<compile_context>
chip_gen: v5e
topology: v5e:2x2
jax: 0.10.0
libtpu: 0.0.40
codegen_flags: <defaults>
</compile_context>

<pallas_src>
import functools
import math

import jax
import jax.numpy as jnp
from jax.experimental import pallas as pl
from jax.experimental.pallas import tpu as pltpu


def _round_up(x, m):
    return (x + m - 1) // m * m


def _choose_tm(M, max_tile=512):
    """Pick an M-tile size.

    Prefers the largest tile <= max_tile that divides M and yields >= 2 tiles (so a
    parallel grid axis can be sharded across both v7x TensorCores); otherwise a single
    full-M tile (block dim == array dim is always layout-legal).  Returns None only for
    large awkward M, in which case the caller pads M.
    """
    if M >= 64:
        for t in (512, 256, 128, 64, 32, 16, 8):
            if t <= max_tile and M % t == 0 and M // t >= 2:
                return t
    if M <= 1024:
        return M
    return None


# ----------------------------------------------------------------------------
# Pallas kernels
# ----------------------------------------------------------------------------

def _mm_bias_kernel(x_ref, w_ref, b_ref, o_ref, *, apply_relu):
    """o = maybe_relu(x @ w + bias); BN scale is pre-folded into w, pad columns are zero."""
    acc = jnp.dot(x_ref[...], w_ref[...], preferred_element_type=jnp.float32)
    y = acc + b_ref[...]
    if apply_relu:
        y = jnp.maximum(y, 0.0)
    o_ref[...] = y.astype(o_ref.dtype)


def matmul_bias(x, w, bias, *, relu=True, out_dtype=jnp.bfloat16):
    """Gridded bf16 MXU matmul with fused bias/ReLU.

    x: (M, K); w: (K, Nout) bf16 with BN scale folded in and output channels already
    zero-padded to a multiple of 128 (where desired); bias: (1, Nout) f32.
    Grid is 1-D over M tiles only, so the weight/bias blocks have constant index maps and
    stay resident in VMEM across the whole M sweep.  K is kept whole per block
    (<= 1440 in this network), so no reduction grid axis is needed.
    """
    M, K = x.shape
    K2, Nout = w.shape
    assert K == K2
    bias = bias.reshape(1, Nout).astype(jnp.float32)
    xb = x.astype(jnp.bfloat16)
    wb = w.astype(jnp.bfloat16)

    tm = _choose_tm(M)
    if tm is None:                     # awkward large M: pad rows (doesn't trigger here)
        M_run = _round_up(M, 512)
        xb = jnp.pad(xb, ((0, M_run - M), (0, 0)))
        tm = 512
    else:
        M_run = M

    cost = pl.CostEstimate(
        flops=2 * M_run * K * Nout,
        transcendentals=0,
        bytes_accessed=2 * (M_run * K + K * Nout + M_run * Nout) + 4 * Nout,
    )

    out = pl.pallas_call(
        functools.partial(_mm_bias_kernel, apply_relu=relu),
        grid=(M_run // tm,),
        in_specs=[
            pl.BlockSpec((tm, K), lambda i: (i, 0)),
            pl.BlockSpec((K, Nout), lambda i: (0, 0)),     # resident across M sweep
            pl.BlockSpec((1, Nout), lambda i: (0, 0)),
        ],
        out_specs=pl.BlockSpec((tm, Nout), lambda i: (i, 0)),
        out_shape=jax.ShapeDtypeStruct((M_run, Nout), out_dtype),
        compiler_params=pltpu.CompilerParams(
            dimension_semantics=("parallel",),
            vmem_limit_bytes=32 * 1024 * 1024,
        ),
        cost_estimate=cost,
    )(xb, wb, bias)

    if M_run != M:
        out = out[:M]
    return out


def _dblock_tail_kernel(a_ref, xb_ref, m_ref, sew1_ref, sew2_ref,
                        w2a_ref, b2a_ref, w1b_ref, b1b_ref, o_ref):
    """Fused DBlock tail for one (batch, spatial-tile) grid point.

    gate   = sigmoid(relu(m_b @ SE_W1) @ SE_W2)                   (SE excitation)
    brancha= relu((a_cat * gate) @ W2a + b2a)                     (SE rescale + conv2a + bn2a)
    branchb= relu(xb_pooled @ W1b + b1b)                          (conv1b + bn1b)
    out    = relu(brancha + branchb)                              (residual add + final ReLU)
    """
    b = pl.program_id(0)

    # SE excitation for all batch rows (tiny matmuls, negligible), then select row b.
    h = jnp.maximum(
        jnp.dot(m_ref[...], sew1_ref[...], preferred_element_type=jnp.float32), 0.0)
    gates = jax.nn.sigmoid(
        jnp.dot(h.astype(sew2_ref.dtype), sew2_ref[...],
                preferred_element_type=jnp.float32))              # (Nb, Cout) f32
    nb = m_ref.shape[0]
    sel = (jax.lax.broadcasted_iota(jnp.int32, (nb, 1), 0) == b).astype(jnp.float32)
    s = jnp.sum(gates * sel, axis=0, keepdims=True)               # (1, Cout)

    # branch_a: per-channel SE gate, conv2a (+ folded bn2a), ReLU   (f32 epilogue math)
    a = a_ref[0].astype(jnp.float32) * s                          # (tm, Cout)
    acc_a = jnp.dot(a.astype(jnp.bfloat16), w2a_ref[...],
                    preferred_element_type=jnp.float32) + b2a_ref[...]
    acc_a = jnp.maximum(acc_a, 0.0)

    # branch_b: conv1b (+ folded bn1b) on the adaptively avg-pooled block input, ReLU
    acc_b = jnp.dot(xb_ref[0], w1b_ref[...],
                    preferred_element_type=jnp.float32) + b1b_ref[...]
    acc_b = jnp.maximum(acc_b, 0.0)

    o_ref[0] = jnp.maximum(acc_a + acc_b, 0.0).astype(o_ref.dtype)


def dblock_tail(a_cat, xb, m, p):
    """a_cat: (N, S2, Cout) bf16; xb: (N, S2, Cin_pad) bf16 pooled input; m: (N, Cout) max-pool.

    Returns (N, S2, Cout_pad) bf16 (channel padding lanes are exactly zero).
    Grid = (batch, spatial tiles); weights/SE params/bias blocks are constant -> resident.
    """
    Nb, S2, Cout = a_cat.shape
    Cin_pad = xb.shape[-1]
    Cout_pad = p['w2a'].shape[1]
    Cr = p['se_w1'].shape[1]

    tm = _choose_tm(S2, max_tile=256)
    assert tm is not None and S2 % tm == 0, "unsupported spatial size for the tail kernel"

    cost = pl.CostEstimate(
        flops=2 * Nb * S2 * (Cout * Cout_pad + Cin_pad * Cout_pad)
        + 4 * Nb * Cout * Cr * (S2 // tm),
        transcendentals=Nb * Cout * (S2 // tm),
        bytes_accessed=2 * (Nb * S2 * (Cout + Cin_pad + Cout_pad)
                            + Cout * Cout_pad + Cin_pad * Cout_pad + 2 * Cout * Cr),
    )

    return pl.pallas_call(
        _dblock_tail_kernel,
        grid=(Nb, S2 // tm),
        in_specs=[
            pl.BlockSpec((1, tm, Cout), lambda b, i: (b, i, 0)),
            pl.BlockSpec((1, tm, Cin_pad), lambda b, i: (b, i, 0)),
            pl.BlockSpec((Nb, Cout), lambda b, i: (0, 0)),
            pl.BlockSpec((Cout, Cr), lambda b, i: (0, 0)),
            pl.BlockSpec((Cr, Cout), lambda b, i: (0, 0)),
            pl.BlockSpec((Cout, Cout_pad), lambda b, i: (0, 0)),
            pl.BlockSpec((1, Cout_pad), lambda b, i: (0, 0)),
            pl.BlockSpec((Cin_pad, Cout_pad), lambda b, i: (0, 0)),
            pl.BlockSpec((1, Cout_pad), lambda b, i: (0, 0)),
        ],
        out_specs=pl.BlockSpec((1, tm, Cout_pad), lambda b, i: (b, i, 0)),
        out_shape=jax.ShapeDtypeStruct((Nb, S2, Cout_pad), jnp.bfloat16),
        compiler_params=pltpu.CompilerParams(
            dimension_semantics=("parallel", "parallel"),
            vmem_limit_bytes=32 * 1024 * 1024,
        ),
        cost_estimate=cost,
    )(a_cat.astype(jnp.bfloat16), xb.astype(jnp.bfloat16), m.astype(jnp.bfloat16),
      p['se_w1'], p['se_w2'], p['w2a'], p['b2a'], p['w1b'], p['b1b'])


# ----------------------------------------------------------------------------
# Plain-JAX glue: im2col, pooling, weight/BN reshaping
# ----------------------------------------------------------------------------

def im2col(x, ksize=3, stride=1, dilation=1, padding=1):
    """x: (N, H, W, C) NHWC -> ((N, Ho, Wo, ksize*ksize*C), Ho, Wo)."""
    N, H, W, C = x.shape
    Ho = (H + 2 * padding - dilation * (ksize - 1) - 1) // stride + 1
    Wo = (W + 2 * padding - dilation * (ksize - 1) - 1) // stride + 1
    xp = jnp.pad(x, ((0, 0), (padding, padding), (padding, padding), (0, 0)))
    cols = []
    for ky in range(ksize):
        for kx in range(ksize):
            ys, xs = ky * dilation, kx * dilation
            patch = xp[:, ys:ys + stride * (Ho - 1) + 1:stride,
                       xs:xs + stride * (Wo - 1) + 1:stride, :]
            cols.append(patch)
    return jnp.concatenate(cols, axis=-1), Ho, Wo


def conv1x1_to_mat(w):      # (Cout, Cin, 1, 1) -> (Cin, Cout)
    return jnp.transpose(w[:, :, 0, 0], (1, 0))


def conv3x3_to_mat(w):      # (Cout, Cin, 3, 3) -> (9*Cin, Cout) matching im2col tap order
    return jnp.transpose(w, (2, 3, 1, 0)).reshape(-1, w.shape[0])


def _fold_bn(w_mat, ch, eps=1e-5):
    """Fold inference-mode BN (PyTorch default init) into the weight matrix + bias."""
    gamma, beta = jnp.ones(ch, jnp.float32), jnp.zeros(ch, jnp.float32)
    mean, var = jnp.zeros(ch, jnp.float32), jnp.ones(ch, jnp.float32)
    scale = gamma / jnp.sqrt(var + eps)
    return w_mat * scale[None, :], beta - mean * scale


def _pad_wb(w_mat, bias, kin_pad=None, nout_pad=None):
    """Zero-pad a (K, Nout) weight + (Nout,) bias once at init (no runtime pad/slice)."""
    K, Nout = w_mat.shape
    kin_pad = K if kin_pad is None else kin_pad
    nout_pad = Nout if nout_pad is None else nout_pad
    w = jnp.zeros((kin_pad, nout_pad), jnp.float32).at[:K, :Nout].set(w_mat)
    b = jnp.zeros((1, nout_pad), jnp.float32).at[0, :Nout].set(bias)
    return w.astype(jnp.bfloat16), b


# ----------------------------------------------------------------------------
# Parameter construction (deterministic, matches module __init__ shapes)
# ----------------------------------------------------------------------------

def _he(key, shape, fan_in):
    return jax.random.normal(key, shape, jnp.float32) * jnp.sqrt(2.0 / fan_in)


def init_dblock(key, d1, d2, groups, cin, cout, stride, out_size):
    keys = jax.random.split(key, 7)
    half = cout // 2
    ratio = groups  # SEBlock(channels=cout, ratio=groups)
    cin_pad, cout_pad = _round_up(cin, 128), _round_up(cout, 128)
    p = {}
    w, b = _fold_bn(conv1x1_to_mat(_he(keys[0], (cout, cin, 1, 1), cin)), cout)
    p['w1a'], p['b1a'] = _pad_wb(w, b, cin_pad, cout_pad)
    w, b = _fold_bn(conv1x1_to_mat(_he(keys[1], (cout, cout, 1, 1), cout)), cout)
    p['w2a'], p['b2a'] = _pad_wb(w, b, cout, cout_pad)     # a_cat input is exactly Cout wide
    w, b = _fold_bn(conv3x3_to_mat(_he(keys[2], (half, half, 3, 3), 9 * half)), half)
    p['wg1'], p['bg1'] = _pad_wb(w, b)                     # group-conv outputs left unpadded
    w, b = _fold_bn(conv3x3_to_mat(_he(keys[3], (half, half, 3, 3), 9 * half)), half)
    p['wg2'], p['bg2'] = _pad_wb(w, b)
    w, b = _fold_bn(conv1x1_to_mat(_he(keys[4], (cout, cin, 1, 1), cin)), cout)
    p['w1b'], p['b1b'] = _pad_wb(w, b, cin_pad, cout_pad)
    # SE linears (PyTorch Linear weight is (out_feat, in_feat), bias=False); stored transposed.
    p['se_w1'] = jnp.transpose(_he(keys[5], (cout // ratio, cout), cout)).astype(jnp.bfloat16)
    p['se_w2'] = jnp.transpose(_he(keys[6], (cout, cout // ratio), cout // ratio)).astype(jnp.bfloat16)
    p.update(d1=d1, d2=d2, stride=stride, out_size=out_size, cin=cin, cout=cout)
    return p


def init_backbone(key, groups=1, im_size=32):
    cfg = [((1, 1), 2, 32, 48, 1), ((1, 1), 2, 48, 128, 3), ((1, 1), 2, 128, 256, 2),
           ((1, 2), 1, 256, 256, 1), ((1, 4), 1, 256, 256, 4), ((1, 14), 1, 256, 256, 6),
           ((1, 14), 1, 256, 320, 1)]
    key, k0, kb = jax.random.split(key, 3)
    # stem: 3x3 stride-2 conv WITH bias, no BN / no ReLU. Output channels padded 32 -> 128.
    w_stem = conv3x3_to_mat(_he(k0, (32, 3, 3, 3), 27))
    b_stem = jax.random.uniform(kb, (32,), jnp.float32,
                                -1.0 / math.sqrt(27), 1.0 / math.sqrt(27))
    stem = {}
    stem['w'], stem['b'] = _pad_wb(w_stem, b_stem, 27, _round_up(32, 128))
    blocks = []
    for i, ((d1, d2), stride, cin, cout, reps) in enumerate(cfg):
        if i == 0:
            size = math.ceil(im_size / 4)
        elif i == 1:
            size = math.ceil(im_size / 8)
        else:
            size = math.ceil(im_size / 16)
        for r in range(reps):
            key, kk = jax.random.split(key)
            if r:
                blocks.append(init_dblock(kk, d1, d2, groups, cout, cout, 1, size))
            else:
                blocks.append(init_dblock(kk, d1, d2, groups, cin, cout, stride, size))
    return stem, blocks


# ----------------------------------------------------------------------------
# Forward pass
# ----------------------------------------------------------------------------

def dblock_forward(x, p):
    """x: (N, H, W, Cin_pad) NHWC bf16 (pad lanes zero) -> (N, S, S, Cout_pad) bf16."""
    N, H, W, Cin_pad = x.shape
    Cout, half = p['cout'], p['cout'] // 2
    Cout_pad = p['w2a'].shape[1]

    # branch_a = relu(bn1a(conv1a(x)))  -- 1x1 conv as matmul (BN folded, output padded)
    a = matmul_bias(x.reshape(N * H * W, Cin_pad), p['w1a'], p['b1a'], relu=True)
    a = a.reshape(N, H, W, Cout_pad)

    # two dilated 3x3 convs on the channel halves (groups=1); im2col stays XLA glue.
    c1, Ho, Wo = im2col(a[..., :half], stride=p['stride'],
                        dilation=p['d1'], padding=p['d1'])
    a1 = matmul_bias(c1.reshape(N * Ho * Wo, 9 * half), p['wg1'], p['bg1'], relu=True)
    c2, _, _ = im2col(a[..., half:Cout], stride=p['stride'],
                      dilation=p['d2'], padding=p['d2'])
    a2 = matmul_bias(c2.reshape(N * Ho * Wo, 9 * half), p['wg2'], p['bg2'], relu=True)
    a_cat = jnp.concatenate([a1, a2], axis=-1).reshape(N, Ho * Wo, Cout)

    # SE squeeze: AdaptiveMaxPool2d(1) -> cheap XLA reduce; excitation / gating run in-kernel.
    m = jnp.max(a_cat, axis=1)                                  # (N, Cout)

    # adaptive avg pool of the block input (out_size divides H on this size schedule)
    S = p['out_size']
    assert Ho == S and Wo == S
    f = H // S
    assert f * S == H, "adaptive avg pool requires out_size | H for this implementation"
    if f == 1:
        xb = x
    else:
        xb = x.reshape(N, S, f, S, f, Cin_pad).astype(jnp.float32).mean(axis=(2, 4))
        xb = xb.astype(jnp.bfloat16)
    xb = xb.reshape(N, S * S, Cin_pad)

    # Fused tail: SE excitation + gate + conv2a/bn2a/ReLU + conv1b/bn1b/ReLU + add + ReLU.
    out = dblock_tail(a_cat, xb, m, p)                          # (N, S*S, Cout_pad)
    return out.reshape(N, S, S, Cout_pad)


def backbone_forward(x_nchw, stem, blocks):
    # NCHW (PyTorch) -> NHWC bf16 for kernel compute
    x = jnp.transpose(x_nchw, (0, 2, 3, 1)).astype(jnp.bfloat16)
    N = x.shape[0]
    # stem conv: 3x3, stride 2, pad 1, with bias, no BN / no ReLU (output channels padded)
    cols, Ho, Wo = im2col(x, stride=2, dilation=1, padding=1)
    y = matmul_bias(cols.reshape(N * Ho * Wo, -1), stem['w'], stem['b'], relu=False)
    x = y.reshape(N, Ho, Wo, stem['w'].shape[1])
    for p in blocks:
        x = dblock_forward(x, p)
    # drop the channel padding once, at the very end; back to NCHW f32 at the boundary
    x = x[..., :blocks[-1]['cout']]
    return jnp.transpose(x, (0, 3, 1, 2)).astype(jnp.float32)


# ----------------------------------------------------------------------------
# Main
# ----------------------------------------------------------------------------

if __name__ == "__main__":
    IM_SIZE = 32  # small spatial size; divisibility matches the module's size schedule
    key = jax.random.PRNGKey(0)
    kp, kx = jax.random.split(key)

    stem, blocks = init_backbone(kp, groups=1, im_size=IM_SIZE)
    x = jax.random.normal(kx, (2, 3, IM_SIZE, IM_SIZE), jnp.float32)  # NCHW like PyTorch

    fwd = jax.jit(lambda inp: backbone_forward(inp, stem, blocks))
    out = fwd(x)
    jax.block_until_ready(out)

    assert out.shape == (2, 320, IM_SIZE // 16, IM_SIZE // 16), out.shape
    assert out.dtype == jnp.float32
    assert bool(jnp.all(jnp.isfinite(out)))
    print("KERNEL_OK")
</pallas_src>

<mosaic_0001>
module attributes {stable_mosaic.version = 11 : i64} {
  func.func @_mm_bias_kernel(%arg0: i32, %arg1: memref<256x27xbf16, #tpu.memory_space<vmem>>, %arg2: memref<27x128xbf16, #tpu.memory_space<vmem>>, %arg3: memref<1x128xf32, #tpu.memory_space<vmem>>, %arg4: memref<256x128xbf16, #tpu.memory_space<vmem>>) attributes {dimension_semantics = [#tpu.dimension_semantics<parallel>], iteration_bounds = array<i64: 2>, scalar_prefetch = 0 : i64, scratch_operands = 0 : i64, tpu.core_type = #tpu.core_type<tc>, window_params = [{transform_indices = @transform_0, window_bounds = array<i64: 256, 27>}, {pipeline_mode = #tpu.pipeline_mode<synchronous>, transform_indices = @transform_1, window_bounds = array<i64: 27, 128>}, {pipeline_mode = #tpu.pipeline_mode<synchronous>, transform_indices = @transform_2, window_bounds = array<i64: 1, 128>}, {transform_indices = @transform_3, window_bounds = array<i64: 256, 128>}]} {
    %c0 = arith.constant 0 : index
    %c0_0 = arith.constant 0 : index
    %0 = vector.load %arg1[%c0, %c0_0] : memref<256x27xbf16, #tpu.memory_space<vmem>>, vector<256x27xbf16>
    %c0_1 = arith.constant 0 : index
    %c0_2 = arith.constant 0 : index
    %1 = vector.load %arg2[%c0_1, %c0_2] : memref<27x128xbf16, #tpu.memory_space<vmem>>, vector<27x128xbf16>
    %cst = arith.constant dense<0.000000e+00> : vector<256x128xf32>
    %2 = tpu.matmul %0, %1, %cst {dimension_numbers = #tpu.dot_dimension_numbers<[1], [0], [0], [1], [0, 0, 1, 1], [], []>} : vector<256x27xbf16>, vector<27x128xbf16>, vector<256x128xf32> -> vector<256x128xf32>
    %c0_3 = arith.constant 0 : index
    %c0_4 = arith.constant 0 : index
    %3 = vector.load %arg3[%c0_3, %c0_4] : memref<1x128xf32, #tpu.memory_space<vmem>>, vector<1x128xf32>
    %4 = vector.broadcast %3 : vector<1x128xf32> to vector<256x128xf32>
    %5 = arith.addf %2, %4 : vector<256x128xf32>
    %6 = arith.truncf %5 : vector<256x128xf32> to vector<256x128xbf16>
    %c0_5 = arith.constant 0 : index
    %c0_6 = arith.constant 0 : index
    %7 = vector.load %arg4[%c0_5, %c0_6] : memref<256x128xbf16, #tpu.memory_space<vmem>>, vector<256x128xbf16>
    tpu.vector_store %arg4[%c0_5, %c0_6], %6 {strides = array<i32>} : memref<256x128xbf16, #tpu.memory_space<vmem>>, vector<256x128xbf16>,
    return
  }
  func.func @transform_0(%arg0: i32) -> (i32, i32) {
    %c0_i32 = arith.constant 0 : i32
    %c0_i32_0 = arith.constant 0 : i32
    return %arg0, %c0_i32 : i32, i32
  }
  func.func @transform_1(%arg0: i32) -> (i32, i32) {
    %c0_i32 = arith.constant 0 : i32
    %c0_i32_0 = arith.constant 0 : i32
    %c0_i32_1 = arith.constant 0 : i32
    return %c0_i32, %c0_i32_0 : i32, i32
  }
  func.func @transform_2(%arg0: i32) -> (i32, i32) {
    %c0_i32 = arith.constant 0 : i32
    %c0_i32_0 = arith.constant 0 : i32
    %c0_i32_1 = arith.constant 0 : i32
    return %c0_i32, %c0_i32_0 : i32, i32
  }
  func.func @transform_3(%arg0: i32) -> (i32, i32) {
    %c0_i32 = arith.constant 0 : i32
    %c0_i32_0 = arith.constant 0 : i32
    return %arg0, %c0_i32 : i32, i32
  }
}

module attributes {stable_mosaic.version = 11 : i64} {
  func.func @_mm_bias_kernel(%arg0: i32, %arg1: memref<256x128xbf16, #tpu.memory_space<vmem>>, %arg2: memref<128x128xbf16, #tpu.memory_space<vmem>>, %arg3: memref<1x128xf32, #tpu.memory_space<vmem>>, %arg4: memref<256x128xbf16, #tpu.memory_space<vmem>>) attributes {dimension_semantics = [#tpu.dimension_semantics<parallel>], iteration_bounds = array<i64: 2>, scalar_prefetch = 0 : i64, scratch_operands = 0 : i64, tpu.core_type = #tpu.core_type<tc>, window_params = [{transform_indices = @transform_0, window_bounds = array<i64: 256, 128>}, {pipeline_mode = #tpu.pipeline_mode<synchronous>, transform_indices = @transform_1, window_bounds = array<i64: 128, 128>}, {pipeline_mode = #tpu.pipeline_mode<synchronous>, transform_indices = @transform_2, window_bounds = array<i64: 1, 128>}, {transform_indices = @transform_3, window_bounds = array<i64: 256, 128>}]} {
    %c0 = arith.constant 0 : index
    %c0_0 = arith.constant 0 : index
    %0 = vector.load %arg1[%c0, %c0_0] : memref<256x128xbf16, #tpu.memory_space<vmem>>, vector<256x128xbf16>
    %c0_1 = arith.constant 0 : index
    %c0_2 = arith.constant 0 : index
    %1 = vector.load %arg2[%c0_1, %c0_2] : memref<128x128xbf16, #tpu.memory_space<vmem>>, vector<128x128xbf16>
    %cst = arith.constant dense<0.000000e+00> : vector<256x128xf32>
    %2 = tpu.matmul %0, %1, %cst {dimension_numbers = #tpu.dot_dimension_numbers<[1], [0], [0], [1], [0, 0, 1, 1], [], []>} : vector<256x128xbf16>, vector<128x128xbf16>, vector<256x128xf32> -> vector<256x128xf32>
    %c0_3 = arith.constant 0 : index
    %c0_4 = arith.constant 0 : index
    %3 = vector.load %arg3[%c0_3, %c0_4] : memref<1x128xf32, #tpu.memory_space<vmem>>, vector<1x128xf32>
    %4 = vector.broadcast %3 : vector<1x128xf32> to vector<256x128xf32>
    %5 = arith.addf %2, %4 : vector<256x128xf32>
    %cst_5 = arith.constant 0.000000e+00 : f32
    %6 = vector.broadcast %cst_5 : f32 to vector<256x128xf32>
    %7 = arith.maximumf %5, %6 : vector<256x128xf32>
    %8 = arith.truncf %7 : vector<256x128xf32> to vector<256x128xbf16>
    %c0_6 = arith.constant 0 : index
    %c0_7 = arith.constant 0 : index
    %9 = vector.load %arg4[%c0_6, %c0_7] : memref<256x128xbf16, #tpu.memory_space<vmem>>, vector<256x128xbf16>
    tpu.vector_store %arg4[%c0_6, %c0_7], %8 {strides = array<i32>} : memref<256x128xbf16, #tpu.memory_space<vmem>>, vector<256x128xbf16>,
    return
  }
  func.func @transform_0(%arg0: i32) -> (i32, i32) {
    %c0_i32 = arith.constant 0 : i32
    %c0_i32_0 = arith.constant 0 : i32
    return %arg0, %c0_i32 : i32, i32
  }
  func.func @transform_1(%arg0: i32) -> (i32, i32) {
    %c0_i32 = arith.constant 0 : i32
    %c0_i32_0 = arith.constant 0 : i32
    %c0_i32_1 = arith.constant 0 : i32
    return %c0_i32, %c0_i32_0 : i32, i32
  }
  func.func @transform_2(%arg0: i32) -> (i32, i32) {
    %c0_i32 = arith.constant 0 : i32
    %c0_i32_0 = arith.constant 0 : i32
    %c0_i32_1 = arith.constant 0 : i32
    return %c0_i32, %c0_i32_0 : i32, i32
  }
  func.func @transform_3(%arg0: i32) -> (i32, i32) {
    %c0_i32 = arith.constant 0 : i32
    %c0_i32_0 = arith.constant 0 : i32
    return %arg0, %c0_i32 : i32, i32
  }
}

module attributes {stable_mosaic.version = 11 : i64} {
  func.func @_mm_bias_kernel(%arg0: i32, %arg1: memref<64x216xbf16, #tpu.memory_space<vmem>>, %arg2: memref<216x24xbf16, #tpu.memory_space<vmem>>, %arg3: memref<1x24xf32, #tpu.memory_space<vmem>>, %arg4: memref<64x24xbf16, #tpu.memory_space<vmem>>) attributes {dimension_semantics = [#tpu.dimension_semantics<parallel>], iteration_bounds = array<i64: 2>, scalar_prefetch = 0 : i64, scratch_operands = 0 : i64, tpu.core_type = #tpu.core_type<tc>, window_params = [{transform_indices = @transform_0, window_bounds = array<i64: 64, 216>}, {pipeline_mode = #tpu.pipeline_mode<synchronous>, transform_indices = @transform_1, window_bounds = array<i64: 216, 24>}, {pipeline_mode = #tpu.pipeline_mode<synchronous>, transform_indices = @transform_2, window_bounds = array<i64: 1, 24>}, {transform_indices = @transform_3, window_bounds = array<i64: 64, 24>}]} {
    %c0 = arith.constant 0 : index
    %c0_0 = arith.constant 0 : index
    %0 = vector.load %arg1[%c0, %c0_0] : memref<64x216xbf16, #tpu.memory_space<vmem>>, vector<64x216xbf16>
    %c0_1 = arith.constant 0 : index
    %c0_2 = arith.constant 0 : index
    %1 = vector.load %arg2[%c0_1, %c0_2] : memref<216x24xbf16, #tpu.memory_space<vmem>>, vector<216x24xbf16>
    %cst = arith.constant dense<0.000000e+00> : vector<64x24xf32>
    %2 = tpu.matmul %0, %1, %cst {dimension_numbers = #tpu.dot_dimension_numbers<[1], [0], [0], [1], [0, 0, 1, 1], [], []>} : vector<64x216xbf16>, vector<216x24xbf16>, vector<64x24xf32> -> vector<64x24xf32>
    %c0_3 = arith.constant 0 : index
    %c0_4 = arith.constant 0 : index
    %3 = vector.load %arg3[%c0_3, %c0_4] : memref<1x24xf32, #tpu.memory_space<vmem>>, vector<1x24xf32>
    %4 = vector.broadcast %3 : vector<1x24xf32> to vector<64x24xf32>
    %5 = arith.addf %2, %4 : vector<64x24xf32>
    %cst_5 = arith.constant 0.000000e+00 : f32
    %6 = vector.broadcast %cst_5 : f32 to vector<64x24xf32>
    %7 = arith.maximumf %5, %6 : vector<64x24xf32>
    %8 = arith.truncf %7 : vector<64x24xf32> to vector<64x24xbf16>
    %c0_6 = arith.constant 0 : index
    %c0_7 = arith.constant 0 : index
    %9 = vector.load %arg4[%c0_6, %c0_7] : memref<64x24xbf16, #tpu.memory_space<vmem>>, vector<64x24xbf16>
    tpu.vector_store %arg4[%c0_6, %c0_7], %8 {strides = array<i32>} : memref<64x24xbf16, #tpu.memory_space<vmem>>, vector<64x24xbf16>,
    return
  }
  func.func @transform_0(%arg0: i32) -> (i32, i32) {
    %c0_i32 = arith.constant 0 : i32
    %c0_i32_0 = arith.constant 0 : i32
    return %arg0, %c0_i32 : i32, i32
  }
  func.func @transform_1(%arg0: i32) -> (i32, i32) {
    %c0_i32 = arith.constant 0 : i32
    %c0_i32_0 = arith.constant 0 : i32
    %c0_i32_1 = arith.constant 0 : i32
    return %c0_i32, %c0_i32_0 : i32, i32
  }
  func.func @transform_2(%arg0: i32) -> (i32, i32) {
    %c0_i32 = arith.constant 0 : i32
    %c0_i32_0 = arith.constant 0 : i32
    %c0_i32_1 = arith.constant 0 : i32
    return %c0_i32, %c0_i32_0 : i32, i32
  }
  func.func @transform_3(%arg0: i32) -> (i32, i32) {
    %c0_i32 = arith.constant 0 : i32
    %c0_i32_0 = arith.constant 0 : i32
    return %arg0, %c0_i32 : i32, i32
  }
}

module attributes {stable_mosaic.version = 11 : i64} {
  func.func @_mm_bias_kernel(%arg0: i32, %arg1: memref<64x128xbf16, #tpu.memory_space<vmem>>, %arg2: memref<128x128xbf16, #tpu.memory_space<vmem>>, %arg3: memref<1x128xf32, #tpu.memory_space<vmem>>, %arg4: memref<64x128xbf16, #tpu.memory_space<vmem>>) attributes {dimension_semantics = [#tpu.dimension_semantics<parallel>], iteration_bounds = array<i64: 2>, scalar_prefetch = 0 : i64, scratch_operands = 0 : i64, tpu.core_type = #tpu.core_type<tc>, window_params = [{transform_indices = @transform_0, window_bounds = array<i64: 64, 128>}, {pipeline_mode = #tpu.pipeline_mode<synchronous>, transform_indices = @transform_1, window_bounds = array<i64: 128, 128>}, {pipeline_mode = #tpu.pipeline_mode<synchronous>, transform_indices = @transform_2, window_bounds = array<i64: 1, 128>}, {transform_indices = @transform_3, window_bounds = array<i64: 64, 128>}]} {
    %c0 = arith.constant 0 : index
    %c0_0 = arith.constant 0 : index
    %0 = vector.load %arg1[%c0, %c0_0] : memref<64x128xbf16, #tpu.memory_space<vmem>>, vector<64x128xbf16>
    %c0_1 = arith.constant 0 : index
    %c0_2 = arith.constant 0 : index
    %1 = vector.load %arg2[%c0_1, %c0_2] : memref<128x128xbf16, #tpu.memory_space<vmem>>, vector<128x128xbf16>
    %cst = arith.constant dense<0.000000e+00> : vector<64x128xf32>
    %2 = tpu.matmul %0, %1, %cst {dimension_numbers = #tpu.dot_dimension_numbers<[1], [0], [0], [1], [0, 0, 1, 1], [], []>} : vector<64x128xbf16>, vector<128x128xbf16>, vector<64x128xf32> -> vector<64x128xf32>
    %c0_3 = arith.constant 0 : index
    %c0_4 = arith.constant 0 : index
    %3 = vector.load %arg3[%c0_3, %c0_4] : memref<1x128xf32, #tpu.memory_space<vmem>>, vector<1x128xf32>
    %4 = vector.broadcast %3 : vector<1x128xf32> to vector<64x128xf32>
    %5 = arith.addf %2, %4 : vector<64x128xf32>
    %cst_5 = arith.constant 0.000000e+00 : f32
    %6 = vector.broadcast %cst_5 : f32 to vector<64x128xf32>
    %7 = arith.maximumf %5, %6 : vector<64x128xf32>
    %8 = arith.truncf %7 : vector<64x128xf32> to vector<64x128xbf16>
    %c0_6 = arith.constant 0 : index
    %c0_7 = arith.constant 0 : index
    %9 = vector.load %arg4[%c0_6, %c0_7] : memref<64x128xbf16, #tpu.memory_space<vmem>>, vector<64x128xbf16>
    tpu.vector_store %arg4[%c0_6, %c0_7], %8 {strides = array<i32>} : memref<64x128xbf16, #tpu.memory_space<vmem>>, vector<64x128xbf16>,
    return
  }
  func.func @transform_0(%arg0: i32) -> (i32, i32) {
    %c0_i32 = arith.constant 0 : i32
    %c0_i32_0 = arith.constant 0 : i32
    return %arg0, %c0_i32 : i32, i32
  }
  func.func @transform_1(%arg0: i32) -> (i32, i32) {
    %c0_i32 = arith.constant 0 : i32
    %c0_i32_0 = arith.constant 0 : i32
    %c0_i32_1 = arith.constant 0 : i32
    return %c0_i32, %c0_i32_0 : i32, i32
  }
  func.func @transform_2(%arg0: i32) -> (i32, i32) {
    %c0_i32 = arith.constant 0 : i32
    %c0_i32_0 = arith.constant 0 : i32
    %c0_i32_1 = arith.constant 0 : i32
    return %c0_i32, %c0_i32_0 : i32, i32
  }
  func.func @transform_3(%arg0: i32) -> (i32, i32) {
    %c0_i32 = arith.constant 0 : i32
    %c0_i32_0 = arith.constant 0 : i32
    return %arg0, %c0_i32 : i32, i32
  }
}

module attributes {stable_mosaic.version = 11 : i64} {
  func.func @_dblock_tail_kernel(%arg0: i32, %arg1: i32, %arg2: memref<1x32x48xbf16, #tpu.memory_space<vmem>>, %arg3: memref<1x32x128xbf16, #tpu.memory_space<vmem>>, %arg4: memref<2x48xbf16, #tpu.memory_space<vmem>>, %arg5: memref<48x48xbf16, #tpu.memory_space<vmem>>, %arg6: memref<48x48xbf16, #tpu.memory_space<vmem>>, %arg7: memref<48x128xbf16, #tpu.memory_space<vmem>>, %arg8: memref<1x128xf32, #tpu.memory_space<vmem>>, %arg9: memref<128x128xbf16, #tpu.memory_space<vmem>>, %arg10: memref<1x128xf32, #tpu.memory_space<vmem>>, %arg11: memref<1x32x128xbf16, #tpu.memory_space<vmem>>) attributes {dimension_semantics = [#tpu.dimension_semantics<parallel>, #tpu.dimension_semantics<parallel>], iteration_bounds = array<i64: 2, 2>, scalar_prefetch = 0 : i64, scratch_operands = 0 : i64, tpu.core_type = #tpu.core_type<tc>, window_params = [{transform_indices = @transform_0, window_bounds = array<i64: 1, 32, 48>}, {transform_indices = @transform_1, window_bounds = array<i64: 1, 32, 128>}, {pipeline_mode = #tpu.pipeline_mode<synchronous>, transform_indices = @transform_2, window_bounds = array<i64: 2, 48>}, {pipeline_mode = #tpu.pipeline_mode<synchronous>, transform_indices = @transform_3, window_bounds = array<i64: 48, 48>}, {pipeline_mode = #tpu.pipeline_mode<synchronous>, transform_indices = @transform_4, window_bounds = array<i64: 48, 48>}, {pipeline_mode = #tpu.pipeline_mode<synchronous>, transform_indices = @transform_5, window_bounds = array<i64: 48, 128>}, {pipeline_mode = #tpu.pipeline_mode<synchronous>, transform_indices = @transform_6, window_bounds = array<i64: 1, 128>}, {pipeline_mode = #tpu.pipeline_mode<synchronous>, transform_indices = @transform_7, window_bounds = array<i64: 128, 128>}, {pipeline_mode = #tpu.pipeline_mode<synchronous>, transform_indices = @transform_8, window_bounds = array<i64: 1, 128>}, {transform_indices = @transform_9, window_bounds = array<i64: 1, 32, 128>}]} {
    %c0 = arith.constant 0 : index
    %c0_0 = arith.constant 0 : index
    %0 = vector.load %arg4[%c0, %c0_0] : memref<2x48xbf16, #tpu.memory_space<vmem>>, vector<2x48xbf16>
    %c0_1 = arith.constant 0 : index
    %c0_2 = arith.constant 0 : index
    %1 = vector.load %arg5[%c0_1, %c0_2] : memref<48x48xbf16, #tpu.memory_space<vmem>>, vector<48x48xbf16>
    %cst = arith.constant dense<0.000000e+00> : vector<2x48xf32>
    %2 = tpu.matmul %0, %1, %cst {dimension_numbers = #tpu.dot_dimension_numbers<[1], [0], [0], [1], [0, 0, 1, 1], [], []>} : vector<2x48xbf16>, vector<48x48xbf16>, vector<2x48xf32> -> vector<2x48xf32>
    %cst_3 = arith.constant 0.000000e+00 : f32
    %3 = vector.broadcast %cst_3 : f32 to vector<2x48xf32>
    %4 = arith.maximumf %2, %3 : vector<2x48xf32>
    %5 = arith.truncf %4 : vector<2x48xf32> to vector<2x48xbf16>
    %c0_4 = arith.constant 0 : index
    %c0_5 = arith.constant 0 : index
    %6 = vector.load %arg6[%c0_4, %c0_5] : memref<48x48xbf16, #tpu.memory_space<vmem>>, vector<48x48xbf16>
    %cst_6 = arith.constant dense<0.000000e+00> : vector<2x48xf32>
    %7 = tpu.matmul %5, %6, %cst_6 {dimension_numbers = #tpu.dot_dimension_numbers<[1], [0], [0], [1], [0, 0, 1, 1], [], []>} : vector<2x48xbf16>, vector<48x48xbf16>, vector<2x48xf32> -> vector<2x48xf32>
    %8 = arith.negf %7 : vector<2x48xf32>
    %9 = math.exp %8 : vector<2x48xf32>
    %cst_7 = arith.constant 1.000000e+00 : f32
    %10 = vector.broadcast %cst_7 : f32 to vector<2x48xf32>
    %11 = arith.addf %10, %9 : vector<2x48xf32>
    %12 = arith.divf %10, %11 : vector<2x48xf32>
    %13 = tpu.iota {dimensions = array<i32: 0>} : vector<2x1xi32>
    %14 = vector.broadcast %arg0 : i32 to vector<2x1xi32>
    %15 = arith.cmpi eq, %13, %14 : vector<2x1xi32>
    %16 = arith.extui %15 : vector<2x1xi1> to vector<2x1xi32>
    %17 = arith.sitofp %16 : vector<2x1xi32> to vector<2x1xf32>
    %18 = vector.broadcast %17 : vector<2x1xf32> to vector<2x48xf32>
    %19 = arith.mulf %12, %18 : vector<2x48xf32>
    %cst_8 = arith.constant dense<0.000000e+00> : vector<48xf32>
    %20 = vector.multi_reduction <add>, %19, %cst_8 [0] : vector<2x48xf32> to vector<48xf32>
    %21 = vector.shape_cast %20 : vector<48xf32> to vector<1x48xf32>
    %c0_9 = arith.constant 0 : index
    %c0_10 = arith.constant 0 : index
    %c0_11 = arith.constant 0 : index
    %22 = vector.load %arg2[%c0_9, %c0_10, %c0_11] : memref<1x32x48xbf16, #tpu.memory_space<vmem>>, vector<1x32x48xbf16>
    %23 = vector.shape_cast %22 : vector<1x32x48xbf16> to vector<32x48xbf16>
    %24 = arith.extf %23 : vector<32x48xbf16> to vector<32x48xf32>
    %25 = vector.broadcast %21 : vector<1x48xf32> to vector<32x48xf32>
    %26 = arith.mulf %24, %25 : vector<32x48xf32>
    %27 = arith.truncf %26 : vector<32x48xf32> to vector<32x48xbf16>
    %c0_12 = arith.constant 0 : index
    %c0_13 = arith.constant 0 : index
    %28 = vector.load %arg7[%c0_12, %c0_13] : memref<48x128xbf16, #tpu.memory_space<vmem>>, vector<48x128xbf16>
    %cst_14 = arith.constant dense<0.000000e+00> : vector<32x128xf32>
    %29 = tpu.matmul %27, %28, %cst_14 {dimension_numbers = #tpu.dot_dimension_numbers<[1], [0], [0], [1], [0, 0, 1, 1], [], []>} : vector<32x48xbf16>, vector<48x128xbf16>, vector<32x128xf32> -> vector<32x128xf32>
    %c0_15 = arith.constant 0 : index
    %c0_16 = arith.constant 0 : index
    %30 = vector.load %arg8[%c0_15, %c0_16] : memref<1x128xf32, #tpu.memory_space<vmem>>, vector<1x128xf32>
    %31 = vector.broadcast %30 : vector<1x128xf32> to vector<32x128xf32>
    %32 = arith.addf %29, %31 : vector<32x128xf32>
    %cst_17 = arith.constant 0.000000e+00 : f32
    %33 = vector.broadcast %cst_17 : f32 to vector<32x128xf32>
    %34 = arith.maximumf %32, %33 : vector<32x128xf32>
    %c0_18 = arith.constant 0 : index
    %c0_19 = arith.constant 0 : index
    %c0_20 = arith.constant 0 : index
    %35 = vector.load %arg3[%c0_18, %c0_19, %c0_20] : memref<1x32x128xbf16, #tpu.memory_space<vmem>>, vector<1x32x128xbf16>
    %36 = vector.shape_cast %35 : vector<1x32x128xbf16> to vector<32x128xbf16>
    %c0_21 = arith.constant 0 : index
    %c0_22 = arith.constant 0 : index
    %37 = vector.load %arg9[%c0_21, %c0_22] : memref<128x128xbf16, #tpu.memory_space<vmem>>, vector<128x128xbf16>
    %cst_23 = arith.constant dense<0.000000e+00> : vector<32x128xf32>
    %38 = tpu.matmul %36, %37, %cst_23 {dimension_numbers = #tpu.dot_dimension_numbers<[1], [0], [0], [1], [0, 0, 1, 1], [], []>} : vector<32x128xbf16>, vector<128x128xbf16>, vector<32x128xf32> -> vector<32x128xf32>
    %c0_24 = arith.constant 0 : index
    %c0_25 = arith.constant 0 : index
    %39 = vector.load %arg10[%c0_24, %c0_25] : memref<1x128xf32, #tpu.memory_space<vmem>>, vector<1x128xf32>
    %40 = vector.broadcast %39 : vector<1x128xf32> to vector<32x128xf32>
    %41 = arith.addf %38, %40 : vector<32x128xf32>
    %cst_26 = arith.constant 0.000000e+00 : f32
    %42 = vector.broadcast %cst_26 : f32 to vector<32x128xf32>
    %43 = arith.maximumf %41, %42 : vector<32x128xf32>
    %44 = arith.addf %34, %43 : vector<32x128xf32>
    %cst_27 = arith.constant 0.000000e+00 : f32
    %45 = vector.broadcast %cst_27 : f32 to vector<32x128xf32>
    %46 = arith.maximumf %44, %45 : vector<32x128xf32>
    %47 = arith.truncf %46 : vector<32x128xf32> to vector<32x128xbf16>
    %c0_28 = arith.constant 0 : index
    %c0_29 = arith.constant 0 : index
    %c0_30 = arith.constant 0 : index
    %48 = vector.load %arg11[%c0_28, %c0_29, %c0_30] : memref<1x32x128xbf16, #tpu.memory_space<vmem>>, vector<1x32x128xbf16>
    %49 = vector.shape_cast %48 : vector<1x32x128xbf16> to vector<32x128xbf16>
    %50 = vector.shape_cast %47 : vector<32x128xbf16> to vector<1x32x128xbf16>
    tpu.vector_store %arg11[%c0_28, %c0_29, %c0_30], %50 {strides = array<i32>} : memref<1x32x128xbf16, #tpu.memory_space<vmem>>, vector<1x32x128xbf16>,
    return
  }
  func.func @transform_0(%arg0: i32, %arg1: i32) -> (i32, i32, i32) {
    %c0_i32 = arith.constant 0 : i32
    %c0_i32_0 = arith.constant 0 : i32
    return %arg0, %arg1, %c0_i32 : i32, i32, i32
  }
  func.func @transform_1(%arg0: i32, %arg1: i32) -> (i32, i32, i32) {
    %c0_i32 = arith.constant 0 : i32
    %c0_i32_0 = arith.constant 0 : i32
    return %arg0, %arg1, %c0_i32 : i32, i32, i32
  }
  func.func @transform_2(%arg0: i32, %arg1: i32) -> (i32, i32) {
    %c0_i32 = arith.constant 0 : i32
    %c0_i32_0 = arith.constant 0 : i32
    %c0_i32_1 = arith.constant 0 : i32
    return %c0_i32, %c0_i32_0 : i32, i32
  }
  func.func @transform_3(%arg0: i32, %arg1: i32) -> (i32, i32) {
    %c0_i32 = arith.constant 0 : i32
    %c0_i32_0 = arith.constant 0 : i32
    %c0_i32_1 = arith.constant 0 : i32
    return %c0_i32, %c0_i32_0 : i32, i32
  }
  func.func @transform_4(%arg0: i32, %arg1: i32) -> (i32, i32) {
    %c0_i32 = arith.constant 0 : i32
    %c0_i32_0 = arith.constant 0 : i32
    %c0_i32_1 = arith.constant 0 : i32
    return %c0_i32, %c0_i32_0 : i32, i32
  }
  func.func @transform_5(%arg0: i32, %arg1: i32) -> (i32, i32) {
    %c0_i32 = arith.constant 0 : i32
    %c0_i32_0 = arith.constant 0 : i32
    %c0_i32_1 = arith.constant 0 : i32
    return %c0_i32, %c0_i32_0 : i32, i32
  }
  func.func @transform_6(%arg0: i32, %arg1: i32) -> (i32, i32) {
    %c0_i32 = arith.constant 0 : i32
    %c0_i32_0 = arith.constant 0 : i32
    %c0_i32_1 = arith.constant 0 : i32
    return %c0_i32, %c0_i32_0 : i32, i32
  }
  func.func @transform_7(%arg0: i32, %arg1: i32) -> (i32, i32) {
    %c0_i32 = arith.constant 0 : i32
    %c0_i32_0 = arith.constant 0 : i32
    %c0_i32_1 = arith.constant 0 : i32
    return %c0_i32, %c0_i32_0 : i32, i32
  }
  func.func @transform_8(%arg0: i32, %arg1: i32) -> (i32, i32) {
    %c0_i32 = arith.constant 0 : i32
    %c0_i32_0 = arith.constant 0 : i32
    %c0_i32_1 = arith.constant 0 : i32
    return %c0_i32, %c0_i32_0 : i32, i32
  }
  func.func @transform_9(%arg0: i32, %arg1: i32) -> (i32, i32, i32) {
    %c0_i32 = arith.constant 0 : i32
    %c0_i32_0 = arith.constant 0 : i32
    return %arg0, %arg1, %c0_i32 : i32, i32, i32
  }
}

module attributes {stable_mosaic.version = 11 : i64} {
  func.func @_mm_bias_kernel(%arg0: i32, %arg1: memref<32x576xbf16, #tpu.memory_space<vmem>>, %arg2: memref<576x64xbf16, #tpu.memory_space<vmem>>, %arg3: memref<1x64xf32, #tpu.memory_space<vmem>>, %arg4: memref<32x64xbf16, #tpu.memory_space<vmem>>) attributes {dimension_semantics = [#tpu.dimension_semantics<parallel>], iteration_bounds = array<i64: 1>, scalar_prefetch = 0 : i64, scratch_operands = 0 : i64, tpu.core_type = #tpu.core_type<tc>, window_params = [{transform_indices = @transform_0, window_bounds = array<i64: 32, 576>}, {pipeline_mode = #tpu.pipeline_mode<synchronous>, transform_indices = @transform_1, window_bounds = array<i64: 576, 64>}, {pipeline_mode = #tpu.pipeline_mode<synchronous>, transform_indices = @transform_2, window_bounds = array<i64: 1, 64>}, {transform_indices = @transform_3, window_bounds = array<i64: 32, 64>}]} {
    %c0 = arith.constant 0 : index
    %c0_0 = arith.constant 0 : index
    %0 = vector.load %arg1[%c0, %c0_0] : memref<32x576xbf16, #tpu.memory_space<vmem>>, vector<32x576xbf16>
    %c0_1 = arith.constant 0 : index
    %c0_2 = arith.constant 0 : index
    %1 = vector.load %arg2[%c0_1, %c0_2] : memref<576x64xbf16, #tpu.memory_space<vmem>>, vector<576x64xbf16>
    %cst = arith.constant dense<0.000000e+00> : vector<32x64xf32>
    %2 = tpu.matmul %0, %1, %cst {dimension_numbers = #tpu.dot_dimension_numbers<[1], [0], [0], [1], [0, 0, 1, 1], [], []>} : vector<32x576xbf16>, vector<576x64xbf16>, vector<32x64xf32> -> vector<32x64xf32>
    %c0_3 = arith.constant 0 : index
    %c0_4 = arith.constant 0 : index
    %3 = vector.load %arg3[%c0_3, %c0_4] : memref<1x64xf32, #tpu.memory_space<vmem>>, vector<1x64xf32>
    %4 = vector.broadcast %3 : vector<1x64xf32> to vector<32x64xf32>
    %5 = arith.addf %2, %4 : vector<32x64xf32>
    %cst_5 = arith.constant 0.000000e+00 : f32
    %6 = vector.broadcast %cst_5 : f32 to vector<32x64xf32>
    %7 = arith.maximumf %5, %6 : vector<32x64xf32>
    %8 = arith.truncf %7 : vector<32x64xf32> to vector<32x64xbf16>
    %c0_6 = arith.constant 0 : index
    %c0_7 = arith.constant 0 : index
    %9 = vector.load %arg4[%c0_6, %c0_7] : memref<32x64xbf16, #tpu.memory_space<vmem>>, vector<32x64xbf16>
    tpu.vector_store %arg4[%c0_6, %c0_7], %8 {strides = array<i32>} : memref<32x64xbf16, #tpu.memory_space<vmem>>, vector<32x64xbf16>,
    return
  }
  func.func @transform_0(%arg0: i32) -> (i32, i32) {
    %c0_i32 = arith.constant 0 : i32
    %c0_i32_0 = arith.constant 0 : i32
    return %arg0, %c0_i32 : i32, i32
  }
  func.func @transform_1(%arg0: i32) -> (i32, i32) {
    %c0_i32 = arith.constant 0 : i32
    %c0_i32_0 = arith.constant 0 : i32
    %c0_i32_1 = arith.constant 0 : i32
    return %c0_i32, %c0_i32_0 : i32, i32
  }
  func.func @transform_2(%arg0: i32) -> (i32, i32) {
    %c0_i32 = arith.constant 0 : i32
    %c0_i32_0 = arith.constant 0 : i32
    %c0_i32_1 = arith.constant 0 : i32
    return %c0_i32, %c0_i32_0 : i32, i32
  }
  func.func @transform_3(%arg0: i32) -> (i32, i32) {
    %c0_i32 = arith.constant 0 : i32
    %c0_i32_0 = arith.constant 0 : i32
    return %arg0, %c0_i32 : i32, i32
  }
}

module attributes {stable_mosaic.version = 11 : i64} {
  func.func @_dblock_tail_kernel(%arg0: i32, %arg1: i32, %arg2: memref<1x16x128xbf16, #tpu.memory_space<vmem>>, %arg3: memref<1x16x128xbf16, #tpu.memory_space<vmem>>, %arg4: memref<2x128xbf16, #tpu.memory_space<vmem>>, %arg5: memref<128x128xbf16, #tpu.memory_space<vmem>>, %arg6: memref<128x128xbf16, #tpu.memory_space<vmem>>, %arg7: memref<128x128xbf16, #tpu.memory_space<vmem>>, %arg8: memref<1x128xf32, #tpu.memory_space<vmem>>, %arg9: memref<128x128xbf16, #tpu.memory_space<vmem>>, %arg10: memref<1x128xf32, #tpu.memory_space<vmem>>, %arg11: memref<1x16x128xbf16, #tpu.memory_space<vmem>>) attributes {dimension_semantics = [#tpu.dimension_semantics<parallel>, #tpu.dimension_semantics<parallel>], iteration_bounds = array<i64: 2, 1>, scalar_prefetch = 0 : i64, scratch_operands = 0 : i64, tpu.core_type = #tpu.core_type<tc>, window_params = [{transform_indices = @transform_0, window_bounds = array<i64: 1, 16, 128>}, {transform_indices = @transform_1, window_bounds = array<i64: 1, 16, 128>}, {pipeline_mode = #tpu.pipeline_mode<synchronous>, transform_indices = @transform_2, window_bounds = array<i64: 2, 128>}, {pipeline_mode = #tpu.pipeline_mode<synchronous>, transform_indices = @transform_3, window_bounds = array<i64: 128, 128>}, {pipeline_mode = #tpu.pipeline_mode<synchronous>, transform_indices = @transform_4, window_bounds = array<i64: 128, 128>}, {pipeline_mode = #tpu.pipeline_mode<synchronous>, transform_indices = @transform_5, window_bounds = array<i64: 128, 128>}, {pipeline_mode = #tpu.pipeline_mode<synchronous>, transform_indices = @transform_6, window_bounds = array<i64: 1, 128>}, {pipeline_mode = #tpu.pipeline_mode<synchronous>, transform_indices = @transform_7, window_bounds = array<i64: 128, 128>}, {pipeline_mode = #tpu.pipeline_mode<synchronous>, transform_indices = @transform_8, window_bounds = array<i64: 1, 128>}, {transform_indices = @transform_9, window_bounds = array<i64: 1, 16, 128>}]} {
    %c0 = arith.constant 0 : index
    %c0_0 = arith.constant 0 : index
    %0 = vector.load %arg4[%c0, %c0_0] : memref<2x128xbf16, #tpu.memory_space<vmem>>, vector<2x128xbf16>
    %c0_1 = arith.constant 0 : index
    %c0_2 = arith.constant 0 : index
    %1 = vector.load %arg5[%c0_1, %c0_2] : memref<128x128xbf16, #tpu.memory_space<vmem>>, vector<128x128xbf16>
    %cst = arith.constant dense<0.000000e+00> : vector<2x128xf32>
    %2 = tpu.matmul %0, %1, %cst {dimension_numbers = #tpu.dot_dimension_numbers<[1], [0], [0], [1], [0, 0, 1, 1], [], []>} : vector<2x128xbf16>, vector<128x128xbf16>, vector<2x128xf32> -> vector<2x128xf32>
    %cst_3 = arith.constant 0.000000e+00 : f32
    %3 = vector.broadcast %cst_3 : f32 to vector<2x128xf32>
    %4 = arith.maximumf %2, %3 : vector<2x128xf32>
    %5 = arith.truncf %4 : vector<2x128xf32> to vector<2x128xbf16>
    %c0_4 = arith.constant 0 : index
    %c0_5 = arith.constant 0 : index
    %6 = vector.load %arg6[%c0_4, %c0_5] : memref<128x128xbf16, #tpu.memory_space<vmem>>, vector<128x128xbf16>
    %cst_6 = arith.constant dense<0.000000e+00> : vector<2x128xf32>
    %7 = tpu.matmul %5, %6, %cst_6 {dimension_numbers = #tpu.dot_dimension_numbers<[1], [0], [0], [1], [0, 0, 1, 1], [], []>} : vector<2x128xbf16>, vector<128x128xbf16>, vector<2x128xf32> -> vector<2x128xf32>
    %8 = arith.negf %7 : vector<2x128xf32>
    %9 = math.exp %8 : vector<2x128xf32>
    %cst_7 = arith.constant 1.000000e+00 : f32
    %10 = vector.broadcast %cst_7 : f32 to vector<2x128xf32>
    %11 = arith.addf %10, %9 : vector<2x128xf32>
    %12 = arith.divf %10, %11 : vector<2x128xf32>
    %13 = tpu.iota {dimensions = array<i32: 0>} : vector<2x1xi32>
    %14 = vector.broadcast %arg0 : i32 to vector<2x1xi32>
    %15 = arith.cmpi eq, %13, %14 : vector<2x1xi32>
    %16 = arith.extui %15 : vector<2x1xi1> to vector<2x1xi32>
    %17 = arith.sitofp %16 : vector<2x1xi32> to vector<2x1xf32>
    %18 = vector.broadcast %17 : vector<2x1xf32> to vector<2x128xf32>
    %19 = arith.mulf %12, %18 : vector<2x128xf32>
    %cst_8 = arith.constant dense<0.000000e+00> : vector<128xf32>
    %20 = vector.multi_reduction <add>, %19, %cst_8 [0] : vector<2x128xf32> to vector<128xf32>
    %21 = vector.shape_cast %20 : vector<128xf32> to vector<1x128xf32>
    %c0_9 = arith.constant 0 : index
    %c0_10 = arith.constant 0 : index
    %c0_11 = arith.constant 0 : index
    %22 = vector.load %arg2[%c0_9, %c0_10, %c0_11] : memref<1x16x128xbf16, #tpu.memory_space<vmem>>, vector<1x16x128xbf16>
    %23 = vector.shape_cast %22 : vector<1x16x128xbf16> to vector<16x128xbf16>
    %24 = arith.extf %23 : vector<16x128xbf16> to vector<16x128xf32>
    %25 = vector.broadcast %21 : vector<1x128xf32> to vector<16x128xf32>
    %26 = arith.mulf %24, %25 : vector<16x128xf32>
    %27 = arith.truncf %26 : vector<16x128xf32> to vector<16x128xbf16>
    %c0_12 = arith.constant 0 : index
    %c0_13 = arith.constant 0 : index
    %28 = vector.load %arg7[%c0_12, %c0_13] : memref<128x128xbf16, #tpu.memory_space<vmem>>, vector<128x128xbf16>
    %cst_14 = arith.constant dense<0.000000e+00> : vector<16x128xf32>
    %29 = tpu.matmul %27, %28, %cst_14 {dimension_numbers = #tpu.dot_dimension_numbers<[1], [0], [0], [1], [0, 0, 1, 1], [], []>} : vector<16x128xbf16>, vector<128x128xbf16>, vector<16x128xf32> -> vector<16x128xf32>
    %c0_15 = arith.constant 0 : index
    %c0_16 = arith.constant 0 : index
    %30 = vector.load %arg8[%c0_15, %c0_16] : memref<1x128xf32, #tpu.memory_space<vmem>>, vector<1x128xf32>
    %31 = vector.broadcast %30 : vector<1x128xf32> to vector<16x128xf32>
    %32 = arith.addf %29, %31 : vector<16x128xf32>
    %cst_17 = arith.constant 0.000000e+00 : f32
    %33 = vector.broadcast %cst_17 : f32 to vector<16x128xf32>
    %34 = arith.maximumf %32, %33 : vector<16x128xf32>
    %c0_18 = arith.constant 0 : index
    %c0_19 = arith.constant 0 : index
    %c0_20 = arith.constant 0 : index
    %35 = vector.load %arg3[%c0_18, %c0_19, %c0_20] : memref<1x16x128xbf16, #tpu.memory_space<vmem>>, vector<1x16x128xbf16>
    %36 = vector.shape_cast %35 : vector<1x16x128xbf16> to vector<16x128xbf16>
    %c0_21 = arith.constant 0 : index
    %c0_22 = arith.constant 0 : index
    %37 = vector.load %arg9[%c0_21, %c0_22] : memref<128x128xbf16, #tpu.memory_space<vmem>>, vector<128x128xbf16>
    %cst_23 = arith.constant dense<0.000000e+00> : vector<16x128xf32>
    %38 = tpu.matmul %36, %37, %cst_23 {dimension_numbers = #tpu.dot_dimension_numbers<[1], [0], [0], [1], [0, 0, 1, 1], [], []>} : vector<16x128xbf16>, vector<128x128xbf16>, vector<16x128xf32> -> vector<16x128xf32>
    %c0_24 = arith.constant 0 : index
    %c0_25 = arith.constant 0 : index
    %39 = vector.load %arg10[%c0_24, %c0_25] : memref<1x128xf32, #tpu.memory_space<vmem>>, vector<1x128xf32>
    %40 = vector.broadcast %39 : vector<1x128xf32> to vector<16x128xf32>
    %41 = arith.addf %38, %40 : vector<16x128xf32>
    %cst_26 = arith.constant 0.000000e+00 : f32
    %42 = vector.broadcast %cst_26 : f32 to vector<16x128xf32>
    %43 = arith.maximumf %41, %42 : vector<16x128xf32>
    %44 = arith.addf %34, %43 : vector<16x128xf32>
    %cst_27 = arith.constant 0.000000e+00 : f32
    %45 = vector.broadcast %cst_27 : f32 to vector<16x128xf32>
    %46 = arith.maximumf %44, %45 : vector<16x128xf32>
    %47 = arith.truncf %46 : vector<16x128xf32> to vector<16x128xbf16>
    %c0_28 = arith.constant 0 : index
    %c0_29 = arith.constant 0 : index
    %c0_30 = arith.constant 0 : index
    %48 = vector.load %arg11[%c0_28, %c0_29, %c0_30] : memref<1x16x128xbf16, #tpu.memory_space<vmem>>, vector<1x16x128xbf16>
    %49 = vector.shape_cast %48 : vector<1x16x128xbf16> to vector<16x128xbf16>
    %50 = vector.shape_cast %47 : vector<16x128xbf16> to vector<1x16x128xbf16>
    tpu.vector_store %arg11[%c0_28, %c0_29, %c0_30], %50 {strides = array<i32>} : memref<1x16x128xbf16, #tpu.memory_space<vmem>>, vector<1x16x128xbf16>,
    return
  }
  func.func @transform_0(%arg0: i32, %arg1: i32) -> (i32, i32, i32) {
    %c0_i32 = arith.constant 0 : i32
    %c0_i32_0 = arith.constant 0 : i32
    return %arg0, %arg1, %c0_i32 : i32, i32, i32
  }
  func.func @transform_1(%arg0: i32, %arg1: i32) -> (i32, i32, i32) {
    %c0_i32 = arith.constant 0 : i32
    %c0_i32_0 = arith.constant 0 : i32
    return %arg0, %arg1, %c0_i32 : i32, i32, i32
  }
  func.func @transform_2(%arg0: i32, %arg1: i32) -> (i32, i32) {
    %c0_i32 = arith.constant 0 : i32
    %c0_i32_0 = arith.constant 0 : i32
    %c0_i32_1 = arith.constant 0 : i32
    return %c0_i32, %c0_i32_0 : i32, i32
  }
  func.func @transform_3(%arg0: i32, %arg1: i32) -> (i32, i32) {
    %c0_i32 = arith.constant 0 : i32
    %c0_i32_0 = arith.constant 0 : i32
    %c0_i32_1 = arith.constant 0 : i32
    return %c0_i32, %c0_i32_0 : i32, i32
  }
  func.func @transform_4(%arg0: i32, %arg1: i32) -> (i32, i32) {
    %c0_i32 = arith.constant 0 : i32
    %c0_i32_0 = arith.constant 0 : i32
    %c0_i32_1 = arith.constant 0 : i32
    return %c0_i32, %c0_i32_0 : i32, i32
  }
  func.func @transform_5(%arg0: i32, %arg1: i32) -> (i32, i32) {
    %c0_i32 = arith.constant 0 : i32
    %c0_i32_0 = arith.constant 0 : i32
    %c0_i32_1 = arith.constant 0 : i32
    return %c0_i32, %c0_i32_0 : i32, i32
  }
  func.func @transform_6(%arg0: i32, %arg1: i32) -> (i32, i32) {
    %c0_i32 = arith.constant 0 : i32
    %c0_i32_0 = arith.constant 0 : i32
    %c0_i32_1 = arith.constant 0 : i32
    return %c0_i32, %c0_i32_0 : i32, i32
  }
  func.func @transform_7(%arg0: i32, %arg1: i32) -> (i32, i32) {
    %c0_i32 = arith.constant 0 : i32
    %c0_i32_0 = arith.constant 0 : i32
    %c0_i32_1 = arith.constant 0 : i32
    return %c0_i32, %c0_i32_0 : i32, i32
  }
  func.func @transform_8(%arg0: i32, %arg1: i32) -> (i32, i32) {
    %c0_i32 = arith.constant 0 : i32
    %c0_i32_0 = arith.constant 0 : i32
    %c0_i32_1 = arith.constant 0 : i32
    return %c0_i32, %c0_i32_0 : i32, i32
  }
  func.func @transform_9(%arg0: i32, %arg1: i32) -> (i32, i32, i32) {
    %c0_i32 = arith.constant 0 : i32
    %c0_i32_0 = arith.constant 0 : i32
    return %arg0, %arg1, %c0_i32 : i32, i32, i32
  }
}

module attributes {stable_mosaic.version = 11 : i64} {
  func.func @_mm_bias_kernel(%arg0: i32, %arg1: memref<32x128xbf16, #tpu.memory_space<vmem>>, %arg2: memref<128x128xbf16, #tpu.memory_space<vmem>>, %arg3: memref<1x128xf32, #tpu.memory_space<vmem>>, %arg4: memref<32x128xbf16, #tpu.memory_space<vmem>>) attributes {dimension_semantics = [#tpu.dimension_semantics<parallel>], iteration_bounds = array<i64: 1>, scalar_prefetch = 0 : i64, scratch_operands = 0 : i64, tpu.core_type = #tpu.core_type<tc>, window_params = [{transform_indices = @transform_0, window_bounds = array<i64: 32, 128>}, {pipeline_mode = #tpu.pipeline_mode<synchronous>, transform_indices = @transform_1, window_bounds = array<i64: 128, 128>}, {pipeline_mode = #tpu.pipeline_mode<synchronous>, transform_indices = @transform_2, window_bounds = array<i64: 1, 128>}, {transform_indices = @transform_3, window_bounds = array<i64: 32, 128>}]} {
    %c0 = arith.constant 0 : index
    %c0_0 = arith.constant 0 : index
    %0 = vector.load %arg1[%c0, %c0_0] : memref<32x128xbf16, #tpu.memory_space<vmem>>, vector<32x128xbf16>
    %c0_1 = arith.constant 0 : index
    %c0_2 = arith.constant 0 : index
    %1 = vector.load %arg2[%c0_1, %c0_2] : memref<128x128xbf16, #tpu.memory_space<vmem>>, vector<128x128xbf16>
    %cst = arith.constant dense<0.000000e+00> : vector<32x128xf32>
    %2 = tpu.matmul %0, %1, %cst {dimension_numbers = #tpu.dot_dimension_numbers<[1], [0], [0], [1], [0, 0, 1, 1], [], []>} : vector<32x128xbf16>, vector<128x128xbf16>, vector<32x128xf32> -> vector<32x128xf32>
    %c0_3 = arith.constant 0 : index
    %c0_4 = arith.constant 0 : index
    %3 = vector.load %arg3[%c0_3, %c0_4] : memref<1x128xf32, #tpu.memory_space<vmem>>, vector<1x128xf32>
    %4 = vector.broadcast %3 : vector<1x128xf32> to vector<32x128xf32>
    %5 = arith.addf %2, %4 : vector<32x128xf32>
    %cst_5 = arith.constant 0.000000e+00 : f32
    %6 = vector.broadcast %cst_5 : f32 to vector<32x128xf32>
    %7 = arith.maximumf %5, %6 : vector<32x128xf32>
    %8 = arith.truncf %7 : vector<32x128xf32> to vector<32x128xbf16>
    %c0_6 = arith.constant 0 : index
    %c0_7 = arith.constant 0 : index
    %9 = vector.load %arg4[%c0_6, %c0_7] : memref<32x128xbf16, #tpu.memory_space<vmem>>, vector<32x128xbf16>
    tpu.vector_store %arg4[%c0_6, %c0_7], %8 {strides = array<i32>} : memref<32x128xbf16, #tpu.memory_space<vmem>>, vector<32x128xbf16>,
    return
  }
  func.func @transform_0(%arg0: i32) -> (i32, i32) {
    %c0_i32 = arith.constant 0 : i32
    %c0_i32_0 = arith.constant 0 : i32
    return %arg0, %c0_i32 : i32, i32
  }
  func.func @transform_1(%arg0: i32) -> (i32, i32) {
    %c0_i32 = arith.constant 0 : i32
    %c0_i32_0 = arith.constant 0 : i32
    %c0_i32_1 = arith.constant 0 : i32
    return %c0_i32, %c0_i32_0 : i32, i32
  }
  func.func @transform_2(%arg0: i32) -> (i32, i32) {
    %c0_i32 = arith.constant 0 : i32
    %c0_i32_0 = arith.constant 0 : i32
    %c0_i32_1 = arith.constant 0 : i32
    return %c0_i32, %c0_i32_0 : i32, i32
  }
  func.func @transform_3(%arg0: i32) -> (i32, i32) {
    %c0_i32 = arith.constant 0 : i32
    %c0_i32_0 = arith.constant 0 : i32
    return %arg0, %c0_i32 : i32, i32
  }
}

module attributes {stable_mosaic.version = 11 : i64} {
  func.func @_mm_bias_kernel(%arg0: i32, %arg1: memref<32x128xbf16, #tpu.memory_space<vmem>>, %arg2: memref<128x256xbf16, #tpu.memory_space<vmem>>, %arg3: memref<1x256xf32, #tpu.memory_space<vmem>>, %arg4: memref<32x256xbf16, #tpu.memory_space<vmem>>) attributes {dimension_semantics = [#tpu.dimension_semantics<parallel>], iteration_bounds = array<i64: 1>, scalar_prefetch = 0 : i64, scratch_operands = 0 : i64, tpu.core_type = #tpu.core_type<tc>, window_params = [{transform_indices = @transform_0, window_bounds = array<i64: 32, 128>}, {pipeline_mode = #tpu.pipeline_mode<synchronous>, transform_indices = @transform_1, window_bounds = array<i64: 128, 256>}, {pipeline_mode = #tpu.pipeline_mode<synchronous>, transform_indices = @transform_2, window_bounds = array<i64: 1, 256>}, {transform_indices = @transform_3, window_bounds = array<i64: 32, 256>}]} {
    %c0 = arith.constant 0 : index
    %c0_0 = arith.constant 0 : index
    %0 = vector.load %arg1[%c0, %c0_0] : memref<32x128xbf16, #tpu.memory_space<vmem>>, vector<32x128xbf16>
    %c0_1 = arith.constant 0 : index
    %c0_2 = arith.constant 0 : index
    %1 = vector.load %arg2[%c0_1, %c0_2] : memref<128x256xbf16, #tpu.memory_space<vmem>>, vector<128x256xbf16>
    %cst = arith.constant dense<0.000000e+00> : vector<32x256xf32>
    %2 = tpu.matmul %0, %1, %cst {dimension_numbers = #tpu.dot_dimension_numbers<[1], [0], [0], [1], [0, 0, 1, 1], [], []>} : vector<32x128xbf16>, vector<128x256xbf16>, vector<32x256xf32> -> vector<32x256xf32>
    %c0_3 = arith.constant 0 : index
    %c0_4 = arith.constant 0 : index
    %3 = vector.load %arg3[%c0_3, %c0_4] : memref<1x256xf32, #tpu.memory_space<vmem>>, vector<1x256xf32>
    %4 = vector.broadcast %3 : vector<1x256xf32> to vector<32x256xf32>
    %5 = arith.addf %2, %4 : vector<32x256xf32>
    %cst_5 = arith.constant 0.000000e+00 : f32
    %6 = vector.broadcast %cst_5 : f32 to vector<32x256xf32>
    %7 = arith.maximumf %5, %6 : vector<32x256xf32>
    %8 = arith.truncf %7 : vector<32x256xf32> to vector<32x256xbf16>
    %c0_6 = arith.constant 0 : index
    %c0_7 = arith.constant 0 : index
    %9 = vector.load %arg4[%c0_6, %c0_7] : memref<32x256xbf16, #tpu.memory_space<vmem>>, vector<32x256xbf16>
    tpu.vector_store %arg4[%c0_6, %c0_7], %8 {strides = array<i32>} : memref<32x256xbf16, #tpu.memory_space<vmem>>, vector<32x256xbf16>,
    return
  }
  func.func @transform_0(%arg0: i32) -> (i32, i32) {
    %c0_i32 = arith.constant 0 : i32
    %c0_i32_0 = arith.constant 0 : i32
    return %arg0, %c0_i32 : i32, i32
  }
  func.func @transform_1(%arg0: i32) -> (i32, i32) {
    %c0_i32 = arith.constant 0 : i32
    %c0_i32_0 = arith.constant 0 : i32
    %c0_i32_1 = arith.constant 0 : i32
    return %c0_i32, %c0_i32_0 : i32, i32
  }
  func.func @transform_2(%arg0: i32) -> (i32, i32) {
    %c0_i32 = arith.constant 0 : i32
    %c0_i32_0 = arith.constant 0 : i32
    %c0_i32_1 = arith.constant 0 : i32
    return %c0_i32, %c0_i32_0 : i32, i32
  }
  func.func @transform_3(%arg0: i32) -> (i32, i32) {
    %c0_i32 = arith.constant 0 : i32
    %c0_i32_0 = arith.constant 0 : i32
    return %arg0, %c0_i32 : i32, i32
  }
}

module attributes {stable_mosaic.version = 11 : i64} {
  func.func @_mm_bias_kernel(%arg0: i32, %arg1: memref<8x1152xbf16, #tpu.memory_space<vmem>>, %arg2: memref<1152x128xbf16, #tpu.memory_space<vmem>>, %arg3: memref<1x128xf32, #tpu.memory_space<vmem>>, %arg4: memref<8x128xbf16, #tpu.memory_space<vmem>>) attributes {dimension_semantics = [#tpu.dimension_semantics<parallel>], iteration_bounds = array<i64: 1>, scalar_prefetch = 0 : i64, scratch_operands = 0 : i64, tpu.core_type = #tpu.core_type<tc>, window_params = [{transform_indices = @transform_0, window_bounds = array<i64: 8, 1152>}, {pipeline_mode = #tpu.pipeline_mode<synchronous>, transform_indices = @transform_1, window_bounds = array<i64: 1152, 128>}, {pipeline_mode = #tpu.pipeline_mode<synchronous>, transform_indices = @transform_2, window_bounds = array<i64: 1, 128>}, {transform_indices = @transform_3, window_bounds = array<i64: 8, 128>}]} {
    %c0 = arith.constant 0 : index
    %c0_0 = arith.constant 0 : index
    %0 = vector.load %arg1[%c0, %c0_0] : memref<8x1152xbf16, #tpu.memory_space<vmem>>, vector<8x1152xbf16>
    %c0_1 = arith.constant 0 : index
    %c0_2 = arith.constant 0 : index
    %1 = vector.load %arg2[%c0_1, %c0_2] : memref<1152x128xbf16, #tpu.memory_space<vmem>>, vector<1152x128xbf16>
    %cst = arith.constant dense<0.000000e+00> : vector<8x128xf32>
    %2 = tpu.matmul %0, %1, %cst {dimension_numbers = #tpu.dot_dimension_numbers<[1], [0], [0], [1], [0, 0, 1, 1], [], []>} : vector<8x1152xbf16>, vector<1152x128xbf16>, vector<8x128xf32> -> vector<8x128xf32>
    %c0_3 = arith.constant 0 : index
    %c0_4 = arith.constant 0 : index
    %3 = vector.load %arg3[%c0_3, %c0_4] : memref<1x128xf32, #tpu.memory_space<vmem>>, vector<1x128xf32>
    %4 = vector.broadcast %3 : vector<1x128xf32> to vector<8x128xf32>
    %5 = arith.addf %2, %4 : vector<8x128xf32>
    %cst_5 = arith.constant 0.000000e+00 : f32
    %6 = vector.broadcast %cst_5 : f32 to vector<8x128xf32>
    %7 = arith.maximumf %5, %6 : vector<8x128xf32>
    %8 = arith.truncf %7 : vector<8x128xf32> to vector<8x128xbf16>
    %c0_6 = arith.constant 0 : index
    %c0_7 = arith.constant 0 : index
    %9 = vector.load %arg4[%c0_6, %c0_7] : memref<8x128xbf16, #tpu.memory_space<vmem>>, vector<8x128xbf16>
    tpu.vector_store %arg4[%c0_6, %c0_7], %8 {strides = array<i32>} : memref<8x128xbf16, #tpu.memory_space<vmem>>, vector<8x128xbf16>,
    return
  }
  func.func @transform_0(%arg0: i32) -> (i32, i32) {
    %c0_i32 = arith.constant 0 : i32
    %c0_i32_0 = arith.constant 0 : i32
    return %arg0, %c0_i32 : i32, i32
  }
  func.func @transform_1(%arg0: i32) -> (i32, i32) {
    %c0_i32 = arith.constant 0 : i32
    %c0_i32_0 = arith.constant 0 : i32
    %c0_i32_1 = arith.constant 0 : i32
    return %c0_i32, %c0_i32_0 : i32, i32
  }
  func.func @transform_2(%arg0: i32) -> (i32, i32) {
    %c0_i32 = arith.constant 0 : i32
    %c0_i32_0 = arith.constant 0 : i32
    %c0_i32_1 = arith.constant 0 : i32
    return %c0_i32, %c0_i32_0 : i32, i32
  }
  func.func @transform_3(%arg0: i32) -> (i32, i32) {
    %c0_i32 = arith.constant 0 : i32
    %c0_i32_0 = arith.constant 0 : i32
    return %arg0, %c0_i32 : i32, i32
  }
}

module attributes {stable_mosaic.version = 11 : i64} {
  func.func @_dblock_tail_kernel(%arg0: i32, %arg1: i32, %arg2: memref<1x4x256xbf16, #tpu.memory_space<vmem>>, %arg3: memref<1x4x128xbf16, #tpu.memory_space<vmem>>, %arg4: memref<2x256xbf16, #tpu.memory_space<vmem>>, %arg5: memref<256x256xbf16, #tpu.memory_space<vmem>>, %arg6: memref<256x256xbf16, #tpu.memory_space<vmem>>, %arg7: memref<256x256xbf16, #tpu.memory_space<vmem>>, %arg8: memref<1x256xf32, #tpu.memory_space<vmem>>, %arg9: memref<128x256xbf16, #tpu.memory_space<vmem>>, %arg10: memref<1x256xf32, #tpu.memory_space<vmem>>, %arg11: memref<1x4x256xbf16, #tpu.memory_space<vmem>>) attributes {dimension_semantics = [#tpu.dimension_semantics<parallel>, #tpu.dimension_semantics<parallel>], iteration_bounds = array<i64: 2, 1>, scalar_prefetch = 0 : i64, scratch_operands = 0 : i64, tpu.core_type = #tpu.core_type<tc>, window_params = [{transform_indices = @transform_0, window_bounds = array<i64: 1, 4, 256>}, {transform_indices = @transform_1, window_bounds = array<i64: 1, 4, 128>}, {pipeline_mode = #tpu.pipeline_mode<synchronous>, transform_indices = @transform_2, window_bounds = array<i64: 2, 256>}, {pipeline_mode = #tpu.pipeline_mode<synchronous>, transform_indices = @transform_3, window_bounds = array<i64: 256, 256>}, {pipeline_mode = #tpu.pipeline_mode<synchronous>, transform_indices = @transform_4, window_bounds = array<i64: 256, 256>}, {pipeline_mode = #tpu.pipeline_mode<synchronous>, transform_indices = @transform_5, window_bounds = array<i64: 256, 256>}, {pipeline_mode = #tpu.pipeline_mode<synchronous>, transform_indices = @transform_6, window_bounds = array<i64: 1, 256>}, {pipeline_mode = #tpu.pipeline_mode<synchronous>, transform_indices = @transform_7, window_bounds = array<i64: 128, 256>}, {pipeline_mode = #tpu.pipeline_mode<synchronous>, transform_indices = @transform_8, window_bounds = array<i64: 1, 256>}, {transform_indices = @transform_9, window_bounds = array<i64: 1, 4, 256>}]} {
    %c0 = arith.constant 0 : index
    %c0_0 = arith.constant 0 : index
    %0 = vector.load %arg4[%c0, %c0_0] : memref<2x256xbf16, #tpu.memory_space<vmem>>, vector<2x256xbf16>
    %c0_1 = arith.constant 0 : index
    %c0_2 = arith.constant 0 : index
    %1 = vector.load %arg5[%c0_1, %c0_2] : memref<256x256xbf16, #tpu.memory_space<vmem>>, vector<256x256xbf16>
    %cst = arith.constant dense<0.000000e+00> : vector<2x256xf32>
    %2 = tpu.matmul %0, %1, %cst {dimension_numbers = #tpu.dot_dimension_numbers<[1], [0], [0], [1], [0, 0, 1, 1], [], []>} : vector<2x256xbf16>, vector<256x256xbf16>, vector<2x256xf32> -> vector<2x256xf32>
    %cst_3 = arith.constant 0.000000e+00 : f32
    %3 = vector.broadcast %cst_3 : f32 to vector<2x256xf32>
    %4 = arith.maximumf %2, %3 : vector<2x256xf32>
    %5 = arith.truncf %4 : vector<2x256xf32> to vector<2x256xbf16>
    %c0_4 = arith.constant 0 : index
    %c0_5 = arith.constant 0 : index
    %6 = vector.load %arg6[%c0_4, %c0_5] : memref<256x256xbf16, #tpu.memory_space<vmem>>, vector<256x256xbf16>
    %cst_6 = arith.constant dense<0.000000e+00> : vector<2x256xf32>
    %7 = tpu.matmul %5, %6, %cst_6 {dimension_numbers = #tpu.dot_dimension_numbers<[1], [0], [0], [1], [0, 0, 1, 1], [], []>} : vector<2x256xbf16>, vector<256x256xbf16>, vector<2x256xf32> -> vector<2x256xf32>
    %8 = arith.negf %7 : vector<2x256xf32>
    %9 = math.exp %8 : vector<2x256xf32>
    %cst_7 = arith.constant 1.000000e+00 : f32
    %10 = vector.broadcast %cst_7 : f32 to vector<2x256xf32>
    %11 = arith.addf %10, %9 : vector<2x256xf32>
    %12 = arith.divf %10, %11 : vector<2x256xf32>
    %13 = tpu.iota {dimensions = array<i32: 0>} : vector<2x1xi32>
    %14 = vector.broadcast %arg0 : i32 to vector<2x1xi32>
    %15 = arith.cmpi eq, %13, %14 : vector<2x1xi32>
    %16 = arith.extui %15 : vector<2x1xi1> to vector<2x1xi32>
    %17 = arith.sitofp %16 : vector<2x1xi32> to vector<2x1xf32>
    %18 = vector.broadcast %17 : vector<2x1xf32> to vector<2x256xf32>
    %19 = arith.mulf %12, %18 : vector<2x256xf32>
    %cst_8 = arith.constant dense<0.000000e+00> : vector<256xf32>
    %20 = vector.multi_reduction <add>, %19, %cst_8 [0] : vector<2x256xf32> to vector<256xf32>
    %21 = vector.shape_cast %20 : vector<256xf32> to vector<1x256xf32>
    %c0_9 = arith.constant 0 : index
    %c0_10 = arith.constant 0 : index
    %c0_11 = arith.constant 0 : index
    %22 = vector.load %arg2[%c0_9, %c0_10, %c0_11] : memref<1x4x256xbf16, #tpu.memory_space<vmem>>, vector<1x4x256xbf16>
    %23 = vector.shape_cast %22 : vector<1x4x256xbf16> to vector<4x256xbf16>
    %24 = arith.extf %23 : vector<4x256xbf16> to vector<4x256xf32>
    %25 = vector.broadcast %21 : vector<1x256xf32> to vector<4x256xf32>
    %26 = arith.mulf %24, %25 : vector<4x256xf32>
    %27 = arith.truncf %26 : vector<4x256xf32> to vector<4x256xbf16>
    %c0_12 = arith.constant 0 : index
    %c0_13 = arith.constant 0 : index
    %28 = vector.load %arg7[%c0_12, %c0_13] : memref<256x256xbf16, #tpu.memory_space<vmem>>, vector<256x256xbf16>
    %cst_14 = arith.constant dense<0.000000e+00> : vector<4x256xf32>
    %29 = tpu.matmul %27, %28, %cst_14 {dimension_numbers = #tpu.dot_dimension_numbers<[1], [0], [0], [1], [0, 0, 1, 1], [], []>} : vector<4x256xbf16>, vector<256x256xbf16>, vector<4x256xf32> -> vector<4x256xf32>
    %c0_15 = arith.constant 0 : index
    %c0_16 = arith.constant 0 : index
    %30 = vector.load %arg8[%c0_15, %c0_16] : memref<1x256xf32, #tpu.memory_space<vmem>>, vector<1x256xf32>
    %31 = vector.broadcast %30 : vector<1x256xf32> to vector<4x256xf32>
    %32 = arith.addf %29, %31 : vector<4x256xf32>
    %cst_17 = arith.constant 0.000000e+00 : f32
    %33 = vector.broadcast %cst_17 : f32 to vector<4x256xf32>
    %34 = arith.maximumf %32, %33 : vector<4x256xf32>
    %c0_18 = arith.constant 0 : index
    %c0_19 = arith.constant 0 : index
    %c0_20 = arith.constant 0 : index
    %35 = vector.load %arg3[%c0_18, %c0_19, %c0_20] : memref<1x4x128xbf16, #tpu.memory_space<vmem>>, vector<1x4x128xbf16>
    %36 = vector.shape_cast %35 : vector<1x4x128xbf16> to vector<4x128xbf16>
    %c0_21 = arith.constant 0 : index
    %c0_22 = arith.constant 0 : index
    %37 = vector.load %arg9[%c0_21, %c0_22] : memref<128x256xbf16, #tpu.memory_space<vmem>>, vector<128x256xbf16>
    %cst_23 = arith.constant dense<0.000000e+00> : vector<4x256xf32>
    %38 = tpu.matmul %36, %37, %cst_23 {dimension_numbers = #tpu.dot_dimension_numbers<[1], [0], [0], [1], [0, 0, 1, 1], [], []>} : vector<4x128xbf16>, vector<128x256xbf16>, vector<4x256xf32> -> vector<4x256xf32>
    %c0_24 = arith.constant 0 : index
    %c0_25 = arith.constant 0 : index
    %39 = vector.load %arg10[%c0_24, %c0_25] : memref<1x256xf32, #tpu.memory_space<vmem>>, vector<1x256xf32>
    %40 = vector.broadcast %39 : vector<1x256xf32> to vector<4x256xf32>
    %41 = arith.addf %38, %40 : vector<4x256xf32>
    %cst_26 = arith.constant 0.000000e+00 : f32
    %42 = vector.broadcast %cst_26 : f32 to vector<4x256xf32>
    %43 = arith.maximumf %41, %42 : vector<4x256xf32>
    %44 = arith.addf %34, %43 : vector<4x256xf32>
    %cst_27 = arith.constant 0.000000e+00 : f32
    %45 = vector.broadcast %cst_27 : f32 to vector<4x256xf32>
    %46 = arith.maximumf %44, %45 : vector<4x256xf32>
    %47 = arith.truncf %46 : vector<4x256xf32> to vector<4x256xbf16>
    %c0_28 = arith.constant 0 : index
    %c0_29 = arith.constant 0 : index
    %c0_30 = arith.constant 0 : index
    %48 = vector.load %arg11[%c0_28, %c0_29, %c0_30] : memref<1x4x256xbf16, #tpu.memory_space<vmem>>, vector<1x4x256xbf16>
    %49 = vector.shape_cast %48 : vector<1x4x256xbf16> to vector<4x256xbf16>
    %50 = vector.shape_cast %47 : vector<4x256xbf16> to vector<1x4x256xbf16>
    tpu.vector_store %arg11[%c0_28, %c0_29, %c0_30], %50 {strides = array<i32>} : memref<1x4x256xbf16, #tpu.memory_space<vmem>>, vector<1x4x256xbf16>,
    return
  }
  func.func @transform_0(%arg0: i32, %arg1: i32) -> (i32, i32, i32) {
    %c0_i32 = arith.constant 0 : i32
    %c0_i32_0 = arith.constant 0 : i32
    return %arg0, %arg1, %c0_i32 : i32, i32, i32
  }
  func.func @transform_1(%arg0: i32, %arg1: i32) -> (i32, i32, i32) {
    %c0_i32 = arith.constant 0 : i32
    %c0_i32_0 = arith.constant 0 : i32
    return %arg0, %arg1, %c0_i32 : i32, i32, i32
  }
  func.func @transform_2(%arg0: i32, %arg1: i32) -> (i32, i32) {
    %c0_i32 = arith.constant 0 : i32
    %c0_i32_0 = arith.constant 0 : i32
    %c0_i32_1 = arith.constant 0 : i32
    return %c0_i32, %c0_i32_0 : i32, i32
  }
  func.func @transform_3(%arg0: i32, %arg1: i32) -> (i32, i32) {
    %c0_i32 = arith.constant 0 : i32
    %c0_i32_0 = arith.constant 0 : i32
    %c0_i32_1 = arith.constant 0 : i32
    return %c0_i32, %c0_i32_0 : i32, i32
  }
  func.func @transform_4(%arg0: i32, %arg1: i32) -> (i32, i32) {
    %c0_i32 = arith.constant 0 : i32
    %c0_i32_0 = arith.constant 0 : i32
    %c0_i32_1 = arith.constant 0 : i32
    return %c0_i32, %c0_i32_0 : i32, i32
  }
  func.func @transform_5(%arg0: i32, %arg1: i32) -> (i32, i32) {
    %c0_i32 = arith.constant 0 : i32
    %c0_i32_0 = arith.constant 0 : i32
    %c0_i32_1 = arith.constant 0 : i32
    return %c0_i32, %c0_i32_0 : i32, i32
  }
  func.func @transform_6(%arg0: i32, %arg1: i32) -> (i32, i32) {
    %c0_i32 = arith.constant 0 : i32
    %c0_i32_0 = arith.constant 0 : i32
    %c0_i32_1 = arith.constant 0 : i32
    return %c0_i32, %c0_i32_0 : i32, i32
  }
  func.func @transform_7(%arg0: i32, %arg1: i32) -> (i32, i32) {
    %c0_i32 = arith.constant 0 : i32
    %c0_i32_0 = arith.constant 0 : i32
    %c0_i32_1 = arith.constant 0 : i32
    return %c0_i32, %c0_i32_0 : i32, i32
  }
  func.func @transform_8(%arg0: i32, %arg1: i32) -> (i32, i32) {
    %c0_i32 = arith.constant 0 : i32
    %c0_i32_0 = arith.constant 0 : i32
    %c0_i32_1 = arith.constant 0 : i32
    return %c0_i32, %c0_i32_0 : i32, i32
  }
  func.func @transform_9(%arg0: i32, %arg1: i32) -> (i32, i32, i32) {
    %c0_i32 = arith.constant 0 : i32
    %c0_i32_0 = arith.constant 0 : i32
    return %arg0, %arg1, %c0_i32 : i32, i32, i32
  }
}

module attributes {stable_mosaic.version = 11 : i64} {
  func.func @_mm_bias_kernel(%arg0: i32, %arg1: memref<8x256xbf16, #tpu.memory_space<vmem>>, %arg2: memref<256x256xbf16, #tpu.memory_space<vmem>>, %arg3: memref<1x256xf32, #tpu.memory_space<vmem>>, %arg4: memref<8x256xbf16, #tpu.memory_space<vmem>>) attributes {dimension_semantics = [#tpu.dimension_semantics<parallel>], iteration_bounds = array<i64: 1>, scalar_prefetch = 0 : i64, scratch_operands = 0 : i64, tpu.core_type = #tpu.core_type<tc>, window_params = [{transform_indices = @transform_0, window_bounds = array<i64: 8, 256>}, {pipeline_mode = #tpu.pipeline_mode<synchronous>, transform_indices = @transform_1, window_bounds = array<i64: 256, 256>}, {pipeline_mode = #tpu.pipeline_mode<synchronous>, transform_indices = @transform_2, window_bounds = array<i64: 1, 256>}, {transform_indices = @transform_3, window_bounds = array<i64: 8, 256>}]} {
    %c0 = arith.constant 0 : index
    %c0_0 = arith.constant 0 : index
    %0 = vector.load %arg1[%c0, %c0_0] : memref<8x256xbf16, #tpu.memory_space<vmem>>, vector<8x256xbf16>
    %c0_1 = arith.constant 0 : index
    %c0_2 = arith.constant 0 : index
    %1 = vector.load %arg2[%c0_1, %c0_2] : memref<256x256xbf16, #tpu.memory_space<vmem>>, vector<256x256xbf16>
    %cst = arith.constant dense<0.000000e+00> : vector<8x256xf32>
    %2 = tpu.matmul %0, %1, %cst {dimension_numbers = #tpu.dot_dimension_numbers<[1], [0], [0], [1], [0, 0, 1, 1], [], []>} : vector<8x256xbf16>, vector<256x256xbf16>, vector<8x256xf32> -> vector<8x256xf32>
    %c0_3 = arith.constant 0 : index
    %c0_4 = arith.constant 0 : index
    %3 = vector.load %arg3[%c0_3, %c0_4] : memref<1x256xf32, #tpu.memory_space<vmem>>, vector<1x256xf32>
    %4 = vector.broadcast %3 : vector<1x256xf32> to vector<8x256xf32>
    %5 = arith.addf %2, %4 : vector<8x256xf32>
    %cst_5 = arith.constant 0.000000e+00 : f32
    %6 = vector.broadcast %cst_5 : f32 to vector<8x256xf32>
    %7 = arith.maximumf %5, %6 : vector<8x256xf32>
    %8 = arith.truncf %7 : vector<8x256xf32> to vector<8x256xbf16>
    %c0_6 = arith.constant 0 : index
    %c0_7 = arith.constant 0 : index
    %9 = vector.load %arg4[%c0_6, %c0_7] : memref<8x256xbf16, #tpu.memory_space<vmem>>, vector<8x256xbf16>
    tpu.vector_store %arg4[%c0_6, %c0_7], %8 {strides = array<i32>} : memref<8x256xbf16, #tpu.memory_space<vmem>>, vector<8x256xbf16>,
    return
  }
  func.func @transform_0(%arg0: i32) -> (i32, i32) {
    %c0_i32 = arith.constant 0 : i32
    %c0_i32_0 = arith.constant 0 : i32
    return %arg0, %c0_i32 : i32, i32
  }
  func.func @transform_1(%arg0: i32) -> (i32, i32) {
    %c0_i32 = arith.constant 0 : i32
    %c0_i32_0 = arith.constant 0 : i32
    %c0_i32_1 = arith.constant 0 : i32
    return %c0_i32, %c0_i32_0 : i32, i32
  }
  func.func @transform_2(%arg0: i32) -> (i32, i32) {
    %c0_i32 = arith.constant 0 : i32
    %c0_i32_0 = arith.constant 0 : i32
    %c0_i32_1 = arith.constant 0 : i32
    return %c0_i32, %c0_i32_0 : i32, i32
  }
  func.func @transform_3(%arg0: i32) -> (i32, i32) {
    %c0_i32 = arith.constant 0 : i32
    %c0_i32_0 = arith.constant 0 : i32
    return %arg0, %c0_i32 : i32, i32
  }
}

module attributes {stable_mosaic.version = 11 : i64} {
  func.func @_dblock_tail_kernel(%arg0: i32, %arg1: i32, %arg2: memref<1x4x256xbf16, #tpu.memory_space<vmem>>, %arg3: memref<1x4x256xbf16, #tpu.memory_space<vmem>>, %arg4: memref<2x256xbf16, #tpu.memory_space<vmem>>, %arg5: memref<256x256xbf16, #tpu.memory_space<vmem>>, %arg6: memref<256x256xbf16, #tpu.memory_space<vmem>>, %arg7: memref<256x256xbf16, #tpu.memory_space<vmem>>, %arg8: memref<1x256xf32, #tpu.memory_space<vmem>>, %arg9: memref<256x256xbf16, #tpu.memory_space<vmem>>, %arg10: memref<1x256xf32, #tpu.memory_space<vmem>>, %arg11: memref<1x4x256xbf16, #tpu.memory_space<vmem>>) attributes {dimension_semantics = [#tpu.dimension_semantics<parallel>, #tpu.dimension_semantics<parallel>], iteration_bounds = array<i64: 2, 1>, scalar_prefetch = 0 : i64, scratch_operands = 0 : i64, tpu.core_type = #tpu.core_type<tc>, window_params = [{transform_indices = @transform_0, window_bounds = array<i64: 1, 4, 256>}, {transform_indices = @transform_1, window_bounds = array<i64: 1, 4, 256>}, {pipeline_mode = #tpu.pipeline_mode<synchronous>, transform_indices = @transform_2, window_bounds = array<i64: 2, 256>}, {pipeline_mode = #tpu.pipeline_mode<synchronous>, transform_indices = @transform_3, window_bounds = array<i64: 256, 256>}, {pipeline_mode = #tpu.pipeline_mode<synchronous>, transform_indices = @transform_4, window_bounds = array<i64: 256, 256>}, {pipeline_mode = #tpu.pipeline_mode<synchronous>, transform_indices = @transform_5, window_bounds = array<i64: 256, 256>}, {pipeline_mode = #tpu.pipeline_mode<synchronous>, transform_indices = @transform_6, window_bounds = array<i64: 1, 256>}, {pipeline_mode = #tpu.pipeline_mode<synchronous>, transform_indices = @transform_7, window_bounds = array<i64: 256, 256>}, {pipeline_mode = #tpu.pipeline_mode<synchronous>, transform_indices = @transform_8, window_bounds = array<i64: 1, 256>}, {transform_indices = @transform_9, window_bounds = array<i64: 1, 4, 256>}]} {
    %c0 = arith.constant 0 : index
    %c0_0 = arith.constant 0 : index
    %0 = vector.load %arg4[%c0, %c0_0] : memref<2x256xbf16, #tpu.memory_space<vmem>>, vector<2x256xbf16>
    %c0_1 = arith.constant 0 : index
    %c0_2 = arith.constant 0 : index
    %1 = vector.load %arg5[%c0_1, %c0_2] : memref<256x256xbf16, #tpu.memory_space<vmem>>, vector<256x256xbf16>
    %cst = arith.constant dense<0.000000e+00> : vector<2x256xf32>
    %2 = tpu.matmul %0, %1, %cst {dimension_numbers = #tpu.dot_dimension_numbers<[1], [0], [0], [1], [0, 0, 1, 1], [], []>} : vector<2x256xbf16>, vector<256x256xbf16>, vector<2x256xf32> -> vector<2x256xf32>
    %cst_3 = arith.constant 0.000000e+00 : f32
    %3 = vector.broadcast %cst_3 : f32 to vector<2x256xf32>
    %4 = arith.maximumf %2, %3 : vector<2x256xf32>
    %5 = arith.truncf %4 : vector<2x256xf32> to vector<2x256xbf16>
    %c0_4 = arith.constant 0 : index
    %c0_5 = arith.constant 0 : index
    %6 = vector.load %arg6[%c0_4, %c0_5] : memref<256x256xbf16, #tpu.memory_space<vmem>>, vector<256x256xbf16>
    %cst_6 = arith.constant dense<0.000000e+00> : vector<2x256xf32>
    %7 = tpu.matmul %5, %6, %cst_6 {dimension_numbers = #tpu.dot_dimension_numbers<[1], [0], [0], [1], [0, 0, 1, 1], [], []>} : vector<2x256xbf16>, vector<256x256xbf16>, vector<2x256xf32> -> vector<2x256xf32>
    %8 = arith.negf %7 : vector<2x256xf32>
    %9 = math.exp %8 : vector<2x256xf32>
    %cst_7 = arith.constant 1.000000e+00 : f32
    %10 = vector.broadcast %cst_7 : f32 to vector<2x256xf32>
    %11 = arith.addf %10, %9 : vector<2x256xf32>
    %12 = arith.divf %10, %11 : vector<2x256xf32>
    %13 = tpu.iota {dimensions = array<i32: 0>} : vector<2x1xi32>
    %14 = vector.broadcast %arg0 : i32 to vector<2x1xi32>
    %15 = arith.cmpi eq, %13, %14 : vector<2x1xi32>
    %16 = arith.extui %15 : vector<2x1xi1> to vector<2x1xi32>
    %17 = arith.sitofp %16 : vector<2x1xi32> to vector<2x1xf32>
    %18 = vector.broadcast %17 : vector<2x1xf32> to vector<2x256xf32>
    %19 = arith.mulf %12, %18 : vector<2x256xf32>
    %cst_8 = arith.constant dense<0.000000e+00> : vector<256xf32>
    %20 = vector.multi_reduction <add>, %19, %cst_8 [0] : vector<2x256xf32> to vector<256xf32>
    %21 = vector.shape_cast %20 : vector<256xf32> to vector<1x256xf32>
    %c0_9 = arith.constant 0 : index
    %c0_10 = arith.constant 0 : index
    %c0_11 = arith.constant 0 : index
    %22 = vector.load %arg2[%c0_9, %c0_10, %c0_11] : memref<1x4x256xbf16, #tpu.memory_space<vmem>>, vector<1x4x256xbf16>
    %23 = vector.shape_cast %22 : vector<1x4x256xbf16> to vector<4x256xbf16>
    %24 = arith.extf %23 : vector<4x256xbf16> to vector<4x256xf32>
    %25 = vector.broadcast %21 : vector<1x256xf32> to vector<4x256xf32>
    %26 = arith.mulf %24, %25 : vector<4x256xf32>
    %27 = arith.truncf %26 : vector<4x256xf32> to vector<4x256xbf16>
    %c0_12 = arith.constant 0 : index
    %c0_13 = arith.constant 0 : index
    %28 = vector.load %arg7[%c0_12, %c0_13] : memref<256x256xbf16, #tpu.memory_space<vmem>>, vector<256x256xbf16>
    %cst_14 = arith.constant dense<0.000000e+00> : vector<4x256xf32>
    %29 = tpu.matmul %27, %28, %cst_14 {dimension_numbers = #tpu.dot_dimension_numbers<[1], [0], [0], [1], [0, 0, 1, 1], [], []>} : vector<4x256xbf16>, vector<256x256xbf16>, vector<4x256xf32> -> vector<4x256xf32>
    %c0_15 = arith.constant 0 : index
    %c0_16 = arith.constant 0 : index
    %30 = vector.load %arg8[%c0_15, %c0_16] : memref<1x256xf32, #tpu.memory_space<vmem>>, vector<1x256xf32>
    %31 = vector.broadcast %30 : vector<1x256xf32> to vector<4x256xf32>
    %32 = arith.addf %29, %31 : vector<4x256xf32>
    %cst_17 = arith.constant 0.000000e+00 : f32
    %33 = vector.broadcast %cst_17 : f32 to vector<4x256xf32>
    %34 = arith.maximumf %32, %33 : vector<4x256xf32>
    %c0_18 = arith.constant 0 : index
    %c0_19 = arith.constant 0 : index
    %c0_20 = arith.constant 0 : index
    %35 = vector.load %arg3[%c0_18, %c0_19, %c0_20] : memref<1x4x256xbf16, #tpu.memory_space<vmem>>, vector<1x4x256xbf16>
    %36 = vector.shape_cast %35 : vector<1x4x256xbf16> to vector<4x256xbf16>
    %c0_21 = arith.constant 0 : index
    %c0_22 = arith.constant 0 : index
    %37 = vector.load %arg9[%c0_21, %c0_22] : memref<256x256xbf16, #tpu.memory_space<vmem>>, vector<256x256xbf16>
    %cst_23 = arith.constant dense<0.000000e+00> : vector<4x256xf32>
    %38 = tpu.matmul %36, %37, %cst_23 {dimension_numbers = #tpu.dot_dimension_numbers<[1], [0], [0], [1], [0, 0, 1, 1], [], []>} : vector<4x256xbf16>, vector<256x256xbf16>, vector<4x256xf32> -> vector<4x256xf32>
    %c0_24 = arith.constant 0 : index
    %c0_25 = arith.constant 0 : index
    %39 = vector.load %arg10[%c0_24, %c0_25] : memref<1x256xf32, #tpu.memory_space<vmem>>, vector<1x256xf32>
    %40 = vector.broadcast %39 : vector<1x256xf32> to vector<4x256xf32>
    %41 = arith.addf %38, %40 : vector<4x256xf32>
    %cst_26 = arith.constant 0.000000e+00 : f32
    %42 = vector.broadcast %cst_26 : f32 to vector<4x256xf32>
    %43 = arith.maximumf %41, %42 : vector<4x256xf32>
    %44 = arith.addf %34, %43 : vector<4x256xf32>
    %cst_27 = arith.constant 0.000000e+00 : f32
    %45 = vector.broadcast %cst_27 : f32 to vector<4x256xf32>
    %46 = arith.maximumf %44, %45 : vector<4x256xf32>
    %47 = arith.truncf %46 : vector<4x256xf32> to vector<4x256xbf16>
    %c0_28 = arith.constant 0 : index
    %c0_29 = arith.constant 0 : index
    %c0_30 = arith.constant 0 : index
    %48 = vector.load %arg11[%c0_28, %c0_29, %c0_30] : memref<1x4x256xbf16, #tpu.memory_space<vmem>>, vector<1x4x256xbf16>
    %49 = vector.shape_cast %48 : vector<1x4x256xbf16> to vector<4x256xbf16>
    %50 = vector.shape_cast %47 : vector<4x256xbf16> to vector<1x4x256xbf16>
    tpu.vector_store %arg11[%c0_28, %c0_29, %c0_30], %50 {strides = array<i32>} : memref<1x4x256xbf16, #tpu.memory_space<vmem>>, vector<1x4x256xbf16>,
    return
  }
  func.func @transform_0(%arg0: i32, %arg1: i32) -> (i32, i32, i32) {
    %c0_i32 = arith.constant 0 : i32
    %c0_i32_0 = arith.constant 0 : i32
    return %arg0, %arg1, %c0_i32 : i32, i32, i32
  }
  func.func @transform_1(%arg0: i32, %arg1: i32) -> (i32, i32, i32) {
    %c0_i32 = arith.constant 0 : i32
    %c0_i32_0 = arith.constant 0 : i32
    return %arg0, %arg1, %c0_i32 : i32, i32, i32
  }
  func.func @transform_2(%arg0: i32, %arg1: i32) -> (i32, i32) {
    %c0_i32 = arith.constant 0 : i32
    %c0_i32_0 = arith.constant 0 : i32
    %c0_i32_1 = arith.constant 0 : i32
    return %c0_i32, %c0_i32_0 : i32, i32
  }
  func.func @transform_3(%arg0: i32, %arg1: i32) -> (i32, i32) {
    %c0_i32 = arith.constant 0 : i32
    %c0_i32_0 = arith.constant 0 : i32
    %c0_i32_1 = arith.constant 0 : i32
    return %c0_i32, %c0_i32_0 : i32, i32
  }
  func.func @transform_4(%arg0: i32, %arg1: i32) -> (i32, i32) {
    %c0_i32 = arith.constant 0 : i32
    %c0_i32_0 = arith.constant 0 : i32
    %c0_i32_1 = arith.constant 0 : i32
    return %c0_i32, %c0_i32_0 : i32, i32
  }
  func.func @transform_5(%arg0: i32, %arg1: i32) -> (i32, i32) {
    %c0_i32 = arith.constant 0 : i32
    %c0_i32_0 = arith.constant 0 : i32
    %c0_i32_1 = arith.constant 0 : i32
    return %c0_i32, %c0_i32_0 : i32, i32
  }
  func.func @transform_6(%arg0: i32, %arg1: i32) -> (i32, i32) {
    %c0_i32 = arith.constant 0 : i32
    %c0_i32_0 = arith.constant 0 : i32
    %c0_i32_1 = arith.constant 0 : i32
    return %c0_i32, %c0_i32_0 : i32, i32
  }
  func.func @transform_7(%arg0: i32, %arg1: i32) -> (i32, i32) {
    %c0_i32 = arith.constant 0 : i32
    %c0_i32_0 = arith.constant 0 : i32
    %c0_i32_1 = arith.constant 0 : i32
    return %c0_i32, %c0_i32_0 : i32, i32
  }
  func.func @transform_8(%arg0: i32, %arg1: i32) -> (i32, i32) {
    %c0_i32 = arith.constant 0 : i32
    %c0_i32_0 = arith.constant 0 : i32
    %c0_i32_1 = arith.constant 0 : i32
    return %c0_i32, %c0_i32_0 : i32, i32
  }
  func.func @transform_9(%arg0: i32, %arg1: i32) -> (i32, i32, i32) {
    %c0_i32 = arith.constant 0 : i32
    %c0_i32_0 = arith.constant 0 : i32
    return %arg0, %arg1, %c0_i32 : i32, i32, i32
  }
}

module attributes {stable_mosaic.version = 11 : i64} {
  func.func @_mm_bias_kernel(%arg0: i32, %arg1: memref<8x256xbf16, #tpu.memory_space<vmem>>, %arg2: memref<256x384xbf16, #tpu.memory_space<vmem>>, %arg3: memref<1x384xf32, #tpu.memory_space<vmem>>, %arg4: memref<8x384xbf16, #tpu.memory_space<vmem>>) attributes {dimension_semantics = [#tpu.dimension_semantics<parallel>], iteration_bounds = array<i64: 1>, scalar_prefetch = 0 : i64, scratch_operands = 0 : i64, tpu.core_type = #tpu.core_type<tc>, window_params = [{transform_indices = @transform_0, window_bounds = array<i64: 8, 256>}, {pipeline_mode = #tpu.pipeline_mode<synchronous>, transform_indices = @transform_1, window_bounds = array<i64: 256, 384>}, {pipeline_mode = #tpu.pipeline_mode<synchronous>, transform_indices = @transform_2, window_bounds = array<i64: 1, 384>}, {transform_indices = @transform_3, window_bounds = array<i64: 8, 384>}]} {
    %c0 = arith.constant 0 : index
    %c0_0 = arith.constant 0 : index
    %0 = vector.load %arg1[%c0, %c0_0] : memref<8x256xbf16, #tpu.memory_space<vmem>>, vector<8x256xbf16>
    %c0_1 = arith.constant 0 : index
    %c0_2 = arith.constant 0 : index
    %1 = vector.load %arg2[%c0_1, %c0_2] : memref<256x384xbf16, #tpu.memory_space<vmem>>, vector<256x384xbf16>
    %cst = arith.constant dense<0.000000e+00> : vector<8x384xf32>
    %2 = tpu.matmul %0, %1, %cst {dimension_numbers = #tpu.dot_dimension_numbers<[1], [0], [0], [1], [0, 0, 1, 1], [], []>} : vector<8x256xbf16>, vector<256x384xbf16>, vector<8x384xf32> -> vector<8x384xf32>
    %c0_3 = arith.constant 0 : index
    %c0_4 = arith.constant 0 : index
    %3 = vector.load %arg3[%c0_3, %c0_4] : memref<1x384xf32, #tpu.memory_space<vmem>>, vector<1x384xf32>
    %4 = vector.broadcast %3 : vector<1x384xf32> to vector<8x384xf32>
    %5 = arith.addf %2, %4 : vector<8x384xf32>
    %cst_5 = arith.constant 0.000000e+00 : f32
    %6 = vector.broadcast %cst_5 : f32 to vector<8x384xf32>
    %7 = arith.maximumf %5, %6 : vector<8x384xf32>
    %8 = arith.truncf %7 : vector<8x384xf32> to vector<8x384xbf16>
    %c0_6 = arith.constant 0 : index
    %c0_7 = arith.constant 0 : index
    %9 = vector.load %arg4[%c0_6, %c0_7] : memref<8x384xbf16, #tpu.memory_space<vmem>>, vector<8x384xbf16>
    tpu.vector_store %arg4[%c0_6, %c0_7], %8 {strides = array<i32>} : memref<8x384xbf16, #tpu.memory_space<vmem>>, vector<8x384xbf16>,
    return
  }
  func.func @transform_0(%arg0: i32) -> (i32, i32) {
    %c0_i32 = arith.constant 0 : i32
    %c0_i32_0 = arith.constant 0 : i32
    return %arg0, %c0_i32 : i32, i32
  }
  func.func @transform_1(%arg0: i32) -> (i32, i32) {
    %c0_i32 = arith.constant 0 : i32
    %c0_i32_0 = arith.constant 0 : i32
    %c0_i32_1 = arith.constant 0 : i32
    return %c0_i32, %c0_i32_0 : i32, i32
  }
  func.func @transform_2(%arg0: i32) -> (i32, i32) {
    %c0_i32 = arith.constant 0 : i32
    %c0_i32_0 = arith.constant 0 : i32
    %c0_i32_1 = arith.constant 0 : i32
    return %c0_i32, %c0_i32_0 : i32, i32
  }
  func.func @transform_3(%arg0: i32) -> (i32, i32) {
    %c0_i32 = arith.constant 0 : i32
    %c0_i32_0 = arith.constant 0 : i32
    return %arg0, %c0_i32 : i32, i32
  }
}

module attributes {stable_mosaic.version = 11 : i64} {
  func.func @_mm_bias_kernel(%arg0: i32, %arg1: memref<8x1440xbf16, #tpu.memory_space<vmem>>, %arg2: memref<1440x160xbf16, #tpu.memory_space<vmem>>, %arg3: memref<1x160xf32, #tpu.memory_space<vmem>>, %arg4: memref<8x160xbf16, #tpu.memory_space<vmem>>) attributes {dimension_semantics = [#tpu.dimension_semantics<parallel>], iteration_bounds = array<i64: 1>, scalar_prefetch = 0 : i64, scratch_operands = 0 : i64, tpu.core_type = #tpu.core_type<tc>, window_params = [{transform_indices = @transform_0, window_bounds = array<i64: 8, 1440>}, {pipeline_mode = #tpu.pipeline_mode<synchronous>, transform_indices = @transform_1, window_bounds = array<i64: 1440, 160>}, {pipeline_mode = #tpu.pipeline_mode<synchronous>, transform_indices = @transform_2, window_bounds = array<i64: 1, 160>}, {transform_indices = @transform_3, window_bounds = array<i64: 8, 160>}]} {
    %c0 = arith.constant 0 : index
    %c0_0 = arith.constant 0 : index
    %0 = vector.load %arg1[%c0, %c0_0] : memref<8x1440xbf16, #tpu.memory_space<vmem>>, vector<8x1440xbf16>
    %c0_1 = arith.constant 0 : index
    %c0_2 = arith.constant 0 : index
    %1 = vector.load %arg2[%c0_1, %c0_2] : memref<1440x160xbf16, #tpu.memory_space<vmem>>, vector<1440x160xbf16>
    %cst = arith.constant dense<0.000000e+00> : vector<8x160xf32>
    %2 = tpu.matmul %0, %1, %cst {dimension_numbers = #tpu.dot_dimension_numbers<[1], [0], [0], [1], [0, 0, 1, 1], [], []>} : vector<8x1440xbf16>, vector<1440x160xbf16>, vector<8x160xf32> -> vector<8x160xf32>
    %c0_3 = arith.constant 0 : index
    %c0_4 = arith.constant 0 : index
    %3 = vector.load %arg3[%c0_3, %c0_4] : memref<1x160xf32, #tpu.memory_space<vmem>>, vector<1x160xf32>
    %4 = vector.broadcast %3 : vector<1x160xf32> to vector<8x160xf32>
    %5 = arith.addf %2, %4 : vector<8x160xf32>
    %cst_5 = arith.constant 0.000000e+00 : f32
    %6 = vector.broadcast %cst_5 : f32 to vector<8x160xf32>
    %7 = arith.maximumf %5, %6 : vector<8x160xf32>
    %8 = arith.truncf %7 : vector<8x160xf32> to vector<8x160xbf16>
    %c0_6 = arith.constant 0 : index
    %c0_7 = arith.constant 0 : index
    %9 = vector.load %arg4[%c0_6, %c0_7] : memref<8x160xbf16, #tpu.memory_space<vmem>>, vector<8x160xbf16>
    tpu.vector_store %arg4[%c0_6, %c0_7], %8 {strides = array<i32>} : memref<8x160xbf16, #tpu.memory_space<vmem>>, vector<8x160xbf16>,
    return
  }
  func.func @transform_0(%arg0: i32) -> (i32, i32) {
    %c0_i32 = arith.constant 0 : i32
    %c0_i32_0 = arith.constant 0 : i32
    return %arg0, %c0_i32 : i32, i32
  }
  func.func @transform_1(%arg0: i32) -> (i32, i32) {
    %c0_i32 = arith.constant 0 : i32
    %c0_i32_0 = arith.constant 0 : i32
    %c0_i32_1 = arith.constant 0 : i32
    return %c0_i32, %c0_i32_0 : i32, i32
  }
  func.func @transform_2(%arg0: i32) -> (i32, i32) {
    %c0_i32 = arith.constant 0 : i32
    %c0_i32_0 = arith.constant 0 : i32
    %c0_i32_1 = arith.constant 0 : i32
    return %c0_i32, %c0_i32_0 : i32, i32
  }
  func.func @transform_3(%arg0: i32) -> (i32, i32) {
    %c0_i32 = arith.constant 0 : i32
    %c0_i32_0 = arith.constant 0 : i32
    return %arg0, %c0_i32 : i32, i32
  }
}

module attributes {stable_mosaic.version = 11 : i64} {
  func.func @_dblock_tail_kernel(%arg0: i32, %arg1: i32, %arg2: memref<1x4x320xbf16, #tpu.memory_space<vmem>>, %arg3: memref<1x4x256xbf16, #tpu.memory_space<vmem>>, %arg4: memref<2x320xbf16, #tpu.memory_space<vmem>>, %arg5: memref<320x320xbf16, #tpu.memory_space<vmem>>, %arg6: memref<320x320xbf16, #tpu.memory_space<vmem>>, %arg7: memref<320x384xbf16, #tpu.memory_space<vmem>>, %arg8: memref<1x384xf32, #tpu.memory_space<vmem>>, %arg9: memref<256x384xbf16, #tpu.memory_space<vmem>>, %arg10: memref<1x384xf32, #tpu.memory_space<vmem>>, %arg11: memref<1x4x384xbf16, #tpu.memory_space<vmem>>) attributes {dimension_semantics = [#tpu.dimension_semantics<parallel>, #tpu.dimension_semantics<parallel>], iteration_bounds = array<i64: 2, 1>, scalar_prefetch = 0 : i64, scratch_operands = 0 : i64, tpu.core_type = #tpu.core_type<tc>, window_params = [{transform_indices = @transform_0, window_bounds = array<i64: 1, 4, 320>}, {transform_indices = @transform_1, window_bounds = array<i64: 1, 4, 256>}, {pipeline_mode = #tpu.pipeline_mode<synchronous>, transform_indices = @transform_2, window_bounds = array<i64: 2, 320>}, {pipeline_mode = #tpu.pipeline_mode<synchronous>, transform_indices = @transform_3, window_bounds = array<i64: 320, 320>}, {pipeline_mode = #tpu.pipeline_mode<synchronous>, transform_indices = @transform_4, window_bounds = array<i64: 320, 320>}, {pipeline_mode = #tpu.pipeline_mode<synchronous>, transform_indices = @transform_5, window_bounds = array<i64: 320, 384>}, {pipeline_mode = #tpu.pipeline_mode<synchronous>, transform_indices = @transform_6, window_bounds = array<i64: 1, 384>}, {pipeline_mode = #tpu.pipeline_mode<synchronous>, transform_indices = @transform_7, window_bounds = array<i64: 256, 384>}, {pipeline_mode = #tpu.pipeline_mode<synchronous>, transform_indices = @transform_8, window_bounds = array<i64: 1, 384>}, {transform_indices = @transform_9, window_bounds = array<i64: 1, 4, 384>}]} {
    %c0 = arith.constant 0 : index
    %c0_0 = arith.constant 0 : index
    %0 = vector.load %arg4[%c0, %c0_0] : memref<2x320xbf16, #tpu.memory_space<vmem>>, vector<2x320xbf16>
    %c0_1 = arith.constant 0 : index
    %c0_2 = arith.constant 0 : index
    %1 = vector.load %arg5[%c0_1, %c0_2] : memref<320x320xbf16, #tpu.memory_space<vmem>>, vector<320x320xbf16>
    %cst = arith.constant dense<0.000000e+00> : vector<2x320xf32>
    %2 = tpu.matmul %0, %1, %cst {dimension_numbers = #tpu.dot_dimension_numbers<[1], [0], [0], [1], [0, 0, 1, 1], [], []>} : vector<2x320xbf16>, vector<320x320xbf16>, vector<2x320xf32> -> vector<2x320xf32>
    %cst_3 = arith.constant 0.000000e+00 : f32
    %3 = vector.broadcast %cst_3 : f32 to vector<2x320xf32>
    %4 = arith.maximumf %2, %3 : vector<2x320xf32>
    %5 = arith.truncf %4 : vector<2x320xf32> to vector<2x320xbf16>
    %c0_4 = arith.constant 0 : index
    %c0_5 = arith.constant 0 : index
    %6 = vector.load %arg6[%c0_4, %c0_5] : memref<320x320xbf16, #tpu.memory_space<vmem>>, vector<320x320xbf16>
    %cst_6 = arith.constant dense<0.000000e+00> : vector<2x320xf32>
    %7 = tpu.matmul %5, %6, %cst_6 {dimension_numbers = #tpu.dot_dimension_numbers<[1], [0], [0], [1], [0, 0, 1, 1], [], []>} : vector<2x320xbf16>, vector<320x320xbf16>, vector<2x320xf32> -> vector<2x320xf32>
    %8 = arith.negf %7 : vector<2x320xf32>
    %9 = math.exp %8 : vector<2x320xf32>
    %cst_7 = arith.constant 1.000000e+00 : f32
    %10 = vector.broadcast %cst_7 : f32 to vector<2x320xf32>
    %11 = arith.addf %10, %9 : vector<2x320xf32>
    %12 = arith.divf %10, %11 : vector<2x320xf32>
    %13 = tpu.iota {dimensions = array<i32: 0>} : vector<2x1xi32>
    %14 = vector.broadcast %arg0 : i32 to vector<2x1xi32>
    %15 = arith.cmpi eq, %13, %14 : vector<2x1xi32>
    %16 = arith.extui %15 : vector<2x1xi1> to vector<2x1xi32>
    %17 = arith.sitofp %16 : vector<2x1xi32> to vector<2x1xf32>
    %18 = vector.broadcast %17 : vector<2x1xf32> to vector<2x320xf32>
    %19 = arith.mulf %12, %18 : vector<2x320xf32>
    %cst_8 = arith.constant dense<0.000000e+00> : vector<320xf32>
    %20 = vector.multi_reduction <add>, %19, %cst_8 [0] : vector<2x320xf32> to vector<320xf32>
    %21 = vector.shape_cast %20 : vector<320xf32> to vector<1x320xf32>
    %c0_9 = arith.constant 0 : index
    %c0_10 = arith.constant 0 : index
    %c0_11 = arith.constant 0 : index
    %22 = vector.load %arg2[%c0_9, %c0_10, %c0_11] : memref<1x4x320xbf16, #tpu.memory_space<vmem>>, vector<1x4x320xbf16>
    %23 = vector.shape_cast %22 : vector<1x4x320xbf16> to vector<4x320xbf16>
    %24 = arith.extf %23 : vector<4x320xbf16> to vector<4x320xf32>
    %25 = vector.broadcast %21 : vector<1x320xf32> to vector<4x320xf32>
    %26 = arith.mulf %24, %25 : vector<4x320xf32>
    %27 = arith.truncf %26 : vector<4x320xf32> to vector<4x320xbf16>
    %c0_12 = arith.constant 0 : index
    %c0_13 = arith.constant 0 : index
    %28 = vector.load %arg7[%c0_12, %c0_13] : memref<320x384xbf16, #tpu.memory_space<vmem>>, vector<320x384xbf16>
    %cst_14 = arith.constant dense<0.000000e+00> : vector<4x384xf32>
    %29 = tpu.matmul %27, %28, %cst_14 {dimension_numbers = #tpu.dot_dimension_numbers<[1], [0], [0], [1], [0, 0, 1, 1], [], []>} : vector<4x320xbf16>, vector<320x384xbf16>, vector<4x384xf32> -> vector<4x384xf32>
    %c0_15 = arith.constant 0 : index
    %c0_16 = arith.constant 0 : index
    %30 = vector.load %arg8[%c0_15, %c0_16] : memref<1x384xf32, #tpu.memory_space<vmem>>, vector<1x384xf32>
    %31 = vector.broadcast %30 : vector<1x384xf32> to vector<4x384xf32>
    %32 = arith.addf %29, %31 : vector<4x384xf32>
    %cst_17 = arith.constant 0.000000e+00 : f32
    %33 = vector.broadcast %cst_17 : f32 to vector<4x384xf32>
    %34 = arith.maximumf %32, %33 : vector<4x384xf32>
    %c0_18 = arith.constant 0 : index
    %c0_19 = arith.constant 0 : index
    %c0_20 = arith.constant 0 : index
    %35 = vector.load %arg3[%c0_18, %c0_19, %c0_20] : memref<1x4x256xbf16, #tpu.memory_space<vmem>>, vector<1x4x256xbf16>
    %36 = vector.shape_cast %35 : vector<1x4x256xbf16> to vector<4x256xbf16>
    %c0_21 = arith.constant 0 : index
    %c0_22 = arith.constant 0 : index
    %37 = vector.load %arg9[%c0_21, %c0_22] : memref<256x384xbf16, #tpu.memory_space<vmem>>, vector<256x384xbf16>
    %cst_23 = arith.constant dense<0.000000e+00> : vector<4x384xf32>
    %38 = tpu.matmul %36, %37, %cst_23 {dimension_numbers = #tpu.dot_dimension_numbers<[1], [0], [0], [1], [0, 0, 1, 1], [], []>} : vector<4x256xbf16>, vector<256x384xbf16>, vector<4x384xf32> -> vector<4x384xf32>
    %c0_24 = arith.constant 0 : index
    %c0_25 = arith.constant 0 : index
    %39 = vector.load %arg10[%c0_24, %c0_25] : memref<1x384xf32, #tpu.memory_space<vmem>>, vector<1x384xf32>
    %40 = vector.broadcast %39 : vector<1x384xf32> to vector<4x384xf32>
    %41 = arith.addf %38, %40 : vector<4x384xf32>
    %cst_26 = arith.constant 0.000000e+00 : f32
    %42 = vector.broadcast %cst_26 : f32 to vector<4x384xf32>
    %43 = arith.maximumf %41, %42 : vector<4x384xf32>
    %44 = arith.addf %34, %43 : vector<4x384xf32>
    %cst_27 = arith.constant 0.000000e+00 : f32
    %45 = vector.broadcast %cst_27 : f32 to vector<4x384xf32>
    %46 = arith.maximumf %44, %45 : vector<4x384xf32>
    %47 = arith.truncf %46 : vector<4x384xf32> to vector<4x384xbf16>
    %c0_28 = arith.constant 0 : index
    %c0_29 = arith.constant 0 : index
    %c0_30 = arith.constant 0 : index
    %48 = vector.load %arg11[%c0_28, %c0_29, %c0_30] : memref<1x4x384xbf16, #tpu.memory_space<vmem>>, vector<1x4x384xbf16>
    %49 = vector.shape_cast %48 : vector<1x4x384xbf16> to vector<4x384xbf16>
    %50 = vector.shape_cast %47 : vector<4x384xbf16> to vector<1x4x384xbf16>
    tpu.vector_store %arg11[%c0_28, %c0_29, %c0_30], %50 {strides = array<i32>} : memref<1x4x384xbf16, #tpu.memory_space<vmem>>, vector<1x4x384xbf16>,
    return
  }
  func.func @transform_0(%arg0: i32, %arg1: i32) -> (i32, i32, i32) {
    %c0_i32 = arith.constant 0 : i32
    %c0_i32_0 = arith.constant 0 : i32
    return %arg0, %arg1, %c0_i32 : i32, i32, i32
  }
  func.func @transform_1(%arg0: i32, %arg1: i32) -> (i32, i32, i32) {
    %c0_i32 = arith.constant 0 : i32
    %c0_i32_0 = arith.constant 0 : i32
    return %arg0, %arg1, %c0_i32 : i32, i32, i32
  }
  func.func @transform_2(%arg0: i32, %arg1: i32) -> (i32, i32) {
    %c0_i32 = arith.constant 0 : i32
    %c0_i32_0 = arith.constant 0 : i32
    %c0_i32_1 = arith.constant 0 : i32
    return %c0_i32, %c0_i32_0 : i32, i32
  }
  func.func @transform_3(%arg0: i32, %arg1: i32) -> (i32, i32) {
    %c0_i32 = arith.constant 0 : i32
    %c0_i32_0 = arith.constant 0 : i32
    %c0_i32_1 = arith.constant 0 : i32
    return %c0_i32, %c0_i32_0 : i32, i32
  }
  func.func @transform_4(%arg0: i32, %arg1: i32) -> (i32, i32) {
    %c0_i32 = arith.constant 0 : i32
    %c0_i32_0 = arith.constant 0 : i32
    %c0_i32_1 = arith.constant 0 : i32
    return %c0_i32, %c0_i32_0 : i32, i32
  }
  func.func @transform_5(%arg0: i32, %arg1: i32) -> (i32, i32) {
    %c0_i32 = arith.constant 0 : i32
    %c0_i32_0 = arith.constant 0 : i32
    %c0_i32_1 = arith.constant 0 : i32
    return %c0_i32, %c0_i32_0 : i32, i32
  }
  func.func @transform_6(%arg0: i32, %arg1: i32) -> (i32, i32) {
    %c0_i32 = arith.constant 0 : i32
    %c0_i32_0 = arith.constant 0 : i32
    %c0_i32_1 = arith.constant 0 : i32
    return %c0_i32, %c0_i32_0 : i32, i32
  }
  func.func @transform_7(%arg0: i32, %arg1: i32) -> (i32, i32) {
    %c0_i32 = arith.constant 0 : i32
    %c0_i32_0 = arith.constant 0 : i32
    %c0_i32_1 = arith.constant 0 : i32
    return %c0_i32, %c0_i32_0 : i32, i32
  }
  func.func @transform_8(%arg0: i32, %arg1: i32) -> (i32, i32) {
    %c0_i32 = arith.constant 0 : i32
    %c0_i32_0 = arith.constant 0 : i32
    %c0_i32_1 = arith.constant 0 : i32
    return %c0_i32, %c0_i32_0 : i32, i32
  }
  func.func @transform_9(%arg0: i32, %arg1: i32) -> (i32, i32, i32) {
    %c0_i32 = arith.constant 0 : i32
    %c0_i32_0 = arith.constant 0 : i32
    return %arg0, %arg1, %c0_i32 : i32, i32, i32
  }
}

</mosaic_0001>

<bundles_post_ra>
// kernel: _lambda_.73
= control target key start
LH: loop header
LB: loop body
LE: loop exit
PB: predicated region body
PF: predicated region fallthrough
CT: control target
= control target key end

     0   :  { %s828_s12 = smov 0   ;;  %s950_s0 = inlined_call_operand.vmem [shape: bf16[512,27], index: 0, kind: input, shape index: {}]   ;;  %s951_s1 = inlined_call_operand.vmem [shape: bf16[27,128], index: 1, kind: input, shape index: {}]   ;;  %s952_s2 = inlined_call_operand.vmem [shape: f32[1,128], index: 2, kind: input, shape index: {}]   ;;  %s953_s3 = inlined_call_operand.vmem [shape: bf16[512,128], index: 3, kind: output, shape index: {}]  }
   0x1 LB: > { %s571_s13 = sadd.s32 4294967295, %s805_s12   ;;  %p575_p0 = scmp.ge.s32.totalorder %s805_s12, 1  ;;  %s805_s12 = sphi %s828_s12, %s13_s12  }
   0x2   : > { %p138_p1 = scmp.lt.s32.totalorder %s805_s12, 3 }
   0x4   : > { %p139_p2 = pnand %p575_p0, %p138_p1 }
   0x5   : > { %s576_s18 = sshll.u32 (!%p139_p2), %s571_s13, 5 }
   0x6   : > { %142 = sbr.rel (%p139_p2) target bundleno = 219 (0xdb), region = 32  ;;  %p163_p3 = scmp.lt.s32.totalorder (!%p139_p2), %s576_s18, 63 }
   0xb   : > { %v650_v0 = vld [vmem:[%s951_s1 + $0x8] sm:$0xf]  ;;  %v687_v1 = vld [vmem:[%s951_s1 + $0x8] sm:$0x30]  ;;  %vm355_vm0 = vcmask 1044480   ;;  %vm356_vm1 = vcmask 1045504  }
   0xc   : > { %v651_v2 = vor.u32 %v687_v1, %v650_v0  ;;  %v807_v3 = vmov 65535   ;;  %s955_s18 = smov (!%p163_p3, %s576_s18), 63  ;;  %v686_v7 = vld [vmem:[%s951_s1] sm:$0xff]  ;;  %vm306_vm2 = vcmask 220160  }
   0xd   : > { %v357_v4 = vsel %vm355_vm0, 4294967295, %v807_v3  ;;  %s577_s21 = sshll.u32 %s955_s18, 2  ;;  %v890_v26 = vld [vmem:[%s952_s2] ss:$0 sm:$0xff] }
   0xe   : > { %v358_v5 = vsel %vm356_vm1, %v357_v4, 0  ;;  %s853_s24 = scalar_lea.vmem %s950_s0, %s577_s21  ;;  %s901_s29 = scalar_lea.vmem %s953_s3, %s577_s21 }
   0xf   : > { %v360_v6 = vand.u32 %v651_v2, %v358_v5  ;;  %v670_v8 = vld [vmem:[%s853_s24] sm:$0xff]  ;;  %v671_v12 = vld [vmem:[%s853_s24 + $0x8] sm:$0xff]  ;;  %v672_v16 = vld [vmem:[%s853_s24 + $0x10] sm:$0xff] }
  0x10   : > { %v674_v9 = vld [vmem:[%s853_s24 + $0x20] sm:$0xff]  ;;  %v675_v13 = vld [vmem:[%s853_s24 + $0x28] sm:$0xff]  ;;  %v676_v17 = vld [vmem:[%s853_s24 + $0x30] sm:$0xff] }
  0x11   : > { %368 = vmatpush.bf16.msra.mxu0 %v360_v6  ;;  %783 = vmatpush.bf16.msra.mxu1 %v360_v6  ;;  %v678_v10 = vld [vmem:[%s853_s24 + $0x40] sm:$0xff]  ;;  %v679_v14 = vld [vmem:[%s853_s24 + $0x48] sm:$0xff]  ;;  %v680_v18 = vld [vmem:[%s853_s24 + $0x50] sm:$0xff] }
  0x12   : > { %784 = vmatpush.bf16.msra.mxu2 %v360_v6  ;;  %785 = vmatpush.bf16.msra.mxu3 %v360_v6  ;;  %v682_v11 = vld [vmem:[%s853_s24 + $0x60] sm:$0xff]  ;;  %v683_v15 = vld [vmem:[%s853_s24 + $0x68] sm:$0xff]  ;;  %v684_v19 = vld [vmem:[%s853_s24 + $0x70] sm:$0xff] }
  0x13   : > { %v673_v20 = vld [vmem:[%s853_s24 + $0x18] sm:$0xff] }
  0x14   : > { %v677_v21 = vld [vmem:[%s853_s24 + $0x38] sm:$0xff] }
  0x15   : > { %369 = vmatpush.bf16.msra.mxu0 %v686_v7  ;;  %786 = vmatpush.bf16.msra.mxu1 %v686_v7  ;;  %v681_v22 = vld [vmem:[%s853_s24 + $0x58] sm:$0xff] }
  0x16   : > { %787 = vmatpush.bf16.msra.mxu2 %v686_v7  ;;  %788 = vmatpush.bf16.msra.mxu3 %v686_v7  ;;  %v685_v23 = vld [vmem:[%s853_s24 + $0x78] sm:$0xff] }
  0x18   : > { %652 = vmatmul.msk.bf16.vlgmr.msra.gmra.mxu0 %vm306_vm2, %v670_v8  ;;  %656 = vmatmul.msk.bf16.vlgmr.msra.gmra.mxu1 %vm306_vm2, %v674_v9 }
  0x19   : > { %660 = vmatmul.msk.bf16.vlgmr.msra.gmra.mxu2 %vm306_vm2, %v678_v10  ;;  %664 = vmatmul.msk.bf16.vlgmr.msra.gmra.mxu3 %vm306_vm2, %v682_v11 }
  0x28   : > { %653 = vmatmul.msk.bf16.gmra.mxu0 %vm306_vm2, %v671_v12  ;;  %657 = vmatmul.msk.bf16.gmra.mxu1 %vm306_vm2, %v675_v13 }
  0x29   : > { %661 = vmatmul.msk.bf16.gmra.mxu2 %vm306_vm2, %v679_v14  ;;  %665 = vmatmul.msk.bf16.gmra.mxu3 %vm306_vm2, %v683_v15 }
  0x38   : > { %654 = vmatmul.msk.bf16.gmra.mxu0 %vm306_vm2, %v672_v16  ;;  %658 = vmatmul.msk.bf16.gmra.mxu1 %vm306_vm2, %v676_v17 }
  0x39   : > { %662 = vmatmul.msk.bf16.gmra.mxu2 %vm306_vm2, %v680_v18  ;;  %666 = vmatmul.msk.bf16.gmra.mxu3 %vm306_vm2, %v684_v19 }
  0x48   : > { %655 = vmatmul.msk.bf16.gmra.mxu0 %vm306_vm2, %v673_v20  ;;  %659 = vmatmul.msk.bf16.gmra.mxu1 %vm306_vm2, %v677_v21 }
  0x49   : > { %663 = vmatmul.msk.bf16.gmra.mxu2 %vm306_vm2, %v681_v22  ;;  %667 = vmatmul.msk.bf16.gmra.mxu3 %vm306_vm2, %v685_v23 }
  0x95   : > { %v371_v24 = vpop.f32.mrf.mxu0  ;;  %v391_v25 = vpop.f32.mrf.mxu1 }
  0x96   : > { %v372_v31 = vadd.f32 %v890_v26, %v371_v24  ;;  %v392_v32 = vadd.f32 %v890_v26, %v391_v25 }
  0x9c   : > { %v411_v27 = vpop.f32.mrf.mxu2  ;;  %v431_v28 = vpop.f32.mrf.mxu3 }
  0x9d   : > { %v373_v29 = vpop.f32.mrf.mxu0  ;;  %v393_v30 = vpop.f32.mrf.mxu1  ;;  %v412_v39 = vadd.f32 %v890_v26, %v411_v27  ;;  %v432_v40 = vadd.f32 %v890_v26, %v431_v28 }
  0x9e   : > { %v374_v33 = vadd.f32 %v890_v26, %v373_v29  ;;  %v394_v34 = vadd.f32 %v890_v26, %v393_v30 }
  0xa0   : > { %v691_v35 = vpack.c.bf16 %v374_v33, %v372_v31  ;;  %v711_v36 = vpack.c.bf16 %v394_v34, %v392_v32 }
  0xa2   : > { %692 = vst [vmem:[%s901_s29] sm:$0xff] %v691_v35  }
  0xa3   : > { %771 = vst [vmem:[%s901_s29 + $0x20] sm:$0xff] %v711_v36  }
  0xa4   : > { %v413_v37 = vpop.f32.mrf.mxu2  ;;  %v433_v38 = vpop.f32.mrf.mxu3 }
  0xa5   : > { %v414_v41 = vadd.f32 %v890_v26, %v413_v37  ;;  %v434_v42 = vadd.f32 %v890_v26, %v433_v38  ;;  %v376_v43 = vpop.f32.mrf.mxu0  ;;  %v396_v44 = vpop.f32.mrf.mxu1 }
  0xa6   : > { %v377_v51 = vadd.f32 %v890_v26, %v376_v43  ;;  %v397_v52 = vadd.f32 %v890_v26, %v396_v44 }
  0xa7   : > { %v731_v45 = vpack.c.bf16 %v414_v41, %v412_v39  ;;  %v751_v46 = vpack.c.bf16 %v434_v42, %v432_v40 }
  0xa9   : > { %775 = vst [vmem:[%s901_s29 + $0x40] sm:$0xff] %v731_v45  }
  0xaa   : > { %779 = vst [vmem:[%s901_s29 + $0x60] sm:$0xff] %v751_v46  }
  0xac   : > { %v416_v47 = vpop.f32.mrf.mxu2  ;;  %v436_v48 = vpop.f32.mrf.mxu3 }
  0xad   : > { %v378_v49 = vpop.f32.mrf.mxu0  ;;  %v398_v50 = vpop.f32.mrf.mxu1  ;;  %v417_v59 = vadd.f32 %v890_v26, %v416_v47  ;;  %v437_v60 = vadd.f32 %v890_v26, %v436_v48 }
  0xae   : > { %v379_v53 = vadd.f32 %v890_v26, %v378_v49  ;;  %v399_v54 = vadd.f32 %v890_v26, %v398_v50 }
  0xb0   : > { %v696_v55 = vpack.c.bf16 %v379_v53, %v377_v51  ;;  %v716_v56 = vpack.c.bf16 %v399_v54, %v397_v52 }
  0xb2   : > { %768 = vst [vmem:[%s901_s29 + $0x8] sm:$0xff] %v696_v55  }
  0xb3   : > { %772 = vst [vmem:[%s901_s29 + $0x28] sm:$0xff] %v716_v56  }
  0xb4   : > { %v418_v57 = vpop.f32.mrf.mxu2  ;;  %v438_v58 = vpop.f32.mrf.mxu3 }
  0xb5   : > { %v419_v61 = vadd.f32 %v890_v26, %v418_v57  ;;  %v439_v62 = vadd.f32 %v890_v26, %v438_v58  ;;  %v381_v63 = vpop.f32.mrf.mxu0  ;;  %v401_v0 = vpop.f32.mrf.mxu1 }
  0xb6   : > { %v382_v7 = vadd.f32 %v890_v26, %v381_v63  ;;  %v402_v8 = vadd.f32 %v890_v26, %v401_v0 }
  0xb7   : > { %v736_v1 = vpack.c.bf16 %v419_v61, %v417_v59  ;;  %v756_v2 = vpack.c.bf16 %v439_v62, %v437_v60 }
  0xb9   : > { %776 = vst [vmem:[%s901_s29 + $0x48] sm:$0xff] %v736_v1  }
  0xba   : > { %780 = vst [vmem:[%s901_s29 + $0x68] sm:$0xff] %v756_v2  }
  0xbc   : > { %v421_v3 = vpop.f32.mrf.mxu2  ;;  %v441_v4 = vpop.f32.mrf.mxu3 }
  0xbd   : > { %v383_v5 = vpop.f32.mrf.mxu0  ;;  %v403_v6 = vpop.f32.mrf.mxu1  ;;  %v422_v15 = vadd.f32 %v890_v26, %v421_v3  ;;  %v442_v16 = vadd.f32 %v890_v26, %v441_v4 }
  0xbe   : > { %v384_v9 = vadd.f32 %v890_v26, %v383_v5  ;;  %v404_v10 = vadd.f32 %v890_v26, %v403_v6 }
  0xc0   : > { %v701_v11 = vpack.c.bf16 %v384_v9, %v382_v7  ;;  %v721_v12 = vpack.c.bf16 %v404_v10, %v402_v8 }
  0xc2   : > { %769 = vst [vmem:[%s901_s29 + $0x10] sm:$0xff] %v701_v11  }
  0xc3   : > { %773 = vst [vmem:[%s901_s29 + $0x30] sm:$0xff] %v721_v12  }
  0xc4   : > { %v423_v13 = vpop.f32.mrf.mxu2  ;;  %v443_v14 = vpop.f32.mrf.mxu3 }
  0xc5   : > { %v424_v17 = vadd.f32 %v890_v26, %v423_v13  ;;  %v444_v18 = vadd.f32 %v890_v26, %v443_v14  ;;  %v386_v19 = vpop.f32.mrf.mxu0  ;;  %v406_v20 = vpop.f32.mrf.mxu1 }
  0xc6   : > { %v387_v28 = vadd.f32 %v890_v26, %v386_v19  ;;  %v407_v29 = vadd.f32 %v890_v26, %v406_v20 }
  0xc7   : > { %v741_v21 = vpack.c.bf16 %v424_v17, %v422_v15  ;;  %v761_v22 = vpack.c.bf16 %v444_v18, %v442_v16 }
  0xc9   : > { %777 = vst [vmem:[%s901_s29 + $0x50] sm:$0xff] %v741_v21  }
  0xca   : > { %781 = vst [vmem:[%s901_s29 + $0x70] sm:$0xff] %v761_v22  }
  0xcc   : > { %v426_v23 = vpop.f32.mrf.mxu2  ;;  %v446_v24 = vpop.f32.mrf.mxu3 }
  0xcd   : > { %v388_v25 = vpop.f32.mrf.mxu0  ;;  %v408_v27 = vpop.f32.mrf.mxu1  ;;  %v427_v36 = vadd.f32 %v890_v26, %v426_v23  ;;  %v447_v37 = vadd.f32 %v890_v26, %v446_v24 }
  0xce   : > { %v389_v30 = vadd.f32 %v890_v26, %v388_v25  ;;  %v409_v31 = vadd.f32 %v890_v26, %v408_v27 }
  0xd0   : > { %v706_v32 = vpack.c.bf16 %v389_v30, %v387_v28  ;;  %v726_v33 = vpack.c.bf16 %v409_v31, %v407_v29 }
  0xd2   : > { %770 = vst [vmem:[%s901_s29 + $0x18] sm:$0xff] %v706_v32  }
  0xd3   : > { %774 = vst [vmem:[%s901_s29 + $0x38] sm:$0xff] %v726_v33  }
  0xd4   : > { %v428_v34 = vpop.f32.mrf.mxu2  ;;  %v448_v35 = vpop.f32.mrf.mxu3 }
  0xd5   : > { %v429_v38 = vadd.f32 %v890_v26, %v428_v34  ;;  %v449_v39 = vadd.f32 %v890_v26, %v448_v35 }
  0xd7   : > { %v746_v40 = vpack.c.bf16 %v429_v38, %v427_v36  ;;  %v766_v41 = vpack.c.bf16 %v449_v39, %v447_v37 }
  0xd9   : > { %778 = vst [vmem:[%s901_s29 + $0x58] sm:$0xff] %v746_v40  }
  0xda   : > { %782 = vst [vmem:[%s901_s29 + $0x78] sm:$0xff] %v766_v41  }
  0xdb PF: > { %s13_s12 = sadd.s32 1, %s805_s12  }
  0xdc   : > { %p10_p4 = scmp.ge.s32.totalorder %s13_s12, 4  }
  0xde   :  { %12 = sbr.rel (!%p10_p4) target bundleno = 1 (0x1), region = 62 }

// kernel: _lambda_.74
= control target key start
LH: loop header
LB: loop body
LE: loop exit
PB: predicated region body
PF: predicated region fallthrough
CT: control target
= control target key end

     0   :  { %s898_s12 = smov 0   ;;  %s1019_s0 = inlined_call_operand.vmem [shape: bf16[512,128], index: 0, kind: input, shape index: {}]   ;;  %s1020_s1 = inlined_call_operand.vmem [shape: bf16[128,128], index: 1, kind: input, shape index: {}]   ;;  %s1021_s2 = inlined_call_operand.vmem [shape: f32[1,128], index: 2, kind: input, shape index: {}]   ;;  %s1022_s3 = inlined_call_operand.vmem [shape: bf16[512,128], index: 3, kind: output, shape index: {}]  }
   0x1 LB: > { %s611_s13 = sadd.s32 4294967295, %s876_s12   ;;  %p615_p0 = scmp.ge.s32.totalorder %s876_s12, 1  ;;  %s876_s12 = sphi %s898_s12, %s13_s12  }
   0x2   : > { %p138_p1 = scmp.lt.s32.totalorder %s876_s12, 3 }
   0x4   : > { %p139_p2 = pnand %p615_p0, %p138_p1 }
   0x5   : > { %s616_s22 = sshll.u32 (!%p139_p2), %s611_s13, 5 }
   0x6   : > { %142 = sbr.rel (%p139_p2) target bundleno = 240 (0xf0), region = 32  ;;  %p163_p3 = scmp.lt.s32.totalorder (!%p139_p2), %s616_s22, 63 }
   0xb   : > { %v741_v0 = vld [vmem:[%s1020_s1 + $0x38] sm:$0xff]  ;;  %v740_v1 = vld [vmem:[%s1020_s1 + $0x30] sm:$0xff]  ;;  %v739_v2 = vld [vmem:[%s1020_s1 + $0x28] sm:$0xff]  ;;  %s1024_s22 = smov (!%p163_p3, %s616_s22), 63 }
   0xc   : > { %370 = vmatpush.bf16.msra.mxu0 %v741_v0  ;;  %837 = vmatpush.bf16.msra.mxu1 %v741_v0  ;;  %v738_v3 = vld [vmem:[%s1020_s1 + $0x20] sm:$0xff]  ;;  %v737_v4 = vld [vmem:[%s1020_s1 + $0x18] sm:$0xff]  ;;  %v736_v5 = vld [vmem:[%s1020_s1 + $0x10] sm:$0xff]  ;;  %s617_s29 = sshll.u32 %s1024_s22, 2 }
   0xd   : > { %838 = vmatpush.bf16.msra.mxu2 %v741_v0  ;;  %839 = vmatpush.bf16.msra.mxu3 %v741_v0  ;;  %v735_v6 = vld [vmem:[%s1020_s1 + $0x8] sm:$0xff]  ;;  %v734_v7 = vld [vmem:[%s1020_s1] sm:$0xff]  ;;  %s938_s7 = scalar_lea.vmem %s1019_s0, %s617_s29  ;;  %s970_s13 = scalar_lea.vmem %s1022_s3, %s617_s29 }
   0xe   : > { %v718_v8 = vld [vmem:[%s938_s7] sm:$0xff]  ;;  %v719_v12 = vld [vmem:[%s938_s7 + $0x8] sm:$0xff]  ;;  %v720_v16 = vld [vmem:[%s938_s7 + $0x10] sm:$0xff] }
   0xf   : > { %v722_v9 = vld [vmem:[%s938_s7 + $0x20] sm:$0xff]  ;;  %v723_v13 = vld [vmem:[%s938_s7 + $0x28] sm:$0xff]  ;;  %v724_v17 = vld [vmem:[%s938_s7 + $0x30] sm:$0xff] }
  0x10   : > { %371 = vmatpush.bf16.msra.mxu0 %v740_v1  ;;  %840 = vmatpush.bf16.msra.mxu1 %v740_v1  ;;  %v726_v10 = vld [vmem:[%s938_s7 + $0x40] sm:$0xff]  ;;  %v727_v14 = vld [vmem:[%s938_s7 + $0x48] sm:$0xff]  ;;  %v728_v18 = vld [vmem:[%s938_s7 + $0x50] sm:$0xff] }
  0x11   : > { %841 = vmatpush.bf16.msra.mxu2 %v740_v1  ;;  %842 = vmatpush.bf16.msra.mxu3 %v740_v1  ;;  %v730_v11 = vld [vmem:[%s938_s7 + $0x60] sm:$0xff]  ;;  %v731_v15 = vld [vmem:[%s938_s7 + $0x68] sm:$0xff]  ;;  %v732_v19 = vld [vmem:[%s938_s7 + $0x70] sm:$0xff] }
  0x12   : > { %v721_v20 = vld [vmem:[%s938_s7 + $0x18] sm:$0xff]  ;;  %v959_v26 = vld [vmem:[%s1021_s2] ss:$0 sm:$0xff] }
  0x13   : > { %v725_v21 = vld [vmem:[%s938_s7 + $0x38] sm:$0xff] }
  0x14   : > { %372 = vmatpush.bf16.msra.mxu0 %v739_v2  ;;  %843 = vmatpush.bf16.msra.mxu1 %v739_v2  ;;  %v729_v22 = vld [vmem:[%s938_s7 + $0x58] sm:$0xff] }
  0x15   : > { %844 = vmatpush.bf16.msra.mxu2 %v739_v2  ;;  %845 = vmatpush.bf16.msra.mxu3 %v739_v2  ;;  %v733_v23 = vld [vmem:[%s938_s7 + $0x78] sm:$0xff] }
  0x18   : > { %373 = vmatpush.bf16.msra.mxu0 %v738_v3  ;;  %846 = vmatpush.bf16.msra.mxu1 %v738_v3 }
  0x19   : > { %847 = vmatpush.bf16.msra.mxu2 %v738_v3  ;;  %848 = vmatpush.bf16.msra.mxu3 %v738_v3 }
  0x1c   : > { %374 = vmatpush.bf16.msra.mxu0 %v737_v4  ;;  %849 = vmatpush.bf16.msra.mxu1 %v737_v4 }
  0x1d   : > { %850 = vmatpush.bf16.msra.mxu2 %v737_v4  ;;  %851 = vmatpush.bf16.msra.mxu3 %v737_v4 }
  0x20   : > { %375 = vmatpush.bf16.msra.mxu0 %v736_v5  ;;  %852 = vmatpush.bf16.msra.mxu1 %v736_v5 }
  0x21   : > { %853 = vmatpush.bf16.msra.mxu2 %v736_v5  ;;  %854 = vmatpush.bf16.msra.mxu3 %v736_v5 }
  0x24   : > { %376 = vmatpush.bf16.msra.mxu0 %v735_v6  ;;  %855 = vmatpush.bf16.msra.mxu1 %v735_v6 }
  0x25   : > { %856 = vmatpush.bf16.msra.mxu2 %v735_v6  ;;  %857 = vmatpush.bf16.msra.mxu3 %v735_v6 }
  0x28   : > { %377 = vmatpush.bf16.msra.mxu0 %v734_v7  ;;  %858 = vmatpush.bf16.msra.mxu1 %v734_v7 }
  0x29   : > { %859 = vmatpush.bf16.msra.mxu2 %v734_v7  ;;  %860 = vmatpush.bf16.msra.mxu3 %v734_v7 }
  0x2b   : > { %378 = vmatmul.bf16.vlgmr.msra.gmra.mxu0 %v718_v8  ;;  %398 = vmatmul.bf16.vlgmr.msra.gmra.mxu1 %v722_v9 }
  0x2c   : > { %418 = vmatmul.bf16.vlgmr.msra.gmra.mxu2 %v726_v10  ;;  %438 = vmatmul.bf16.vlgmr.msra.gmra.mxu3 %v730_v11 }
  0x3b   : > { %383 = vmatmul.bf16.gmra.mxu0 %v719_v12  ;;  %403 = vmatmul.bf16.gmra.mxu1 %v723_v13 }
  0x3c   : > { %423 = vmatmul.bf16.gmra.mxu2 %v727_v14  ;;  %443 = vmatmul.bf16.gmra.mxu3 %v731_v15 }
  0x4b   : > { %388 = vmatmul.bf16.gmra.mxu0 %v720_v16  ;;  %408 = vmatmul.bf16.gmra.mxu1 %v724_v17 }
  0x4c   : > { %428 = vmatmul.bf16.gmra.mxu2 %v728_v18  ;;  %448 = vmatmul.bf16.gmra.mxu3 %v732_v19 }
  0x5b   : > { %393 = vmatmul.bf16.gmra.mxu0 %v721_v20  ;;  %413 = vmatmul.bf16.gmra.mxu1 %v725_v21 }
  0x5c   : > { %433 = vmatmul.bf16.gmra.mxu2 %v729_v22  ;;  %453 = vmatmul.bf16.gmra.mxu3 %v733_v23 }
  0xa8   : > { %v379_v24 = vpop.f32.mrf.mxu0  ;;  %v399_v25 = vpop.f32.mrf.mxu1 }
  0xa9   : > { %v380_v27 = vadd.f32 %v959_v26, %v379_v24  ;;  %v400_v28 = vadd.f32 %v959_v26, %v399_v25 }
  0xab   : > { %v459_v35 = vmax.f32 %v380_v27, 0.0  ;;  %v467_v36 = vmax.f32 %v400_v28, 0.0 }
  0xaf   : > { %v419_v29 = vpop.f32.mrf.mxu2  ;;  %v439_v30 = vpop.f32.mrf.mxu3 }
  0xb0   : > { %v381_v31 = vpop.f32.mrf.mxu0  ;;  %v401_v32 = vpop.f32.mrf.mxu1  ;;  %v420_v41 = vadd.f32 %v959_v26, %v419_v29  ;;  %v440_v42 = vadd.f32 %v959_v26, %v439_v30 }
  0xb1   : > { %v382_v33 = vadd.f32 %v959_v26, %v381_v31  ;;  %v402_v34 = vadd.f32 %v959_v26, %v401_v32 }
  0xb2   : > { %v475_v49 = vmax.f32 %v420_v41, 0.0  ;;  %v483_v50 = vmax.f32 %v440_v42, 0.0 }
  0xb3   : > { %v460_v37 = vmax.f32 %v382_v33, 0.0  ;;  %v468_v38 = vmax.f32 %v402_v34, 0.0 }
  0xb5   : > { %v745_v39 = vpack.c.bf16 %v460_v37, %v459_v35  ;;  %v765_v40 = vpack.c.bf16 %v468_v38, %v467_v36 }
  0xb7   : > { %746 = vst [vmem:[%s970_s13] sm:$0xff] %v745_v39   ;;  %v421_v43 = vpop.f32.mrf.mxu2  ;;  %v441_v44 = vpop.f32.mrf.mxu3 }
  0xb8   : > { %825 = vst [vmem:[%s970_s13 + $0x20] sm:$0xff] %v765_v40   ;;  %v422_v45 = vadd.f32 %v959_v26, %v421_v43  ;;  %v442_v46 = vadd.f32 %v959_v26, %v441_v44  ;;  %v384_v47 = vpop.f32.mrf.mxu0  ;;  %v404_v48 = vpop.f32.mrf.mxu1 }
  0xb9   : > { %v385_v55 = vadd.f32 %v959_v26, %v384_v47  ;;  %v405_v56 = vadd.f32 %v959_v26, %v404_v48 }
  0xba   : > { %v476_v51 = vmax.f32 %v422_v45, 0.0  ;;  %v484_v52 = vmax.f32 %v442_v46, 0.0 }
  0xbb   : > { %v461_v63 = vmax.f32 %v385_v55, 0.0  ;;  %v469_v0 = vmax.f32 %v405_v56, 0.0 }
  0xbc   : > { %v785_v53 = vpack.c.bf16 %v476_v51, %v475_v49  ;;  %v805_v54 = vpack.c.bf16 %v484_v52, %v483_v50 }
  0xbe   : > { %829 = vst [vmem:[%s970_s13 + $0x40] sm:$0xff] %v785_v53  }
  0xbf   : > { %833 = vst [vmem:[%s970_s13 + $0x60] sm:$0xff] %v805_v54   ;;  %v424_v57 = vpop.f32.mrf.mxu2  ;;  %v444_v58 = vpop.f32.mrf.mxu3 }
  0xc0   : > { %v386_v59 = vpop.f32.mrf.mxu0  ;;  %v406_v60 = vpop.f32.mrf.mxu1  ;;  %v425_v5 = vadd.f32 %v959_v26, %v424_v57  ;;  %v445_v6 = vadd.f32 %v959_v26, %v444_v58 }
  0xc1   : > { %v387_v61 = vadd.f32 %v959_v26, %v386_v59  ;;  %v407_v62 = vadd.f32 %v959_v26, %v406_v60 }
  0xc2   : > { %v477_v13 = vmax.f32 %v425_v5, 0.0  ;;  %v485_v14 = vmax.f32 %v445_v6, 0.0 }
  0xc3   : > { %v462_v1 = vmax.f32 %v387_v61, 0.0  ;;  %v470_v2 = vmax.f32 %v407_v62, 0.0 }
  0xc5   : > { %v750_v3 = vpack.c.bf16 %v462_v1, %v461_v63  ;;  %v770_v4 = vpack.c.bf16 %v470_v2, %v469_v0 }
  0xc7   : > { %822 = vst [vmem:[%s970_s13 + $0x8] sm:$0xff] %v750_v3   ;;  %v426_v7 = vpop.f32.mrf.mxu2  ;;  %v446_v8 = vpop.f32.mrf.mxu3 }
  0xc8   : > { %826 = vst [vmem:[%s970_s13 + $0x28] sm:$0xff] %v770_v4   ;;  %v427_v9 = vadd.f32 %v959_v26, %v426_v7  ;;  %v447_v10 = vadd.f32 %v959_v26, %v446_v8  ;;  %v389_v11 = vpop.f32.mrf.mxu0  ;;  %v409_v12 = vpop.f32.mrf.mxu1 }
  0xc9   : > { %v390_v19 = vadd.f32 %v959_v26, %v389_v11  ;;  %v410_v20 = vadd.f32 %v959_v26, %v409_v12 }
  0xca   : > { %v478_v15 = vmax.f32 %v427_v9, 0.0  ;;  %v486_v16 = vmax.f32 %v447_v10, 0.0 }
  0xcb   : > { %v463_v28 = vmax.f32 %v390_v19, 0.0  ;;  %v471_v29 = vmax.f32 %v410_v20, 0.0 }
  0xcc   : > { %v790_v17 = vpack.c.bf16 %v478_v15, %v477_v13  ;;  %v810_v18 = vpack.c.bf16 %v486_v16, %v485_v14 }
  0xce   : > { %830 = vst [vmem:[%s970_s13 + $0x48] sm:$0xff] %v790_v17  }
  0xcf   : > { %834 = vst [vmem:[%s970_s13 + $0x68] sm:$0xff] %v810_v18   ;;  %v429_v21 = vpop.f32.mrf.mxu2  ;;  %v449_v22 = vpop.f32.mrf.mxu3 }
  0xd0   : > { %v391_v23 = vpop.f32.mrf.mxu0  ;;  %v411_v24 = vpop.f32.mrf.mxu1  ;;  %v430_v34 = vadd.f32 %v959_v26, %v429_v21  ;;  %v450_v35 = vadd.f32 %v959_v26, %v449_v22 }
  0xd1   : > { %v392_v25 = vadd.f32 %v959_v26, %v391_v23  ;;  %v412_v27 = vadd.f32 %v959_v26, %v411_v24 }
  0xd2   : > { %v479_v42 = vmax.f32 %v430_v34, 0.0  ;;  %v487_v43 = vmax.f32 %v450_v35, 0.0 }
  0xd3   : > { %v464_v30 = vmax.f32 %v392_v25, 0.0  ;;  %v472_v31 = vmax.f32 %v412_v27, 0.0 }
  0xd5   : > { %v755_v32 = vpack.c.bf16 %v464_v30, %v463_v28  ;;  %v775_v33 = vpack.c.bf16 %v472_v31, %v471_v29 }
  0xd7   : > { %823 = vst [vmem:[%s970_s13 + $0x10] sm:$0xff] %v755_v32   ;;  %v431_v36 = vpop.f32.mrf.mxu2  ;;  %v451_v37 = vpop.f32.mrf.mxu3 }
  0xd8   : > { %827 = vst [vmem:[%s970_s13 + $0x30] sm:$0xff] %v775_v33   ;;  %v432_v38 = vadd.f32 %v959_v26, %v431_v36  ;;  %v452_v39 = vadd.f32 %v959_v26, %v451_v37  ;;  %v394_v40 = vpop.f32.mrf.mxu0  ;;  %v414_v41 = vpop.f32.mrf.mxu1 }
  0xd9   : > { %v395_v48 = vadd.f32 %v959_v26, %v394_v40  ;;  %v415_v49 = vadd.f32 %v959_v26, %v414_v41 }
  0xda   : > { %v480_v44 = vmax.f32 %v432_v38, 0.0  ;;  %v488_v45 = vmax.f32 %v452_v39, 0.0 }
  0xdb   : > { %v465_v56 = vmax.f32 %v395_v48, 0.0  ;;  %v473_v57 = vmax.f32 %v415_v49, 0.0 }
  0xdc   : > { %v795_v46 = vpack.c.bf16 %v480_v44, %v479_v42  ;;  %v815_v47 = vpack.c.bf16 %v488_v45, %v487_v43 }
  0xde   : > { %831 = vst [vmem:[%s970_s13 + $0x50] sm:$0xff] %v795_v46  }
  0xdf   : > { %835 = vst [vmem:[%s970_s13 + $0x70] sm:$0xff] %v815_v47   ;;  %v434_v50 = vpop.f32.mrf.mxu2  ;;  %v454_v51 = vpop.f32.mrf.mxu3 }
  0xe0   : > { %v396_v52 = vpop.f32.mrf.mxu0  ;;  %v416_v53 = vpop.f32.mrf.mxu1  ;;  %v435_v62 = vadd.f32 %v959_v26, %v434_v50  ;;  %v455_v63 = vadd.f32 %v959_v26, %v454_v51 }
  0xe1   : > { %v397_v54 = vadd.f32 %v959_v26, %v396_v52  ;;  %v417_v55 = vadd.f32 %v959_v26, %v416_v53 }
  0xe2   : > { %v481_v4 = vmax.f32 %v435_v62, 0.0  ;;  %v489_v5 = vmax.f32 %v455_v63, 0.0 }
  0xe3   : > { %v466_v58 = vmax.f32 %v397_v54, 0.0  ;;  %v474_v59 = vmax.f32 %v417_v55, 0.0 }
  0xe5   : > { %v760_v60 = vpack.c.bf16 %v466_v58, %v465_v56  ;;  %v780_v61 = vpack.c.bf16 %v474_v59, %v473_v57 }
  0xe7   : > { %824 = vst [vmem:[%s970_s13 + $0x18] sm:$0xff] %v760_v60   ;;  %v436_v0 = vpop.f32.mrf.mxu2  ;;  %v456_v1 = vpop.f32.mrf.mxu3 }
  0xe8   : > { %828 = vst [vmem:[%s970_s13 + $0x38] sm:$0xff] %v780_v61   ;;  %v437_v2 = vadd.f32 %v959_v26, %v436_v0  ;;  %v457_v3 = vadd.f32 %v959_v26, %v456_v1 }
  0xea   : > { %v482_v6 = vmax.f32 %v437_v2, 0.0  ;;  %v490_v7 = vmax.f32 %v457_v3, 0.0 }
  0xec   : > { %v800_v8 = vpack.c.bf16 %v482_v6, %v481_v4  ;;  %v820_v9 = vpack.c.bf16 %v490_v7, %v489_v5 }
  0xee   : > { %832 = vst [vmem:[%s970_s13 + $0x58] sm:$0xff] %v800_v8  }
  0xef   : > { %836 = vst [vmem:[%s970_s13 + $0x78] sm:$0xff] %v820_v9  }
  0xf0 PF: > { %s13_s12 = sadd.s32 1, %s876_s12  }
  0xf1   : > { %p10_p4 = scmp.ge.s32.totalorder %s13_s12, 4  }
  0xf3   :  { %12 = sbr.rel (!%p10_p4) target bundleno = 1 (0x1), region = 62 }

// kernel: _lambda_.78
= control target key start
LH: loop header
LB: loop body
LE: loop exit
PB: predicated region body
PF: predicated region fallthrough
CT: control target
= control target key end

     0   :  { %s538_s12 = smov 0   ;;  %s589_s0 = inlined_call_operand.vmem [shape: bf16[128,128], index: 0, kind: input, shape index: {}]   ;;  %s590_s1 = inlined_call_operand.vmem [shape: bf16[128,128], index: 1, kind: input, shape index: {}]   ;;  %s591_s2 = inlined_call_operand.vmem [shape: f32[1,128], index: 2, kind: input, shape index: {}]   ;;  %s592_s3 = inlined_call_operand.vmem [shape: bf16[128,128], index: 3, kind: output, shape index: {}]  }
   0x1 LB: > { %s383_s13 = sadd.s32 4294967295, %s516_s12   ;;  %p387_p0 = scmp.ge.s32.totalorder %s516_s12, 1  ;;  %s516_s12 = sphi %s538_s12, %s13_s12  }
   0x2   : > { %p138_p1 = scmp.lt.s32.totalorder %s516_s12, 3 }
   0x4   : > { %p139_p2 = pnand %p387_p0, %p138_p1 }
   0x5   : > { %s388_s22 = sshll.u32 (!%p139_p2), %s383_s13, 3 }
   0x6   : > { %142 = sbr.rel (%p139_p2) target bundleno = 192 (0xc0), region = 32  ;;  %p163_p3 = scmp.lt.s32.totalorder (!%p139_p2), %s388_s22, 15 }
   0xb   : > { %v453_v0 = vld [vmem:[%s590_s1 + $0x38] sm:$0xff]  ;;  %v452_v1 = vld [vmem:[%s590_s1 + $0x30] sm:$0xff]  ;;  %v451_v2 = vld [vmem:[%s590_s1 + $0x28] sm:$0xff]  ;;  %s594_s22 = smov (!%p163_p3, %s388_s22), 15 }
   0xc   : > { %274 = vmatpush.bf16.msra.mxu0 %v453_v0  ;;  %477 = vmatpush.bf16.msra.mxu1 %v453_v0  ;;  %v450_v3 = vld [vmem:[%s590_s1 + $0x20] sm:$0xff]  ;;  %v449_v4 = vld [vmem:[%s590_s1 + $0x18] sm:$0xff]  ;;  %v448_v5 = vld [vmem:[%s590_s1 + $0x10] sm:$0xff]  ;;  %s389_s29 = sshll.u32 %s594_s22, 2 }
   0xd   : > { %478 = vmatpush.bf16.msra.mxu2 %v453_v0  ;;  %479 = vmatpush.bf16.msra.mxu3 %v453_v0  ;;  %v447_v6 = vld [vmem:[%s590_s1 + $0x8] sm:$0xff]  ;;  %v446_v7 = vld [vmem:[%s590_s1] sm:$0xff]  ;;  %s166_s7 = scalar_lea.vmem %s589_s0, %s389_s29  ;;  %s172_s13 = scalar_lea.vmem %s592_s3, %s389_s29 }
   0xe   : > { %v442_v8 = vld [vmem:[%s166_s7] sm:$0xff]  ;;  %v443_v9 = vld [vmem:[%s166_s7 + $0x8] sm:$0xff]  ;;  %v444_v10 = vld [vmem:[%s166_s7 + $0x10] sm:$0xff] }
   0xf   : > { %v445_v11 = vld [vmem:[%s166_s7 + $0x18] sm:$0xff]  ;;  %v509_v14 = vld [vmem:[%s591_s2] ss:$0 sm:$0xff] }
  0x10   : > { %275 = vmatpush.bf16.msra.mxu0 %v452_v1  ;;  %480 = vmatpush.bf16.msra.mxu1 %v452_v1 }
  0x11   : > { %481 = vmatpush.bf16.msra.mxu2 %v452_v1  ;;  %482 = vmatpush.bf16.msra.mxu3 %v452_v1 }
  0x14   : > { %276 = vmatpush.bf16.msra.mxu0 %v451_v2  ;;  %483 = vmatpush.bf16.msra.mxu1 %v451_v2 }
  0x15   : > { %484 = vmatpush.bf16.msra.mxu2 %v451_v2  ;;  %485 = vmatpush.bf16.msra.mxu3 %v451_v2 }
  0x18   : > { %277 = vmatpush.bf16.msra.mxu0 %v450_v3  ;;  %486 = vmatpush.bf16.msra.mxu1 %v450_v3 }
  0x19   : > { %487 = vmatpush.bf16.msra.mxu2 %v450_v3  ;;  %488 = vmatpush.bf16.msra.mxu3 %v450_v3 }
  0x1c   : > { %278 = vmatpush.bf16.msra.mxu0 %v449_v4  ;;  %489 = vmatpush.bf16.msra.mxu1 %v449_v4 }
  0x1d   : > { %490 = vmatpush.bf16.msra.mxu2 %v449_v4  ;;  %491 = vmatpush.bf16.msra.mxu3 %v449_v4 }
  0x20   : > { %279 = vmatpush.bf16.msra.mxu0 %v448_v5  ;;  %492 = vmatpush.bf16.msra.mxu1 %v448_v5 }
  0x21   : > { %493 = vmatpush.bf16.msra.mxu2 %v448_v5  ;;  %494 = vmatpush.bf16.msra.mxu3 %v448_v5 }
  0x24   : > { %280 = vmatpush.bf16.msra.mxu0 %v447_v6  ;;  %495 = vmatpush.bf16.msra.mxu1 %v447_v6 }
  0x25   : > { %496 = vmatpush.bf16.msra.mxu2 %v447_v6  ;;  %497 = vmatpush.bf16.msra.mxu3 %v447_v6 }
  0x28   : > { %281 = vmatpush.bf16.msra.mxu0 %v446_v7  ;;  %498 = vmatpush.bf16.msra.mxu1 %v446_v7 }
  0x29   : > { %499 = vmatpush.bf16.msra.mxu2 %v446_v7  ;;  %500 = vmatpush.bf16.msra.mxu3 %v446_v7 }
  0x2b   : > { %282 = vmatmul.bf16.vlgmr.msra.gmra.mxu0 %v442_v8  ;;  %287 = vmatmul.bf16.vlgmr.msra.gmra.mxu1 %v443_v9 }
  0x2c   : > { %292 = vmatmul.bf16.vlgmr.msra.gmra.mxu2 %v444_v10  ;;  %297 = vmatmul.bf16.vlgmr.msra.gmra.mxu3 %v445_v11 }
  0xa8   : > { %v283_v12 = vpop.f32.mrf.mxu0  ;;  %v288_v13 = vpop.f32.mrf.mxu1 }
  0xa9   : > { %v284_v15 = vadd.f32 %v509_v14, %v283_v12  ;;  %v289_v16 = vadd.f32 %v509_v14, %v288_v13 }
  0xab   : > { %v303_v23 = vmax.f32 %v284_v15, 0.0  ;;  %v305_v24 = vmax.f32 %v289_v16, 0.0 }
  0xaf   : > { %v293_v17 = vpop.f32.mrf.mxu2  ;;  %v298_v18 = vpop.f32.mrf.mxu3 }
  0xb0   : > { %v285_v19 = vpop.f32.mrf.mxu0  ;;  %v290_v20 = vpop.f32.mrf.mxu1  ;;  %v294_v29 = vadd.f32 %v509_v14, %v293_v17  ;;  %v299_v30 = vadd.f32 %v509_v14, %v298_v18 }
  0xb1   : > { %v286_v21 = vadd.f32 %v509_v14, %v285_v19  ;;  %v291_v22 = vadd.f32 %v509_v14, %v290_v20 }
  0xb2   : > { %v307_v35 = vmax.f32 %v294_v29, 0.0  ;;  %v309_v36 = vmax.f32 %v299_v30, 0.0 }
  0xb3   : > { %v304_v25 = vmax.f32 %v286_v21, 0.0  ;;  %v306_v26 = vmax.f32 %v291_v22, 0.0 }
  0xb5   : > { %v457_v27 = vpack.c.bf16 %v304_v25, %v303_v23  ;;  %v462_v28 = vpack.c.bf16 %v306_v26, %v305_v24 }
  0xb7   : > { %458 = vst [vmem:[%s172_s13] sm:$0xff] %v457_v27   ;;  %v295_v31 = vpop.f32.mrf.mxu2  ;;  %v300_v32 = vpop.f32.mrf.mxu3 }
  0xb8   : > { %474 = vst [vmem:[%s172_s13 + $0x8] sm:$0xff] %v462_v28   ;;  %v296_v33 = vadd.f32 %v509_v14, %v295_v31  ;;  %v301_v34 = vadd.f32 %v509_v14, %v300_v32 }
  0xba   : > { %v308_v37 = vmax.f32 %v296_v33, 0.0  ;;  %v310_v38 = vmax.f32 %v301_v34, 0.0 }
  0xbc   : > { %v467_v39 = vpack.c.bf16 %v308_v37, %v307_v35  ;;  %v472_v40 = vpack.c.bf16 %v310_v38, %v309_v36 }
  0xbe   : > { %475 = vst [vmem:[%s172_s13 + $0x10] sm:$0xff] %v467_v39  }
  0xbf   : > { %476 = vst [vmem:[%s172_s13 + $0x18] sm:$0xff] %v472_v40  }
  0xc0 PF: > { %s13_s12 = sadd.s32 1, %s516_s12  }
  0xc1   : > { %p10_p4 = scmp.ge.s32.totalorder %s13_s12, 4  }
  0xc3   :  { %12 = sbr.rel (!%p10_p4) target bundleno = 1 (0x1), region = 62 }

// kernel: _lambda_.75
= control target key start
LH: loop header
LB: loop body
LE: loop exit
PB: predicated region body
PF: predicated region fallthrough
CT: control target
= control target key end

     0   :  { %s663_s12 = smov 0   ;;  %s769_s0 = inlined_call_operand.vmem [shape: bf16[128,216], index: 0, kind: input, shape index: {}]   ;;  %s770_s1 = inlined_call_operand.vmem [shape: bf16[216,24], index: 1, kind: input, shape index: {}]   ;;  %s771_s2 = inlined_call_operand.vmem [shape: f32[1,24], index: 2, kind: input, shape index: {}]   ;;  %s772_s3 = inlined_call_operand.vmem [shape: bf16[128,24], index: 3, kind: output, shape index: {}]  }
   0x1 LB: > { %s490_s13 = sadd.s32 4294967295, %s641_s12   ;;  %p494_p0 = scmp.ge.s32.totalorder %s641_s12, 1  ;;  %s641_s12 = sphi %s663_s12, %s13_s12  }
   0x2   : > { %p139_p1 = scmp.lt.s32.totalorder %s641_s12, 3 }
   0x4   : > { %p140_p2 = pnand %p494_p0, %p139_p1 }
   0x5   : > { %s495_s20 = sshll.u32 (!%p140_p2), %s490_s13, 3 }
   0x6   : > { %143 = sbr.rel (%p140_p2) target bundleno = 219 (0xdb), region = 32  ;;  %p165_p3 = scmp.lt.s32.totalorder (!%p140_p2), %s495_s20, 15 }
   0xb   : > { %v606_v0 = vld [vmem:[%s770_s1 + $0x38] sm:$0xff]  ;;  %v212_v1 = vld [vmem:[%s770_s1 + $0x68] sm:$0xf]  ;;  %vm347_vm0 = vcmask 1043456   ;;  %v605_v3 = vld [vmem:[%s770_s1 + $0x30] sm:$0xff]  ;;  %s774_s20 = smov (!%p165_p3, %s495_s20), 15 }
   0xc   : > { %v306_v2 = vunpack.c.l.b16 %v212_v1  ;;  %351 = vmatpush.bf16.msra.mxu0 %v606_v0  ;;  %612 = vmatpush.bf16.msra.mxu2 %v606_v0  ;;  %v611_v6 = vld [vmem:[%s770_s1 + $0x60] sm:$0xff]  ;;  %v604_v7 = vld [vmem:[%s770_s1 + $0x28] sm:$0xff]  ;;  %v610_v8 = vld [vmem:[%s770_s1 + $0x58] sm:$0xff]  ;;  %s590_s6 = sshll.u32 %s774_s20, 3  ;;  %vm334_vm1 = vcmask 719872   ;;  %s499_s24 = sshll.u32 %s774_s20, 2 }
   0xd   : > { %v603_v9 = vld [vmem:[%s770_s1 + $0x20] sm:$0xff]  ;;  %v609_v10 = vld [vmem:[%s770_s1 + $0x50] sm:$0xff]  ;;  %v602_v11 = vld [vmem:[%s770_s1 + $0x18] sm:$0xff]  ;;  %s710_s14 = scalar_lea.vmem %s769_s0, %s590_s6  ;;  %s748_s27 = scalar_lea.vmem %s772_s3, %s499_s24  ;;  %vm425_vm2 = vcmask 191488  }
   0xe   : > { %v320_v4 = vpack.c.b16 %v306_v2, %v306_v2  ;;  %v608_v12 = vld [vmem:[%s770_s1 + $0x48] sm:$0xff]  ;;  %v601_v13 = vld [vmem:[%s770_s1 + $0x10] sm:$0xff]  ;;  %v607_v14 = vld [vmem:[%s770_s1 + $0x40] sm:$0xff] }
   0xf   : > { %v600_v15 = vld [vmem:[%s770_s1 + $0x8] sm:$0xff]  ;;  %v593_v16 = vld [vmem:[%s710_s14 + $0x14] sm:$0xf]  ;;  %v512_v17 = vld [vmem:[%s710_s14 + $0x18] sm:$0xf0] }
  0x10   : > { %v349_v5 = vsel %vm347_vm0, %v320_v4, 0  ;;  %352 = vmatpush.bf16.msra.mxu0 %v605_v3  ;;  %613 = vmatpush.bf16.msra.mxu2 %v605_v3  ;;  %v591_v18 = vld [vmem:[%s710_s14 + $0x4] sm:$0xf]  ;;  %v504_v19 = vld [vmem:[%s710_s14 + $0x8] sm:$0xf0]  ;;  %v515_v20 = vor.u32 %v593_v16, %v512_v17 }
  0x11   : > { %620 = vmatpush.bf16.msra.mxu3 %v349_v5  ;;  %382 = vmatpush.bf16.msra.mxu1 %v349_v5  ;;  %v599_v21 = vld [vmem:[%s770_s1] sm:$0xff]  ;;  %v592_v23 = vld [vmem:[%s710_s14 + $0x4] sm:$0xf0]  ;;  %v507_v24 = vor.u32 %v591_v18, %v504_v19  ;;  %v520_v30 = vld [vmem:[%s710_s14 + $0x28] sm:$0xf0] }
  0x12   : > { %v502_v22 = vld [vmem:[%s710_s14] sm:$0xf]  ;;  %v596_v26 = vld [vmem:[%s710_s14 + $0x24] sm:$0xf0]  ;;  %v595_v29 = vld [vmem:[%s710_s14 + $0x24] sm:$0xf] }
  0x13   : > { %v518_v25 = vld [vmem:[%s710_s14 + $0x20] sm:$0xf]  ;;  %v503_v27 = vor.u32 %v592_v23, %v502_v22  ;;  %v523_v31 = vor.u32 %v595_v29, %v520_v30  ;;  %v510_v32 = vld [vmem:[%s710_s14 + $0x10] sm:$0xf]  ;;  %v594_v33 = vld [vmem:[%s710_s14 + $0x14] sm:$0xf0] }
  0x14   : > { %353 = vmatpush.bf16.msra.mxu0 %v604_v7  ;;  %614 = vmatpush.bf16.msra.mxu2 %v604_v7  ;;  %v519_v28 = vor.u32 %v596_v26, %v518_v25  ;;  %v526_v34 = vld [vmem:[%s710_s14 + $0x30] sm:$0xf]  ;;  %v598_v35 = vld [vmem:[%s710_s14 + $0x34] sm:$0xf0]  ;;  %v511_v36 = vor.u32 %v594_v33, %v510_v32  ;;  %v597_v38 = vld [vmem:[%s710_s14 + $0x34] sm:$0xf] }
  0x15   : > { %621 = vmatpush.bf16.msra.mxu3 %v611_v6  ;;  %383 = vmatpush.bf16.msra.mxu1 %v611_v6  ;;  %v527_v37 = vor.u32 %v598_v35, %v526_v34  ;;  %v528_v39 = vld [vmem:[%s710_s14 + $0x38] sm:$0xf0]  ;;  %v634_v41 = vld [vmem:[%s771_s2] ss:$0 sm:$0xff] }
  0x16   : > { %v531_v40 = vor.u32 %v597_v38, %v528_v39 }
  0x18   : > { %354 = vmatpush.bf16.msra.mxu0 %v603_v9  ;;  %615 = vmatpush.bf16.msra.mxu2 %v603_v9 }
  0x19   : > { %622 = vmatpush.bf16.msra.mxu3 %v610_v8  ;;  %384 = vmatpush.bf16.msra.mxu1 %v610_v8 }
  0x1c   : > { %355 = vmatpush.bf16.msra.mxu0 %v602_v11  ;;  %616 = vmatpush.bf16.msra.mxu2 %v602_v11 }
  0x1d   : > { %623 = vmatpush.bf16.msra.mxu3 %v609_v10  ;;  %385 = vmatpush.bf16.msra.mxu1 %v609_v10 }
  0x20   : > { %356 = vmatpush.bf16.msra.mxu0 %v601_v13  ;;  %617 = vmatpush.bf16.msra.mxu2 %v601_v13 }
  0x21   : > { %624 = vmatpush.bf16.msra.mxu3 %v608_v12  ;;  %386 = vmatpush.bf16.msra.mxu1 %v608_v12 }
  0x24   : > { %357 = vmatpush.bf16.msra.mxu0 %v600_v15  ;;  %618 = vmatpush.bf16.msra.mxu2 %v600_v15 }
  0x25   : > { %625 = vmatpush.bf16.msra.mxu3 %v607_v14  ;;  %387 = vmatpush.bf16.msra.mxu1 %v607_v14 }
  0x28   : > { %585 = vmatmul.msk.bf16.vlgmr.msra.gmra.mxu3 %vm334_vm1, %v515_v20  ;;  %358 = vmatpush.bf16.msra.mxu0 %v599_v21 }
  0x29   : > { %584 = vmatmul.msk.bf16.vlgmr.msra.gmra.mxu1 %vm334_vm1, %v507_v24  ;;  %619 = vmatpush.bf16.msra.mxu2 %v599_v21 }
  0x2b   : > { %359 = vmatmul.bf16.vlgmr.msra.gmra.mxu0 %v503_v27 }
  0x2c   : > { %369 = vmatmul.bf16.vlgmr.msra.gmra.mxu2 %v519_v28 }
  0x38   : > { %586 = vmatmul.msk.bf16.gmra.mxu3 %vm334_vm1, %v523_v31 }
  0x3b   : > { %364 = vmatmul.bf16.gmra.mxu0 %v511_v36 }
  0x3c   : > { %374 = vmatmul.bf16.gmra.mxu2 %v527_v37 }
  0x48   : > { %587 = vmatmul.msk.bf16.gmra.mxu3 %vm334_vm1, %v531_v40 }
  0xa6   : > { %v389_v42 = vpop.f32.mrf.mxu1 }
  0xa8   : > { %v360_v43 = vpop.f32.mrf.mxu0 }
  0xa9   : > { %v361_v44 = vadd.f32 %v634_v41, %v360_v43 }
  0xab   : > { %v394_v45 = vpop.f32.mrf.mxu3  ;;  %v390_v46 = vadd.f32 %v389_v42, %v361_v44 }
  0xad   : > { %v409_v47 = vmax.f32 %v390_v46, 0.0 }
  0xae   : > { %v391_v49 = vpop.f32.mrf.mxu1 }
  0xaf   : > { %v417_v48 = vpack.c.bf16 %v409_v47, %v409_v47  ;;  %v370_v50 = vpop.f32.mrf.mxu2 }
  0xb0   : > { %v362_v51 = vpop.f32.mrf.mxu0  ;;  %v371_v56 = vadd.f32 %v634_v41, %v370_v50 }
  0xb1   : > { %v363_v52 = vadd.f32 %v634_v41, %v362_v51  ;;  %426 = vst.msk [vmem:[%s748_s27] sm:$0xf] %vm425_vm2, %v417_v48 }
  0xb3   : > { %v396_v53 = vpop.f32.mrf.mxu3  ;;  %v392_v54 = vadd.f32 %v391_v49, %v363_v52 }
  0xb5   : > { %v410_v55 = vmax.f32 %v392_v54, 0.0 }
  0xb7   : > { %v418_v57 = vpack.c.bf16 %v410_v55, %v410_v55  ;;  %v372_v60 = vpop.f32.mrf.mxu2 }
  0xb8   : > { %v365_v58 = vpop.f32.mrf.mxu0  ;;  %v373_v5 = vadd.f32 %v634_v41, %v372_v60 }
  0xb9   : > { %v366_v59 = vadd.f32 %v634_v41, %v365_v58  ;;  %427 = vst.msk [vmem:[%s748_s27 + $0x4] sm:$0xf] %vm425_vm2, %v418_v57 }
  0xbb   : > { %v399_v61 = vpop.f32.mrf.mxu3  ;;  %v395_v62 = vadd.f32 %v394_v45, %v366_v59 }
  0xbc   : > { %v400_v63 = vadd.f32 %v399_v61, %v371_v56 }
  0xbd   : > { %v411_v0 = vmax.f32 %v395_v62, 0.0 }
  0xbe   : > { %v413_v1 = vmax.f32 %v400_v63, 0.0 }
  0xbf   : > { %v419_v2 = vpack.c.bf16 %v411_v0, %v411_v0  ;;  %v375_v10 = vpop.f32.mrf.mxu2 }
  0xc0   : > { %v421_v3 = vpack.c.bf16 %v413_v1, %v413_v1  ;;  %v367_v4 = vpop.f32.mrf.mxu0  ;;  %v376_v13 = vadd.f32 %v634_v41, %v375_v10 }
  0xc1   : > { %428 = vst.msk [vmem:[%s748_s27 + $0x8] sm:$0xf] %vm425_vm2, %v419_v2  ;;  %v368_v6 = vadd.f32 %v634_v41, %v367_v4 }
  0xc2   : > { %430 = vst.msk [vmem:[%s748_s27 + $0x10] sm:$0xf] %vm425_vm2, %v421_v3 }
  0xc3   : > { %v401_v7 = vpop.f32.mrf.mxu3  ;;  %v397_v8 = vadd.f32 %v396_v53, %v368_v6 }
  0xc4   : > { %v402_v9 = vadd.f32 %v401_v7, %v373_v5 }
  0xc5   : > { %v412_v11 = vmax.f32 %v397_v8, 0.0 }
  0xc6   : > { %v414_v12 = vmax.f32 %v402_v9, 0.0 }
  0xc7   : > { %v420_v14 = vpack.c.bf16 %v412_v11, %v412_v11  ;;  %v377_v19 = vpop.f32.mrf.mxu2 }
  0xc8   : > { %v422_v15 = vpack.c.bf16 %v414_v12, %v414_v12  ;;  %v378_v21 = vadd.f32 %v634_v41, %v377_v19 }
  0xc9   : > { %429 = vst.msk [vmem:[%s748_s27 + $0xc] sm:$0xf] %vm425_vm2, %v420_v14 }
  0xca   : > { %431 = vst.msk [vmem:[%s748_s27 + $0x14] sm:$0xf] %vm425_vm2, %v422_v15 }
  0xcb   : > { %v404_v16 = vpop.f32.mrf.mxu3 }
  0xcc   : > { %v405_v17 = vadd.f32 %v404_v16, %v376_v13 }
  0xce   : > { %v415_v18 = vmax.f32 %v405_v17, 0.0 }
  0xd0   : > { %v423_v20 = vpack.c.bf16 %v415_v18, %v415_v18 }
  0xd2   : > { %432 = vst.msk [vmem:[%s748_s27 + $0x18] sm:$0xf] %vm425_vm2, %v423_v20 }
  0xd3   : > { %v406_v22 = vpop.f32.mrf.mxu3 }
  0xd4   : > { %v407_v23 = vadd.f32 %v406_v22, %v378_v21 }
  0xd6   : > { %v416_v24 = vmax.f32 %v407_v23, 0.0 }
  0xd8   : > { %v424_v25 = vpack.c.bf16 %v416_v24, %v416_v24 }
  0xda   : > { %433 = vst.msk [vmem:[%s748_s27 + $0x1c] sm:$0xf] %vm425_vm2, %v424_v25 }
  0xdb PF: > { %s13_s12 = sadd.s32 1, %s641_s12  }
  0xdc   : > { %p10_p4 = scmp.ge.s32.totalorder %s13_s12, 4  }
  0xde   :  { %12 = sbr.rel (!%p10_p4) target bundleno = 1 (0x1), region = 62 }

// kernel: _lambda_.77
= control target key start
LH: loop header
LB: loop body
LE: loop exit
PB: predicated region body
PF: predicated region fallthrough
CT: control target
= control target key end

     0   :  { %s1112_s30 = smov 0   ;;  %s1114_s10 = smov 0   ;;  %s1243_s0 = inlined_call_operand.vmem [shape: bf16[2,64,48], index: 0, kind: input, shape index: {}]   ;;  %s1244_s1 = inlined_call_operand.vmem [shape: bf16[2,64,128], index: 1, kind: input, shape index: {}]   ;;  %s1245_s2 = inlined_call_operand.vmem [shape: bf16[2,48], index: 2, kind: input, shape index: {}]   ;;  %s1246_s3 = inlined_call_operand.vmem [shape: bf16[48,48], index: 3, kind: input, shape index: {}]   ;;  %s1247_s4 = inlined_call_operand.vmem [shape: bf16[48,48], index: 4, kind: input, shape index: {}]   ;;  %s1248_s5 = inlined_call_operand.vmem [shape: bf16[48,128], index: 5, kind: input, shape index: {}]   ;;  %s1249_s6 = inlined_call_operand.vmem [shape: f32[1,128], index: 6, kind: input, shape index: {}, may-alias: {6,8}]   ;;  %s1250_s7 = inlined_call_operand.vmem [shape: bf16[128,128], index: 7, kind: input, shape index: {}]   ;;  %s1251_s8 = inlined_call_operand.vmem [shape: f32[1,128], index: 8, kind: input, shape index: {}, may-alias: {6,8}]   ;;  %s1252_s9 = inlined_call_operand.vmem [shape: bf16[2,64,128], index: 9, kind: output, shape index: {}]  }
   0x1   :  { %s1116_s11 = smov 0   ;;  %s1118_s12 = smov 0  }
   0x2   :  { %s1120_s13 = smov 0  }
   0x3 LB: > { %s28_s14 = sadd.s32 1, %s1051_s11  ;;  %s31_s15 = sadd.s32 1, %s1055_s12  ;;  %s1059_s13 = sphi %s1120_s13, %s19_s13   ;;  %s1055_s12 = sphi %s1118_s12, %s1256_s12   ;;  %s1051_s11 = sphi %s1116_s11, %s1255_s11   ;;  %s1047_s10 = sphi %s1114_s10, %s1254_s10   ;;  %s1043_s30 = sphi %s1112_s30, %s1253_s30  }
   0x4   : > { %p29_p0 = scmp.ge.s32.totalorder %s28_s14, 2  ;;  %p833_p1 = scmp.ge.s32.totalorder %s1059_s13, 1 }
   0x5   : > { %p325_p2 = scmp.lt.s32.totalorder %s1059_s13, 5 }
   0x6   : > { %s1258_s14 = smov (%p29_p0, %s28_s14), 0  ;;  %s1260_s15 = smov (!%p29_p0, %s31_s15), %s1055_s12 }
   0x7   : > { %p326_p3 = pnand %p833_p1, %p325_p2  ;;  %p33_p4 = scmp.ge.s32.totalorder %s1260_s15, 2 }
   0x8   : > { %s834_s28 = sshll.u32 (!%p326_p3), %s1043_s30, 2  ;;  %p379_p5 = scmp.lt.s32.totalorder (!%p326_p3), %s1047_s10, 1 }
   0x9   : > { %s1262_s15 = smov (%p33_p4, %s1260_s15), 0  ;;  %329 = sbr.rel (%p326_p3) target bundleno = 496 (0x1f0), region = 56 }
   0xa   : > { %p381_p6 = scmp.lt.s32.totalorder (!%p326_p3), %s834_s28, 7 }
   0xe   : > { %v929_v0 = vld [vmem:[%s1246_s3 + $0x10] sm:$0xff]  ;;  %v928_v1 = vld [vmem:[%s1246_s3 + $0x8] sm:$0xff]  ;;  %v927_v2 = vld [vmem:[%s1246_s3] sm:$0xff]  ;;  %vm434_vm0 = vcmask 392192   ;;  %s380_s19 = scalar_select %p379_p5, %s1047_s10, 1  ;;  %v512_v26 = vlaneseq  ;;  %v514_v33 = vstv %s1047_s10  ;;  %v1061_v40 = vmov 0.0  }
   0xf   : > { %443 = vmatpush.bf16.msra.mxu1 %v929_v0  ;;  %v932_v3 = vld [vmem:[%s1247_s4 + $0x10] sm:$0xff]  ;;  %v409_v4 = vld [vmem:[%s1245_s2] sm:$0x1]  ;;  %v931_v5 = vld [vmem:[%s1247_s4 + $0x8] sm:$0xff]  ;;  %s1264_s28 = smov (!%p381_p6, %s834_s28), 7  ;;  %vm519_vm6 = vcmask 386048  }
  0x10   : > { %v930_v6 = vld [vmem:[%s1247_s4] sm:$0xff]  ;;  %v945_v11 = vld [vmem:[%s1250_s7 + $0x38] sm:$0xff]  ;;  %v944_v12 = vld [vmem:[%s1250_s7 + $0x30] sm:$0xff]  ;;  %s835_s21 = sshll.u32 %s380_s19, 3  ;;  %v513_v29 = vshrl.u32 %v512_v26, 7 }
  0x11   : > { %682 = vmatpush.bf16.msra.mxu0 %v945_v11  ;;  %966 = vmatpush.bf16.msra.mxu3 %v945_v11  ;;  %v943_v13 = vld [vmem:[%s1250_s7 + $0x28] sm:$0xff]  ;;  %v935_v14 = vld [vmem:[%s1248_s5 + $0x10] sm:$0xff]  ;;  %v942_v15 = vld [vmem:[%s1250_s7 + $0x20] sm:$0xff]  ;;  %s384_s24 = sadd.s32 %s835_s21, %s1264_s28 }
  0x12   : > { %580 = vmatpush.bf16.msra.mxu2 %v935_v14  ;;  %v934_v17 = vld [vmem:[%s1248_s5 + $0x8] sm:$0xff]  ;;  %v941_v19 = vld [vmem:[%s1250_s7 + $0x18] sm:$0xff]  ;;  %v933_v20 = vld [vmem:[%s1248_s5] sm:$0xff]  ;;  %s1202_s25 = sshll.u32 %s384_s24, 2  ;;  %vm515_vm1 = vcmp.eq.s32.totalorder %v513_v29, %v514_v33 }
  0x13   : > { %444 = vmatpush.bf16.msra.mxu1 %v928_v1  ;;  %v940_v21 = vld [vmem:[%s1250_s7 + $0x10] sm:$0xff]  ;;  %v939_v25 = vld [vmem:[%s1250_s7 + $0x8] sm:$0xff]  ;;  %s396_s29 = scalar_lea.vmem %s1244_s1, %s1202_s25  ;;  %v938_v27 = vld [vmem:[%s1250_s7] sm:$0xff]  ;;  %v870_v41 = vsel %vm515_vm1, 1.0, %v1061_v40  ;;  %s386_s18 = scalar_lea.vmem %s1243_s0, %s1202_s25 }
  0x14   : > { %v936_v30 = vld [vmem:[%s396_s29] sm:$0xff]  ;;  %v937_v31 = vld [vmem:[%s396_s29 + $0x8] sm:$0xff]  ;;  %s406_s24 = scalar_lea.vmem %s1252_s9, %s1202_s25 }
  0x15   : > { %683 = vmatpush.bf16.msra.mxu0 %v944_v12  ;;  %967 = vmatpush.bf16.msra.mxu3 %v944_v12  ;;  %v947_v49 = vld [vmem:[%s386_s18] sm:$0xff]   ;;  %v964_v58 = vld [vmem:[%s386_s18 + $0x8] sm:$0xff]  }
  0x16   : > { %581 = vmatpush.bf16.msra.mxu2 %v934_v17  ;;  %v948_v52 = vunpack.c.l.bf16 %v947_v49  ;;  %v949_v53 = vunpack.c.h.bf16 %v947_v49  ;;  %v952_v59 = vunpack.c.l.bf16 %v964_v58  ;;  %v953_v60 = vunpack.c.h.bf16 %v964_v58  ;;  %v1015_v1 = vld [vmem:[%s1249_s6] ss:$0 sm:$0xff] }
  0x17   : > { %445 = vmatpush.bf16.msra.mxu1 %v927_v2  ;;  %v1016_v2 = vld [vmem:[%s1251_s8] ss:$0 sm:$0xff] }
  0x19   : > { %684 = vmatpush.bf16.msra.mxu0 %v943_v13  ;;  %968 = vmatpush.bf16.msra.mxu3 %v943_v13 }
  0x1a   : > { %855 = vmatmul.msk.bf16.vlgmr.msra.gmra.mxu1 %vm434_vm0, %v409_v4  ;;  %582 = vmatpush.bf16.msra.mxu2 %v933_v20 }
  0x1b   : > { %485 = vmatpush.bf16.msrb.mxu1 %v932_v3 }
  0x1d   : > { %685 = vmatpush.bf16.msra.mxu0 %v942_v15  ;;  %969 = vmatpush.bf16.msra.mxu3 %v942_v15 }
  0x1f   : > { %486 = vmatpush.bf16.msrb.mxu1 %v931_v5 }
  0x21   : > { %686 = vmatpush.bf16.msra.mxu0 %v941_v19  ;;  %970 = vmatpush.bf16.msra.mxu3 %v941_v19 }
  0x23   : > { %487 = vmatpush.bf16.msrb.mxu1 %v930_v6 }
  0x25   : > { %687 = vmatpush.bf16.msra.mxu0 %v940_v21  ;;  %971 = vmatpush.bf16.msra.mxu3 %v940_v21 }
  0x29   : > { %688 = vmatpush.bf16.msra.mxu0 %v939_v25  ;;  %972 = vmatpush.bf16.msra.mxu3 %v939_v25 }
  0x2d   : > { %689 = vmatpush.bf16.msra.mxu0 %v938_v27  ;;  %973 = vmatpush.bf16.msra.mxu3 %v938_v27 }
  0x30   : > { %690 = vmatmul.bf16.vlgmr.msra.gmra.mxu0 %v936_v30  ;;  %695 = vmatmul.bf16.vlgmr.msra.gmra.mxu3 %v937_v31 }
  0x97   : > { %v447_v7 = vpop.f32.mrf.mxu1 }
  0x98   : > { %v451_v8 = vmax.f32 %v447_v7, 0.0 }
  0x9a   : > { %v452_v9 = vpack.c.bf16 %v451_v8, %v451_v8 }
  0x9c   : > { %868 = vmatmul.msk.bf16.vlgmr.msrb.gmra.mxu1 %vm434_vm0, %v452_v9 }
  0x9f   : > { %v449_v10 = vpop.f32.mrf.mxu1 }
  0xad   : > { %v691_v0 = vpop.f32.mrf.mxu0 }
  0xae   : > { %v692_v6 = vadd.f32 %v1016_v2, %v691_v0 }
  0xb0   : > { %v701_v9 = vmax.f32 %v692_v6, 0.0 }
  0xb3   : > { %v696_v13 = vpop.f32.mrf.mxu3 }
  0xb4   : > { %v697_v21 = vadd.f32 %v1016_v2, %v696_v13 }
  0xb5   : > { %v693_v4 = vpop.f32.mrf.mxu0 }
  0xb6   : > { %v694_v7 = vadd.f32 %v1016_v2, %v693_v4 }
  0xb8   : > { %v702_v12 = vmax.f32 %v694_v7, 0.0 }
 0x119   : > { %v489_v16 = vpop.f32.mrf.mxu1 }
 0x11a   : > { %v869_v18 = vmul.f32 -1.442695, %v489_v16 }
 0x11c   : > { %1017 = vpow2.f32 %v869_v18 }
 0x121   : > { %v491_v22 = vpop.f32.mrf.mxu1 }
 0x122   : > { %v1018_v23 = vpop.eup %1017 }
 0x123   : > { %v496_v24 = vadd.f32 1.0, %v1018_v23  ;;  %v698_v23 = vpop.f32.mrf.mxu3 }
 0x124   : > { %v699_v26 = vadd.f32 %v1016_v2, %v698_v23 }
 0x125   : > { %1019 = vrcp.f32 %v496_v24  ;;  %v508_v35 = vand.u32 2147483648, %v496_v24  ;;  %v506_v37 = vand.u32 2147483647, %v496_v24  ;;  %vm502_vm3 = vweird.f32 %v496_v24 }
 0x126   : > { %v704_v30 = vmax.f32 %v699_v26, 0.0 }
 0x127   : > { %v509_v39 = vor.u32 1.1754944e-38, %v508_v35  ;;  %vm507_vm5 = vcmp.eq.f32.partialorder %v506_v37, 8.507059e+37 }
 0x12b   : > { %v1020_v28 = vpop.eup %1019 }
 0x12c   : > { %v498_v32 = vmul.f32 %v1020_v28, %v496_v24  ;;  %vm503_vm2 = vweird.f32 %v1020_v28  ;;  %v703_v24 = vmax.f32 %v697_v21, 0.0 }
 0x12d   : > { %vm504_vm4 = vmor %vm502_vm3, %vm503_vm2 }
 0x12e   : > { %v499_v34 = vsub.f32 1.0, %v498_v32 }
 0x130   : > { %v500_v36 = vmul.f32 %v1020_v28, %v499_v34 }
 0x132   : > { %v501_v38 = vadd.f32 %v1020_v28, %v500_v36 }
 0x134   : > { %v505_v42 = vsel %vm504_vm4, %v1020_v28, %v501_v38 }
 0x135   : > { %v510_v43 = vsel %vm507_vm5, %v509_v39, %v505_v42 }
 0x136   : > { %v518_v44 = vmul.f32 %v870_v41, %v510_v43 }
 0x138   : > { %v520_v45 = vsel %vm519_vm6, %v518_v44, 0.0 }
 0x139   : > { %v521_v46 = vrot.slane %v520_v45, 4 }
 0x13b   : > { %v522_v47 = vadd.f32 %v521_v46, %v520_v45 }
 0x13d   : > { %v523_v48 = vrot.slane %v522_v47, 2 }
 0x13f   : > { %v524_v50 = vadd.f32 %v523_v48, %v522_v47 }
 0x141   : > { %v525_v51 = vrot.slane %v524_v50, 1 }
 0x143   : > { %v526_v54 = vadd.f32 %v525_v51, %v524_v50 }
 0x145   : > { %v535_v55 = vmul.f32 %v948_v52, %v526_v54  ;;  %v536_v56 = vmul.f32 %v949_v53, %v526_v54  ;;  %v537_v61 = vmul.f32 %v952_v59, %v526_v54  ;;  %v538_v62 = vmul.f32 %v953_v60, %v526_v54 }
 0x147   : > { %v539_v57 = vpack.c.bf16 %v536_v56, %v535_v55  ;;  %v540_v63 = vpack.c.bf16 %v538_v62, %v537_v61 }
 0x149   : > { %883 = vmatmul.msk.bf16.vlgmr.msra.gmra.mxu2 %vm434_vm0, %v539_v57 }
 0x159   : > { %884 = vmatmul.msk.bf16.gmra.mxu2 %vm434_vm0, %v540_v63 }
 0x1cc   : > { %v584_v3 = vpop.f32.mrf.mxu2 }
 0x1cd   : > { %v585_v5 = vadd.f32 %v1015_v1, %v584_v3 }
 0x1cf   : > { %v594_v8 = vmax.f32 %v585_v5, 0.0 }
 0x1d1   : > { %v705_v14 = vadd.f32 %v701_v9, %v594_v8 }
 0x1d3   : > { %v709_v17 = vmax.f32 %v705_v14, 0.0 }
 0x1d4   : > { %v586_v10 = vpop.f32.mrf.mxu2 }
 0x1d5   : > { %v587_v11 = vadd.f32 %v1015_v1, %v586_v10 }
 0x1d7   : > { %v595_v15 = vmax.f32 %v587_v11, 0.0 }
 0x1d9   : > { %v706_v16 = vadd.f32 %v702_v12, %v595_v15 }
 0x1db   : > { %v710_v18 = vmax.f32 %v706_v16, 0.0 }
 0x1dc   : > { %v589_v19 = vpop.f32.mrf.mxu2 }
 0x1dd   : > { %v957_v20 = vpack.c.bf16 %v710_v18, %v709_v17  ;;  %v590_v22 = vadd.f32 %v1015_v1, %v589_v19 }
 0x1df   : > { %958 = vst [vmem:[%s406_s24] sm:$0xff] %v957_v20   ;;  %v596_v25 = vmax.f32 %v590_v22, 0.0 }
 0x1e1   : > { %v707_v29 = vadd.f32 %v703_v24, %v596_v25 }
 0x1e3   : > { %v711_v33 = vmax.f32 %v707_v29, 0.0 }
 0x1e4   : > { %v591_v27 = vpop.f32.mrf.mxu2 }
 0x1e5   : > { %v592_v28 = vadd.f32 %v1015_v1, %v591_v27 }
 0x1e7   : > { %v597_v31 = vmax.f32 %v592_v28, 0.0 }
 0x1e9   : > { %v708_v32 = vadd.f32 %v704_v30, %v597_v31 }
 0x1eb   : > { %v712_v34 = vmax.f32 %v708_v32, 0.0 }
 0x1ed   : > { %v962_v35 = vpack.c.bf16 %v712_v34, %v711_v33 }
 0x1ef   : > { %965 = vst [vmem:[%s406_s24 + $0x8] sm:$0xff] %v962_v35  }
 0x1f0 PF: > { %s19_s13 = sadd.s32 1, %s1059_s13   ;;  %s1253_s30 = smov %s1051_s11 }
 0x1f1   : > { %p16_p7 = scmp.ge.s32.totalorder %s19_s13, 6   ;;  %s1254_s10 = smov %s1055_s12 }
 0x1f2   : > { %s1255_s11 = smov %s1258_s14  ;;  %s1256_s12 = smov %s1262_s15 }
 0x1f3   :  { %18 = sbr.rel (!%p16_p7) target bundleno = 3 (0x3), region = 89 }

// kernel: _lambda_.79
= control target key start
LH: loop header
LB: loop body
LE: loop exit
PB: predicated region body
PF: predicated region fallthrough
CT: control target
= control target key end

     0   :  { %vm369_vm0 = vcmask 523264   ;;  %vm479_vm1 = vcmask 519168   ;;  %s932_s1 = inlined_call_operand.vmem [shape: bf16[576,64], index: 1, kind: input, shape index: {}]   ;;  %s933_s2 = inlined_call_operand.vmem [shape: f32[1,64], index: 2, kind: input, shape index: {}]   ;;  %s934_s0 = inlined_call_operand.vmem [shape: bf16[32,576], index: 0, kind: input, shape index: {}]   ;;  %s935_s3 = inlined_call_operand.vmem [shape: bf16[32,64], index: 3, kind: output, shape index: {}]  }
   0x1   :  { %v691_v0 = vld [vmem:[%s932_s1 + $0x38] sm:$0xff]  ;;  %v690_v4 = vld [vmem:[%s932_s1 + $0x30] sm:$0xff]  ;;  %v689_v8 = vld [vmem:[%s932_s1 + $0x28] sm:$0xff] }
   0x2   :  { %v699_v1 = vld [vmem:[%s932_s1 + $0x78] sm:$0xff]  ;;  %376 = vmatpush.bf16.msra.mxu0 %v691_v0  ;;  %v698_v5 = vld [vmem:[%s932_s1 + $0x70] sm:$0xff]  ;;  %v697_v9 = vld [vmem:[%s932_s1 + $0x68] sm:$0xff] }
   0x3   :  { %v707_v2 = vld [vmem:[%s932_s1 + $0xb8] sm:$0xff]  ;;  %395 = vmatpush.bf16.msra.mxu1 %v699_v1  ;;  %v706_v6 = vld [vmem:[%s932_s1 + $0xb0] sm:$0xff]  ;;  %v705_v10 = vld [vmem:[%s932_s1 + $0xa8] sm:$0xff] }
   0x4   :  { %v715_v3 = vld [vmem:[%s932_s1 + $0xf8] sm:$0xff]  ;;  %414 = vmatpush.bf16.msra.mxu2 %v707_v2  ;;  %v714_v7 = vld [vmem:[%s932_s1 + $0xf0] sm:$0xff]  ;;  %v713_v11 = vld [vmem:[%s932_s1 + $0xe8] sm:$0xff] }
   0x5   :  { %433 = vmatpush.bf16.msra.mxu3 %v715_v3  ;;  %v688_v12 = vld [vmem:[%s932_s1 + $0x20] sm:$0xff]  ;;  %v687_v16 = vld [vmem:[%s932_s1 + $0x18] sm:$0xff]  ;;  %v686_v20 = vld [vmem:[%s932_s1 + $0x10] sm:$0xff] }
   0x6   :  { %377 = vmatpush.bf16.msra.mxu0 %v690_v4  ;;  %v696_v13 = vld [vmem:[%s932_s1 + $0x60] sm:$0xff]  ;;  %v695_v17 = vld [vmem:[%s932_s1 + $0x58] sm:$0xff]  ;;  %v694_v21 = vld [vmem:[%s932_s1 + $0x50] sm:$0xff] }
   0x7   :  { %396 = vmatpush.bf16.msra.mxu1 %v698_v5  ;;  %v704_v14 = vld [vmem:[%s932_s1 + $0xa0] sm:$0xff]  ;;  %v703_v18 = vld [vmem:[%s932_s1 + $0x98] sm:$0xff]  ;;  %v702_v22 = vld [vmem:[%s932_s1 + $0x90] sm:$0xff] }
   0x8   :  { %415 = vmatpush.bf16.msra.mxu2 %v706_v6  ;;  %v712_v15 = vld [vmem:[%s932_s1 + $0xe0] sm:$0xff]  ;;  %v711_v19 = vld [vmem:[%s932_s1 + $0xd8] sm:$0xff]  ;;  %v710_v23 = vld [vmem:[%s932_s1 + $0xd0] sm:$0xff] }
   0x9   :  { %434 = vmatpush.bf16.msra.mxu3 %v714_v7  ;;  %v685_v24 = vld [vmem:[%s932_s1 + $0x8] sm:$0xff]  ;;  %v684_v28 = vld [vmem:[%s932_s1] sm:$0xff]  ;;  %v676_v33 = vld [vmem:[%s934_s0 + $0x10] sm:$0xf0] }
   0xa   :  { %378 = vmatpush.bf16.msra.mxu0 %v689_v8  ;;  %v693_v25 = vld [vmem:[%s932_s1 + $0x48] sm:$0xff]  ;;  %v692_v29 = vld [vmem:[%s932_s1 + $0x40] sm:$0xff]  ;;  %v492_v35 = vld [vmem:[%s934_s0 + $0x14] sm:$0xf0] }
   0xb   :  { %397 = vmatpush.bf16.msra.mxu1 %v697_v9  ;;  %v701_v26 = vld [vmem:[%s932_s1 + $0x88] sm:$0xff]  ;;  %v700_v30 = vld [vmem:[%s932_s1 + $0x80] sm:$0xff]  ;;  %v677_v37 = vld [vmem:[%s934_s0 + $0x18] sm:$0xf0] }
   0xc   :  { %416 = vmatpush.bf16.msra.mxu2 %v705_v10  ;;  %v709_v27 = vld [vmem:[%s932_s1 + $0xc8] sm:$0xff]  ;;  %v708_v31 = vld [vmem:[%s932_s1 + $0xc0] sm:$0xff]  ;;  %v719_v40 = vld [vmem:[%s932_s1 + $0x118] sm:$0xff] }
   0xd   :  { %435 = vmatpush.bf16.msra.mxu3 %v713_v11  ;;  %v490_v32 = vld [vmem:[%s934_s0] sm:$0xf]  ;;  %v674_v34 = vld [vmem:[%s934_s0 + $0x4] sm:$0xf]  ;;  %v498_v36 = vld [vmem:[%s934_s0 + $0x8] sm:$0xf] }
   0xe   :  { %379 = vmatpush.bf16.msra.mxu0 %v688_v12  ;;  %v675_v38 = vld [vmem:[%s934_s0 + $0xc] sm:$0xf]  ;;  %v500_v39 = vld [vmem:[%s934_s0 + $0x1c] sm:$0xf0]  ;;  %v491_v41 = vor.u32 %v676_v33, %v490_v32  ;;  %v495_v42 = vor.u32 %v674_v34, %v492_v35  ;;  %v499_v43 = vor.u32 %v677_v37, %v498_v36  ;;  %v718_v45 = vld [vmem:[%s932_s1 + $0x110] sm:$0xff] }
   0xf   :  { %398 = vmatpush.bf16.msra.mxu1 %v696_v13  ;;  %v503_v44 = vor.u32 %v675_v38, %v500_v39  ;;  %v717_v46 = vld [vmem:[%s932_s1 + $0x108] sm:$0xff]  ;;  %v716_v47 = vld [vmem:[%s932_s1 + $0x100] sm:$0xff]  ;;  %v681_v49 = vld [vmem:[%s934_s0 + $0x38] sm:$0xf0] }
  0x10   :  { %417 = vmatpush.bf16.msra.mxu2 %v704_v14  ;;  %v510_v48 = vld [vmem:[%s934_s0 + $0x28] sm:$0xf]  ;;  %v679_v50 = vld [vmem:[%s934_s0 + $0x2c] sm:$0xf]  ;;  %v512_v51 = vld [vmem:[%s934_s0 + $0x3c] sm:$0xf0] }
  0x11   :  { %436 = vmatpush.bf16.msra.mxu3 %v712_v15  ;;  %v518_v52 = vld [vmem:[%s934_s0 + $0x30] sm:$0xf]  ;;  %v682_v53 = vld [vmem:[%s934_s0 + $0x40] sm:$0xf0]  ;;  %v680_v54 = vld [vmem:[%s934_s0 + $0x34] sm:$0xf]  ;;  %v511_v56 = vor.u32 %v681_v49, %v510_v48  ;;  %v515_v57 = vor.u32 %v679_v50, %v512_v51 }
  0x12   :  { %380 = vmatpush.bf16.msra.mxu0 %v687_v16  ;;  %v520_v55 = vld [vmem:[%s934_s0 + $0x44] sm:$0xf0]  ;;  %v519_v58 = vor.u32 %v682_v53, %v518_v52  ;;  %v506_v60 = vld [vmem:[%s934_s0 + $0x10] sm:$0xf]  ;;  %v678_v61 = vld [vmem:[%s934_s0 + $0x20] sm:$0xf0] }
  0x13   :  { %399 = vmatpush.bf16.msra.mxu1 %v695_v17  ;;  %v523_v59 = vor.u32 %v680_v54, %v520_v55  ;;  %v526_v62 = vld [vmem:[%s934_s0 + $0x38] sm:$0xf]  ;;  %v683_v63 = vld [vmem:[%s934_s0 + $0x48] sm:$0xf0]  ;;  %v507_v0 = vor.u32 %v678_v61, %v506_v60  ;;  %v724_v11 = vld [vmem:[%s933_s2] ss:$0 sm:$0xff] }
  0x14   :  { %418 = vmatpush.bf16.msra.mxu2 %v703_v18  ;;  %v527_v1 = vor.u32 %v683_v63, %v526_v62 }
  0x15   :  { %437 = vmatpush.bf16.msra.mxu3 %v711_v19 }
  0x16   :  { %381 = vmatpush.bf16.msra.mxu0 %v686_v20 }
  0x17   :  { %400 = vmatpush.bf16.msra.mxu1 %v694_v21 }
  0x18   :  { %419 = vmatpush.bf16.msra.mxu2 %v702_v22 }
  0x19   :  { %438 = vmatpush.bf16.msra.mxu3 %v710_v23 }
  0x1a   :  { %382 = vmatpush.bf16.msra.mxu0 %v685_v24 }
  0x1b   :  { %401 = vmatpush.bf16.msra.mxu1 %v693_v25 }
  0x1c   :  { %420 = vmatpush.bf16.msra.mxu2 %v701_v26 }
  0x1d   :  { %439 = vmatpush.bf16.msra.mxu3 %v709_v27 }
  0x1e   :  { %383 = vmatpush.bf16.msra.mxu0 %v684_v28 }
  0x1f   :  { %402 = vmatpush.bf16.msra.mxu1 %v692_v29 }
  0x20   :  { %421 = vmatpush.bf16.msra.mxu2 %v700_v30 }
  0x21   :  { %440 = vmatpush.bf16.msra.mxu3 %v708_v31  ;;  %384 = vmatmul.bf16.vlgmr.msra.gmra.mxu0 %v491_v41 }
  0x22   :  { %456 = vmatpush.bf16.msrb.mxu0 %v719_v40  ;;  %403 = vmatmul.bf16.vlgmr.msra.gmra.mxu1 %v495_v42 }
  0x23   :  { %720 = vmatpush.bf16.msrb.mxu1 %v719_v40  ;;  %422 = vmatmul.bf16.vlgmr.msra.gmra.mxu2 %v499_v43 }
  0x24   :  { %441 = vmatmul.bf16.vlgmr.msra.gmra.mxu3 %v503_v44 }
  0x26   :  { %457 = vmatpush.bf16.msrb.mxu0 %v718_v45 }
  0x27   :  { %721 = vmatpush.bf16.msrb.mxu1 %v718_v45 }
  0x2a   :  { %458 = vmatpush.bf16.msrb.mxu0 %v717_v46 }
  0x2b   :  { %722 = vmatpush.bf16.msrb.mxu1 %v717_v46 }
  0x2e   :  { %459 = vmatpush.bf16.msrb.mxu0 %v716_v47 }
  0x2f   :  { %723 = vmatpush.bf16.msrb.mxu1 %v716_v47 }
  0x31   :  { %389 = vmatmul.bf16.gmra.mxu0 %v511_v56 }
  0x32   :  { %408 = vmatmul.bf16.gmra.mxu1 %v515_v57 }
  0x33   :  { %427 = vmatmul.bf16.gmra.mxu2 %v519_v58 }
  0x34   :  { %446 = vmatmul.bf16.gmra.mxu3 %v523_v59 }
  0x41   :  { %672 = vmatmul.msk.bf16.vlgmr.msrb.gmra.mxu0 %vm369_vm0, %v507_v0 }
  0x42   :  { %673 = vmatmul.msk.bf16.vlgmr.msrb.gmra.mxu1 %vm369_vm0, %v527_v1 }
  0x9e   :  { %v385_v2 = vpop.f32.mrf.mxu0 }
  0x9f   :  { %v404_v3 = vpop.f32.mrf.mxu1  ;;  %v386_v13 = vadd.f32 %v724_v11, %v385_v2 }
  0xa1   :  { %v405_v18 = vadd.f32 %v404_v3, %v386_v13 }
  0xa6   :  { %v423_v4 = vpop.f32.mrf.mxu2  ;;  %v387_v6 = vpop.f32.mrf.mxu0 }
  0xa7   :  { %v442_v5 = vpop.f32.mrf.mxu3  ;;  %v406_v7 = vpop.f32.mrf.mxu1  ;;  %v424_v20 = vadd.f32 %v423_v4, %v405_v18  ;;  %v388_v23 = vadd.f32 %v724_v11, %v387_v6 }
  0xa9   :  { %v443_v25 = vadd.f32 %v442_v5, %v424_v20  ;;  %v407_v30 = vadd.f32 %v406_v7, %v388_v23 }
  0xae   :  { %v425_v8 = vpop.f32.mrf.mxu2  ;;  %v390_v9 = vpop.f32.mrf.mxu0 }
  0xaf   :  { %v409_v10 = vpop.f32.mrf.mxu1  ;;  %v444_v12 = vpop.f32.mrf.mxu3  ;;  %v391_v14 = vadd.f32 %v724_v11, %v390_v9  ;;  %v426_v34 = vadd.f32 %v425_v8, %v407_v30 }
  0xb1   :  { %v410_v19 = vadd.f32 %v409_v10, %v391_v14  ;;  %v445_v41 = vadd.f32 %v444_v12, %v426_v34 }
  0xb6   :  { %v428_v15 = vpop.f32.mrf.mxu2  ;;  %v392_v16 = vpop.f32.mrf.mxu0 }
  0xb7   :  { %v411_v17 = vpop.f32.mrf.mxu1  ;;  %v429_v21 = vadd.f32 %v428_v15, %v410_v19  ;;  %v447_v22 = vpop.f32.mrf.mxu3  ;;  %v393_v24 = vadd.f32 %v724_v11, %v392_v16 }
  0xb9   :  { %v448_v26 = vadd.f32 %v447_v22, %v429_v21  ;;  %v412_v31 = vadd.f32 %v411_v17, %v393_v24 }
  0xbe   :  { %v430_v27 = vpop.f32.mrf.mxu2  ;;  %v461_v28 = vpop.f32.mrf.mxu0 }
  0xbf   :  { %v466_v29 = vpop.f32.mrf.mxu1  ;;  %v462_v32 = vadd.f32 %v461_v28, %v443_v25  ;;  %v431_v35 = vadd.f32 %v430_v27, %v412_v31  ;;  %v449_v40 = vpop.f32.mrf.mxu3 }
  0xc0   :  { %v467_v33 = vadd.f32 %v466_v29, %v448_v26 }
  0xc1   :  { %v471_v36 = vmax.f32 %v462_v32, 0.0  ;;  %v450_v42 = vadd.f32 %v449_v40, %v431_v35 }
  0xc2   :  { %v473_v37 = vmax.f32 %v467_v33, 0.0 }
  0xc3   :  { %v475_v38 = vpack.c.bf16 %v471_v36, %v471_v36 }
  0xc4   :  { %v477_v39 = vpack.c.bf16 %v473_v37, %v473_v37 }
  0xc5   :  { %480 = vst.msk [vmem:[%s935_s3] sm:$0xf] %vm479_vm1, %v475_v38 }
  0xc6   :  { %482 = vst.msk [vmem:[%s935_s3 + $0x8] sm:$0xf] %vm479_vm1, %v477_v39  ;;  %v463_v43 = vpop.f32.mrf.mxu0 }
  0xc7   :  { %v468_v44 = vpop.f32.mrf.mxu1  ;;  %v464_v45 = vadd.f32 %v463_v43, %v445_v41 }
  0xc8   :  { %v469_v46 = vadd.f32 %v468_v44, %v450_v42 }
  0xc9   :  { %v472_v47 = vmax.f32 %v464_v45, 0.0 }
  0xca   :  { %v474_v48 = vmax.f32 %v469_v46, 0.0 }
  0xcb   :  { %v476_v49 = vpack.c.bf16 %v472_v47, %v472_v47 }
  0xcc   :  { %v478_v50 = vpack.c.bf16 %v474_v48, %v474_v48 }
  0xcd   :  { %481 = vst.msk [vmem:[%s935_s3 + $0x4] sm:$0xf] %vm479_vm1, %v476_v49 }
  0xce   :  { %483 = vst.msk [vmem:[%s935_s3 + $0xc] sm:$0xf] %vm479_vm1, %v478_v50 }

// kernel: _lambda_.82
= control target key start
LH: loop header
LB: loop body
LE: loop exit
PB: predicated region body
PF: predicated region fallthrough
CT: control target
= control target key end

     0   :  { %s262_s1 = inlined_call_operand.vmem [shape: bf16[128,128], index: 1, kind: input, shape index: {}]   ;;  %s263_s2 = inlined_call_operand.vmem [shape: f32[1,128], index: 2, kind: input, shape index: {}]   ;;  %s264_s0 = inlined_call_operand.vmem [shape: bf16[32,128], index: 0, kind: input, shape index: {}]   ;;  %s265_s3 = inlined_call_operand.vmem [shape: bf16[32,128], index: 3, kind: output, shape index: {}]  }
   0x1   :  { %v182_v0 = vld [vmem:[%s262_s1 + $0x38] sm:$0xff]  ;;  %v181_v1 = vld [vmem:[%s262_s1 + $0x30] sm:$0xff]  ;;  %v180_v2 = vld [vmem:[%s262_s1 + $0x28] sm:$0xff] }
   0x2   :  { %98 = vmatpush.bf16.msra.mxu0 %v182_v0  ;;  %194 = vmatpush.bf16.msra.mxu1 %v182_v0  ;;  %v179_v3 = vld [vmem:[%s262_s1 + $0x20] sm:$0xff]  ;;  %v178_v4 = vld [vmem:[%s262_s1 + $0x18] sm:$0xff]  ;;  %v177_v5 = vld [vmem:[%s262_s1 + $0x10] sm:$0xff] }
   0x3   :  { %v176_v6 = vld [vmem:[%s262_s1 + $0x8] sm:$0xff]  ;;  %v175_v7 = vld [vmem:[%s262_s1] sm:$0xff] }
   0x4   :  { %v173_v8 = vld [vmem:[%s264_s0] sm:$0xff]  ;;  %v174_v9 = vld [vmem:[%s264_s0 + $0x8] sm:$0xff] }
   0x5   :  { %v202_v12 = vld [vmem:[%s263_s2] ss:$0 sm:$0xff] }
   0x6   :  { %99 = vmatpush.bf16.msra.mxu0 %v181_v1  ;;  %195 = vmatpush.bf16.msra.mxu1 %v181_v1 }
   0xa   :  { %100 = vmatpush.bf16.msra.mxu0 %v180_v2  ;;  %196 = vmatpush.bf16.msra.mxu1 %v180_v2 }
   0xe   :  { %101 = vmatpush.bf16.msra.mxu0 %v179_v3  ;;  %197 = vmatpush.bf16.msra.mxu1 %v179_v3 }
  0x12   :  { %102 = vmatpush.bf16.msra.mxu0 %v178_v4  ;;  %198 = vmatpush.bf16.msra.mxu1 %v178_v4 }
  0x16   :  { %103 = vmatpush.bf16.msra.mxu0 %v177_v5  ;;  %199 = vmatpush.bf16.msra.mxu1 %v177_v5 }
  0x1a   :  { %104 = vmatpush.bf16.msra.mxu0 %v176_v6  ;;  %200 = vmatpush.bf16.msra.mxu1 %v176_v6 }
  0x1e   :  { %105 = vmatpush.bf16.msra.mxu0 %v175_v7  ;;  %201 = vmatpush.bf16.msra.mxu1 %v175_v7 }
  0x21   :  { %106 = vmatmul.bf16.vlgmr.msra.gmra.mxu0 %v173_v8  ;;  %111 = vmatmul.bf16.vlgmr.msra.gmra.mxu1 %v174_v9 }
  0x9e   :  { %v107_v10 = vpop.f32.mrf.mxu0  ;;  %v112_v11 = vpop.f32.mrf.mxu1 }
  0x9f   :  { %v108_v13 = vadd.f32 %v202_v12, %v107_v10  ;;  %v113_v14 = vadd.f32 %v202_v12, %v112_v11 }
  0xa1   :  { %v117_v19 = vmax.f32 %v108_v13, 0.0  ;;  %v119_v20 = vmax.f32 %v113_v14, 0.0 }
  0xa6   :  { %v109_v15 = vpop.f32.mrf.mxu0  ;;  %v114_v16 = vpop.f32.mrf.mxu1 }
  0xa7   :  { %v110_v17 = vadd.f32 %v202_v12, %v109_v15  ;;  %v115_v18 = vadd.f32 %v202_v12, %v114_v16 }
  0xa9   :  { %v118_v21 = vmax.f32 %v110_v17, 0.0  ;;  %v120_v22 = vmax.f32 %v115_v18, 0.0 }
  0xab   :  { %v186_v23 = vpack.c.bf16 %v118_v21, %v117_v19  ;;  %v191_v24 = vpack.c.bf16 %v120_v22, %v119_v20 }
  0xad   :  { %187 = vst [vmem:[%s265_s3] sm:$0xff] %v186_v23  }
  0xae   :  { %193 = vst [vmem:[%s265_s3 + $0x8] sm:$0xff] %v191_v24  }

// kernel: _lambda_.81
= control target key start
LH: loop header
LB: loop body
LE: loop exit
PB: predicated region body
PF: predicated region fallthrough
CT: control target
= control target key end

     0   :  { %s1193_s30 = smov 0   ;;  %s1195_s10 = smov 0   ;;  %s1344_s0 = inlined_call_operand.vmem [shape: bf16[2,16,128], index: 0, kind: input, shape index: {}]   ;;  %s1345_s1 = inlined_call_operand.vmem [shape: bf16[2,16,128], index: 1, kind: input, shape index: {}]   ;;  %s1346_s2 = inlined_call_operand.vmem [shape: bf16[2,128], index: 2, kind: input, shape index: {}]   ;;  %s1347_s3 = inlined_call_operand.vmem [shape: bf16[128,128], index: 3, kind: input, shape index: {}]   ;;  %s1348_s4 = inlined_call_operand.vmem [shape: bf16[128,128], index: 4, kind: input, shape index: {}]   ;;  %s1349_s5 = inlined_call_operand.vmem [shape: bf16[128,128], index: 5, kind: input, shape index: {}]   ;;  %s1350_s6 = inlined_call_operand.vmem [shape: f32[1,128], index: 6, kind: input, shape index: {}, may-alias: {6,8}]   ;;  %s1351_s7 = inlined_call_operand.vmem [shape: bf16[128,128], index: 7, kind: input, shape index: {}]   ;;  %s1352_s8 = inlined_call_operand.vmem [shape: f32[1,128], index: 8, kind: input, shape index: {}, may-alias: {6,8}]   ;;  %s1353_s9 = inlined_call_operand.vmem [shape: bf16[2,16,128], index: 9, kind: output, shape index: {}]  }
   0x1   :  { %s1197_s11 = smov 0  }
   0x2 LB: > { %s31_s12 = sadd.s32 1, %s1136_s10  ;;  %p899_p0 = scmp.ge.s32.totalorder %s1140_s11, 1  ;;  %s1140_s11 = sphi %s1197_s11, %s19_s11   ;;  %s1136_s10 = sphi %s1195_s10, %s1355_s10   ;;  %s1132_s30 = sphi %s1193_s30, %s1354_s30  }
   0x3   : > { %p33_p1 = scmp.ge.s32.totalorder %s31_s12, 2  ;;  %p325_p2 = scmp.lt.s32.totalorder %s1140_s11, 3 }
   0x5   : > { %s1357_s12 = smov (%p33_p1, %s31_s12), 0  ;;  %p326_p3 = pnand %p899_p0, %p325_p2 }
   0x6   : > { %p379_p4 = scmp.lt.s32.totalorder (!%p326_p3), %s1132_s30, 1 }
   0x7   : > { %329 = sbr.rel (%p326_p3) target bundleno = 498 (0x1f2), region = 56 }
   0xc   : > { %v1052_v0 = vld [vmem:[%s1347_s3 + $0x38] sm:$0xff]  ;;  %v1051_v1 = vld [vmem:[%s1347_s3 + $0x30] sm:$0xff]  ;;  %v1050_v4 = vld [vmem:[%s1347_s3 + $0x28] sm:$0xff]  ;;  %s380_s16 = scalar_select %p379_p4, %s1132_s30, 1  ;;  %v584_v43 = vlaneseq  ;;  %v586_v47 = vstv %s1132_s30  ;;  %v1142_v54 = vmov 0.0   ;;  %vm591_vm5 = vcmask 1041408  }
   0xd   : > { %473 = vmatpush.bf16.msra.mxu0 %v1052_v0  ;;  %v1060_v2 = vld [vmem:[%s1348_s4 + $0x38] sm:$0xff]  ;;  %v1059_v3 = vld [vmem:[%s1348_s4 + $0x30] sm:$0xff]  ;;  %v1058_v5 = vld [vmem:[%s1348_s4 + $0x28] sm:$0xff] }
   0xe   : > { %552 = vmatpush.bf16.msra.mxu1 %v1060_v2  ;;  %v1049_v6 = vld [vmem:[%s1347_s3 + $0x20] sm:$0xff]  ;;  %v1048_v8 = vld [vmem:[%s1347_s3 + $0x18] sm:$0xff]  ;;  %v1047_v10 = vld [vmem:[%s1347_s3 + $0x10] sm:$0xff]  ;;  %s1302_s21 = sshll.u32 %s380_s16, 3  ;;  %v585_v45 = vshrl.u32 %v584_v43, 7 }
   0xf   : > { %v1057_v7 = vld [vmem:[%s1348_s4 + $0x20] sm:$0xff]  ;;  %v1056_v9 = vld [vmem:[%s1348_s4 + $0x18] sm:$0xff]  ;;  %v1055_v11 = vld [vmem:[%s1348_s4 + $0x10] sm:$0xff]  ;;  %s396_s28 = scalar_lea.vmem %s1345_s1, %s1302_s21  ;;  %s386_s17 = scalar_lea.vmem %s1344_s0, %s1302_s21 }
  0x10   : > { %v1046_v12 = vld [vmem:[%s1347_s3 + $0x8] sm:$0xff]  ;;  %v1045_v14 = vld [vmem:[%s1347_s3] sm:$0xff]  ;;  %v1077_v21 = vld [vmem:[%s1351_s7 + $0x38] sm:$0xff]  ;;  %vm587_vm0 = vcmp.eq.s32.totalorder %v585_v45, %v586_v47  ;;  %s406_s25 = scalar_lea.vmem %s1353_s9, %s1302_s21 }
  0x11   : > { %474 = vmatpush.bf16.msra.mxu0 %v1051_v1  ;;  %v1054_v13 = vld [vmem:[%s1348_s4 + $0x8] sm:$0xff]  ;;  %v408_v15 = vld [vmem:[%s1346_s2] sm:$0x1]  ;;  %766 = vmatpush.bf16.msra.mxu3 %v1077_v21  ;;  %v1076_v22 = vld [vmem:[%s1351_s7 + $0x30] sm:$0xff]  ;;  %v971_v55 = vsel %vm587_vm0, 1.0, %v1142_v54 }
  0x12   : > { %553 = vmatpush.bf16.msra.mxu1 %v1059_v3  ;;  %v1053_v16 = vld [vmem:[%s1348_s4] sm:$0xff]  ;;  %v1068_v23 = vld [vmem:[%s1349_s5 + $0x38] sm:$0xff]  ;;  %v1075_v24 = vld [vmem:[%s1351_s7 + $0x28] sm:$0xff] }
  0x13   : > { %674 = vmatpush.bf16.msra.mxu2 %v1068_v23  ;;  %v1067_v25 = vld [vmem:[%s1349_s5 + $0x30] sm:$0xff]  ;;  %v1074_v26 = vld [vmem:[%s1351_s7 + $0x20] sm:$0xff]  ;;  %v1066_v27 = vld [vmem:[%s1349_s5 + $0x28] sm:$0xff] }
  0x14   : > { %v1073_v28 = vld [vmem:[%s1351_s7 + $0x18] sm:$0xff]  ;;  %v1065_v29 = vld [vmem:[%s1349_s5 + $0x20] sm:$0xff]  ;;  %v1072_v30 = vld [vmem:[%s1351_s7 + $0x10] sm:$0xff] }
  0x15   : > { %475 = vmatpush.bf16.msra.mxu0 %v1050_v4  ;;  %767 = vmatpush.bf16.msra.mxu3 %v1076_v22  ;;  %v1064_v31 = vld [vmem:[%s1349_s5 + $0x18] sm:$0xff]  ;;  %v1071_v32 = vld [vmem:[%s1351_s7 + $0x8] sm:$0xff]  ;;  %v1063_v35 = vld [vmem:[%s1349_s5 + $0x10] sm:$0xff] }
  0x16   : > { %554 = vmatpush.bf16.msra.mxu1 %v1058_v5  ;;  %v1070_v36 = vld [vmem:[%s1351_s7] sm:$0xff]  ;;  %v1062_v38 = vld [vmem:[%s1349_s5 + $0x8] sm:$0xff] }
  0x17   : > { %675 = vmatpush.bf16.msra.mxu2 %v1067_v25  ;;  %v1069_v37 = vld [vmem:[%s396_s28] sm:$0xff] }
  0x18   : > { %v1061_v41 = vld [vmem:[%s1349_s5] sm:$0xff] }
  0x19   : > { %476 = vmatpush.bf16.msra.mxu0 %v1049_v6  ;;  %768 = vmatpush.bf16.msra.mxu3 %v1075_v24  ;;  %v1079_v63 = vld [vmem:[%s386_s17] sm:$0xff]  }
  0x1a   : > { %555 = vmatpush.bf16.msra.mxu1 %v1057_v7  ;;  %v1080_v2 = vunpack.c.l.bf16 %v1079_v63  ;;  %v1081_v3 = vunpack.c.h.bf16 %v1079_v63 }
  0x1b   : > { %676 = vmatpush.bf16.msra.mxu2 %v1066_v27 }
  0x1d   : > { %477 = vmatpush.bf16.msra.mxu0 %v1048_v8  ;;  %769 = vmatpush.bf16.msra.mxu3 %v1074_v26 }
  0x1e   : > { %556 = vmatpush.bf16.msra.mxu1 %v1056_v9  ;;  %v1112_v9 = vld [vmem:[%s1352_s8] ss:$0 sm:$0xff] }
  0x1f   : > { %677 = vmatpush.bf16.msra.mxu2 %v1065_v29 }
  0x21   : > { %478 = vmatpush.bf16.msra.mxu0 %v1047_v10  ;;  %770 = vmatpush.bf16.msra.mxu3 %v1073_v28  ;;  %v1113_v10 = vld [vmem:[%s1350_s6] ss:$0 sm:$0xff] }
  0x22   : > { %557 = vmatpush.bf16.msra.mxu1 %v1055_v11 }
  0x23   : > { %678 = vmatpush.bf16.msra.mxu2 %v1064_v31 }
  0x25   : > { %479 = vmatpush.bf16.msra.mxu0 %v1046_v12  ;;  %771 = vmatpush.bf16.msra.mxu3 %v1072_v30 }
  0x26   : > { %558 = vmatpush.bf16.msra.mxu1 %v1054_v13 }
  0x27   : > { %679 = vmatpush.bf16.msra.mxu2 %v1063_v35 }
  0x29   : > { %480 = vmatpush.bf16.msra.mxu0 %v1045_v14  ;;  %772 = vmatpush.bf16.msra.mxu3 %v1071_v32 }
  0x2a   : > { %559 = vmatpush.bf16.msra.mxu1 %v1053_v16 }
  0x2b   : > { %680 = vmatpush.bf16.msra.mxu2 %v1062_v38 }
  0x2c   : > { %481 = vmatmul.bf16.vlgmr.msra.gmra.mxu0 %v408_v15 }
  0x2d   : > { %773 = vmatpush.bf16.msra.mxu3 %v1070_v36 }
  0x2f   : > { %681 = vmatpush.bf16.msra.mxu2 %v1061_v41 }
  0x30   : > { %774 = vmatmul.bf16.vlgmr.msra.gmra.mxu3 %v1069_v37 }
  0xa9   : > { %v482_v17 = vpop.f32.mrf.mxu0 }
  0xaa   : > { %v486_v18 = vmax.f32 %v482_v17, 0.0 }
  0xac   : > { %v487_v19 = vpack.c.bf16 %v486_v18, %v486_v18 }
  0xae   : > { %560 = vmatmul.bf16.vlgmr.msra.gmra.mxu1 %v487_v19 }
  0xb1   : > { %v484_v20 = vpop.f32.mrf.mxu0 }
  0xb3   : > { %v775_v8 = vpop.f32.mrf.mxu3 }
  0xb4   : > { %v776_v12 = vadd.f32 %v1112_v9, %v775_v8 }
  0xb6   : > { %v780_v15 = vmax.f32 %v776_v12, 0.0 }
  0xbb   : > { %v777_v14 = vpop.f32.mrf.mxu3 }
  0xbc   : > { %v778_v17 = vadd.f32 %v1112_v9, %v777_v14 }
  0xbe   : > { %v781_v21 = vmax.f32 %v778_v17, 0.0 }
 0x12b   : > { %v561_v33 = vpop.f32.mrf.mxu1 }
 0x12c   : > { %v970_v34 = vmul.f32 -1.442695, %v561_v33 }
 0x12e   : > { %1114 = vpow2.f32 %v970_v34 }
 0x133   : > { %v563_v39 = vpop.f32.mrf.mxu1 }
 0x134   : > { %v1115_v40 = vpop.eup %1114 }
 0x135   : > { %v568_v42 = vadd.f32 1.0, %v1115_v40 }
 0x137   : > { %1116 = vrcp.f32 %v568_v42  ;;  %v580_v49 = vand.u32 2147483648, %v568_v42  ;;  %v578_v51 = vand.u32 2147483647, %v568_v42  ;;  %vm574_vm2 = vweird.f32 %v568_v42 }
 0x139   : > { %v581_v53 = vor.u32 1.1754944e-38, %v580_v49  ;;  %vm579_vm4 = vcmp.eq.f32.partialorder %v578_v51, 8.507059e+37 }
 0x13d   : > { %v1117_v44 = vpop.eup %1116 }
 0x13e   : > { %v570_v46 = vmul.f32 %v1117_v44, %v568_v42  ;;  %vm575_vm1 = vweird.f32 %v1117_v44 }
 0x13f   : > { %vm576_vm3 = vmor %vm574_vm2, %vm575_vm1 }
 0x140   : > { %v571_v48 = vsub.f32 1.0, %v570_v46 }
 0x142   : > { %v572_v50 = vmul.f32 %v1117_v44, %v571_v48 }
 0x144   : > { %v573_v52 = vadd.f32 %v1117_v44, %v572_v50 }
 0x146   : > { %v577_v56 = vsel %vm576_vm3, %v1117_v44, %v573_v52 }
 0x147   : > { %v582_v57 = vsel %vm579_vm4, %v581_v53, %v577_v56 }
 0x148   : > { %v590_v58 = vmul.f32 %v971_v55, %v582_v57 }
 0x14a   : > { %v592_v59 = vsel %vm591_vm5, %v590_v58, 0.0 }
 0x14b   : > { %v593_v60 = vrot.slane %v592_v59, 4 }
 0x14d   : > { %v594_v61 = vadd.f32 %v593_v60, %v592_v59 }
 0x14f   : > { %v595_v62 = vrot.slane %v594_v61, 2 }
 0x151   : > { %v596_v0 = vadd.f32 %v595_v62, %v594_v61 }
 0x153   : > { %v597_v1 = vrot.slane %v596_v0, 1 }
 0x155   : > { %v598_v4 = vadd.f32 %v597_v1, %v596_v0 }
 0x157   : > { %v603_v5 = vmul.f32 %v1080_v2, %v598_v4  ;;  %v604_v6 = vmul.f32 %v1081_v3, %v598_v4 }
 0x159   : > { %v605_v7 = vpack.c.bf16 %v604_v6, %v603_v5 }
 0x15b   : > { %682 = vmatmul.bf16.vlgmr.msra.gmra.mxu2 %v605_v7 }
 0x1de   : > { %v683_v11 = vpop.f32.mrf.mxu2 }
 0x1df   : > { %v684_v13 = vadd.f32 %v1113_v10, %v683_v11 }
 0x1e1   : > { %v688_v16 = vmax.f32 %v684_v13, 0.0 }
 0x1e3   : > { %v782_v20 = vadd.f32 %v780_v15, %v688_v16 }
 0x1e5   : > { %v784_v24 = vmax.f32 %v782_v20, 0.0 }
 0x1e6   : > { %v685_v18 = vpop.f32.mrf.mxu2 }
 0x1e7   : > { %v686_v19 = vadd.f32 %v1113_v10, %v685_v18 }
 0x1e9   : > { %v689_v22 = vmax.f32 %v686_v19, 0.0 }
 0x1eb   : > { %v783_v23 = vadd.f32 %v781_v21, %v689_v22 }
 0x1ed   : > { %v785_v25 = vmax.f32 %v783_v23, 0.0 }
 0x1ef   : > { %v1085_v26 = vpack.c.bf16 %v785_v25, %v784_v24 }
 0x1f1   : > { %1086 = vst [vmem:[%s406_s25] sm:$0xff] %v1085_v26  }
 0x1f2 PF: > { %s19_s11 = sadd.s32 1, %s1140_s11   ;;  %s1354_s30 = smov %s1136_s10 }
 0x1f3   : > { %p16_p5 = scmp.ge.s32.totalorder %s19_s11, 4   ;;  %s1355_s10 = smov %s1357_s12 }
 0x1f5   :  { %18 = sbr.rel (!%p16_p5) target bundleno = 2 (0x2), region = 89 }

// kernel: _lambda_.90
= control target key start
LH: loop header
LB: loop body
LE: loop exit
PB: predicated region body
PF: predicated region fallthrough
CT: control target
= control target key end

     0   :  { %s433_s1 = inlined_call_operand.vmem [shape: bf16[128,256], index: 1, kind: input, shape index: {}]   ;;  %s434_s0 = inlined_call_operand.vmem [shape: bf16[32,128], index: 0, kind: input, shape index: {}]   ;;  %s435_s2 = inlined_call_operand.vmem [shape: f32[1,256], index: 2, kind: input, shape index: {}]   ;;  %s436_s3 = inlined_call_operand.vmem [shape: bf16[32,256], index: 3, kind: output, shape index: {}]  }
   0x1   :  { %v256_v0 = vld [vmem:[%s433_s1 + $0x70] sm:$0xf]  ;;  %v279_v1 = vld [vmem:[%s433_s1 + $0x74] sm:$0xf0]  ;;  %v278_v2 = vld [vmem:[%s433_s1 + $0x74] sm:$0xf] }
   0x2   :  { %v257_v3 = vor.u32 %v279_v1, %v256_v0  ;;  %v258_v4 = vld [vmem:[%s433_s1 + $0x78] sm:$0xf0]  ;;  %v248_v5 = vld [vmem:[%s433_s1 + $0x60] sm:$0xf]  ;;  %v277_v6 = vld [vmem:[%s433_s1 + $0x64] sm:$0xf0] }
   0x3   :  { %v261_v7 = vor.u32 %v278_v2, %v258_v4  ;;  %v276_v8 = vld [vmem:[%s433_s1 + $0x64] sm:$0xf]  ;;  %v250_v9 = vld [vmem:[%s433_s1 + $0x68] sm:$0xf0]  ;;  %v249_v10 = vor.u32 %v277_v6, %v248_v5  ;;  %v240_v12 = vld [vmem:[%s433_s1 + $0x50] sm:$0xf] }
   0x4   :  { %132 = vmatpush.bf16.msra.mxu0 %v257_v3  ;;  %280 = vmatpush.bf16.msra.mxu2 %v257_v3  ;;  %v253_v11 = vor.u32 %v276_v8, %v250_v9  ;;  %v275_v13 = vld [vmem:[%s433_s1 + $0x54] sm:$0xf0]  ;;  %v274_v14 = vld [vmem:[%s433_s1 + $0x54] sm:$0xf]  ;;  %v242_v15 = vld [vmem:[%s433_s1 + $0x58] sm:$0xf0] }
   0x5   :  { %151 = vmatpush.bf16.msra.mxu1 %v261_v7  ;;  %288 = vmatpush.bf16.msra.mxu3 %v261_v7  ;;  %v241_v16 = vor.u32 %v275_v13, %v240_v12  ;;  %v245_v17 = vor.u32 %v274_v14, %v242_v15  ;;  %v232_v18 = vld [vmem:[%s433_s1 + $0x40] sm:$0xf]  ;;  %v273_v19 = vld [vmem:[%s433_s1 + $0x44] sm:$0xf0]  ;;  %v272_v20 = vld [vmem:[%s433_s1 + $0x44] sm:$0xf] }
   0x6   :  { %v234_v21 = vld [vmem:[%s433_s1 + $0x48] sm:$0xf0]  ;;  %v233_v22 = vor.u32 %v273_v19, %v232_v18  ;;  %v224_v24 = vld [vmem:[%s433_s1 + $0x30] sm:$0xf]  ;;  %v271_v25 = vld [vmem:[%s433_s1 + $0x34] sm:$0xf0] }
   0x7   :  { %v237_v23 = vor.u32 %v272_v20, %v234_v21  ;;  %v270_v26 = vld [vmem:[%s433_s1 + $0x34] sm:$0xf]  ;;  %v226_v27 = vld [vmem:[%s433_s1 + $0x38] sm:$0xf0]  ;;  %v225_v28 = vor.u32 %v271_v25, %v224_v24  ;;  %v216_v30 = vld [vmem:[%s433_s1 + $0x20] sm:$0xf] }
   0x8   :  { %133 = vmatpush.bf16.msra.mxu0 %v249_v10  ;;  %281 = vmatpush.bf16.msra.mxu2 %v249_v10  ;;  %v229_v29 = vor.u32 %v270_v26, %v226_v27  ;;  %v269_v31 = vld [vmem:[%s433_s1 + $0x24] sm:$0xf0]  ;;  %v268_v32 = vld [vmem:[%s433_s1 + $0x24] sm:$0xf]  ;;  %v218_v33 = vld [vmem:[%s433_s1 + $0x28] sm:$0xf0] }
   0x9   :  { %152 = vmatpush.bf16.msra.mxu1 %v253_v11  ;;  %289 = vmatpush.bf16.msra.mxu3 %v253_v11  ;;  %v217_v34 = vor.u32 %v269_v31, %v216_v30  ;;  %v221_v35 = vor.u32 %v268_v32, %v218_v33  ;;  %v208_v36 = vld [vmem:[%s433_s1 + $0x10] sm:$0xf]  ;;  %v267_v37 = vld [vmem:[%s433_s1 + $0x14] sm:$0xf0]  ;;  %v266_v38 = vld [vmem:[%s433_s1 + $0x14] sm:$0xf] }
   0xa   :  { %v210_v39 = vld [vmem:[%s433_s1 + $0x18] sm:$0xf0]  ;;  %v209_v40 = vor.u32 %v267_v37, %v208_v36  ;;  %v200_v42 = vld [vmem:[%s433_s1] sm:$0xf]  ;;  %v265_v43 = vld [vmem:[%s433_s1 + $0x4] sm:$0xf0] }
   0xb   :  { %v213_v41 = vor.u32 %v266_v38, %v210_v39  ;;  %v264_v44 = vld [vmem:[%s433_s1 + $0x4] sm:$0xf]  ;;  %v202_v45 = vld [vmem:[%s433_s1 + $0x8] sm:$0xf0]  ;;  %v201_v46 = vor.u32 %v265_v43, %v200_v42  ;;  %v34_v50 = vld [vmem:[%s435_s2] sm:$0x3] }
   0xc   :  { %134 = vmatpush.bf16.msra.mxu0 %v241_v16  ;;  %282 = vmatpush.bf16.msra.mxu2 %v241_v16  ;;  %v205_v47 = vor.u32 %v264_v44, %v202_v45  ;;  %v262_v48 = vld [vmem:[%s434_s0] sm:$0xff]  ;;  %v263_v49 = vld [vmem:[%s434_s0 + $0x8] sm:$0xff]  ;;  %v36_v51 = vperm.slane %v34_v50, 0  ;;  %v37_v52 = vperm.slane %v34_v50, 1 }
   0xd   :  { %153 = vmatpush.bf16.msra.mxu1 %v245_v17  ;;  %290 = vmatpush.bf16.msra.mxu3 %v245_v17 }
  0x10   :  { %135 = vmatpush.bf16.msra.mxu0 %v233_v22  ;;  %283 = vmatpush.bf16.msra.mxu2 %v233_v22 }
  0x11   :  { %154 = vmatpush.bf16.msra.mxu1 %v237_v23  ;;  %291 = vmatpush.bf16.msra.mxu3 %v237_v23 }
  0x14   :  { %136 = vmatpush.bf16.msra.mxu0 %v225_v28  ;;  %284 = vmatpush.bf16.msra.mxu2 %v225_v28 }
  0x15   :  { %155 = vmatpush.bf16.msra.mxu1 %v229_v29  ;;  %292 = vmatpush.bf16.msra.mxu3 %v229_v29 }
  0x18   :  { %137 = vmatpush.bf16.msra.mxu0 %v217_v34  ;;  %285 = vmatpush.bf16.msra.mxu2 %v217_v34 }
  0x19   :  { %156 = vmatpush.bf16.msra.mxu1 %v221_v35  ;;  %293 = vmatpush.bf16.msra.mxu3 %v221_v35 }
  0x1c   :  { %138 = vmatpush.bf16.msra.mxu0 %v209_v40  ;;  %286 = vmatpush.bf16.msra.mxu2 %v209_v40 }
  0x1d   :  { %157 = vmatpush.bf16.msra.mxu1 %v213_v41  ;;  %294 = vmatpush.bf16.msra.mxu3 %v213_v41 }
  0x20   :  { %139 = vmatpush.bf16.msra.mxu0 %v201_v46  ;;  %287 = vmatpush.bf16.msra.mxu2 %v201_v46 }
  0x21   :  { %158 = vmatpush.bf16.msra.mxu1 %v205_v47  ;;  %295 = vmatpush.bf16.msra.mxu3 %v205_v47 }
  0x23   :  { %140 = vmatmul.bf16.vlgmr.msra.gmra.mxu0 %v262_v48  ;;  %145 = vmatmul.bf16.vlgmr.msra.gmra.mxu2 %v263_v49 }
  0x24   :  { %159 = vmatmul.bf16.vlgmr.msra.gmra.mxu1 %v262_v48  ;;  %164 = vmatmul.bf16.vlgmr.msra.gmra.mxu3 %v263_v49 }
  0xa0   :  { %v141_v53 = vpop.f32.mrf.mxu0 }
  0xa1   :  { %v142_v54 = vadd.f32 %v141_v53, %v36_v51  ;;  %v160_v55 = vpop.f32.mrf.mxu1 }
  0xa2   :  { %v161_v56 = vadd.f32 %v160_v55, %v37_v52 }
  0xa3   :  { %v170_v57 = vmax.f32 %v142_v54, 0.0 }
  0xa4   :  { %v171_v58 = vmax.f32 %v161_v56, 0.0 }
  0xa6   :  { %v178_v59 = vpack.c.bf16 %v171_v58, %v170_v57  ;;  %v146_v60 = vpop.f32.mrf.mxu2 }
  0xa7   :  { %v147_v61 = vadd.f32 %v146_v60, %v36_v51  ;;  %v165_v62 = vpop.f32.mrf.mxu3 }
  0xa8   :  { %182 = vst [vmem:[%s436_s3] sm:$0xff] %v178_v59  ;;  %v166_v63 = vadd.f32 %v165_v62, %v37_v52  ;;  %v143_v0 = vpop.f32.mrf.mxu0 }
  0xa9   :  { %v174_v1 = vmax.f32 %v147_v61, 0.0  ;;  %v144_v2 = vadd.f32 %v143_v0, %v36_v51  ;;  %v162_v3 = vpop.f32.mrf.mxu1 }
  0xaa   :  { %v175_v4 = vmax.f32 %v166_v63, 0.0  ;;  %v163_v5 = vadd.f32 %v162_v3, %v37_v52 }
  0xab   :  { %v172_v6 = vmax.f32 %v144_v2, 0.0 }
  0xac   :  { %v180_v7 = vpack.c.bf16 %v175_v4, %v174_v1  ;;  %v173_v8 = vmax.f32 %v163_v5, 0.0 }
  0xae   :  { %184 = vst [vmem:[%s436_s3 + $0x10] sm:$0xff] %v180_v7  ;;  %v179_v9 = vpack.c.bf16 %v173_v8, %v172_v6  ;;  %v148_v10 = vpop.f32.mrf.mxu2 }
  0xaf   :  { %v149_v11 = vadd.f32 %v148_v10, %v36_v51  ;;  %v167_v12 = vpop.f32.mrf.mxu3 }
  0xb0   :  { %183 = vst [vmem:[%s436_s3 + $0x8] sm:$0xff] %v179_v9  ;;  %v168_v13 = vadd.f32 %v167_v12, %v37_v52 }
  0xb1   :  { %v176_v14 = vmax.f32 %v149_v11, 0.0 }
  0xb2   :  { %v177_v15 = vmax.f32 %v168_v13, 0.0 }
  0xb4   :  { %v181_v16 = vpack.c.bf16 %v177_v15, %v176_v14 }
  0xb6   :  { %185 = vst [vmem:[%s436_s3 + $0x18] sm:$0xff] %v181_v16 }

// kernel: _lambda_.94
= control target key start
LH: loop header
LB: loop body
LE: loop exit
PB: predicated region body
PF: predicated region fallthrough
CT: control target
= control target key end

     0   :  { %s661_s1 = inlined_call_operand.vmem [shape: bf16[256,256], index: 1, kind: input, shape index: {}]   ;;  %s662_s0 = inlined_call_operand.vmem [shape: bf16[8,256], index: 0, kind: input, shape index: {}]   ;;  %s663_s2 = inlined_call_operand.vmem [shape: f32[1,256], index: 2, kind: input, shape index: {}]   ;;  %s664_s3 = inlined_call_operand.vmem [shape: bf16[8,256], index: 3, kind: output, shape index: {}]  }
   0x1   :  { %v338_v0 = vld [vmem:[%s661_s1 + $0x70] sm:$0xf]  ;;  %v423_v1 = vld [vmem:[%s661_s1 + $0x74] sm:$0xf0]  ;;  %v422_v5 = vld [vmem:[%s661_s1 + $0x74] sm:$0xf] }
   0x2   :  { %v402_v2 = vld [vmem:[%s661_s1 + $0xf0] sm:$0xf]  ;;  %v339_v3 = vor.u32 %v423_v1, %v338_v0  ;;  %v439_v4 = vld [vmem:[%s661_s1 + $0xf4] sm:$0xf0]  ;;  %v340_v6 = vld [vmem:[%s661_s1 + $0x78] sm:$0xf0] }
   0x3   :  { %v403_v7 = vor.u32 %v439_v4, %v402_v2  ;;  %v343_v8 = vor.u32 %v422_v5, %v340_v6  ;;  %v438_v9 = vld [vmem:[%s661_s1 + $0xf4] sm:$0xf]  ;;  %v404_v10 = vld [vmem:[%s661_s1 + $0xf8] sm:$0xf0]  ;;  %v330_v11 = vld [vmem:[%s661_s1 + $0x60] sm:$0xf] }
   0x4   :  { %220 = vmatpush.bf16.msra.mxu0 %v339_v3  ;;  %v407_v12 = vor.u32 %v438_v9, %v404_v10  ;;  %v421_v13 = vld [vmem:[%s661_s1 + $0x64] sm:$0xf0]  ;;  %v394_v14 = vld [vmem:[%s661_s1 + $0xe0] sm:$0xf]  ;;  %v420_v18 = vld [vmem:[%s661_s1 + $0x64] sm:$0xf] }
   0x5   :  { %v437_v15 = vld [vmem:[%s661_s1 + $0xe4] sm:$0xf0]  ;;  %233 = vmatpush.bf16.msra.mxu1 %v403_v7  ;;  %246 = vmatpush.bf16.msra.mxu2 %v343_v8  ;;  %v331_v16 = vor.u32 %v421_v13, %v330_v11  ;;  %v332_v19 = vld [vmem:[%s661_s1 + $0x68] sm:$0xf0]  ;;  %v436_v20 = vld [vmem:[%s661_s1 + $0xe4] sm:$0xf] }
   0x6   :  { %v395_v17 = vor.u32 %v437_v15, %v394_v14  ;;  %259 = vmatpush.bf16.msra.mxu3 %v407_v12  ;;  %v335_v21 = vor.u32 %v420_v18, %v332_v19  ;;  %v396_v22 = vld [vmem:[%s661_s1 + $0xe8] sm:$0xf0]  ;;  %v322_v23 = vld [vmem:[%s661_s1 + $0x50] sm:$0xf]  ;;  %v419_v24 = vld [vmem:[%s661_s1 + $0x54] sm:$0xf0] }
   0x7   :  { %v399_v25 = vor.u32 %v436_v20, %v396_v22  ;;  %v386_v26 = vld [vmem:[%s661_s1 + $0xd0] sm:$0xf]  ;;  %v435_v27 = vld [vmem:[%s661_s1 + $0xd4] sm:$0xf0]  ;;  %v418_v28 = vld [vmem:[%s661_s1 + $0x54] sm:$0xf]  ;;  %v323_v29 = vor.u32 %v419_v24, %v322_v23 }
   0x8   :  { %221 = vmatpush.bf16.msra.mxu0 %v331_v16  ;;  %v324_v30 = vld [vmem:[%s661_s1 + $0x58] sm:$0xf0]  ;;  %v434_v31 = vld [vmem:[%s661_s1 + $0xd4] sm:$0xf]  ;;  %v387_v33 = vor.u32 %v435_v27, %v386_v26  ;;  %v314_v35 = vld [vmem:[%s661_s1 + $0x40] sm:$0xf] }
   0x9   :  { %v388_v32 = vld [vmem:[%s661_s1 + $0xd8] sm:$0xf0]  ;;  %234 = vmatpush.bf16.msra.mxu1 %v395_v17  ;;  %247 = vmatpush.bf16.msra.mxu2 %v335_v21  ;;  %v327_v34 = vor.u32 %v418_v28, %v324_v30  ;;  %v417_v36 = vld [vmem:[%s661_s1 + $0x44] sm:$0xf0]  ;;  %v378_v37 = vld [vmem:[%s661_s1 + $0xc0] sm:$0xf] }
   0xa   :  { %260 = vmatpush.bf16.msra.mxu3 %v399_v25  ;;  %v391_v38 = vor.u32 %v434_v31, %v388_v32  ;;  %v433_v39 = vld [vmem:[%s661_s1 + $0xc4] sm:$0xf0]  ;;  %v416_v40 = vld [vmem:[%s661_s1 + $0x44] sm:$0xf]  ;;  %v316_v41 = vld [vmem:[%s661_s1 + $0x48] sm:$0xf0]  ;;  %v315_v44 = vor.u32 %v417_v36, %v314_v35 }
   0xb   :  { %v432_v42 = vld [vmem:[%s661_s1 + $0xc4] sm:$0xf]  ;;  %v380_v43 = vld [vmem:[%s661_s1 + $0xc8] sm:$0xf0]  ;;  %v379_v45 = vor.u32 %v433_v39, %v378_v37  ;;  %v319_v46 = vor.u32 %v416_v40, %v316_v41  ;;  %v306_v47 = vld [vmem:[%s661_s1 + $0x30] sm:$0xf] }
   0xc   :  { %222 = vmatpush.bf16.msra.mxu0 %v323_v29  ;;  %v415_v48 = vld [vmem:[%s661_s1 + $0x34] sm:$0xf0]  ;;  %v370_v49 = vld [vmem:[%s661_s1 + $0xb0] sm:$0xf]  ;;  %v383_v50 = vor.u32 %v432_v42, %v380_v43  ;;  %v414_v52 = vld [vmem:[%s661_s1 + $0x34] sm:$0xf] }
   0xd   :  { %235 = vmatpush.bf16.msra.mxu1 %v387_v33  ;;  %248 = vmatpush.bf16.msra.mxu2 %v327_v34  ;;  %v431_v51 = vld [vmem:[%s661_s1 + $0xb4] sm:$0xf0]  ;;  %v308_v53 = vld [vmem:[%s661_s1 + $0x38] sm:$0xf0]  ;;  %v430_v54 = vld [vmem:[%s661_s1 + $0xb4] sm:$0xf]  ;;  %v307_v56 = vor.u32 %v415_v48, %v306_v47 }
   0xe   :  { %261 = vmatpush.bf16.msra.mxu3 %v391_v38  ;;  %v372_v55 = vld [vmem:[%s661_s1 + $0xb8] sm:$0xf0]  ;;  %v371_v57 = vor.u32 %v431_v51, %v370_v49  ;;  %v311_v58 = vor.u32 %v414_v52, %v308_v53  ;;  %v298_v59 = vld [vmem:[%s661_s1 + $0x20] sm:$0xf]  ;;  %v413_v60 = vld [vmem:[%s661_s1 + $0x24] sm:$0xf0] }
   0xf   :  { %v362_v61 = vld [vmem:[%s661_s1 + $0xa0] sm:$0xf]  ;;  %v375_v62 = vor.u32 %v430_v54, %v372_v55  ;;  %v429_v63 = vld [vmem:[%s661_s1 + $0xa4] sm:$0xf0]  ;;  %v412_v0 = vld [vmem:[%s661_s1 + $0x24] sm:$0xf]  ;;  %v299_v4 = vor.u32 %v413_v60, %v298_v59 }
  0x10   :  { %223 = vmatpush.bf16.msra.mxu0 %v315_v44  ;;  %v300_v1 = vld [vmem:[%s661_s1 + $0x28] sm:$0xf0]  ;;  %v428_v2 = vld [vmem:[%s661_s1 + $0xa4] sm:$0xf]  ;;  %v363_v5 = vor.u32 %v429_v63, %v362_v61  ;;  %v290_v7 = vld [vmem:[%s661_s1 + $0x10] sm:$0xf] }
  0x11   :  { %236 = vmatpush.bf16.msra.mxu1 %v379_v45  ;;  %249 = vmatpush.bf16.msra.mxu2 %v319_v46  ;;  %v364_v3 = vld [vmem:[%s661_s1 + $0xa8] sm:$0xf0]  ;;  %v303_v6 = vor.u32 %v412_v0, %v300_v1  ;;  %v411_v8 = vld [vmem:[%s661_s1 + $0x14] sm:$0xf0]  ;;  %v354_v9 = vld [vmem:[%s661_s1 + $0x90] sm:$0xf] }
  0x12   :  { %262 = vmatpush.bf16.msra.mxu3 %v383_v50  ;;  %v367_v10 = vor.u32 %v428_v2, %v364_v3  ;;  %v427_v11 = vld [vmem:[%s661_s1 + $0x94] sm:$0xf0]  ;;  %v410_v12 = vld [vmem:[%s661_s1 + $0x14] sm:$0xf]  ;;  %v292_v13 = vld [vmem:[%s661_s1 + $0x18] sm:$0xf0]  ;;  %v291_v16 = vor.u32 %v411_v8, %v290_v7 }
  0x13   :  { %v426_v14 = vld [vmem:[%s661_s1 + $0x94] sm:$0xf]  ;;  %v356_v15 = vld [vmem:[%s661_s1 + $0x98] sm:$0xf0]  ;;  %v14_v17 = vld [vmem:[%s662_s0] sm:$0xff]  ;;  %v355_v18 = vor.u32 %v427_v11, %v354_v9  ;;  %v295_v19 = vor.u32 %v410_v12, %v292_v13 }
  0x14   :  { %224 = vmatpush.bf16.msra.mxu0 %v307_v56  ;;  %v282_v20 = vld [vmem:[%s661_s1] sm:$0xf]  ;;  %v409_v21 = vld [vmem:[%s661_s1 + $0x4] sm:$0xf0]  ;;  %v359_v23 = vor.u32 %v426_v14, %v356_v15  ;;  %v408_v25 = vld [vmem:[%s661_s1 + $0x4] sm:$0xf]  ;;  %v54_v29 = vunpack.c.l.b16 %v14_v17  ;;  %v55_v31 = vunpack.c.h.b16 %v14_v17 }
  0x15   :  { %237 = vmatpush.bf16.msra.mxu1 %v371_v57  ;;  %250 = vmatpush.bf16.msra.mxu2 %v311_v58  ;;  %v346_v22 = vld [vmem:[%s661_s1 + $0x80] sm:$0xf]  ;;  %v425_v24 = vld [vmem:[%s661_s1 + $0x84] sm:$0xf0]  ;;  %v284_v26 = vld [vmem:[%s661_s1 + $0x8] sm:$0xf0]  ;;  %v283_v30 = vor.u32 %v409_v21, %v282_v20 }
  0x16   :  { %263 = vmatpush.bf16.msra.mxu3 %v375_v62  ;;  %v424_v27 = vld [vmem:[%s661_s1 + $0x84] sm:$0xf]  ;;  %v348_v28 = vld [vmem:[%s661_s1 + $0x88] sm:$0xf0]  ;;  %v347_v32 = vor.u32 %v425_v24, %v346_v22  ;;  %v287_v33 = vor.u32 %v408_v25, %v284_v26  ;;  %v56_v35 = vpack.c.b16 %v54_v29, %v54_v29  ;;  %v57_v36 = vpack.c.b16 %v55_v31, %v55_v31  ;;  %v47_v37 = vld [vmem:[%s663_s2] sm:$0x3] }
  0x17   :  { %v351_v34 = vor.u32 %v424_v27, %v348_v28  ;;  %v49_v38 = vperm.slane %v47_v37, 0  ;;  %v50_v42 = vperm.slane %v47_v37, 1 }
  0x18   :  { %225 = vmatpush.bf16.msra.mxu0 %v299_v4 }
  0x19   :  { %238 = vmatpush.bf16.msra.mxu1 %v363_v5  ;;  %251 = vmatpush.bf16.msra.mxu2 %v303_v6 }
  0x1a   :  { %264 = vmatpush.bf16.msra.mxu3 %v367_v10 }
  0x1c   :  { %226 = vmatpush.bf16.msra.mxu0 %v291_v16 }
  0x1d   :  { %239 = vmatpush.bf16.msra.mxu1 %v355_v18  ;;  %252 = vmatpush.bf16.msra.mxu2 %v295_v19 }
  0x1e   :  { %265 = vmatpush.bf16.msra.mxu3 %v359_v23 }
  0x20   :  { %227 = vmatpush.bf16.msra.mxu0 %v283_v30 }
  0x21   :  { %240 = vmatpush.bf16.msra.mxu1 %v347_v32  ;;  %253 = vmatpush.bf16.msra.mxu2 %v287_v33 }
  0x22   :  { %266 = vmatpush.bf16.msra.mxu3 %v351_v34 }
  0x23   :  { %228 = vmatmul.bf16.vlgmr.msra.gmra.mxu0 %v56_v35 }
  0x24   :  { %241 = vmatmul.bf16.vlgmr.msra.gmra.mxu1 %v57_v36  ;;  %254 = vmatmul.bf16.vlgmr.msra.gmra.mxu2 %v56_v35 }
  0x25   :  { %267 = vmatmul.bf16.vlgmr.msra.gmra.mxu3 %v57_v36 }
  0xa0   :  { %v229_v39 = vpop.f32.mrf.mxu0 }
  0xa1   :  { %v242_v40 = vpop.f32.mrf.mxu1  ;;  %v230_v41 = vadd.f32 %v229_v39, %v49_v38 }
  0xa3   :  { %v243_v43 = vadd.f32 %v242_v40, %v230_v41 }
  0xa5   :  { %v272_v49 = vmax.f32 %v243_v43, 0.0 }
  0xa7   :  { %v255_v44 = vpop.f32.mrf.mxu2 }
  0xa8   :  { %v256_v45 = vadd.f32 %v255_v44, %v50_v42  ;;  %v268_v46 = vpop.f32.mrf.mxu3  ;;  %v231_v47 = vpop.f32.mrf.mxu0 }
  0xa9   :  { %v244_v48 = vpop.f32.mrf.mxu1 }
  0xaa   :  { %v269_v50 = vadd.f32 %v268_v46, %v256_v45 }
  0xac   :  { %v273_v51 = vmax.f32 %v269_v50, 0.0 }
  0xae   :  { %v274_v52 = vpack.c.bf16 %v273_v51, %v272_v49 }
  0xaf   :  { %v257_v53 = vpop.f32.mrf.mxu2 }
  0xb0   :  { %275 = vst [vmem:[%s664_s3] sm:$0xff] %v274_v52  ;;  %v270_v54 = vpop.f32.mrf.mxu3 }

// kernel: _lambda_.91
= control target key start
LH: loop header
LB: loop body
LE: loop exit
PB: predicated region body
PF: predicated region fallthrough
CT: control target
= control target key end

     0   :  { %s1373_s1 = inlined_call_operand.vmem [shape: bf16[1152,128], index: 1, kind: input, shape index: {}]   ;;  %s1374_s2 = inlined_call_operand.vmem [shape: f32[1,128], index: 2, kind: input, shape index: {}]   ;;  %s1375_s0 = inlined_call_operand.vmem [shape: bf16[8,1152], index: 0, kind: input, shape index: {}]   ;;  %s1376_s3 = inlined_call_operand.vmem [shape: bf16[8,128], index: 3, kind: output, shape index: {}]  }
   0x1   :  { %v1050_v0 = vld [vmem:[%s1373_s1 + $0x38] sm:$0xff]  ;;  %v1049_v4 = vld [vmem:[%s1373_s1 + $0x30] sm:$0xff]  ;;  %v1048_v8 = vld [vmem:[%s1373_s1 + $0x28] sm:$0xff] }
   0x2   :  { %v1066_v1 = vld [vmem:[%s1373_s1 + $0xb8] sm:$0xff]  ;;  %631 = vmatpush.bf16.msra.mxu0 %v1050_v0  ;;  %v1065_v5 = vld [vmem:[%s1373_s1 + $0xb0] sm:$0xff]  ;;  %v1064_v9 = vld [vmem:[%s1373_s1 + $0xa8] sm:$0xff] }
   0x3   :  { %v1074_v2 = vld [vmem:[%s1373_s1 + $0xf8] sm:$0xff]  ;;  %657 = vmatpush.bf16.msra.mxu2 %v1066_v1  ;;  %v1073_v6 = vld [vmem:[%s1373_s1 + $0xf0] sm:$0xff]  ;;  %v1072_v10 = vld [vmem:[%s1373_s1 + $0xe8] sm:$0xff] }
   0x4   :  { %v1058_v3 = vld [vmem:[%s1373_s1 + $0x78] sm:$0xff]  ;;  %670 = vmatpush.bf16.msra.mxu3 %v1074_v2  ;;  %v1057_v7 = vld [vmem:[%s1373_s1 + $0x70] sm:$0xff]  ;;  %v1056_v11 = vld [vmem:[%s1373_s1 + $0x68] sm:$0xff] }
   0x5   :  { %644 = vmatpush.bf16.msra.mxu1 %v1058_v3  ;;  %v1047_v12 = vld [vmem:[%s1373_s1 + $0x20] sm:$0xff]  ;;  %v1046_v16 = vld [vmem:[%s1373_s1 + $0x18] sm:$0xff]  ;;  %v1045_v20 = vld [vmem:[%s1373_s1 + $0x10] sm:$0xff] }
   0x6   :  { %632 = vmatpush.bf16.msra.mxu0 %v1049_v4  ;;  %v1063_v13 = vld [vmem:[%s1373_s1 + $0xa0] sm:$0xff]  ;;  %v1062_v17 = vld [vmem:[%s1373_s1 + $0x98] sm:$0xff]  ;;  %v1061_v21 = vld [vmem:[%s1373_s1 + $0x90] sm:$0xff] }
   0x7   :  { %658 = vmatpush.bf16.msra.mxu2 %v1065_v5  ;;  %v1071_v14 = vld [vmem:[%s1373_s1 + $0xe0] sm:$0xff]  ;;  %v1070_v18 = vld [vmem:[%s1373_s1 + $0xd8] sm:$0xff]  ;;  %v1069_v22 = vld [vmem:[%s1373_s1 + $0xd0] sm:$0xff] }
   0x8   :  { %671 = vmatpush.bf16.msra.mxu3 %v1073_v6  ;;  %v1055_v15 = vld [vmem:[%s1373_s1 + $0x60] sm:$0xff]  ;;  %v1054_v19 = vld [vmem:[%s1373_s1 + $0x58] sm:$0xff]  ;;  %v1053_v23 = vld [vmem:[%s1373_s1 + $0x50] sm:$0xff] }
   0x9   :  { %645 = vmatpush.bf16.msra.mxu1 %v1057_v7  ;;  %v1044_v24 = vld [vmem:[%s1373_s1 + $0x8] sm:$0xff]  ;;  %v14_v29 = vld [vmem:[%s1375_s0] sm:$0xff]  ;;  %v1082_v34 = vld [vmem:[%s1373_s1 + $0x138] sm:$0xff] }
   0xa   :  { %633 = vmatpush.bf16.msra.mxu0 %v1048_v8  ;;  %v1060_v25 = vld [vmem:[%s1373_s1 + $0x88] sm:$0xff]  ;;  %v1043_v30 = vld [vmem:[%s1373_s1] sm:$0xff]  ;;  %v172_v33 = vunpack.c.l.b16 %v14_v29  ;;  %v1098_v35 = vld [vmem:[%s1373_s1 + $0x1b8] sm:$0xff]  ;;  %v173_v39 = vunpack.c.h.b16 %v14_v29 }
   0xb   :  { %659 = vmatpush.bf16.msra.mxu2 %v1064_v9  ;;  %v1068_v26 = vld [vmem:[%s1373_s1 + $0xc8] sm:$0xff]  ;;  %v1059_v31 = vld [vmem:[%s1373_s1 + $0x80] sm:$0xff]  ;;  %v1106_v40 = vld [vmem:[%s1373_s1 + $0x1f8] sm:$0xff] }
   0xc   :  { %672 = vmatpush.bf16.msra.mxu3 %v1072_v10  ;;  %v1052_v27 = vld [vmem:[%s1373_s1 + $0x48] sm:$0xff]  ;;  %v1067_v36 = vld [vmem:[%s1373_s1 + $0xc0] sm:$0xff]  ;;  %v1090_v41 = vld [vmem:[%s1373_s1 + $0x178] sm:$0xff]  ;;  %v181_v43 = vpack.c.b16 %v172_v33, %v172_v33  ;;  %v182_v47 = vpack.c.b16 %v173_v39, %v173_v39 }
   0xd   :  { %646 = vmatpush.bf16.msra.mxu1 %v1056_v11  ;;  %v15_v28 = vld [vmem:[%s1375_s0 + $0x8] sm:$0xff]  ;;  %v1051_v37 = vld [vmem:[%s1373_s1 + $0x40] sm:$0xff]  ;;  %v1081_v44 = vld [vmem:[%s1373_s1 + $0x130] sm:$0xff] }
   0xe   :  { %634 = vmatpush.bf16.msra.mxu0 %v1047_v12  ;;  %v174_v32 = vunpack.c.l.b16 %v15_v28  ;;  %v175_v38 = vunpack.c.h.b16 %v15_v28  ;;  %v1097_v45 = vld [vmem:[%s1373_s1 + $0x1b0] sm:$0xff]  ;;  %v1080_v50 = vld [vmem:[%s1373_s1 + $0x128] sm:$0xff]  ;;  %v1079_v54 = vld [vmem:[%s1373_s1 + $0x120] sm:$0xff] }
   0xf   :  { %660 = vmatpush.bf16.msra.mxu2 %v1063_v13  ;;  %v1105_v48 = vld [vmem:[%s1373_s1 + $0x1f0] sm:$0xff]  ;;  %v1096_v51 = vld [vmem:[%s1373_s1 + $0x1a8] sm:$0xff]  ;;  %v1095_v55 = vld [vmem:[%s1373_s1 + $0x1a0] sm:$0xff] }
  0x10   :  { %673 = vmatpush.bf16.msra.mxu3 %v1071_v14  ;;  %v183_v42 = vpack.c.b16 %v174_v32, %v174_v32  ;;  %v184_v46 = vpack.c.b16 %v175_v38, %v175_v38  ;;  %v1089_v49 = vld [vmem:[%s1373_s1 + $0x170] sm:$0xff]  ;;  %v1104_v52 = vld [vmem:[%s1373_s1 + $0x1e8] sm:$0xff]  ;;  %v1103_v56 = vld [vmem:[%s1373_s1 + $0x1e0] sm:$0xff] }
  0x11   :  { %647 = vmatpush.bf16.msra.mxu1 %v1055_v15  ;;  %v1088_v53 = vld [vmem:[%s1373_s1 + $0x168] sm:$0xff]  ;;  %v1087_v57 = vld [vmem:[%s1373_s1 + $0x160] sm:$0xff]  ;;  %v1078_v58 = vld [vmem:[%s1373_s1 + $0x118] sm:$0xff] }
  0x12   :  { %635 = vmatpush.bf16.msra.mxu0 %v1046_v16  ;;  %v1094_v59 = vld [vmem:[%s1373_s1 + $0x198] sm:$0xff]  ;;  %v1077_v62 = vld [vmem:[%s1373_s1 + $0x110] sm:$0xff]  ;;  %v1076_v2 = vld [vmem:[%s1373_s1 + $0x108] sm:$0xff] }
  0x13   :  { %661 = vmatpush.bf16.msra.mxu2 %v1062_v17  ;;  %v1102_v60 = vld [vmem:[%s1373_s1 + $0x1d8] sm:$0xff]  ;;  %v1093_v63 = vld [vmem:[%s1373_s1 + $0x190] sm:$0xff]  ;;  %v1092_v3 = vld [vmem:[%s1373_s1 + $0x188] sm:$0xff] }
  0x14   :  { %674 = vmatpush.bf16.msra.mxu3 %v1070_v18  ;;  %v1086_v61 = vld [vmem:[%s1373_s1 + $0x158] sm:$0xff]  ;;  %v1101_v0 = vld [vmem:[%s1373_s1 + $0x1d0] sm:$0xff]  ;;  %v1100_v6 = vld [vmem:[%s1373_s1 + $0x1c8] sm:$0xff] }
  0x15   :  { %648 = vmatpush.bf16.msra.mxu1 %v1054_v19  ;;  %v1085_v1 = vld [vmem:[%s1373_s1 + $0x150] sm:$0xff]  ;;  %v17_v4 = vld [vmem:[%s1375_s0 + $0x18] sm:$0xff]  ;;  %v1084_v7 = vld [vmem:[%s1373_s1 + $0x148] sm:$0xff] }
  0x16   :  { %636 = vmatpush.bf16.msra.mxu0 %v1045_v20  ;;  %v16_v5 = vld [vmem:[%s1375_s0 + $0x10] sm:$0xff]  ;;  %v178_v8 = vunpack.c.l.b16 %v17_v4  ;;  %v1075_v10 = vld [vmem:[%s1373_s1 + $0x100] sm:$0xff]  ;;  %v1114_v12 = vld [vmem:[%s1373_s1 + $0x238] sm:$0xff]  ;;  %v179_v13 = vunpack.c.h.b16 %v17_v4 }
  0x17   :  { %662 = vmatpush.bf16.msra.mxu2 %v1061_v21  ;;  %v176_v9 = vunpack.c.l.b16 %v16_v5  ;;  %v1091_v11 = vld [vmem:[%s1373_s1 + $0x180] sm:$0xff]  ;;  %v177_v16 = vunpack.c.h.b16 %v16_v5  ;;  %v1113_v19 = vld [vmem:[%s1373_s1 + $0x230] sm:$0xff] }
  0x18   :  { %675 = vmatpush.bf16.msra.mxu3 %v1069_v22  ;;  %v1099_v14 = vld [vmem:[%s1373_s1 + $0x1c0] sm:$0xff]  ;;  %v187_v17 = vpack.c.b16 %v178_v8, %v178_v8  ;;  %v188_v20 = vpack.c.b16 %v179_v13, %v179_v13  ;;  %v1112_v22 = vld [vmem:[%s1373_s1 + $0x228] sm:$0xff] }
  0x19   :  { %649 = vmatpush.bf16.msra.mxu1 %v1053_v23  ;;  %v1083_v15 = vld [vmem:[%s1373_s1 + $0x140] sm:$0xff]  ;;  %v185_v18 = vpack.c.b16 %v176_v9, %v176_v9  ;;  %v186_v21 = vpack.c.b16 %v177_v16, %v177_v16 }
  0x1a   :  { %637 = vmatpush.bf16.msra.mxu0 %v1044_v24  ;;  %v1111_v23 = vld [vmem:[%s1373_s1 + $0x220] sm:$0xff]  ;;  %v1110_v24 = vld [vmem:[%s1373_s1 + $0x218] sm:$0xff] }
  0x1b   :  { %663 = vmatpush.bf16.msra.mxu2 %v1060_v25  ;;  %v1109_v25 = vld [vmem:[%s1373_s1 + $0x210] sm:$0xff]  ;;  %v1107_v29 = vld [vmem:[%s1373_s1 + $0x200] sm:$0xff] }
  0x1c   :  { %676 = vmatpush.bf16.msra.mxu3 %v1068_v26  ;;  %v1108_v26 = vld [vmem:[%s1373_s1 + $0x208] sm:$0xff]  ;;  %v1115_v39 = vld [vmem:[%s1374_s2] ss:$0 sm:$0xff] }
  0x1d   :  { %650 = vmatpush.bf16.msra.mxu1 %v1052_v27  ;;  %v18_v27 = vld [vmem:[%s1375_s0 + $0x20] sm:$0xf] }
  0x1e   :  { %638 = vmatpush.bf16.msra.mxu0 %v1043_v30  ;;  %v180_v28 = vunpack.c.l.b16 %v18_v27 }
  0x1f   :  { %664 = vmatpush.bf16.msra.mxu2 %v1059_v31 }
  0x20   :  { %677 = vmatpush.bf16.msra.mxu3 %v1067_v36  ;;  %v189_v30 = vpack.c.b16 %v180_v28, %v180_v28 }
  0x21   :  { %651 = vmatpush.bf16.msra.mxu1 %v1051_v37  ;;  %639 = vmatmul.bf16.vlgmr.msra.gmra.mxu0 %v181_v43 }
  0x22   :  { %683 = vmatpush.bf16.msrb.mxu0 %v1082_v34  ;;  %665 = vmatmul.bf16.vlgmr.msra.gmra.mxu2 %v183_v42 }
  0x23   :  { %709 = vmatpush.bf16.msrb.mxu2 %v1098_v35  ;;  %678 = vmatmul.bf16.vlgmr.msra.gmra.mxu3 %v184_v46 }
  0x24   :  { %722 = vmatpush.bf16.msrb.mxu3 %v1106_v40  ;;  %652 = vmatmul.bf16.vlgmr.msra.gmra.mxu1 %v182_v47 }
  0x25   :  { %696 = vmatpush.bf16.msrb.mxu1 %v1090_v41 }
  0x26   :  { %684 = vmatpush.bf16.msrb.mxu0 %v1081_v44 }
  0x27   :  { %710 = vmatpush.bf16.msrb.mxu2 %v1097_v45 }
  0x28   :  { %723 = vmatpush.bf16.msrb.mxu3 %v1105_v48 }
  0x29   :  { %697 = vmatpush.bf16.msrb.mxu1 %v1089_v49 }
  0x2a   :  { %685 = vmatpush.bf16.msrb.mxu0 %v1080_v50 }
  0x2b   :  { %711 = vmatpush.bf16.msrb.mxu2 %v1096_v51 }
  0x2c   :  { %724 = vmatpush.bf16.msrb.mxu3 %v1104_v52 }
  0x2d   :  { %698 = vmatpush.bf16.msrb.mxu1 %v1088_v53 }
  0x2e   :  { %686 = vmatpush.bf16.msrb.mxu0 %v1079_v54 }
  0x2f   :  { %712 = vmatpush.bf16.msrb.mxu2 %v1095_v55 }
  0x30   :  { %725 = vmatpush.bf16.msrb.mxu3 %v1103_v56 }
  0x31   :  { %699 = vmatpush.bf16.msrb.mxu1 %v1087_v57 }
  0x32   :  { %687 = vmatpush.bf16.msrb.mxu0 %v1078_v58 }
  0x33   :  { %713 = vmatpush.bf16.msrb.mxu2 %v1094_v59 }
  0x34   :  { %726 = vmatpush.bf16.msrb.mxu3 %v1102_v60 }
  0x35   :  { %700 = vmatpush.bf16.msrb.mxu1 %v1086_v61 }
  0x36   :  { %688 = vmatpush.bf16.msrb.mxu0 %v1077_v62 }
  0x37   :  { %714 = vmatpush.bf16.msrb.mxu2 %v1093_v63 }
  0x38   :  { %727 = vmatpush.bf16.msrb.mxu3 %v1101_v0 }
  0x39   :  { %701 = vmatpush.bf16.msrb.mxu1 %v1085_v1 }
  0x3a   :  { %689 = vmatpush.bf16.msrb.mxu0 %v1076_v2 }
  0x3b   :  { %715 = vmatpush.bf16.msrb.mxu2 %v1092_v3 }
  0x3c   :  { %728 = vmatpush.bf16.msrb.mxu3 %v1100_v6 }
  0x3d   :  { %702 = vmatpush.bf16.msrb.mxu1 %v1084_v7 }
  0x3e   :  { %690 = vmatpush.bf16.msrb.mxu0 %v1075_v10 }
  0x3f   :  { %716 = vmatpush.bf16.msrb.mxu2 %v1091_v11 }
  0x40   :  { %729 = vmatpush.bf16.msrb.mxu3 %v1099_v14 }
  0x41   :  { %703 = vmatpush.bf16.msrb.mxu1 %v1083_v15  ;;  %691 = vmatmul.bf16.vlgmr.msrb.gmra.mxu0 %v185_v18 }
  0x42   :  { %735 = vmatpush.bf16.msra.mxu0 %v1114_v12  ;;  %717 = vmatmul.bf16.vlgmr.msrb.gmra.mxu2 %v187_v17 }
  0x43   :  { %730 = vmatmul.bf16.vlgmr.msrb.gmra.mxu3 %v188_v20 }
  0x44   :  { %704 = vmatmul.bf16.vlgmr.msrb.gmra.mxu1 %v186_v21 }
  0x46   :  { %736 = vmatpush.bf16.msra.mxu0 %v1113_v19 }
  0x4a   :  { %737 = vmatpush.bf16.msra.mxu0 %v1112_v22 }
  0x4e   :  { %738 = vmatpush.bf16.msra.mxu0 %v1111_v23 }
  0x52   :  { %739 = vmatpush.bf16.msra.mxu0 %v1110_v24 }
  0x56   :  { %740 = vmatpush.bf16.msra.mxu0 %v1109_v25 }
  0x5a   :  { %741 = vmatpush.bf16.msra.mxu0 %v1108_v26 }
  0x5e   :  { %742 = vmatpush.bf16.msra.mxu0 %v1107_v29 }
  0x61   :  { %743 = vmatmul.bf16.vlgmr.msra.gmra.mxu0 %v189_v30 }
  0x9e   :  { %v640_v31 = vpop.f32.mrf.mxu0 }
  0x9f   :  { %v641_v40 = vadd.f32 %v1115_v39, %v640_v31 }
  0xa1   :  { %v653_v32 = vpop.f32.mrf.mxu1 }
  0xa2   :  { %v654_v43 = vadd.f32 %v653_v32, %v641_v40 }
  0xa5   :  { %v666_v33 = vpop.f32.mrf.mxu2 }
  0xa6   :  { %v679_v34 = vpop.f32.mrf.mxu3  ;;  %v642_v35 = vpop.f32.mrf.mxu0  ;;  %v667_v45 = vadd.f32 %v666_v33, %v654_v43 }
  0xa8   :  { %v680_v49 = vadd.f32 %v679_v34, %v667_v45 }
  0xa9   :  { %v655_v36 = vpop.f32.mrf.mxu1 }
  0xad   :  { %v668_v37 = vpop.f32.mrf.mxu2 }
  0xae   :  { %v681_v38 = vpop.f32.mrf.mxu3 }
  0xbe   :  { %v692_v41 = vpop.f32.mrf.mxu0 }
  0xbf   :  { %v693_v51 = vadd.f32 %v692_v41, %v680_v49 }
  0xc1   :  { %v705_v42 = vpop.f32.mrf.mxu1 }
  0xc2   :  { %v706_v53 = vadd.f32 %v705_v42, %v693_v51 }
  0xc5   :  { %v718_v44 = vpop.f32.mrf.mxu2 }
  0xc6   :  { %v731_v46 = vpop.f32.mrf.mxu3  ;;  %v694_v47 = vpop.f32.mrf.mxu0  ;;  %v719_v54 = vadd.f32 %v718_v44, %v706_v53 }
  0xc8   :  { %v732_v55 = vadd.f32 %v731_v46, %v719_v54 }
  0xc9   :  { %v707_v48 = vpop.f32.mrf.mxu1 }
  0xcd   :  { %v720_v50 = vpop.f32.mrf.mxu2 }
  0xce   :  { %v733_v52 = vpop.f32.mrf.mxu3 }
  0xde   :  { %v744_v56 = vpop.f32.mrf.mxu0 }
  0xdf   :  { %v745_v57 = vadd.f32 %v744_v56, %v732_v55 }
  0xe1   :  { %v748_v58 = vmax.f32 %v745_v57, 0.0 }
  0xe3   :  { %v749_v59 = vpack.c.bf16 %v748_v58, %v748_v58 }
  0xe5   :  { %750 = vst [vmem:[%s1376_s3] sm:$0xf] %v749_v59 }
  0xe6   :  { %v746_v60 = vpop.f32.mrf.mxu0 }

// kernel: _lambda_.93
= control target key start
LH: loop header
LB: loop body
LE: loop exit
PB: predicated region body
PF: predicated region fallthrough
CT: control target
= control target key end

     0   :  { %s2161_s30 = smov 0   ;;  %s2163_s10 = smov 0   ;;  %s2941_s0 = inlined_call_operand.vmem [shape: bf16[2,4,256], index: 0, kind: input, shape index: {}]   ;;  %s2942_s1 = inlined_call_operand.vmem [shape: bf16[2,4,128], index: 1, kind: input, shape index: {}]   ;;  %s2943_s2 = inlined_call_operand.vmem [shape: bf16[2,256], index: 2, kind: input, shape index: {}]   ;;  %s2944_s3 = inlined_call_operand.vmem [shape: bf16[256,256], index: 3, kind: input, shape index: {}]   ;;  %s2945_s4 = inlined_call_operand.vmem [shape: bf16[256,256], index: 4, kind: input, shape index: {}]   ;;  %s2946_s5 = inlined_call_operand.vmem [shape: bf16[256,256], index: 5, kind: input, shape index: {}]   ;;  %s2947_s6 = inlined_call_operand.vmem [shape: f32[1,256], index: 6, kind: input, shape index: {}, may-alias: {6,8}]   ;;  %s2948_s7 = inlined_call_operand.vmem [shape: bf16[128,256], index: 7, kind: input, shape index: {}]   ;;  %s2949_s8 = inlined_call_operand.vmem [shape: f32[1,256], index: 8, kind: input, shape index: {}, may-alias: {6,8}]   ;;  %s2950_s9 = inlined_call_operand.vmem [shape: bf16[2,4,256], index: 9, kind: output, shape index: {}]  }
   0x1   :  { %s2165_s11 = smov 0  }
   0x2 LB: > { %s31_s12 = sadd.s32 1, %s2104_s10  ;;  %p1480_p0 = scmp.ge.s32.totalorder %s2108_s11, 1  ;;  %s2108_s11 = sphi %s2165_s11, %s19_s11   ;;  %s2104_s10 = sphi %s2163_s10, %s2958_s10   ;;  %s2100_s30 = sphi %s2161_s30, %s2957_s30  }
   0x3   : > { %p33_p1 = scmp.ge.s32.totalorder %s31_s12, 2  ;;  %p321_p2 = scmp.lt.s32.totalorder %s2108_s11, 3 }
   0x5   : > { %s2960_s12 = smov (%p33_p1, %s31_s12), 0  ;;  %p322_p3 = pnand %p1480_p0, %p321_p2 }
   0x6   : > { %p372_p4 = scmp.lt.s32.totalorder (!%p322_p3), %s2100_s30, 1 }
   0x7   : > { %325 = sbr.rel (%p322_p3) target bundleno = 535 (0x217), region = 56 }
   0xc   : > { %v1544_v0 = vld [vmem:[%s2944_s3 + $0x70] sm:$0xf]  ;;  %v1956_v1 = vld [vmem:[%s2944_s3 + $0x74] sm:$0xf0]  ;;  %v1955_v5 = vld [vmem:[%s2944_s3 + $0x74] sm:$0xf] }
   0xd   : > { %v1608_v2 = vld [vmem:[%s2944_s3 + $0xf0] sm:$0xf]  ;;  %v1545_v3 = vor.u32 %v1956_v1, %v1544_v0  ;;  %v1972_v4 = vld [vmem:[%s2944_s3 + $0xf4] sm:$0xf0]  ;;  %v1546_v6 = vld [vmem:[%s2944_s3 + $0x78] sm:$0xf0] }
   0xe   : > { %v1609_v7 = vor.u32 %v1972_v4, %v1608_v2  ;;  %v1549_v8 = vor.u32 %v1955_v5, %v1546_v6  ;;  %v1971_v9 = vld [vmem:[%s2944_s3 + $0xf4] sm:$0xf]  ;;  %v1610_v10 = vld [vmem:[%s2944_s3 + $0xf8] sm:$0xf0]  ;;  %v1536_v11 = vld [vmem:[%s2944_s3 + $0x60] sm:$0xf] }
   0xf   : > { %596 = vmatpush.bf16.msra.mxu0 %v1545_v3  ;;  %v1613_v12 = vor.u32 %v1971_v9, %v1610_v10  ;;  %v1954_v13 = vld [vmem:[%s2944_s3 + $0x64] sm:$0xf0]  ;;  %v1600_v14 = vld [vmem:[%s2944_s3 + $0xe0] sm:$0xf]  ;;  %v1953_v18 = vld [vmem:[%s2944_s3 + $0x64] sm:$0xf] }
  0x10   : > { %v1970_v15 = vld [vmem:[%s2944_s3 + $0xe4] sm:$0xf0]  ;;  %609 = vmatpush.bf16.msra.mxu1 %v1609_v7  ;;  %622 = vmatpush.bf16.msra.mxu2 %v1549_v8  ;;  %v1537_v16 = vor.u32 %v1954_v13, %v1536_v11  ;;  %v1538_v19 = vld [vmem:[%s2944_s3 + $0x68] sm:$0xf0]  ;;  %v1969_v20 = vld [vmem:[%s2944_s3 + $0xe4] sm:$0xf] }
  0x11   : > { %v1601_v17 = vor.u32 %v1970_v15, %v1600_v14  ;;  %635 = vmatpush.bf16.msra.mxu3 %v1613_v12  ;;  %v1541_v21 = vor.u32 %v1953_v18, %v1538_v19  ;;  %v1602_v22 = vld [vmem:[%s2944_s3 + $0xe8] sm:$0xf0]  ;;  %v1528_v23 = vld [vmem:[%s2944_s3 + $0x50] sm:$0xf]  ;;  %v1952_v24 = vld [vmem:[%s2944_s3 + $0x54] sm:$0xf0] }
  0x12   : > { %v1605_v25 = vor.u32 %v1969_v20, %v1602_v22  ;;  %v1592_v26 = vld [vmem:[%s2944_s3 + $0xd0] sm:$0xf]  ;;  %v1968_v27 = vld [vmem:[%s2944_s3 + $0xd4] sm:$0xf0]  ;;  %v1951_v28 = vld [vmem:[%s2944_s3 + $0x54] sm:$0xf]  ;;  %v1529_v29 = vor.u32 %v1952_v24, %v1528_v23 }
  0x13   : > { %597 = vmatpush.bf16.msra.mxu0 %v1537_v16  ;;  %v1530_v30 = vld [vmem:[%s2944_s3 + $0x58] sm:$0xf0]  ;;  %v1967_v31 = vld [vmem:[%s2944_s3 + $0xd4] sm:$0xf]  ;;  %v1593_v33 = vor.u32 %v1968_v27, %v1592_v26  ;;  %v1520_v35 = vld [vmem:[%s2944_s3 + $0x40] sm:$0xf] }
  0x14   : > { %v1594_v32 = vld [vmem:[%s2944_s3 + $0xd8] sm:$0xf0]  ;;  %610 = vmatpush.bf16.msra.mxu1 %v1601_v17  ;;  %623 = vmatpush.bf16.msra.mxu2 %v1541_v21  ;;  %v1533_v34 = vor.u32 %v1951_v28, %v1530_v30  ;;  %v1950_v36 = vld [vmem:[%s2944_s3 + $0x44] sm:$0xf0]  ;;  %v1584_v37 = vld [vmem:[%s2944_s3 + $0xc0] sm:$0xf] }
  0x15   : > { %636 = vmatpush.bf16.msra.mxu3 %v1605_v25  ;;  %v1597_v38 = vor.u32 %v1967_v31, %v1594_v32  ;;  %v1966_v39 = vld [vmem:[%s2944_s3 + $0xc4] sm:$0xf0]  ;;  %v1949_v40 = vld [vmem:[%s2944_s3 + $0x44] sm:$0xf]  ;;  %v1522_v41 = vld [vmem:[%s2944_s3 + $0x48] sm:$0xf0]  ;;  %v1521_v44 = vor.u32 %v1950_v36, %v1520_v35 }
  0x16   : > { %v1965_v42 = vld [vmem:[%s2944_s3 + $0xc4] sm:$0xf]  ;;  %v1586_v43 = vld [vmem:[%s2944_s3 + $0xc8] sm:$0xf0]  ;;  %v1585_v45 = vor.u32 %v1966_v39, %v1584_v37  ;;  %v1525_v46 = vor.u32 %v1949_v40, %v1522_v41  ;;  %v1512_v47 = vld [vmem:[%s2944_s3 + $0x30] sm:$0xf] }
  0x17   : > { %598 = vmatpush.bf16.msra.mxu0 %v1529_v29  ;;  %v1948_v48 = vld [vmem:[%s2944_s3 + $0x34] sm:$0xf0]  ;;  %v1576_v49 = vld [vmem:[%s2944_s3 + $0xb0] sm:$0xf]  ;;  %v1589_v50 = vor.u32 %v1965_v42, %v1586_v43  ;;  %v1947_v52 = vld [vmem:[%s2944_s3 + $0x34] sm:$0xf] }
  0x18   : > { %611 = vmatpush.bf16.msra.mxu1 %v1593_v33  ;;  %624 = vmatpush.bf16.msra.mxu2 %v1533_v34  ;;  %v1964_v51 = vld [vmem:[%s2944_s3 + $0xb4] sm:$0xf0]  ;;  %v1514_v53 = vld [vmem:[%s2944_s3 + $0x38] sm:$0xf0]  ;;  %v1963_v54 = vld [vmem:[%s2944_s3 + $0xb4] sm:$0xf]  ;;  %v1513_v56 = vor.u32 %v1948_v48, %v1512_v47 }
  0x19   : > { %637 = vmatpush.bf16.msra.mxu3 %v1597_v38  ;;  %v1578_v55 = vld [vmem:[%s2944_s3 + $0xb8] sm:$0xf0]  ;;  %v1577_v57 = vor.u32 %v1964_v51, %v1576_v49  ;;  %v1517_v58 = vor.u32 %v1947_v52, %v1514_v53  ;;  %v1504_v59 = vld [vmem:[%s2944_s3 + $0x20] sm:$0xf]  ;;  %v1946_v60 = vld [vmem:[%s2944_s3 + $0x24] sm:$0xf0] }
  0x1a   : > { %v1568_v61 = vld [vmem:[%s2944_s3 + $0xa0] sm:$0xf]  ;;  %v1581_v62 = vor.u32 %v1963_v54, %v1578_v55  ;;  %v1962_v63 = vld [vmem:[%s2944_s3 + $0xa4] sm:$0xf0]  ;;  %v1945_v0 = vld [vmem:[%s2944_s3 + $0x24] sm:$0xf]  ;;  %v1505_v4 = vor.u32 %v1946_v60, %v1504_v59 }
  0x1b   : > { %599 = vmatpush.bf16.msra.mxu0 %v1521_v44  ;;  %v1506_v1 = vld [vmem:[%s2944_s3 + $0x28] sm:$0xf0]  ;;  %v1961_v2 = vld [vmem:[%s2944_s3 + $0xa4] sm:$0xf]  ;;  %v1496_v5 = vld [vmem:[%s2944_s3 + $0x10] sm:$0xf]  ;;  %v1569_v6 = vor.u32 %v1962_v63, %v1568_v61 }
  0x1c   : > { %612 = vmatpush.bf16.msra.mxu1 %v1585_v45  ;;  %625 = vmatpush.bf16.msra.mxu2 %v1525_v46  ;;  %v1570_v3 = vld [vmem:[%s2944_s3 + $0xa8] sm:$0xf0]  ;;  %v1509_v7 = vor.u32 %v1945_v0, %v1506_v1  ;;  %v1944_v8 = vld [vmem:[%s2944_s3 + $0x14] sm:$0xf0]  ;;  %v1560_v9 = vld [vmem:[%s2944_s3 + $0x90] sm:$0xf] }
  0x1d   : > { %638 = vmatpush.bf16.msra.mxu3 %v1589_v50  ;;  %v1960_v10 = vld [vmem:[%s2944_s3 + $0x94] sm:$0xf0]  ;;  %v1573_v11 = vor.u32 %v1961_v2, %v1570_v3  ;;  %v1943_v12 = vld [vmem:[%s2944_s3 + $0x14] sm:$0xf]  ;;  %v1498_v13 = vld [vmem:[%s2944_s3 + $0x18] sm:$0xf0]  ;;  %v1497_v17 = vor.u32 %v1944_v8, %v1496_v5 }
  0x1e   : > { %v397_v14 = vld [vmem:[%s2943_s2] sm:$0x3]  ;;  %v1959_v15 = vld [vmem:[%s2944_s3 + $0x94] sm:$0xf]  ;;  %v1562_v16 = vld [vmem:[%s2944_s3 + $0x98] sm:$0xf0]  ;;  %v1561_v19 = vor.u32 %v1960_v10, %v1560_v9  ;;  %v1501_v20 = vor.u32 %v1943_v12, %v1498_v13 }
  0x1f   : > { %600 = vmatpush.bf16.msra.mxu0 %v1513_v56  ;;  %431 = vst [vmem:[#allocation1] ss:$9 sm:$0xff] %v397_v14  ;;  %v1488_v18 = vld [vmem:[%s2944_s3] sm:$0xf]  ;;  %v1942_v21 = vld [vmem:[%s2944_s3 + $0x4] sm:$0xf0]  ;;  %v1565_v24 = vor.u32 %v1959_v15, %v1562_v16 }
  0x20   : > { %613 = vmatpush.bf16.msra.mxu1 %v1577_v57  ;;  %626 = vmatpush.bf16.msra.mxu2 %v1517_v58  ;;  %v1552_v22 = vld [vmem:[%s2944_s3 + $0x80] sm:$0xf]  ;;  %v1958_v23 = vld [vmem:[%s2944_s3 + $0x84] sm:$0xf0]  ;;  %v1941_v25 = vld [vmem:[%s2944_s3 + $0x4] sm:$0xf]  ;;  %v1489_v31 = vor.u32 %v1942_v21, %v1488_v18 }
  0x21   : > { %639 = vmatpush.bf16.msra.mxu3 %v1581_v62  ;;  %v1490_v26 = vld [vmem:[%s2944_s3 + $0x8] sm:$0xf0]  ;;  %v1957_v27 = vld [vmem:[%s2944_s3 + $0x84] sm:$0xf]  ;;  %v1672_v29 = vld [vmem:[%s2945_s4 + $0x70] sm:$0xf]  ;;  %v1553_v34 = vor.u32 %v1958_v23, %v1552_v22 }
  0x22   : > { %v1554_v28 = vld [vmem:[%s2944_s3 + $0x88] sm:$0xf0]  ;;  %v1988_v30 = vld [vmem:[%s2945_s4 + $0x74] sm:$0xf0]  ;;  %v1987_v32 = vld [vmem:[%s2945_s4 + $0x74] sm:$0xf]  ;;  %v1493_v35 = vor.u32 %v1941_v25, %v1490_v26 }
  0x23   : > { %601 = vmatpush.bf16.msra.mxu0 %v1505_v4  ;;  %v1674_v33 = vld [vmem:[%s2945_s4 + $0x78] sm:$0xf0]  ;;  %v1557_v36 = vor.u32 %v1957_v27, %v1554_v28  ;;  %v1673_v37 = vor.u32 %v1988_v30, %v1672_v29  ;;  %v1664_v38 = vld [vmem:[%s2945_s4 + $0x60] sm:$0xf]  ;;  %v1736_v39 = vld [vmem:[%s2945_s4 + $0xf0] sm:$0xf] }
  0x24   : > { %614 = vmatpush.bf16.msra.mxu1 %v1569_v6  ;;  %627 = vmatpush.bf16.msra.mxu2 %v1509_v7  ;;  %v2004_v40 = vld [vmem:[%s2945_s4 + $0xf4] sm:$0xf0]  ;;  %v1677_v41 = vor.u32 %v1987_v32, %v1674_v33  ;;  %v1986_v42 = vld [vmem:[%s2945_s4 + $0x64] sm:$0xf0]  ;;  %v2003_v43 = vld [vmem:[%s2945_s4 + $0xf4] sm:$0xf] }
  0x25   : > { %640 = vmatpush.bf16.msra.mxu3 %v1573_v11  ;;  %v1738_v44 = vld [vmem:[%s2945_s4 + $0xf8] sm:$0xf0]  ;;  %v1985_v46 = vld [vmem:[%s2945_s4 + $0x64] sm:$0xf]  ;;  %v1666_v47 = vld [vmem:[%s2945_s4 + $0x68] sm:$0xf0]  ;;  %v1737_v49 = vor.u32 %v2004_v40, %v1736_v39  ;;  %v1665_v50 = vor.u32 %v1986_v42, %v1664_v38 }
  0x26   : > { %v432_v45 = vld [vmem:[#allocation1] sm:$0xff]  ;;  %v433_v48 = vld [vmem:[#allocation1 + $0x9] sm:$0xff]  ;;  %v1741_v51 = vor.u32 %v2003_v43, %v1738_v44  ;;  %v2002_v54 = vld [vmem:[%s2945_s4 + $0xe4] sm:$0xf0]  ;;  %v1669_v55 = vor.u32 %v1985_v46, %v1666_v47  ;;  %vm942_vm2 = vcmask 1041408   ;;  %vm962_vm10 = vcmask 1043456  }
  0x27   : > { %602 = vmatpush.bf16.msra.mxu0 %v1497_v17  ;;  %v1656_v52 = vld [vmem:[%s2945_s4 + $0x50] sm:$0xf]  ;;  %v1728_v53 = vld [vmem:[%s2945_s4 + $0xe0] sm:$0xf]  ;;  %v1984_v56 = vld [vmem:[%s2945_s4 + $0x54] sm:$0xf0] }
  0x28   : > { %615 = vmatpush.bf16.msra.mxu1 %v1561_v19  ;;  %628 = vmatpush.bf16.msra.mxu2 %v1501_v20  ;;  %v2001_v57 = vld [vmem:[%s2945_s4 + $0xe4] sm:$0xf]  ;;  %v1730_v58 = vld [vmem:[%s2945_s4 + $0xe8] sm:$0xf0]  ;;  %v1983_v59 = vld [vmem:[%s2945_s4 + $0x54] sm:$0xf]  ;;  %v1729_v61 = vor.u32 %v2002_v54, %v1728_v53  ;;  %v1657_v62 = vor.u32 %v1984_v56, %v1656_v52 }
  0x29   : > { %641 = vmatpush.bf16.msra.mxu3 %v1565_v24  ;;  %v1658_v60 = vld [vmem:[%s2945_s4 + $0x58] sm:$0xf0]  ;;  %v1733_v63 = vor.u32 %v2001_v57, %v1730_v58  ;;  %v1648_v0 = vld [vmem:[%s2945_s4 + $0x40] sm:$0xf]  ;;  %v1720_v1 = vld [vmem:[%s2945_s4 + $0xd0] sm:$0xf] }
  0x2a   : > { %v2000_v2 = vld [vmem:[%s2945_s4 + $0xd4] sm:$0xf0]  ;;  %v1661_v3 = vor.u32 %v1983_v59, %v1658_v60  ;;  %v1982_v4 = vld [vmem:[%s2945_s4 + $0x44] sm:$0xf0]  ;;  %v1999_v5 = vld [vmem:[%s2945_s4 + $0xd4] sm:$0xf] }
  0x2b   : > { %603 = vmatpush.bf16.msra.mxu0 %v1489_v31  ;;  %v1722_v6 = vld [vmem:[%s2945_s4 + $0xd8] sm:$0xf0]  ;;  %v1981_v7 = vld [vmem:[%s2945_s4 + $0x44] sm:$0xf]  ;;  %v1650_v8 = vld [vmem:[%s2945_s4 + $0x48] sm:$0xf0]  ;;  %v1721_v9 = vor.u32 %v2000_v2, %v1720_v1  ;;  %v1649_v10 = vor.u32 %v1982_v4, %v1648_v0 }
  0x2c   : > { %616 = vmatpush.bf16.msra.mxu1 %v1553_v34  ;;  %629 = vmatpush.bf16.msra.mxu2 %v1493_v35  ;;  %v1725_v11 = vor.u32 %v1999_v5, %v1722_v6  ;;  %v1640_v12 = vld [vmem:[%s2945_s4 + $0x30] sm:$0xf]  ;;  %v1712_v13 = vld [vmem:[%s2945_s4 + $0xc0] sm:$0xf]  ;;  %v1998_v14 = vld [vmem:[%s2945_s4 + $0xc4] sm:$0xf0]  ;;  %v1653_v15 = vor.u32 %v1981_v7, %v1650_v8 }
  0x2d   : > { %642 = vmatpush.bf16.msra.mxu3 %v1557_v36  ;;  %v1980_v16 = vld [vmem:[%s2945_s4 + $0x34] sm:$0xf0]  ;;  %v1997_v17 = vld [vmem:[%s2945_s4 + $0xc4] sm:$0xf]  ;;  %v1714_v18 = vld [vmem:[%s2945_s4 + $0xc8] sm:$0xf0]  ;;  %v1713_v21 = vor.u32 %v1998_v14, %v1712_v13 }
  0x2e   : > { %604 = vmatmul.bf16.vlgmr.msra.gmra.mxu0 %v432_v45  ;;  %v1979_v19 = vld [vmem:[%s2945_s4 + $0x34] sm:$0xf]  ;;  %v1642_v20 = vld [vmem:[%s2945_s4 + $0x38] sm:$0xf0]  ;;  %v1641_v22 = vor.u32 %v1980_v16, %v1640_v12  ;;  %v1717_v23 = vor.u32 %v1997_v17, %v1714_v18  ;;  %v1632_v24 = vld [vmem:[%s2945_s4 + $0x20] sm:$0xf] }
  0x2f   : > { %844 = vmatpush.bf16.msrb.mxu0 %v1673_v37  ;;  %617 = vmatmul.bf16.vlgmr.msra.gmra.mxu1 %v433_v48  ;;  %v1704_v25 = vld [vmem:[%s2945_s4 + $0xb0] sm:$0xf]  ;;  %v1996_v26 = vld [vmem:[%s2945_s4 + $0xb4] sm:$0xf0]  ;;  %v1645_v27 = vor.u32 %v1979_v19, %v1642_v20  ;;  %v1978_v28 = vld [vmem:[%s2945_s4 + $0x24] sm:$0xf0] }
  0x30   : > { %870 = vmatpush.bf16.msrb.mxu2 %v1677_v41  ;;  %643 = vmatmul.bf16.vlgmr.msra.gmra.mxu3 %v433_v48  ;;  %v1995_v29 = vld [vmem:[%s2945_s4 + $0xb4] sm:$0xf]  ;;  %v1706_v30 = vld [vmem:[%s2945_s4 + $0xb8] sm:$0xf0]  ;;  %v1977_v31 = vld [vmem:[%s2945_s4 + $0x24] sm:$0xf]  ;;  %v1705_v33 = vor.u32 %v1996_v26, %v1704_v25  ;;  %v1633_v34 = vor.u32 %v1978_v28, %v1632_v24 }
  0x31   : > { %630 = vmatmul.bf16.vlgmr.msra.gmra.mxu2 %v432_v45  ;;  %857 = vmatpush.bf16.msrb.mxu1 %v1737_v49  ;;  %v1634_v32 = vld [vmem:[%s2945_s4 + $0x28] sm:$0xf0]  ;;  %v1709_v35 = vor.u32 %v1995_v29, %v1706_v30  ;;  %v1624_v37 = vld [vmem:[%s2945_s4 + $0x10] sm:$0xf]  ;;  %v1976_v38 = vld [vmem:[%s2945_s4 + $0x14] sm:$0xf0] }
  0x32   : > { %883 = vmatpush.bf16.msrb.mxu3 %v1741_v51  ;;  %v1637_v36 = vor.u32 %v1977_v31, %v1634_v32  ;;  %v1975_v39 = vld [vmem:[%s2945_s4 + $0x14] sm:$0xf]  ;;  %v1625_v40 = vor.u32 %v1976_v38, %v1624_v37  ;;  %v1626_v41 = vld [vmem:[%s2945_s4 + $0x18] sm:$0xf0]  ;;  %v1696_v43 = vld [vmem:[%s2945_s4 + $0xa0] sm:$0xf] }
  0x33   : > { %845 = vmatpush.bf16.msrb.mxu0 %v1665_v50  ;;  %v1629_v42 = vor.u32 %v1975_v39, %v1626_v41  ;;  %v1994_v44 = vld [vmem:[%s2945_s4 + $0xa4] sm:$0xf0]  ;;  %v1993_v45 = vld [vmem:[%s2945_s4 + $0xa4] sm:$0xf]  ;;  %v1698_v47 = vld [vmem:[%s2945_s4 + $0xa8] sm:$0xf0] }
  0x34   : > { %871 = vmatpush.bf16.msrb.mxu2 %v1669_v55  ;;  %v1697_v46 = vor.u32 %v1994_v44, %v1696_v43  ;;  %v1701_v48 = vor.u32 %v1993_v45, %v1698_v47  ;;  %v1616_v49 = vld [vmem:[%s2945_s4] sm:$0xf]  ;;  %v1974_v50 = vld [vmem:[%s2945_s4 + $0x4] sm:$0xf0]  ;;  %v1973_v51 = vld [vmem:[%s2945_s4 + $0x4] sm:$0xf] }
  0x35   : > { %858 = vmatpush.bf16.msrb.mxu1 %v1729_v61  ;;  %v1617_v52 = vor.u32 %v1974_v50, %v1616_v49  ;;  %v1618_v53 = vld [vmem:[%s2945_s4 + $0x8] sm:$0xf0]  ;;  %v1688_v55 = vld [vmem:[%s2945_s4 + $0x90] sm:$0xf]  ;;  %v1992_v56 = vld [vmem:[%s2945_s4 + $0x94] sm:$0xf0] }
  0x36   : > { %884 = vmatpush.bf16.msrb.mxu3 %v1733_v63  ;;  %v1621_v54 = vor.u32 %v1973_v51, %v1618_v53  ;;  %v1991_v57 = vld [vmem:[%s2945_s4 + $0x94] sm:$0xf]  ;;  %v1689_v58 = vor.u32 %v1992_v56, %v1688_v55  ;;  %v1690_v59 = vld [vmem:[%s2945_s4 + $0x98] sm:$0xf0]  ;;  %v1680_v61 = vld [vmem:[%s2945_s4 + $0x80] sm:$0xf] }
  0x37   : > { %846 = vmatpush.bf16.msrb.mxu0 %v1657_v62  ;;  %v1693_v60 = vor.u32 %v1991_v57, %v1690_v59  ;;  %v1990_v62 = vld [vmem:[%s2945_s4 + $0x84] sm:$0xf0]  ;;  %v1989_v63 = vld [vmem:[%s2945_s4 + $0x84] sm:$0xf]  ;;  %v1682_v1 = vld [vmem:[%s2945_s4 + $0x88] sm:$0xf0] }
  0x38   : > { %872 = vmatpush.bf16.msrb.mxu2 %v1661_v3  ;;  %v1681_v0 = vor.u32 %v1990_v62, %v1680_v61  ;;  %v1685_v2 = vor.u32 %v1989_v63, %v1682_v1  ;;  %v1803_v17 = vld [vmem:[%s2946_s5 + $0x70] sm:$0xf]  ;;  %v2020_v18 = vld [vmem:[%s2946_s5 + $0x74] sm:$0xf0]  ;;  %v2018_v24 = vld [vmem:[%s2946_s5 + $0x64] sm:$0xf0] }
  0x39   : > { %859 = vmatpush.bf16.msrb.mxu1 %v1721_v9  ;;  %v1867_v19 = vld [vmem:[%s2946_s5 + $0xf0] sm:$0xf]  ;;  %v1804_v20 = vor.u32 %v2020_v18, %v1803_v17  ;;  %v1859_v25 = vld [vmem:[%s2946_s5 + $0xe0] sm:$0xf]  ;;  %v2034_v28 = vld [vmem:[%s2946_s5 + $0xe4] sm:$0xf0] }
  0x3a   : > { %885 = vmatpush.bf16.msrb.mxu3 %v1725_v11  ;;  %v1860_v29 = vor.u32 %v2034_v28, %v1859_v25  ;;  %v1787_v30 = vld [vmem:[%s2946_s5 + $0x50] sm:$0xf]  ;;  %v2016_v31 = vld [vmem:[%s2946_s5 + $0x54] sm:$0xf0]  ;;  %v1779_v38 = vld [vmem:[%s2946_s5 + $0x40] sm:$0xf]  ;;  %v936_v28 = vstv %s2100_s30 }
  0x3b   : > { %847 = vmatpush.bf16.msrb.mxu0 %v1649_v10  ;;  %v1851_v32 = vld [vmem:[%s2946_s5 + $0xd0] sm:$0xf]  ;;  %v2014_v39 = vld [vmem:[%s2946_s5 + $0x44] sm:$0xf0]  ;;  %v2019_v45 = vld [vmem:[%s2946_s5 + $0x74] sm:$0xf] }
  0x3c   : > { %873 = vmatpush.bf16.msrb.mxu2 %v1653_v15  ;;  %v1780_v43 = vor.u32 %v2014_v39, %v1779_v38  ;;  %v2030_v44 = vld [vmem:[%s2946_s5 + $0xc4] sm:$0xf0]  ;;  %v2035_v49 = vld [vmem:[%s2946_s5 + $0xf4] sm:$0xf]  ;;  %v1869_v50 = vld [vmem:[%s2946_s5 + $0xf8] sm:$0xf0] }
  0x3d   : > { %860 = vmatpush.bf16.msrb.mxu1 %v1713_v21  ;;  %v2036_v21 = vld [vmem:[%s2946_s5 + $0xf4] sm:$0xf0]  ;;  %v1771_v53 = vld [vmem:[%s2946_s5 + $0x30] sm:$0xf]  ;;  %v1797_v59 = vld [vmem:[%s2946_s5 + $0x68] sm:$0xf0] }
  0x3e   : > { %886 = vmatpush.bf16.msrb.mxu3 %v1717_v23  ;;  %v1795_v23 = vld [vmem:[%s2946_s5 + $0x60] sm:$0xf]  ;;  %v1835_v55 = vld [vmem:[%s2946_s5 + $0xb0] sm:$0xf]  ;;  %v2028_v57 = vld [vmem:[%s2946_s5 + $0xb4] sm:$0xf0] }
  0x3f   : > { %848 = vmatpush.bf16.msrb.mxu0 %v1641_v22  ;;  %v1868_v22 = vor.u32 %v2036_v21, %v1867_v19  ;;  %v1836_v61 = vor.u32 %v2028_v57, %v1835_v55  ;;  %v2033_v63 = vld [vmem:[%s2946_s5 + $0xe4] sm:$0xf]  ;;  %v1819_v25 = vld [vmem:[%s2946_s5 + $0x90] sm:$0xf]  ;;  %v1813_v39 = vld [vmem:[%s2946_s5 + $0x88] sm:$0xf0] }
  0x40   : > { %874 = vmatpush.bf16.msrb.mxu2 %v1645_v27  ;;  %v1796_v27 = vor.u32 %v2018_v24, %v1795_v23  ;;  %v2008_v23 = vld [vmem:[%s2946_s5 + $0x14] sm:$0xf0]  ;;  %s2962_s30 = smov (!%p372_p4, %s2100_s30), 1 }
  0x41   : > { %861 = vmatpush.bf16.msrb.mxu1 %v1705_v33  ;;  %v1788_v33 = vor.u32 %v2016_v31, %v1787_v30  ;;  %v1781_v30 = vld [vmem:[%s2946_s5 + $0x48] sm:$0xf0]  ;;  %s1939_s13 = sshll.u32 %s2962_s30, 2  ;;  %s1483_s25 = sshll.u32 %s2962_s30, 1 }
  0x42   : > { %887 = vmatpush.bf16.msrb.mxu3 %v1709_v35  ;;  %s380_s18 = scalar_lea.vmem %s2941_s0, %s1939_s13  ;;  %s387_s28 = scalar_lea.vmem %s2942_s1, %s1483_s25 }
  0x43   : > { %849 = vmatpush.bf16.msrb.mxu0 %v1633_v34  ;;  %v2032_v34 = vld [vmem:[%s2946_s5 + $0xd4] sm:$0xf0]  ;;  %s396_s19 = scalar_lea.vmem %s2950_s9, %s1939_s13 }
  0x44   : > { %875 = vmatpush.bf16.msrb.mxu2 %v1637_v36  ;;  %v1852_v35 = vor.u32 %v2032_v34, %v1851_v32  ;;  %v1845_v34 = vld [vmem:[%s2946_s5 + $0xc8] sm:$0xf0] }
  0x45   : > { %862 = vmatpush.bf16.msrb.mxu1 %v1697_v46  ;;  %v1805_v46 = vld [vmem:[%s2946_s5 + $0x78] sm:$0xf0] }
  0x46   : > { %888 = vmatpush.bf16.msrb.mxu3 %v1701_v48  ;;  %v1808_v48 = vor.u32 %v2019_v45, %v1805_v46 }
  0x47   : > { %850 = vmatpush.bf16.msrb.mxu0 %v1625_v40  ;;  %v1843_v40 = vld [vmem:[%s2946_s5 + $0xc0] sm:$0xf] }
  0x48   : > { %876 = vmatpush.bf16.msrb.mxu2 %v1629_v42  ;;  %v1844_v47 = vor.u32 %v2030_v44, %v1843_v40 }
  0x49   : > { %863 = vmatpush.bf16.msrb.mxu1 %v1689_v58  ;;  %v2017_v58 = vld [vmem:[%s2946_s5 + $0x64] sm:$0xf] }
  0x4a   : > { %889 = vmatpush.bf16.msrb.mxu3 %v1693_v60  ;;  %v1800_v62 = vor.u32 %v2017_v58, %v1797_v59  ;;  %v2051_v59 = vld [vmem:[%s2948_s7 + $0x74] sm:$0xf] }
  0x4b   : > { %851 = vmatpush.bf16.msrb.mxu0 %v1617_v52  ;;  %v1872_v52 = vor.u32 %v2035_v49, %v1869_v50  ;;  %v2027_v50 = vld [vmem:[%s2946_s5 + $0xb4] sm:$0xf] }
  0x4c   : > { %877 = vmatpush.bf16.msrb.mxu2 %v1621_v54  ;;  %v2012_v54 = vld [vmem:[%s2946_s5 + $0x34] sm:$0xf0] }
  0x4d   : > { %864 = vmatpush.bf16.msrb.mxu1 %v1681_v0  ;;  %v1772_v56 = vor.u32 %v2012_v54, %v1771_v53  ;;  %v1861_v0 = vld [vmem:[%s2946_s5 + $0xe8] sm:$0xf0]  ;;  %v2052_v54 = vld [vmem:[%s2948_s7 + $0x74] sm:$0xf0] }
  0x4e   : > { %890 = vmatpush.bf16.msrb.mxu3 %v1685_v2 }
  0x4f   : > { %1172 = vmatpush.bf16.msra.mxu0 %v1804_v20 }
  0x50   : > { %1198 = vmatpush.bf16.msra.mxu2 %v1808_v48  ;;  %v1773_v48 = vld [vmem:[%s2946_s5 + $0x38] sm:$0xf0] }
  0x51   : > { %1185 = vmatpush.bf16.msra.mxu1 %v1868_v22  ;;  %v1755_v22 = vld [vmem:[%s2946_s5 + $0x10] sm:$0xf] }
  0x52   : > { %1211 = vmatpush.bf16.msra.mxu3 %v1872_v52  ;;  %v1756_v24 = vor.u32 %v2008_v23, %v1755_v22  ;;  %v1931_v52 = vld [vmem:[%s2948_s7 + $0x70] sm:$0xf] }
  0x53   : > { %1173 = vmatpush.bf16.msra.mxu0 %v1796_v27  ;;  %v2013_v27 = vld [vmem:[%s2946_s5 + $0x44] sm:$0xf]  ;;  %v1915_v22 = vld [vmem:[%s2948_s7 + $0x50] sm:$0xf] }
  0x54   : > { %1199 = vmatpush.bf16.msra.mxu2 %v1800_v62  ;;  %v1784_v32 = vor.u32 %v2013_v27, %v1781_v30  ;;  %v1932_v62 = vor.u32 %v2052_v54, %v1931_v52  ;;  %v2047_v27 = vld [vmem:[%s2948_s7 + $0x54] sm:$0xf] }
  0x55   : > { %1186 = vmatpush.bf16.msra.mxu1 %v1860_v29 }
  0x57   : > { %1174 = vmatpush.bf16.msra.mxu0 %v1788_v33  ;;  %v2029_v33 = vld [vmem:[%s2946_s5 + $0xc4] sm:$0xf] }
  0x59   : > { %1187 = vmatpush.bf16.msra.mxu1 %v1852_v35  ;;  %v1848_v35 = vor.u32 %v2029_v33, %v1845_v34  ;;  %v1749_v33 = vld [vmem:[%s2946_s5 + $0x8] sm:$0xf0] }
  0x5b   : > { %1175 = vmatpush.bf16.msra.mxu0 %v1780_v43  ;;  %v2011_v43 = vld [vmem:[%s2946_s5 + $0x34] sm:$0xf] }
  0x5c   : > { %v1776_v49 = vor.u32 %v2011_v43, %v1773_v48  ;;  %v2045_v43 = vld [vmem:[%s2948_s7 + $0x44] sm:$0xf]  ;;  %v1909_v48 = vld [vmem:[%s2948_s7 + $0x48] sm:$0xf0] }
  0x5d   : > { %1188 = vmatpush.bf16.msra.mxu1 %v1844_v47 }
  0x5f   : > { %1176 = vmatpush.bf16.msra.mxu0 %v1772_v56  ;;  %v2110_v56 = vmov 0.0  }
  0x61   : > { %1189 = vmatpush.bf16.msra.mxu1 %v1836_v61 }
  0xab   : > { %v605_v3 = vpop.f32.mrf.mxu0 }
  0xac   : > { %v618_v4 = vpop.f32.mrf.mxu1 }
  0xad   : > { %v619_v5 = vadd.f32 %v618_v4, %v605_v3  ;;  %v1864_v3 = vor.u32 %v2033_v63, %v1861_v0  ;;  %v934_v4 = vlaneseq  ;;  %v2009_v0 = vld [vmem:[%s2946_s5 + $0x24] sm:$0xf] }
  0xaf   : > { %v648_v6 = vmax.f32 %v619_v5, 0.0  ;;  %1212 = vmatpush.bf16.msra.mxu3 %v1864_v3  ;;  %v935_v21 = vshrl.u32 %v934_v4, 7 }
  0xb1   : > { %v650_v7 = vpack.c.bf16 %v648_v6, %v648_v6  ;;  %v1763_v6 = vld [vmem:[%s2946_s5 + $0x20] sm:$0xf]  ;;  %vm2710_vm0 = vcmp.eq.s32.totalorder %v935_v21, %v936_v28  ;;  %v1821_v21 = vld [vmem:[%s2946_s5 + $0x98] sm:$0xf0] }
  0xb2   : > { %v2749_v57 = vsel %vm2710_vm0, 1.0, %v2110_v56  ;;  %v1917_v28 = vld [vmem:[%s2948_s7 + $0x58] sm:$0xf0]  ;;  %v2044_v56 = vld [vmem:[%s2948_s7 + $0x34] sm:$0xf0] }
  0xb3   : > { %v644_v9 = vpop.f32.mrf.mxu3  ;;  %852 = vmatmul.bf16.vlgmr.msrb.gmra.mxu0 %v650_v7  ;;  %878 = vmatmul.bf16.vlgmr.msrb.gmra.mxu2 %v650_v7  ;;  %v607_v10 = vpop.f32.mrf.mxu0  ;;  %v2010_v7 = vld [vmem:[%s2946_s5 + $0x24] sm:$0xf0] }
  0xb4   : > { %v631_v8 = vpop.f32.mrf.mxu2  ;;  %v620_v12 = vpop.f32.mrf.mxu1  ;;  %v1764_v10 = vor.u32 %v2010_v7, %v1763_v6  ;;  %v1829_v6 = vld [vmem:[%s2946_s5 + $0xa8] sm:$0xf0] }
  0xb5   : > { %v645_v11 = vadd.f32 %v644_v9, %v631_v8  ;;  %v1827_v8 = vld [vmem:[%s2946_s5 + $0xa0] sm:$0xf]  ;;  %v2015_v12 = vld [vmem:[%s2946_s5 + $0x54] sm:$0xf] }
  0xb6   : > { %1177 = vmatpush.bf16.msra.mxu0 %v1764_v10  ;;  %v2049_v10 = vld [vmem:[%s2948_s7 + $0x64] sm:$0xf] }
  0xb7   : > { %v649_v13 = vmax.f32 %v645_v11, 0.0  ;;  %v2026_v11 = vld [vmem:[%s2946_s5 + $0xa4] sm:$0xf0] }
  0xb9   : > { %v651_v14 = vpack.c.bf16 %v649_v13, %v649_v13  ;;  %v1828_v13 = vor.u32 %v2026_v11, %v1827_v8  ;;  %v1923_v8 = vld [vmem:[%s2948_s7 + $0x60] sm:$0xf] }
  0xba   : > { %1178 = vmatpush.bf16.msra.mxu0 %v1756_v24 }
  0xbb   : > { %865 = vmatmul.bf16.vlgmr.msrb.gmra.mxu1 %v651_v14  ;;  %891 = vmatmul.bf16.vlgmr.msrb.gmra.mxu3 %v651_v14  ;;  %v646_v16 = vpop.f32.mrf.mxu3  ;;  %v1789_v14 = vld [vmem:[%s2946_s5 + $0x58] sm:$0xf0] }
  0xbc   : > { %v633_v15 = vpop.f32.mrf.mxu2  ;;  %v1853_v16 = vld [vmem:[%s2946_s5 + $0xd8] sm:$0xf0]  ;;  %v1792_v18 = vor.u32 %v2015_v12, %v1789_v14  ;;  %1190 = vmatpush.bf16.msra.mxu1 %v1828_v13  ;;  %v1925_v13 = vld [vmem:[%s2948_s7 + $0x68] sm:$0xf0]  ;;  %v2007_v14 = vld [vmem:[%s2946_s5 + $0x14] sm:$0xf] }
  0xbd   : > { %v2031_v15 = vld [vmem:[%s2946_s5 + $0xd4] sm:$0xf] }
  0xbe   : > { %v1856_v19 = vor.u32 %v2031_v15, %v1853_v16  ;;  %1200 = vmatpush.bf16.msra.mxu2 %v1792_v18  ;;  %v1757_v15 = vld [vmem:[%s2946_s5 + $0x18] sm:$0xf0] }
  0xbf   : > { %v1760_v18 = vor.u32 %v2007_v14, %v1757_v15 }
  0xc0   : > { %1213 = vmatpush.bf16.msra.mxu3 %v1856_v19  ;;  %v2023_v19 = vld [vmem:[%s2946_s5 + $0x94] sm:$0xf] }
  0xc2   : > { %1201 = vmatpush.bf16.msra.mxu2 %v1784_v32  ;;  %v2005_v32 = vld [vmem:[%s2946_s5 + $0x4] sm:$0xf] }
  0xc4   : > { %1214 = vmatpush.bf16.msra.mxu3 %v1848_v35 }
  0xc6   : > { %1202 = vmatpush.bf16.msra.mxu2 %v1776_v49 }
 0x130   : > { %v853_v26 = vpop.f32.mrf.mxu0 }
 0x136   : > { %v879_v36 = vpop.f32.mrf.mxu2 }
 0x138   : > { %v866_v37 = vpop.f32.mrf.mxu1  ;;  %v855_v42 = vpop.f32.mrf.mxu0 }
 0x139   : > { %v867_v41 = vadd.f32 %v866_v37, %v853_v26  ;;  %v2024_v26 = vld [vmem:[%s2946_s5 + $0x94] sm:$0xf0]  ;;  %v2006_v37 = vld [vmem:[%s2946_s5 + $0x4] sm:$0xf0] }
 0x13a   : > { %v1820_v31 = vor.u32 %v2024_v26, %v1819_v25  ;;  %v2022_v42 = vld [vmem:[%s2946_s5 + $0x84] sm:$0xf0]  ;;  %v1824_v25 = vor.u32 %v2023_v19, %v1821_v21  ;;  %v2048_v26 = vld [vmem:[%s2948_s7 + $0x54] sm:$0xf0]  ;;  %v2037_v21 = vld [vmem:[%s2948_s7 + $0x4] sm:$0xf] }
 0x13b   : > { %v1742_v51 = vmul.f32 -1.442695, %v867_v41  ;;  %v1811_v41 = vld [vmem:[%s2946_s5 + $0x80] sm:$0xf]  ;;  %v1916_v30 = vor.u32 %v2048_v26, %v1915_v22  ;;  %v2038_v19 = vld [vmem:[%s2948_s7 + $0x4] sm:$0xf0] }
 0x13c   : > { %1191 = vmatpush.bf16.msra.mxu1 %v1820_v31  ;;  %v1812_v47 = vor.u32 %v2022_v42, %v1811_v41  ;;  %v1920_v31 = vor.u32 %v2047_v27, %v1917_v28  ;;  %v1907_v41 = vld [vmem:[%s2948_s7 + $0x40] sm:$0xf]  ;;  %v2046_v42 = vld [vmem:[%s2948_s7 + $0x44] sm:$0xf0]  ;;  %v1877_v22 = vld [vmem:[%s2948_s7 + $0x8] sm:$0xf0] }
 0x13d   : > { %2078 = vpow2.f32 %v1742_v51  ;;  %v1837_v51 = vld [vmem:[%s2946_s5 + $0xb8] sm:$0xf0]  ;;  %v1908_v49 = vor.u32 %v2046_v42, %v1907_v41  ;;  %v957_v26 = vld [vmem:[%s380_s18] sm:$0xf]  ;;  %v1880_v28 = vor.u32 %v2037_v21, %v1877_v22 }
 0x13e   : > { %v892_v60 = vpop.f32.mrf.mxu3  ;;  %v881_v2 = vpop.f32.mrf.mxu2  ;;  %v1840_v58 = vor.u32 %v2027_v50, %v1837_v51  ;;  %v1912_v50 = vor.u32 %v2045_v43, %v1909_v48  ;;  %v1006_v41 = vld [vmem:[%s2947_s6] sm:$0x3] }
 0x13f   : > { %v893_v1 = vadd.f32 %v892_v60, %v879_v36  ;;  %v1747_v36 = vld [vmem:[%s2946_s5] sm:$0xf]  ;;  %v1933_v60 = vld [vmem:[%s2948_s7 + $0x78] sm:$0xf0]  ;;  %v1008_v42 = vperm.slane %v1006_v41, 0  ;;  %v1009_v43 = vperm.slane %v1006_v41, 1 }
 0x140   : > { %v868_v5 = vpop.f32.mrf.mxu1  ;;  %v1748_v40 = vor.u32 %v2006_v37, %v1747_v36  ;;  %1192 = vmatpush.bf16.msra.mxu1 %v1812_v47  ;;  %v1936_v63 = vor.u32 %v2051_v59, %v1933_v60  ;;  %1215 = vmatpush.bf16.msra.mxu3 %v1840_v58  ;;  %v1752_v37 = vor.u32 %v2005_v32, %v1749_v33  ;;  %v1901_v60 = vld [vmem:[%s2948_s7 + $0x38] sm:$0xf0] }
 0x141   : > { %v1743_v9 = vmul.f32 -1.442695, %v893_v1  ;;  %v1765_v1 = vld [vmem:[%s2946_s5 + $0x28] sm:$0xf0]  ;;  %v2025_v5 = vld [vmem:[%s2946_s5 + $0xa4] sm:$0xf] }
 0x142   : > { %1179 = vmatpush.bf16.msra.mxu0 %v1748_v40  ;;  %v1768_v4 = vor.u32 %v2009_v0, %v1765_v1  ;;  %v1832_v7 = vor.u32 %v2025_v5, %v1829_v6  ;;  %v1891_v0 = vld [vmem:[%s2948_s7 + $0x20] sm:$0xf] }
 0x143   : > { %v2079_v17 = vpop.eup %2078  ;;  %2080 = vpow2.f32 %v1743_v9  ;;  %v2050_v9 = vld [vmem:[%s2948_s7 + $0x64] sm:$0xf0] }
 0x144   : > { %v2676_v20 = vadd.f32 1.0, %v2079_v17  ;;  %1342 = vmatpush.bf16.msrb.mxu1 %v1936_v63  ;;  %1203 = vmatpush.bf16.msra.mxu2 %v1768_v4  ;;  %v1924_v12 = vor.u32 %v2050_v9, %v1923_v8  ;;  %v1928_v17 = vor.u32 %v2049_v10, %v1925_v13  ;;  %v1893_v4 = vld [vmem:[%s2948_s7 + $0x28] sm:$0xf0]  ;;  %v1883_v9 = vld [vmem:[%s2948_s7 + $0x10] sm:$0xf] }
 0x145   : > { %1216 = vmatpush.bf16.msra.mxu3 %v1832_v7  ;;  %v2040_v10 = vld [vmem:[%s2948_s7 + $0x14] sm:$0xf0] }
 0x146   : > { %2082 = vrcp.f32 %v2676_v20  ;;  %v894_v29 = vpop.f32.mrf.mxu3  ;;  %v913_v44 = vand.u32 2147483647, %v2676_v20  ;;  %v915_v45 = vand.u32 2147483648, %v2676_v20  ;;  %1329 = vmatpush.bf16.msrb.mxu0 %v1932_v62  ;;  %vm909_vm4 = vweird.f32 %v2676_v20 }
 0x148   : > { %vm2757_vm1 = vcmp.eq.f32.partialorder %v913_v44, 8.507059e+37  ;;  %v916_v3 = vor.u32 1.1754944e-38, %v915_v45  ;;  %1343 = vmatpush.bf16.msrb.mxu1 %v1928_v17  ;;  %1204 = vmatpush.bf16.msra.mxu2 %v1760_v18  ;;  %v1875_v18 = vld [vmem:[%s2948_s7] sm:$0xf] }
 0x149   : > { %v2081_v38 = vpop.eup %2080  ;;  %1217 = vmatpush.bf16.msra.mxu3 %v1824_v25  ;;  %v1876_v27 = vor.u32 %v2038_v19, %v1875_v18 }
 0x14a   : > { %v2725_v46 = vadd.f32 1.0, %v2081_v38  ;;  %1330 = vmatpush.bf16.msrb.mxu0 %v1924_v12  ;;  %v2021_v38 = vld [vmem:[%s2946_s5 + $0x84] sm:$0xf]  ;;  %v1885_v12 = vld [vmem:[%s2948_s7 + $0x18] sm:$0xf0] }
 0x14b   : > { %v1816_v47 = vor.u32 %v2021_v38, %v1813_v39  ;;  %v1226_v38 = vld [vmem:[%s387_s28] sm:$0x3] }
 0x14c   : > { %v2739_v53 = vpop.eup %2082  ;;  %2084 = vrcp.f32 %v2725_v46  ;;  %v928_v29 = vand.u32 2147483647, %v2725_v46  ;;  %v930_v36 = vand.u32 2147483648, %v2725_v46  ;;  %1344 = vmatpush.bf16.msrb.mxu1 %v1920_v31  ;;  %vm924_vm7 = vweird.f32 %v2725_v46  ;;  %1205 = vmatpush.bf16.msra.mxu2 %v1752_v37 }
 0x14d   : > { %v905_v55 = vmul.f32 %v2739_v53, %v2676_v20  ;;  %vm910_vm3 = vweird.f32 %v2739_v53  ;;  %1218 = vmatpush.bf16.msra.mxu3 %v1816_v47 }
 0x14e   : > { %vm2816_vm5 = vmor %vm909_vm4, %vm910_vm3  ;;  %1331 = vmatpush.bf16.msrb.mxu0 %v1916_v30  ;;  %v931_v54 = vor.u32 1.1754944e-38, %v930_v36  ;;  %vm929_vm9 = vcmp.eq.f32.partialorder %v928_v29, 8.507059e+37  ;;  %v958_v29 = vunpack.c.l.bf16 %v957_v26 }
 0x14f   : > { %v906_v2 = vsub.f32 1.0, %v905_v55  ;;  %v1899_v55 = vld [vmem:[%s2948_s7 + $0x30] sm:$0xf] }
 0x150   : > { %v1900_v59 = vor.u32 %v2044_v56, %v1899_v55  ;;  %1345 = vmatpush.bf16.msrb.mxu1 %v1912_v50 }
 0x151   : > { %v907_v11 = vmul.f32 %v2739_v53, %v906_v2  ;;  %v2042_v2 = vld [vmem:[%s2948_s7 + $0x24] sm:$0xf0] }
 0x152   : > { %v2085_v16 = vpop.eup %2084  ;;  %1332 = vmatpush.bf16.msrb.mxu0 %v1908_v49  ;;  %v1892_v7 = vor.u32 %v2042_v2, %v1891_v0  ;;  %v1243_v49 = vld [vmem:[%s2949_s8] sm:$0x3] }
 0x153   : > { %v908_v23 = vadd.f32 %v2739_v53, %v907_v11  ;;  %v920_v24 = vmul.f32 %v2085_v16, %v2725_v46  ;;  %vm925_vm6 = vweird.f32 %v2085_v16  ;;  %v2043_v46 = vld [vmem:[%s2948_s7 + $0x34] sm:$0xf] }
 0x154   : > { %vm926_vm8 = vmor %vm924_vm7, %vm925_vm6  ;;  %v1904_v63 = vor.u32 %v2043_v46, %v1901_v60  ;;  %v2039_v11 = vld [vmem:[%s2948_s7 + $0x14] sm:$0xf] }
 0x155   : > { %v912_v34 = vsel %vm2816_vm5, %v2739_v53, %v908_v23  ;;  %v921_v35 = vsub.f32 1.0, %v920_v24  ;;  %v1888_v17 = vor.u32 %v2039_v11, %v1885_v12 }
 0x156   : > { %v917_v40 = vsel %vm2757_vm1, %v916_v3, %v912_v34  ;;  %v2041_v3 = vld [vmem:[%s2948_s7 + $0x24] sm:$0xf]  ;;  %1333 = vmatpush.bf16.msrb.mxu0 %v1900_v59  ;;  %1346 = vmatpush.bf16.msrb.mxu1 %v1904_v63 }
 0x157   : > { %v940_v44 = vmul.f32 %v2749_v57, %v917_v40  ;;  %v922_v45 = vmul.f32 %v2085_v16, %v921_v35  ;;  %v1896_v8 = vor.u32 %v2041_v3, %v1893_v4 }
 0x159   : > { %v943_v51 = vsel %vm942_vm2, %v940_v44, 0.0  ;;  %v923_v52 = vadd.f32 %v2085_v16, %v922_v45 }
 0x15a   : > { %v944_v53 = vrot.slane %v943_v51, 4  ;;  %1334 = vmatpush.bf16.msrb.mxu0 %v1892_v7  ;;  %1347 = vmatpush.bf16.msrb.mxu1 %v1896_v8 }
 0x15b   : > { %v927_v58 = vsel %vm926_vm8, %v2085_v16, %v923_v52  ;;  %v1884_v16 = vor.u32 %v2040_v10, %v1883_v9  ;;  %v1245_v52 = vperm.slane %v1243_v49, 0 }
 0x15c   : > { %v945_v61 = vadd.f32 %v944_v53, %v943_v51  ;;  %v932_v62 = vsel %vm929_vm9, %v931_v54, %v927_v58  ;;  %v1246_v53 = vperm.slane %v1243_v49, 1 }
 0x15d   : > { %v941_v1 = vmul.f32 %v2749_v57, %v932_v62 }
 0x15e   : > { %v946_v6 = vrot.slane %v945_v61, 2  ;;  %1335 = vmatpush.bf16.msrb.mxu0 %v1884_v16  ;;  %1348 = vmatpush.bf16.msrb.mxu1 %v1888_v17 }
 0x15f   : > { %v950_v5 = vsel %vm942_vm2, %v941_v1, 0.0 }
 0x160   : > { %v951_v57 = vrot.slane %v950_v5, 4  ;;  %v947_v14 = vadd.f32 %v946_v6, %v945_v61 }
 0x162   : > { %v952_v13 = vadd.f32 %v951_v57, %v950_v5  ;;  %v948_v24 = vrot.slane %v947_v14, 1  ;;  %1336 = vmatpush.bf16.msrb.mxu0 %v1876_v27  ;;  %1349 = vmatpush.bf16.msrb.mxu1 %v1880_v28 }
 0x164   : > { %v953_v15 = vrot.slane %v952_v13, 2  ;;  %v949_v30 = vadd.f32 %v948_v24, %v947_v14 }
 0x166   : > { %v954_v23 = vadd.f32 %v953_v15, %v952_v13 }
 0x168   : > { %v955_v25 = vrot.slane %v954_v23, 1 }
 0x16a   : > { %v956_v20 = vadd.f32 %v955_v25, %v954_v23 }
 0x16c   : > { %v961_v31 = vrot.slane %v956_v20, 4 }
 0x16e   : > { %v963_v32 = vsel %vm962_vm10, %v949_v30, %v961_v31 }
 0x16f   : > { %v965_v33 = vmul.f32 %v963_v32, %v958_v29 }
 0x171   : > { %967 = vst [vmem:[#allocation1] ss:$2 sm:$0xff] %v965_v33 }
 0x178   : > { %v968_v34 = vld.sshfl [vmem:[#allocation1] sm:$0xff pattern:$0x75316420]  ;;  %v969_v35 = vld.sshfl [vmem:[#allocation1 + $0x8] sm:$0xff pattern:$0x75316420] }
 0x179   : > { %v972_v36 = vpack.c.bf16 %v968_v34, %v968_v34  ;;  %v973_v37 = vpack.c.bf16 %v969_v35, %v969_v35 }
 0x17b   : > { %1180 = vmatmul.bf16.vlgmr.msra.gmra.mxu0 %v972_v36  ;;  %1193 = vmatmul.bf16.vlgmr.msra.gmra.mxu1 %v973_v37 }
 0x17c   : > { %1206 = vmatmul.bf16.vlgmr.msra.gmra.mxu2 %v972_v36  ;;  %1219 = vmatmul.bf16.vlgmr.msra.gmra.mxu3 %v973_v37 }
 0x18b   : > { %1337 = vmatmul.bf16.vlgmr.msrb.gmra.mxu0 %v1226_v38  ;;  %1350 = vmatmul.bf16.vlgmr.msrb.gmra.mxu1 %v1226_v38 }
 0x1f8   : > { %v1181_v39 = vpop.f32.mrf.mxu0  ;;  %v1194_v40 = vpop.f32.mrf.mxu1 }
 0x1f9   : > { %v1182_v50 = vadd.f32 %v1181_v39, %v1008_v42 }
 0x1fb   : > { %v1195_v54 = vadd.f32 %v1194_v40, %v1182_v50 }
 0x1fd   : > { %v1224_v62 = vmax.f32 %v1195_v54, 0.0 }
 0x1ff   : > { %v1207_v44 = vpop.f32.mrf.mxu2  ;;  %v1220_v45 = vpop.f32.mrf.mxu3 }
 0x200   : > { %v1183_v47 = vpop.f32.mrf.mxu0  ;;  %v1196_v48 = vpop.f32.mrf.mxu1  ;;  %v1208_v51 = vadd.f32 %v1207_v44, %v1009_v43 }
 0x202   : > { %v1221_v55 = vadd.f32 %v1220_v45, %v1208_v51 }
 0x204   : > { %v1225_v63 = vmax.f32 %v1221_v55, 0.0 }
 0x207   : > { %v1209_v56 = vpop.f32.mrf.mxu2  ;;  %v1222_v58 = vpop.f32.mrf.mxu3 }
 0x208   : > { %v1338_v59 = vpop.f32.mrf.mxu0  ;;  %v1351_v46 = vpop.f32.mrf.mxu1 }
 0x209   : > { %v1339_v60 = vadd.f32 %v1338_v59, %v1245_v52  ;;  %v1352_v61 = vadd.f32 %v1351_v46, %v1246_v53 }
 0x20b   : > { %v1355_v0 = vmax.f32 %v1339_v60, 0.0  ;;  %v1356_v1 = vmax.f32 %v1352_v61, 0.0 }
 0x20d   : > { %v1357_v2 = vadd.f32 %v1355_v0, %v1224_v62  ;;  %v1358_v3 = vadd.f32 %v1356_v1, %v1225_v63 }
 0x20f   : > { %v1359_v4 = vmax.f32 %v1357_v2, 0.0  ;;  %v1360_v5 = vmax.f32 %v1358_v3, 0.0 }
 0x210   : > { %v1340_v6 = vpop.f32.mrf.mxu0  ;;  %v1353_v57 = vpop.f32.mrf.mxu1 }
 0x211   : > { %v1361_v7 = vpack.c.bf16 %v1360_v5, %v1359_v4 }
 0x213   : > { %v1363_v8 = vrot.slane %v1361_v7, 2 }
 0x215   : > { %v1366_v9 = vsel %vm942_vm2, %v1361_v7, %v1363_v8 }
 0x216   : > { %1368 = vst [vmem:[%s396_s19] sm:$0xf] %v1366_v9 }
 0x217 PF: > { %s19_s11 = sadd.s32 1, %s2108_s11   ;;  %s2957_s30 = smov %s2104_s10 }
 0x218   : > { %p16_p5 = scmp.ge.s32.totalorder %s19_s11, 4   ;;  %s2958_s10 = smov %s2960_s12 }
 0x21a   :  { %18 = sbr.rel (!%p16_p5) target bundleno = 2 (0x2), region = 89 }

// kernel: _lambda_.97
= control target key start
LH: loop header
LB: loop body
LE: loop exit
PB: predicated region body
PF: predicated region fallthrough
CT: control target
= control target key end

     0   :  { %s2383_s30 = smov 0   ;;  %s2385_s10 = smov 0   ;;  %s3271_s0 = inlined_call_operand.vmem [shape: bf16[2,4,256], index: 0, kind: input, shape index: {}]   ;;  %s3272_s1 = inlined_call_operand.vmem [shape: bf16[2,4,256], index: 1, kind: input, shape index: {}]   ;;  %s3273_s2 = inlined_call_operand.vmem [shape: bf16[2,256], index: 2, kind: input, shape index: {}]   ;;  %s3274_s3 = inlined_call_operand.vmem [shape: bf16[256,256], index: 3, kind: input, shape index: {}]   ;;  %s3275_s4 = inlined_call_operand.vmem [shape: bf16[256,256], index: 4, kind: input, shape index: {}]   ;;  %s3276_s5 = inlined_call_operand.vmem [shape: bf16[256,256], index: 5, kind: input, shape index: {}]   ;;  %s3277_s6 = inlined_call_operand.vmem [shape: f32[1,256], index: 6, kind: input, shape index: {}, may-alias: {6,8}]   ;;  %s3278_s7 = inlined_call_operand.vmem [shape: bf16[256,256], index: 7, kind: input, shape index: {}]   ;;  %s3279_s8 = inlined_call_operand.vmem [shape: f32[1,256], index: 8, kind: input, shape index: {}, may-alias: {6,8}]   ;;  %s3280_s9 = inlined_call_operand.vmem [shape: bf16[2,4,256], index: 9, kind: output, shape index: {}]  }
   0x1   :  { %s2387_s11 = smov 0  }
   0x2 LB: > { %s31_s12 = sadd.s32 1, %s2326_s10  ;;  %p1620_p0 = scmp.ge.s32.totalorder %s2330_s11, 1  ;;  %s2330_s11 = sphi %s2387_s11, %s19_s11   ;;  %s2326_s10 = sphi %s2385_s10, %s3290_s10   ;;  %s2322_s30 = sphi %s2383_s30, %s3289_s30  }
   0x3   : > { %p33_p1 = scmp.ge.s32.totalorder %s31_s12, 2  ;;  %p323_p2 = scmp.lt.s32.totalorder %s2330_s11, 3 }
   0x5   : > { %s3292_s12 = smov (%p33_p1, %s31_s12), 0  ;;  %p324_p3 = pnand %p1620_p0, %p323_p2 }
   0x6   : > { %p376_p4 = scmp.lt.s32.totalorder (!%p324_p3), %s2322_s30, 1 }
   0x7   : > { %327 = sbr.rel (%p324_p3) target bundleno = 544 (0x220), region = 56 }
   0xc   : > { %v1685_v0 = vld [vmem:[%s3274_s3 + $0x70] sm:$0xf]  ;;  %v2162_v1 = vld [vmem:[%s3274_s3 + $0x74] sm:$0xf0]  ;;  %v2161_v5 = vld [vmem:[%s3274_s3 + $0x74] sm:$0xf] }
   0xd   : > { %v1749_v2 = vld [vmem:[%s3274_s3 + $0xf0] sm:$0xf]  ;;  %v1686_v3 = vor.u32 %v2162_v1, %v1685_v0  ;;  %v2178_v4 = vld [vmem:[%s3274_s3 + $0xf4] sm:$0xf0]  ;;  %v1687_v6 = vld [vmem:[%s3274_s3 + $0x78] sm:$0xf0] }
   0xe   : > { %v1750_v7 = vor.u32 %v2178_v4, %v1749_v2  ;;  %v1690_v8 = vor.u32 %v2161_v5, %v1687_v6  ;;  %v2177_v9 = vld [vmem:[%s3274_s3 + $0xf4] sm:$0xf]  ;;  %v1751_v10 = vld [vmem:[%s3274_s3 + $0xf8] sm:$0xf0]  ;;  %v1677_v11 = vld [vmem:[%s3274_s3 + $0x60] sm:$0xf] }
   0xf   : > { %602 = vmatpush.bf16.msra.mxu0 %v1686_v3  ;;  %v1754_v12 = vor.u32 %v2177_v9, %v1751_v10  ;;  %v2160_v13 = vld [vmem:[%s3274_s3 + $0x64] sm:$0xf0]  ;;  %v1741_v14 = vld [vmem:[%s3274_s3 + $0xe0] sm:$0xf]  ;;  %v2159_v18 = vld [vmem:[%s3274_s3 + $0x64] sm:$0xf] }
  0x10   : > { %v2176_v15 = vld [vmem:[%s3274_s3 + $0xe4] sm:$0xf0]  ;;  %615 = vmatpush.bf16.msra.mxu1 %v1750_v7  ;;  %628 = vmatpush.bf16.msra.mxu2 %v1690_v8  ;;  %v1678_v16 = vor.u32 %v2160_v13, %v1677_v11  ;;  %v1679_v19 = vld [vmem:[%s3274_s3 + $0x68] sm:$0xf0]  ;;  %v2175_v20 = vld [vmem:[%s3274_s3 + $0xe4] sm:$0xf] }
  0x11   : > { %v1742_v17 = vor.u32 %v2176_v15, %v1741_v14  ;;  %641 = vmatpush.bf16.msra.mxu3 %v1754_v12  ;;  %v1682_v21 = vor.u32 %v2159_v18, %v1679_v19  ;;  %v1743_v22 = vld [vmem:[%s3274_s3 + $0xe8] sm:$0xf0]  ;;  %v1669_v23 = vld [vmem:[%s3274_s3 + $0x50] sm:$0xf]  ;;  %v2158_v24 = vld [vmem:[%s3274_s3 + $0x54] sm:$0xf0] }
  0x12   : > { %v1746_v25 = vor.u32 %v2175_v20, %v1743_v22  ;;  %v1733_v26 = vld [vmem:[%s3274_s3 + $0xd0] sm:$0xf]  ;;  %v2174_v27 = vld [vmem:[%s3274_s3 + $0xd4] sm:$0xf0]  ;;  %v2157_v28 = vld [vmem:[%s3274_s3 + $0x54] sm:$0xf]  ;;  %v1670_v29 = vor.u32 %v2158_v24, %v1669_v23 }
  0x13   : > { %603 = vmatpush.bf16.msra.mxu0 %v1678_v16  ;;  %v1671_v30 = vld [vmem:[%s3274_s3 + $0x58] sm:$0xf0]  ;;  %v2173_v31 = vld [vmem:[%s3274_s3 + $0xd4] sm:$0xf]  ;;  %v1734_v33 = vor.u32 %v2174_v27, %v1733_v26  ;;  %v1661_v35 = vld [vmem:[%s3274_s3 + $0x40] sm:$0xf] }
  0x14   : > { %v1735_v32 = vld [vmem:[%s3274_s3 + $0xd8] sm:$0xf0]  ;;  %616 = vmatpush.bf16.msra.mxu1 %v1742_v17  ;;  %629 = vmatpush.bf16.msra.mxu2 %v1682_v21  ;;  %v1674_v34 = vor.u32 %v2157_v28, %v1671_v30  ;;  %v2156_v36 = vld [vmem:[%s3274_s3 + $0x44] sm:$0xf0]  ;;  %v1725_v37 = vld [vmem:[%s3274_s3 + $0xc0] sm:$0xf] }
  0x15   : > { %642 = vmatpush.bf16.msra.mxu3 %v1746_v25  ;;  %v1738_v38 = vor.u32 %v2173_v31, %v1735_v32  ;;  %v2172_v39 = vld [vmem:[%s3274_s3 + $0xc4] sm:$0xf0]  ;;  %v2155_v40 = vld [vmem:[%s3274_s3 + $0x44] sm:$0xf]  ;;  %v1663_v41 = vld [vmem:[%s3274_s3 + $0x48] sm:$0xf0]  ;;  %v1662_v44 = vor.u32 %v2156_v36, %v1661_v35 }
  0x16   : > { %v2171_v42 = vld [vmem:[%s3274_s3 + $0xc4] sm:$0xf]  ;;  %v1727_v43 = vld [vmem:[%s3274_s3 + $0xc8] sm:$0xf0]  ;;  %v1726_v45 = vor.u32 %v2172_v39, %v1725_v37  ;;  %v1666_v46 = vor.u32 %v2155_v40, %v1663_v41  ;;  %v1653_v47 = vld [vmem:[%s3274_s3 + $0x30] sm:$0xf] }
  0x17   : > { %604 = vmatpush.bf16.msra.mxu0 %v1670_v29  ;;  %v2154_v48 = vld [vmem:[%s3274_s3 + $0x34] sm:$0xf0]  ;;  %v1717_v49 = vld [vmem:[%s3274_s3 + $0xb0] sm:$0xf]  ;;  %v1730_v50 = vor.u32 %v2171_v42, %v1727_v43  ;;  %v2153_v52 = vld [vmem:[%s3274_s3 + $0x34] sm:$0xf] }
  0x18   : > { %617 = vmatpush.bf16.msra.mxu1 %v1734_v33  ;;  %630 = vmatpush.bf16.msra.mxu2 %v1674_v34  ;;  %v2170_v51 = vld [vmem:[%s3274_s3 + $0xb4] sm:$0xf0]  ;;  %v1655_v53 = vld [vmem:[%s3274_s3 + $0x38] sm:$0xf0]  ;;  %v2169_v54 = vld [vmem:[%s3274_s3 + $0xb4] sm:$0xf]  ;;  %v1654_v56 = vor.u32 %v2154_v48, %v1653_v47 }
  0x19   : > { %643 = vmatpush.bf16.msra.mxu3 %v1738_v38  ;;  %v1719_v55 = vld [vmem:[%s3274_s3 + $0xb8] sm:$0xf0]  ;;  %v1718_v57 = vor.u32 %v2170_v51, %v1717_v49  ;;  %v1658_v58 = vor.u32 %v2153_v52, %v1655_v53  ;;  %v1645_v59 = vld [vmem:[%s3274_s3 + $0x20] sm:$0xf]  ;;  %v2152_v60 = vld [vmem:[%s3274_s3 + $0x24] sm:$0xf0] }
  0x1a   : > { %v1709_v61 = vld [vmem:[%s3274_s3 + $0xa0] sm:$0xf]  ;;  %v1722_v62 = vor.u32 %v2169_v54, %v1719_v55  ;;  %v2168_v63 = vld [vmem:[%s3274_s3 + $0xa4] sm:$0xf0]  ;;  %v2151_v0 = vld [vmem:[%s3274_s3 + $0x24] sm:$0xf]  ;;  %v1646_v4 = vor.u32 %v2152_v60, %v1645_v59 }
  0x1b   : > { %605 = vmatpush.bf16.msra.mxu0 %v1662_v44  ;;  %v1647_v1 = vld [vmem:[%s3274_s3 + $0x28] sm:$0xf0]  ;;  %v2167_v2 = vld [vmem:[%s3274_s3 + $0xa4] sm:$0xf]  ;;  %v1637_v5 = vld [vmem:[%s3274_s3 + $0x10] sm:$0xf]  ;;  %v1710_v6 = vor.u32 %v2168_v63, %v1709_v61 }
  0x1c   : > { %618 = vmatpush.bf16.msra.mxu1 %v1726_v45  ;;  %631 = vmatpush.bf16.msra.mxu2 %v1666_v46  ;;  %v1711_v3 = vld [vmem:[%s3274_s3 + $0xa8] sm:$0xf0]  ;;  %v1650_v7 = vor.u32 %v2151_v0, %v1647_v1  ;;  %v2150_v8 = vld [vmem:[%s3274_s3 + $0x14] sm:$0xf0]  ;;  %v1701_v9 = vld [vmem:[%s3274_s3 + $0x90] sm:$0xf] }
  0x1d   : > { %644 = vmatpush.bf16.msra.mxu3 %v1730_v50  ;;  %v2166_v10 = vld [vmem:[%s3274_s3 + $0x94] sm:$0xf0]  ;;  %v1714_v11 = vor.u32 %v2167_v2, %v1711_v3  ;;  %v2149_v12 = vld [vmem:[%s3274_s3 + $0x14] sm:$0xf]  ;;  %v1639_v13 = vld [vmem:[%s3274_s3 + $0x18] sm:$0xf0]  ;;  %v1638_v17 = vor.u32 %v2150_v8, %v1637_v5 }
  0x1e   : > { %v403_v14 = vld [vmem:[%s3273_s2] sm:$0x3]  ;;  %v2165_v15 = vld [vmem:[%s3274_s3 + $0x94] sm:$0xf]  ;;  %v1703_v16 = vld [vmem:[%s3274_s3 + $0x98] sm:$0xf0]  ;;  %v1702_v19 = vor.u32 %v2166_v10, %v1701_v9  ;;  %v1642_v20 = vor.u32 %v2149_v12, %v1639_v13 }
  0x1f   : > { %606 = vmatpush.bf16.msra.mxu0 %v1654_v56  ;;  %437 = vst [vmem:[#allocation1] ss:$9 sm:$0xff] %v403_v14  ;;  %v1629_v18 = vld [vmem:[%s3274_s3] sm:$0xf]  ;;  %v2148_v21 = vld [vmem:[%s3274_s3 + $0x4] sm:$0xf0]  ;;  %v1706_v24 = vor.u32 %v2165_v15, %v1703_v16 }
  0x20   : > { %619 = vmatpush.bf16.msra.mxu1 %v1718_v57  ;;  %632 = vmatpush.bf16.msra.mxu2 %v1658_v58  ;;  %v1693_v22 = vld [vmem:[%s3274_s3 + $0x80] sm:$0xf]  ;;  %v2164_v23 = vld [vmem:[%s3274_s3 + $0x84] sm:$0xf0]  ;;  %v2147_v25 = vld [vmem:[%s3274_s3 + $0x4] sm:$0xf]  ;;  %v1630_v31 = vor.u32 %v2148_v21, %v1629_v18 }
  0x21   : > { %645 = vmatpush.bf16.msra.mxu3 %v1722_v62  ;;  %v1631_v26 = vld [vmem:[%s3274_s3 + $0x8] sm:$0xf0]  ;;  %v2163_v27 = vld [vmem:[%s3274_s3 + $0x84] sm:$0xf]  ;;  %v1813_v29 = vld [vmem:[%s3275_s4 + $0x70] sm:$0xf]  ;;  %v1694_v34 = vor.u32 %v2164_v23, %v1693_v22 }
  0x22   : > { %v1695_v28 = vld [vmem:[%s3274_s3 + $0x88] sm:$0xf0]  ;;  %v2194_v30 = vld [vmem:[%s3275_s4 + $0x74] sm:$0xf0]  ;;  %v2193_v32 = vld [vmem:[%s3275_s4 + $0x74] sm:$0xf]  ;;  %v1634_v35 = vor.u32 %v2147_v25, %v1631_v26 }
  0x23   : > { %607 = vmatpush.bf16.msra.mxu0 %v1646_v4  ;;  %v1815_v33 = vld [vmem:[%s3275_s4 + $0x78] sm:$0xf0]  ;;  %v1698_v36 = vor.u32 %v2163_v27, %v1695_v28  ;;  %v1814_v37 = vor.u32 %v2194_v30, %v1813_v29  ;;  %v1805_v38 = vld [vmem:[%s3275_s4 + $0x60] sm:$0xf]  ;;  %v1877_v39 = vld [vmem:[%s3275_s4 + $0xf0] sm:$0xf] }
  0x24   : > { %620 = vmatpush.bf16.msra.mxu1 %v1710_v6  ;;  %633 = vmatpush.bf16.msra.mxu2 %v1650_v7  ;;  %v2210_v40 = vld [vmem:[%s3275_s4 + $0xf4] sm:$0xf0]  ;;  %v1818_v41 = vor.u32 %v2193_v32, %v1815_v33  ;;  %v2192_v42 = vld [vmem:[%s3275_s4 + $0x64] sm:$0xf0]  ;;  %v2209_v43 = vld [vmem:[%s3275_s4 + $0xf4] sm:$0xf] }
  0x25   : > { %646 = vmatpush.bf16.msra.mxu3 %v1714_v11  ;;  %v1879_v44 = vld [vmem:[%s3275_s4 + $0xf8] sm:$0xf0]  ;;  %v2191_v46 = vld [vmem:[%s3275_s4 + $0x64] sm:$0xf]  ;;  %v1807_v47 = vld [vmem:[%s3275_s4 + $0x68] sm:$0xf0]  ;;  %v1878_v49 = vor.u32 %v2210_v40, %v1877_v39  ;;  %v1806_v50 = vor.u32 %v2192_v42, %v1805_v38 }
  0x26   : > { %v438_v45 = vld [vmem:[#allocation1] sm:$0xff]  ;;  %v439_v48 = vld [vmem:[#allocation1 + $0x9] sm:$0xff]  ;;  %v1882_v51 = vor.u32 %v2209_v43, %v1879_v44  ;;  %v2208_v54 = vld [vmem:[%s3275_s4 + $0xe4] sm:$0xf0]  ;;  %v1810_v55 = vor.u32 %v2191_v46, %v1807_v47  ;;  %vm948_vm2 = vcmask 1041408   ;;  %vm968_vm10 = vcmask 1043456  }
  0x27   : > { %608 = vmatpush.bf16.msra.mxu0 %v1638_v17  ;;  %v1797_v52 = vld [vmem:[%s3275_s4 + $0x50] sm:$0xf]  ;;  %v1869_v53 = vld [vmem:[%s3275_s4 + $0xe0] sm:$0xf]  ;;  %v2190_v56 = vld [vmem:[%s3275_s4 + $0x54] sm:$0xf0] }
  0x28   : > { %621 = vmatpush.bf16.msra.mxu1 %v1702_v19  ;;  %634 = vmatpush.bf16.msra.mxu2 %v1642_v20  ;;  %v2207_v57 = vld [vmem:[%s3275_s4 + $0xe4] sm:$0xf]  ;;  %v1871_v58 = vld [vmem:[%s3275_s4 + $0xe8] sm:$0xf0]  ;;  %v2189_v59 = vld [vmem:[%s3275_s4 + $0x54] sm:$0xf]  ;;  %v1870_v61 = vor.u32 %v2208_v54, %v1869_v53  ;;  %v1798_v62 = vor.u32 %v2190_v56, %v1797_v52 }
  0x29   : > { %647 = vmatpush.bf16.msra.mxu3 %v1706_v24  ;;  %v1799_v60 = vld [vmem:[%s3275_s4 + $0x58] sm:$0xf0]  ;;  %v1874_v63 = vor.u32 %v2207_v57, %v1871_v58  ;;  %v1789_v0 = vld [vmem:[%s3275_s4 + $0x40] sm:$0xf]  ;;  %v1861_v1 = vld [vmem:[%s3275_s4 + $0xd0] sm:$0xf] }
  0x2a   : > { %v2206_v2 = vld [vmem:[%s3275_s4 + $0xd4] sm:$0xf0]  ;;  %v1802_v3 = vor.u32 %v2189_v59, %v1799_v60  ;;  %v2188_v4 = vld [vmem:[%s3275_s4 + $0x44] sm:$0xf0]  ;;  %v2205_v5 = vld [vmem:[%s3275_s4 + $0xd4] sm:$0xf] }
  0x2b   : > { %609 = vmatpush.bf16.msra.mxu0 %v1630_v31  ;;  %v1863_v6 = vld [vmem:[%s3275_s4 + $0xd8] sm:$0xf0]  ;;  %v2187_v7 = vld [vmem:[%s3275_s4 + $0x44] sm:$0xf]  ;;  %v1791_v8 = vld [vmem:[%s3275_s4 + $0x48] sm:$0xf0]  ;;  %v1862_v9 = vor.u32 %v2206_v2, %v1861_v1  ;;  %v1790_v10 = vor.u32 %v2188_v4, %v1789_v0 }
  0x2c   : > { %622 = vmatpush.bf16.msra.mxu1 %v1694_v34  ;;  %635 = vmatpush.bf16.msra.mxu2 %v1634_v35  ;;  %v1866_v11 = vor.u32 %v2205_v5, %v1863_v6  ;;  %v1781_v12 = vld [vmem:[%s3275_s4 + $0x30] sm:$0xf]  ;;  %v1853_v13 = vld [vmem:[%s3275_s4 + $0xc0] sm:$0xf]  ;;  %v2204_v14 = vld [vmem:[%s3275_s4 + $0xc4] sm:$0xf0]  ;;  %v1794_v15 = vor.u32 %v2187_v7, %v1791_v8 }
  0x2d   : > { %648 = vmatpush.bf16.msra.mxu3 %v1698_v36  ;;  %v2186_v16 = vld [vmem:[%s3275_s4 + $0x34] sm:$0xf0]  ;;  %v2203_v17 = vld [vmem:[%s3275_s4 + $0xc4] sm:$0xf]  ;;  %v1855_v18 = vld [vmem:[%s3275_s4 + $0xc8] sm:$0xf0]  ;;  %v1854_v21 = vor.u32 %v2204_v14, %v1853_v13 }
  0x2e   : > { %610 = vmatmul.bf16.vlgmr.msra.gmra.mxu0 %v438_v45  ;;  %v2185_v19 = vld [vmem:[%s3275_s4 + $0x34] sm:$0xf]  ;;  %v1783_v20 = vld [vmem:[%s3275_s4 + $0x38] sm:$0xf0]  ;;  %v1782_v22 = vor.u32 %v2186_v16, %v1781_v12  ;;  %v1858_v23 = vor.u32 %v2203_v17, %v1855_v18  ;;  %v1773_v24 = vld [vmem:[%s3275_s4 + $0x20] sm:$0xf] }
  0x2f   : > { %850 = vmatpush.bf16.msrb.mxu0 %v1814_v37  ;;  %623 = vmatmul.bf16.vlgmr.msra.gmra.mxu1 %v439_v48  ;;  %v1845_v25 = vld [vmem:[%s3275_s4 + $0xb0] sm:$0xf]  ;;  %v2202_v26 = vld [vmem:[%s3275_s4 + $0xb4] sm:$0xf0]  ;;  %v1786_v27 = vor.u32 %v2185_v19, %v1783_v20  ;;  %v2184_v28 = vld [vmem:[%s3275_s4 + $0x24] sm:$0xf0] }
  0x30   : > { %876 = vmatpush.bf16.msrb.mxu2 %v1818_v41  ;;  %649 = vmatmul.bf16.vlgmr.msra.gmra.mxu3 %v439_v48  ;;  %v2201_v29 = vld [vmem:[%s3275_s4 + $0xb4] sm:$0xf]  ;;  %v1847_v30 = vld [vmem:[%s3275_s4 + $0xb8] sm:$0xf0]  ;;  %v2183_v31 = vld [vmem:[%s3275_s4 + $0x24] sm:$0xf]  ;;  %v1846_v33 = vor.u32 %v2202_v26, %v1845_v25  ;;  %v1774_v34 = vor.u32 %v2184_v28, %v1773_v24 }
  0x31   : > { %636 = vmatmul.bf16.vlgmr.msra.gmra.mxu2 %v438_v45  ;;  %863 = vmatpush.bf16.msrb.mxu1 %v1878_v49  ;;  %v1775_v32 = vld [vmem:[%s3275_s4 + $0x28] sm:$0xf0]  ;;  %v1850_v35 = vor.u32 %v2201_v29, %v1847_v30  ;;  %v1765_v37 = vld [vmem:[%s3275_s4 + $0x10] sm:$0xf]  ;;  %v2182_v38 = vld [vmem:[%s3275_s4 + $0x14] sm:$0xf0] }
  0x32   : > { %889 = vmatpush.bf16.msrb.mxu3 %v1882_v51  ;;  %v1778_v36 = vor.u32 %v2183_v31, %v1775_v32  ;;  %v2181_v39 = vld [vmem:[%s3275_s4 + $0x14] sm:$0xf]  ;;  %v1766_v40 = vor.u32 %v2182_v38, %v1765_v37  ;;  %v1767_v41 = vld [vmem:[%s3275_s4 + $0x18] sm:$0xf0]  ;;  %v1837_v43 = vld [vmem:[%s3275_s4 + $0xa0] sm:$0xf] }
  0x33   : > { %851 = vmatpush.bf16.msrb.mxu0 %v1806_v50  ;;  %v1770_v42 = vor.u32 %v2181_v39, %v1767_v41  ;;  %v2200_v44 = vld [vmem:[%s3275_s4 + $0xa4] sm:$0xf0]  ;;  %v2199_v45 = vld [vmem:[%s3275_s4 + $0xa4] sm:$0xf]  ;;  %v1839_v47 = vld [vmem:[%s3275_s4 + $0xa8] sm:$0xf0] }
  0x34   : > { %877 = vmatpush.bf16.msrb.mxu2 %v1810_v55  ;;  %v1838_v46 = vor.u32 %v2200_v44, %v1837_v43  ;;  %v1842_v48 = vor.u32 %v2199_v45, %v1839_v47  ;;  %v1757_v49 = vld [vmem:[%s3275_s4] sm:$0xf]  ;;  %v2180_v50 = vld [vmem:[%s3275_s4 + $0x4] sm:$0xf0]  ;;  %v2179_v51 = vld [vmem:[%s3275_s4 + $0x4] sm:$0xf] }
  0x35   : > { %864 = vmatpush.bf16.msrb.mxu1 %v1870_v61  ;;  %v1758_v52 = vor.u32 %v2180_v50, %v1757_v49  ;;  %v1759_v53 = vld [vmem:[%s3275_s4 + $0x8] sm:$0xf0]  ;;  %v1829_v55 = vld [vmem:[%s3275_s4 + $0x90] sm:$0xf]  ;;  %v2198_v56 = vld [vmem:[%s3275_s4 + $0x94] sm:$0xf0] }
  0x36   : > { %890 = vmatpush.bf16.msrb.mxu3 %v1874_v63  ;;  %v1762_v54 = vor.u32 %v2179_v51, %v1759_v53  ;;  %v2197_v57 = vld [vmem:[%s3275_s4 + $0x94] sm:$0xf]  ;;  %v1830_v58 = vor.u32 %v2198_v56, %v1829_v55  ;;  %v1831_v59 = vld [vmem:[%s3275_s4 + $0x98] sm:$0xf0]  ;;  %v1821_v61 = vld [vmem:[%s3275_s4 + $0x80] sm:$0xf] }
  0x37   : > { %852 = vmatpush.bf16.msrb.mxu0 %v1798_v62  ;;  %v1834_v60 = vor.u32 %v2197_v57, %v1831_v59  ;;  %v2196_v62 = vld [vmem:[%s3275_s4 + $0x84] sm:$0xf0]  ;;  %v2195_v63 = vld [vmem:[%s3275_s4 + $0x84] sm:$0xf]  ;;  %v1823_v1 = vld [vmem:[%s3275_s4 + $0x88] sm:$0xf0] }
  0x38   : > { %878 = vmatpush.bf16.msrb.mxu2 %v1802_v3  ;;  %v1822_v0 = vor.u32 %v2196_v62, %v1821_v61  ;;  %v1826_v2 = vor.u32 %v2195_v63, %v1823_v1  ;;  %v1944_v17 = vld [vmem:[%s3276_s5 + $0x70] sm:$0xf]  ;;  %v2226_v18 = vld [vmem:[%s3276_s5 + $0x74] sm:$0xf0]  ;;  %v2241_v26 = vld [vmem:[%s3276_s5 + $0xf4] sm:$0xf] }
  0x39   : > { %865 = vmatpush.bf16.msrb.mxu1 %v1862_v9  ;;  %v2008_v19 = vld [vmem:[%s3276_s5 + $0xf0] sm:$0xf]  ;;  %v1945_v20 = vor.u32 %v2226_v18, %v1944_v17  ;;  %v1936_v29 = vld [vmem:[%s3276_s5 + $0x60] sm:$0xf]  ;;  %v2224_v30 = vld [vmem:[%s3276_s5 + $0x64] sm:$0xf0] }
  0x3a   : > { %891 = vmatpush.bf16.msrb.mxu3 %v1866_v11  ;;  %v2000_v31 = vld [vmem:[%s3276_s5 + $0xe0] sm:$0xf]  ;;  %v2239_v39 = vld [vmem:[%s3276_s5 + $0xe4] sm:$0xf]  ;;  %v2222_v43 = vld [vmem:[%s3276_s5 + $0x54] sm:$0xf0] }
  0x3b   : > { %853 = vmatpush.bf16.msrb.mxu0 %v1790_v10  ;;  %v1992_v44 = vld [vmem:[%s3276_s5 + $0xd0] sm:$0xf]  ;;  %v2221_v47 = vld [vmem:[%s3276_s5 + $0x54] sm:$0xf]  ;;  %v1930_v49 = vld [vmem:[%s3276_s5 + $0x58] sm:$0xf0] }
  0x3c   : > { %879 = vmatpush.bf16.msrb.mxu2 %v1794_v15  ;;  %v2237_v50 = vld [vmem:[%s3276_s5 + $0xd4] sm:$0xf]  ;;  %v1994_v53 = vld [vmem:[%s3276_s5 + $0xd8] sm:$0xf0]  ;;  %v1920_v56 = vld [vmem:[%s3276_s5 + $0x40] sm:$0xf] }
  0x3d   : > { %866 = vmatpush.bf16.msrb.mxu1 %v1854_v21  ;;  %v2242_v21 = vld [vmem:[%s3276_s5 + $0xf4] sm:$0xf0]  ;;  %v1997_v55 = vor.u32 %v2237_v50, %v1994_v53  ;;  %v2220_v57 = vld [vmem:[%s3276_s5 + $0x44] sm:$0xf0]  ;;  %v2219_v63 = vld [vmem:[%s3276_s5 + $0x44] sm:$0xf] }
  0x3e   : > { %892 = vmatpush.bf16.msrb.mxu3 %v1858_v23  ;;  %v1946_v23 = vld [vmem:[%s3276_s5 + $0x78] sm:$0xf0]  ;;  %v2009_v24 = vor.u32 %v2242_v21, %v2008_v19  ;;  %v1921_v61 = vor.u32 %v2220_v57, %v1920_v56  ;;  %v2236_v62 = vld [vmem:[%s3276_s5 + $0xc4] sm:$0xf0]  ;;  %v2233_v17 = vld [vmem:[%s3276_s5 + $0xb4] sm:$0xf] }
  0x3f   : > { %854 = vmatpush.bf16.msrb.mxu0 %v1782_v22  ;;  %v2225_v22 = vld [vmem:[%s3276_s5 + $0x74] sm:$0xf]  ;;  %v1978_v18 = vld [vmem:[%s3276_s5 + $0xb8] sm:$0xf0] }
  0x40   : > { %880 = vmatpush.bf16.msrb.mxu2 %v1786_v27  ;;  %v1949_v25 = vor.u32 %v2225_v22, %v1946_v23  ;;  %v2010_v27 = vld [vmem:[%s3276_s5 + $0xf8] sm:$0xf0]  ;;  %v1981_v21 = vor.u32 %v2233_v17, %v1978_v18  ;;  %v940_v22 = vlaneseq  ;;  %v2257_v18 = vld [vmem:[%s3278_s7 + $0x74] sm:$0xf] }
  0x41   : > { %867 = vmatpush.bf16.msrb.mxu1 %v1846_v33  ;;  %v2013_v28 = vor.u32 %v2241_v26, %v2010_v27  ;;  %v1937_v33 = vor.u32 %v2224_v30, %v1936_v29  ;;  %v1968_v26 = vld [vmem:[%s3276_s5 + $0xa0] sm:$0xf]  ;;  %v2232_v29 = vld [vmem:[%s3276_s5 + $0xa4] sm:$0xf0]  ;;  %v2215_v30 = vld [vmem:[%s3276_s5 + $0x24] sm:$0xf] }
  0x42   : > { %893 = vmatpush.bf16.msrb.mxu3 %v1850_v35  ;;  %v2223_v35 = vld [vmem:[%s3276_s5 + $0x64] sm:$0xf]  ;;  %v2122_v57 = vld [vmem:[%s3278_s7 + $0xd8] sm:$0xf0] }
  0x43   : > { %855 = vmatpush.bf16.msrb.mxu0 %v1774_v34  ;;  %v2240_v34 = vld [vmem:[%s3276_s5 + $0xe4] sm:$0xf0] }
  0x44   : > { %881 = vmatpush.bf16.msrb.mxu2 %v1778_v36  ;;  %v1938_v36 = vld [vmem:[%s3276_s5 + $0x68] sm:$0xf0]  ;;  %v2001_v37 = vor.u32 %v2240_v34, %v2000_v31  ;;  %v1969_v31 = vor.u32 %v2232_v29, %v1968_v26  ;;  %v2064_v26 = vld [vmem:[%s3278_s7 + $0x60] sm:$0xf] }
  0x45   : > { %868 = vmatpush.bf16.msrb.mxu1 %v1838_v46  ;;  %v1941_v38 = vor.u32 %v2223_v35, %v1938_v36  ;;  %v2238_v46 = vld [vmem:[%s3276_s5 + $0xd4] sm:$0xf0]  ;;  %v1970_v34 = vld [vmem:[%s3276_s5 + $0xa8] sm:$0xf0] }
  0x46   : > { %894 = vmatpush.bf16.msrb.mxu3 %v1842_v48  ;;  %v1993_v48 = vor.u32 %v2238_v46, %v1992_v44  ;;  %v2230_v44 = vld [vmem:[%s3276_s5 + $0x94] sm:$0xf0]  ;;  %v942_v46 = vstv %s2322_s30  ;;  %s3294_s30 = smov (!%p376_p4, %s2322_s30), 1 }
  0x47   : > { %856 = vmatpush.bf16.msrb.mxu0 %v1766_v40  ;;  %v2002_v40 = vld [vmem:[%s3276_s5 + $0xe8] sm:$0xf0]  ;;  %s3205_s27 = sshll.u32 %s3294_s30, 2 }
  0x48   : > { %882 = vmatpush.bf16.msrb.mxu2 %v1770_v42  ;;  %v2005_v41 = vor.u32 %v2239_v39, %v2002_v40  ;;  %v1928_v42 = vld [vmem:[%s3276_s5 + $0x50] sm:$0xf]  ;;  %v941_v39 = vshrl.u32 %v940_v22, 7  ;;  %s384_s22 = scalar_lea.vmem %s3271_s0, %s3205_s27  ;;  %s402_s13 = scalar_lea.vmem %s3280_s9, %s3205_s27 }
  0x49   : > { %869 = vmatpush.bf16.msrb.mxu1 %v1830_v58  ;;  %v1929_v45 = vor.u32 %v2222_v43, %v1928_v42  ;;  %v1984_v58 = vld [vmem:[%s3276_s5 + $0xc0] sm:$0xf]  ;;  %v1896_v40 = vld [vmem:[%s3276_s5 + $0x10] sm:$0xf] }
  0x4a   : > { %895 = vmatpush.bf16.msrb.mxu3 %v1834_v60  ;;  %v1985_v1 = vor.u32 %v2236_v62, %v1984_v58  ;;  %v1960_v43 = vld [vmem:[%s3276_s5 + $0x90] sm:$0xf]  ;;  %vm2968_vm0 = vcmp.eq.s32.totalorder %v941_v39, %v942_v46  ;;  %v2130_v39 = vld [vmem:[%s3278_s7 + $0xe8] sm:$0xf0]  ;;  %v2270_v46 = vld [vmem:[%s3278_s7 + $0xd4] sm:$0xf0] }
  0x4b   : > { %857 = vmatpush.bf16.msrb.mxu0 %v1758_v52  ;;  %v1933_v52 = vor.u32 %v2221_v47, %v1930_v49  ;;  %v1961_v49 = vor.u32 %v2230_v44, %v1960_v43  ;;  %v2254_v44 = vld [vmem:[%s3278_s7 + $0x54] sm:$0xf0] }
  0x4c   : > { %883 = vmatpush.bf16.msrb.mxu2 %v1762_v54 }
  0x4d   : > { %870 = vmatpush.bf16.msrb.mxu1 %v1822_v0  ;;  %v1922_v0 = vld [vmem:[%s3276_s5 + $0x48] sm:$0xf0] }
  0x4e   : > { %896 = vmatpush.bf16.msrb.mxu3 %v1826_v2  ;;  %v1925_v2 = vor.u32 %v2219_v63, %v1922_v0 }
  0x4f   : > { %1178 = vmatpush.bf16.msra.mxu0 %v1945_v20 }
  0x50   : > { %1204 = vmatpush.bf16.msra.mxu2 %v1949_v25  ;;  %v2216_v25 = vld [vmem:[%s3276_s5 + $0x24] sm:$0xf0] }
  0x51   : > { %1191 = vmatpush.bf16.msra.mxu1 %v2009_v24  ;;  %v1904_v24 = vld [vmem:[%s3276_s5 + $0x20] sm:$0xf] }
  0x52   : > { %1217 = vmatpush.bf16.msra.mxu3 %v2013_v28  ;;  %v1905_v28 = vor.u32 %v2216_v25, %v1904_v24  ;;  %v2138_v24 = vld [vmem:[%s3278_s7 + $0xf8] sm:$0xf0] }
  0x53   : > { %1179 = vmatpush.bf16.msra.mxu0 %v1937_v33  ;;  %v2231_v33 = vld [vmem:[%s3276_s5 + $0xa4] sm:$0xf] }
  0x54   : > { %1205 = vmatpush.bf16.msra.mxu2 %v1941_v38 }
  0x55   : > { %1192 = vmatpush.bf16.msra.mxu1 %v2001_v37  ;;  %v1973_v37 = vor.u32 %v2231_v33, %v1970_v34  ;;  %v2066_v33 = vld [vmem:[%s3278_s7 + $0x68] sm:$0xf0] }
  0x56   : > { %1218 = vmatpush.bf16.msra.mxu3 %v2005_v41  ;;  %v2214_v41 = vld [vmem:[%s3276_s5 + $0x14] sm:$0xf0] }
  0x57   : > { %1180 = vmatpush.bf16.msra.mxu0 %v1929_v45  ;;  %v1897_v42 = vor.u32 %v2214_v41, %v1896_v40  ;;  %v2213_v45 = vld [vmem:[%s3276_s5 + $0x14] sm:$0xf]  ;;  %v2056_v40 = vld [vmem:[%s3278_s7 + $0x50] sm:$0xf] }
  0x58   : > { %1206 = vmatpush.bf16.msra.mxu2 %v1933_v52  ;;  %v1962_v52 = vld [vmem:[%s3276_s5 + $0x98] sm:$0xf0] }
  0x59   : > { %1193 = vmatpush.bf16.msra.mxu1 %v1993_v48  ;;  %v1898_v48 = vld [vmem:[%s3276_s5 + $0x18] sm:$0xf0] }
  0x5a   : > { %1219 = vmatpush.bf16.msra.mxu3 %v1997_v55  ;;  %v1901_v50 = vor.u32 %v2213_v45, %v1898_v48  ;;  %v2212_v55 = vld [vmem:[%s3276_s5 + $0x4] sm:$0xf0]  ;;  %v2120_v45 = vld [vmem:[%s3278_s7 + $0xd0] sm:$0xf]  ;;  %v2057_v48 = vor.u32 %v2254_v44, %v2056_v40  ;;  %v2098_v44 = vld [vmem:[%s3278_s7 + $0xa8] sm:$0xf0] }
  0x5b   : > { %1181 = vmatpush.bf16.msra.mxu0 %v1921_v61  ;;  %v2211_v61 = vld [vmem:[%s3276_s5 + $0x4] sm:$0xf] }
  0x5c   : > { %1207 = vmatpush.bf16.msra.mxu2 %v1925_v2  ;;  %v1890_v2 = vld [vmem:[%s3276_s5 + $0x8] sm:$0xf0] }
  0x5d   : > { %1194 = vmatpush.bf16.msra.mxu1 %v1985_v1 }
  0xab   : > { %v611_v3 = vpop.f32.mrf.mxu0 }
  0xac   : > { %v624_v4 = vpop.f32.mrf.mxu1 }
  0xad   : > { %v625_v5 = vadd.f32 %v624_v4, %v611_v3  ;;  %v2235_v3 = vld [vmem:[%s3276_s5 + $0xc4] sm:$0xf]  ;;  %v1986_v4 = vld [vmem:[%s3276_s5 + $0xc8] sm:$0xf0] }
  0xaf   : > { %v654_v6 = vmax.f32 %v625_v5, 0.0 }
  0xb1   : > { %v656_v7 = vpack.c.bf16 %v654_v6, %v654_v6  ;;  %v1989_v6 = vor.u32 %v2235_v3, %v1986_v4  ;;  %v1893_v3 = vor.u32 %v2211_v61, %v1890_v2  ;;  %v2227_v4 = vld [vmem:[%s3276_s5 + $0x84] sm:$0xf]  ;;  %v2252_v61 = vld [vmem:[%s3278_s7 + $0x44] sm:$0xf0] }
  0xb2   : > { %v2268_v2 = vld [vmem:[%s3278_s7 + $0xc4] sm:$0xf0] }
  0xb3   : > { %v650_v9 = vpop.f32.mrf.mxu3  ;;  %858 = vmatmul.bf16.vlgmr.msrb.gmra.mxu0 %v656_v7  ;;  %884 = vmatmul.bf16.vlgmr.msrb.gmra.mxu2 %v656_v7  ;;  %v613_v10 = vpop.f32.mrf.mxu0  ;;  %v1912_v7 = vld [vmem:[%s3276_s5 + $0x30] sm:$0xf] }
  0xb4   : > { %v637_v8 = vpop.f32.mrf.mxu2  ;;  %v626_v12 = vpop.f32.mrf.mxu1  ;;  %1220 = vmatpush.bf16.msra.mxu3 %v1989_v6  ;;  %v2072_v6 = vld [vmem:[%s3278_s7 + $0x70] sm:$0xf] }
  0xb5   : > { %v651_v11 = vadd.f32 %v650_v9, %v637_v8  ;;  %v2218_v8 = vld [vmem:[%s3276_s5 + $0x34] sm:$0xf0]  ;;  %v1976_v9 = vld [vmem:[%s3276_s5 + $0xb0] sm:$0xf]  ;;  %v2217_v12 = vld [vmem:[%s3276_s5 + $0x34] sm:$0xf] }
  0xb6   : > { %v1913_v10 = vor.u32 %v2218_v8, %v1912_v7  ;;  %v2258_v8 = vld [vmem:[%s3278_s7 + $0x74] sm:$0xf0] }
  0xb7   : > { %v655_v13 = vmax.f32 %v651_v11, 0.0  ;;  %v2234_v11 = vld [vmem:[%s3276_s5 + $0xb4] sm:$0xf0] }
  0xb8   : > { %1182 = vmatpush.bf16.msra.mxu0 %v1913_v10  ;;  %1221 = vmatpush.bf16.msra.mxu3 %v1981_v21  ;;  %v2332_v10 = vmov 0.0  }
  0xb9   : > { %v657_v14 = vpack.c.bf16 %v655_v13, %v655_v13  ;;  %v1914_v13 = vld [vmem:[%s3276_s5 + $0x38] sm:$0xf0] }
  0xbb   : > { %871 = vmatmul.bf16.vlgmr.msrb.gmra.mxu1 %v657_v14  ;;  %897 = vmatmul.bf16.vlgmr.msrb.gmra.mxu3 %v657_v14  ;;  %v652_v16 = vpop.f32.mrf.mxu3 }
  0xbc   : > { %v639_v15 = vpop.f32.mrf.mxu2  ;;  %v1917_v16 = vor.u32 %v2217_v12, %v1914_v13  ;;  %1183 = vmatpush.bf16.msra.mxu0 %v1905_v28  ;;  %1222 = vmatpush.bf16.msra.mxu3 %v1973_v37  ;;  %v2136_v13 = vld [vmem:[%s3278_s7 + $0xf0] sm:$0xf]  ;;  %v2128_v28 = vld [vmem:[%s3278_s7 + $0xe0] sm:$0xf]  ;;  %v2271_v37 = vld [vmem:[%s3278_s7 + $0xe4] sm:$0xf] }
  0xbd   : > { %v1977_v15 = vor.u32 %v2234_v11, %v1976_v9  ;;  %v3007_v11 = vsel %vm2968_vm0, 1.0, %v2332_v10  ;;  %v2133_v43 = vor.u32 %v2271_v37, %v2130_v39  ;;  %v2034_v37 = vld [vmem:[%s3278_s7 + $0x28] sm:$0xf0]  ;;  %v2263_v39 = vld [vmem:[%s3278_s7 + $0xa4] sm:$0xf] }
  0xbe   : > { %1208 = vmatpush.bf16.msra.mxu2 %v1917_v16  ;;  %v2073_v16 = vor.u32 %v2258_v8, %v2072_v6  ;;  %v2114_v8 = vld [vmem:[%s3278_s7 + $0xc8] sm:$0xf0] }
  0xbf   : > { %1195 = vmatpush.bf16.msra.mxu1 %v1977_v15 }
  0xc0   : > { %1184 = vmatpush.bf16.msra.mxu0 %v1897_v42 }
  0xc3   : > { %1196 = vmatpush.bf16.msra.mxu1 %v1969_v31  ;;  %v2272_v31 = vld [vmem:[%s3278_s7 + $0xe4] sm:$0xf0] }
  0xc7   : > { %1197 = vmatpush.bf16.msra.mxu1 %v1961_v49  ;;  %v2121_v49 = vor.u32 %v2270_v46, %v2120_v45  ;;  %v2024_v45 = vld [vmem:[%s3278_s7 + $0x10] sm:$0xf] }
 0x130   : > { %v859_v32 = vpop.f32.mrf.mxu0 }
 0x136   : > { %v885_v51 = vpop.f32.mrf.mxu2 }
 0x138   : > { %v872_v54 = vpop.f32.mrf.mxu1  ;;  %v861_v60 = vpop.f32.mrf.mxu0 }
 0x139   : > { %v873_v59 = vadd.f32 %v872_v54, %v859_v32  ;;  %v1906_v32 = vld [vmem:[%s3276_s5 + $0x28] sm:$0xf0]  ;;  %v1888_v54 = vld [vmem:[%s3276_s5] sm:$0xf]  ;;  %v2228_v60 = vld [vmem:[%s3276_s5 + $0x84] sm:$0xf0] }
 0x13a   : > { %v1909_v36 = vor.u32 %v2215_v30, %v1906_v32  ;;  %v1889_v58 = vor.u32 %v2212_v55, %v1888_v54  ;;  %v2255_v32 = vld [vmem:[%s3278_s7 + $0x64] sm:$0xf] }
 0x13b   : > { %v1883_v5 = vmul.f32 -1.442695, %v873_v59  ;;  %v1952_v59 = vld [vmem:[%s3276_s5 + $0x80] sm:$0xf] }
 0x13c   : > { %1209 = vmatpush.bf16.msra.mxu2 %v1909_v36  ;;  %v1953_v1 = vor.u32 %v2228_v60, %v1952_v59  ;;  %1185 = vmatpush.bf16.msra.mxu0 %v1889_v58  ;;  %v2069_v36 = vor.u32 %v2255_v32, %v2066_v33  ;;  %v2048_v60 = vld [vmem:[%s3278_s7 + $0x40] sm:$0xf]  ;;  %v2248_v32 = vld [vmem:[%s3278_s7 + $0x24] sm:$0xf0] }
 0x13d   : > { %2300 = vpow2.f32 %v1883_v5  ;;  %v1954_v5 = vld [vmem:[%s3276_s5 + $0x88] sm:$0xf0]  ;;  %v2096_v33 = vld [vmem:[%s3278_s7 + $0xa0] sm:$0xf] }
 0x13e   : > { %v898_v14 = vpop.f32.mrf.mxu3  ;;  %v887_v20 = vpop.f32.mrf.mxu2  ;;  %1198 = vmatpush.bf16.msra.mxu1 %v1953_v1  ;;  %v1957_v12 = vor.u32 %v2227_v4, %v1954_v5  ;;  %v2050_v4 = vld [vmem:[%s3278_s7 + $0x48] sm:$0xf0]  ;;  %v2049_v5 = vor.u32 %v2252_v61, %v2048_v60  ;;  %v2244_v61 = vld [vmem:[%s3278_s7 + $0x4] sm:$0xf0] }
 0x13f   : > { %v899_v19 = vadd.f32 %v898_v14, %v885_v51  ;;  %v2229_v51 = vld [vmem:[%s3276_s5 + $0x94] sm:$0xf]  ;;  %v2274_v14 = vld [vmem:[%s3278_s7 + $0xf4] sm:$0xf0] }
 0x140   : > { %v874_v23 = vpop.f32.mrf.mxu1  ;;  %v1965_v53 = vor.u32 %v2229_v51, %v1962_v52  ;;  %1210 = vmatpush.bf16.msra.mxu2 %v1901_v50  ;;  %v2137_v17 = vor.u32 %v2274_v14, %v2136_v13  ;;  %1437 = vmatpush.bf16.msrb.mxu0 %v2073_v16  ;;  %v2253_v50 = vld [vmem:[%s3278_s7 + $0x54] sm:$0xf]  ;;  %v2058_v51 = vld [vmem:[%s3278_s7 + $0x58] sm:$0xf0]  ;;  %v2040_v16 = vld [vmem:[%s3278_s7 + $0x30] sm:$0xf] }
 0x141   : > { %v1884_v27 = vmul.f32 -1.442695, %v899_v19  ;;  %v2074_v19 = vld [vmem:[%s3278_s7 + $0x78] sm:$0xf0]  ;;  %v2273_v23 = vld [vmem:[%s3278_s7 + $0xf4] sm:$0xf]  ;;  %v2061_v55 = vor.u32 %v2253_v50, %v2058_v51  ;;  %v2101_v50 = vor.u32 %v2263_v39, %v2098_v44 }
 0x142   : > { %1223 = vmatpush.bf16.msra.mxu3 %v1965_v53  ;;  %v2077_v22 = vor.u32 %v2257_v18, %v2074_v19  ;;  %1450 = vmatpush.bf16.msrb.mxu1 %v2137_v17  ;;  %v2141_v25 = vor.u32 %v2273_v23, %v2138_v24  ;;  %v2250_v17 = vld [vmem:[%s3278_s7 + $0x34] sm:$0xf0]  ;;  %v2245_v51 = vld [vmem:[%s3278_s7 + $0x14] sm:$0xf] }
 0x143   : > { %v2301_v35 = vpop.eup %2300  ;;  %2302 = vpow2.f32 %v1884_v27  ;;  %v2256_v27 = vld [vmem:[%s3278_s7 + $0x64] sm:$0xf0]  ;;  %v2041_v19 = vor.u32 %v2250_v17, %v2040_v16 }
 0x144   : > { %v2934_v38 = vadd.f32 1.0, %v2301_v35  ;;  %1211 = vmatpush.bf16.msra.mxu2 %v1893_v3  ;;  %v2065_v30 = vor.u32 %v2256_v27, %v2064_v26  ;;  %v2129_v35 = vor.u32 %v2272_v31, %v2128_v28  ;;  %v2251_v3 = vld [vmem:[%s3278_s7 + $0x44] sm:$0xf]  ;;  %v2042_v26 = vld [vmem:[%s3278_s7 + $0x38] sm:$0xf0] }
 0x145   : > { %v2265_v27 = vld [vmem:[%s3278_s7 + $0xb4] sm:$0xf]  ;;  %v2106_v28 = vld [vmem:[%s3278_s7 + $0xb8] sm:$0xf0]  ;;  %v2032_v31 = vld [vmem:[%s3278_s7 + $0x20] sm:$0xf] }
 0x146   : > { %2304 = vrcp.f32 %v2934_v38  ;;  %v900_v47 = vpop.f32.mrf.mxu3  ;;  %v919_v62 = vand.u32 2147483647, %v2934_v38  ;;  %v921_v63 = vand.u32 2147483648, %v2934_v38  ;;  %1224 = vmatpush.bf16.msra.mxu3 %v1957_v12  ;;  %vm915_vm4 = vweird.f32 %v2934_v38  ;;  %1438 = vmatpush.bf16.msrb.mxu0 %v2065_v30 }
 0x147   : > { %1451 = vmatpush.bf16.msrb.mxu1 %v2129_v35  ;;  %v2247_v35 = vld [vmem:[%s3278_s7 + $0x24] sm:$0xf] }
 0x148   : > { %vm3015_vm1 = vcmp.eq.f32.partialorder %v919_v62, 8.507059e+37  ;;  %v922_v21 = vor.u32 1.1754944e-38, %v921_v63  ;;  %1463 = vmatpush.bf16.msrb.mxu2 %v2077_v22  ;;  %v2112_v62 = vld [vmem:[%s3278_s7 + $0xc0] sm:$0xf]  ;;  %v2249_v22 = vld [vmem:[%s3278_s7 + $0x34] sm:$0xf]  ;;  %v2037_v46 = vor.u32 %v2247_v35, %v2034_v37 }
 0x149   : > { %v2303_v56 = vpop.eup %2302  ;;  %v2113_v6 = vor.u32 %v2268_v2, %v2112_v62  ;;  %v2045_v30 = vor.u32 %v2249_v22, %v2042_v26  ;;  %v2080_v62 = vld [vmem:[%s3278_s7 + $0x80] sm:$0xf] }
 0x14a   : > { %v2983_v0 = vadd.f32 1.0, %v2303_v56  ;;  %1476 = vmatpush.bf16.msrb.mxu3 %v2141_v25  ;;  %v2269_v56 = vld [vmem:[%s3278_s7 + $0xd4] sm:$0xf]  ;;  %1439 = vmatpush.bf16.msrb.mxu0 %v2057_v48  ;;  %v2262_v48 = vld [vmem:[%s3278_s7 + $0x94] sm:$0xf0] }
 0x14b   : > { %v2125_v59 = vor.u32 %v2269_v56, %v2122_v57  ;;  %1452 = vmatpush.bf16.msrb.mxu1 %v2121_v49 }
 0x14c   : > { %v2997_v7 = vpop.eup %2304  ;;  %2306 = vrcp.f32 %v2983_v0  ;;  %v934_v47 = vand.u32 2147483647, %v2983_v0  ;;  %v936_v54 = vand.u32 2147483648, %v2983_v0  ;;  %1464 = vmatpush.bf16.msrb.mxu2 %v2069_v36  ;;  %vm930_vm7 = vweird.f32 %v2983_v0 }
 0x14d   : > { %v911_v9 = vmul.f32 %v2997_v7, %v2934_v38  ;;  %vm916_vm3 = vweird.f32 %v2997_v7  ;;  %v2246_v38 = vld [vmem:[%s3278_s7 + $0x14] sm:$0xf0] }
 0x14e   : > { %vm3077_vm5 = vmor %vm915_vm4, %vm916_vm3  ;;  %1477 = vmatpush.bf16.msrb.mxu3 %v2133_v43  ;;  %vm3131_vm8 = vcmp.eq.f32.partialorder %v934_v47, 8.507059e+37  ;;  %v937_v14 = vor.u32 1.1754944e-38, %v936_v54  ;;  %1440 = vmatpush.bf16.msrb.mxu0 %v2049_v5  ;;  %v2088_v47 = vld [vmem:[%s3278_s7 + $0x90] sm:$0xf]  ;;  %v2090_v54 = vld [vmem:[%s3278_s7 + $0x98] sm:$0xf0]  ;;  %v2025_v57 = vor.u32 %v2246_v38, %v2024_v45 }
 0x14f   : > { %v912_v20 = vsub.f32 1.0, %v911_v9  ;;  %1453 = vmatpush.bf16.msrb.mxu1 %v2113_v6  ;;  %v2259_v5 = vld [vmem:[%s3278_s7 + $0x84] sm:$0xf]  ;;  %v2082_v6 = vld [vmem:[%s3278_s7 + $0x88] sm:$0xf0] }
 0x150   : > { %1465 = vmatpush.bf16.msrb.mxu2 %v2061_v55 }
 0x151   : > { %v913_v29 = vmul.f32 %v2997_v7, %v912_v20  ;;  %v2104_v20 = vld [vmem:[%s3278_s7 + $0xb0] sm:$0xf] }
 0x152   : > { %v3051_v34 = vpop.eup %2306  ;;  %1478 = vmatpush.bf16.msrb.mxu3 %v2125_v59  ;;  %1441 = vmatpush.bf16.msrb.mxu0 %v2041_v19  ;;  %v2016_v59 = vld [vmem:[%s3278_s7] sm:$0xf] }
 0x153   : > { %v914_v41 = vadd.f32 %v2997_v7, %v913_v29  ;;  %v926_v42 = vmul.f32 %v3051_v34, %v2983_v0  ;;  %vm931_vm6 = vweird.f32 %v3051_v34  ;;  %v2053_v0 = vor.u32 %v2251_v3, %v2050_v4  ;;  %v2243_v3 = vld [vmem:[%s3278_s7 + $0x4] sm:$0xf]  ;;  %v2018_v4 = vld [vmem:[%s3278_s7 + $0x8] sm:$0xf0] }
 0x154   : > { %vm932_vm9 = vmor %vm930_vm7, %vm931_vm6 }
 0x155   : > { %v918_v52 = vsel %vm3077_vm5, %v2997_v7, %v914_v41  ;;  %v927_v53 = vsub.f32 1.0, %v926_v42  ;;  %v2267_v7 = vld [vmem:[%s3278_s7 + $0xc4] sm:$0xf]  ;;  %1466 = vmatpush.bf16.msrb.mxu2 %v2053_v0  ;;  %v2033_v42 = vor.u32 %v2248_v32, %v2032_v31  ;;  %v2021_v0 = vor.u32 %v2243_v3, %v2018_v4 }
 0x156   : > { %v923_v58 = vsel %vm3015_vm1, %v922_v21, %v918_v52  ;;  %v2117_v15 = vor.u32 %v2267_v7, %v2114_v8  ;;  %v2266_v21 = vld [vmem:[%s3278_s7 + $0xb4] sm:$0xf0]  ;;  %v2026_v52 = vld [vmem:[%s3278_s7 + $0x18] sm:$0xf0] }
 0x157   : > { %v946_v63 = vmul.f32 %v3007_v11, %v923_v58  ;;  %v928_v1 = vmul.f32 %v3051_v34, %v927_v53  ;;  %v2105_v25 = vor.u32 %v2266_v21, %v2104_v20  ;;  %v2261_v53 = vld [vmem:[%s3278_s7 + $0x94] sm:$0xf]  ;;  %1442 = vmatpush.bf16.msrb.mxu0 %v2033_v42  ;;  %v2089_v58 = vor.u32 %v2262_v48, %v2088_v47 }
 0x158   : > { %1479 = vmatpush.bf16.msrb.mxu3 %v2117_v15  ;;  %v2029_v60 = vor.u32 %v2245_v51, %v2026_v52  ;;  %v2093_v2 = vor.u32 %v2261_v53, %v2090_v54 }
 0x159   : > { %v949_v9 = vsel %vm948_vm2, %v946_v63, 0.0  ;;  %v929_v10 = vadd.f32 %v3051_v34, %v928_v1  ;;  %1454 = vmatpush.bf16.msrb.mxu1 %v2105_v25  ;;  %1467 = vmatpush.bf16.msrb.mxu2 %v2045_v30  ;;  %v2260_v63 = vld [vmem:[%s3278_s7 + $0x84] sm:$0xf0] }
 0x15a   : > { %v950_v13 = vrot.slane %v949_v9, 4  ;;  %v2081_v12 = vor.u32 %v2260_v63, %v2080_v62 }
 0x15b   : > { %v933_v18 = vsel %vm932_vm9, %v3051_v34, %v929_v10  ;;  %v2109_v34 = vor.u32 %v2265_v27, %v2106_v28  ;;  %1443 = vmatpush.bf16.msrb.mxu0 %v2025_v57  ;;  %v2017_v10 = vor.u32 %v2244_v61, %v2016_v59 }
 0x15c   : > { %v951_v23 = vadd.f32 %v950_v13, %v949_v9  ;;  %v938_v24 = vsel %vm3131_vm8, %v937_v14, %v933_v18  ;;  %v963_v9 = vld [vmem:[%s384_s22] sm:$0xf]  ;;  %v2085_v14 = vor.u32 %v2259_v5, %v2082_v6  ;;  %s393_s22 = scalar_lea.vmem %s3272_s1, %s3205_s27 }
 0x15d   : > { %v947_v29 = vmul.f32 %v3007_v11, %v938_v24  ;;  %v2264_v11 = vld [vmem:[%s3278_s7 + $0xa4] sm:$0xf0]  ;;  %1480 = vmatpush.bf16.msrb.mxu3 %v2109_v34  ;;  %1468 = vmatpush.bf16.msrb.mxu2 %v2037_v46  ;;  %v964_v15 = vunpack.c.l.bf16 %v963_v9  ;;  %v1232_v20 = vld [vmem:[%s393_s22] sm:$0xf] }
 0x15e   : > { %v952_v40 = vrot.slane %v951_v23, 2  ;;  %v2097_v43 = vor.u32 %v2264_v11, %v2096_v33  ;;  %v1265_v33 = vld [vmem:[%s3279_s8] sm:$0x3] }
 0x15f   : > { %v956_v36 = vsel %vm948_vm2, %v947_v29, 0.0  ;;  %1444 = vmatpush.bf16.msrb.mxu0 %v2017_v10  ;;  %v1012_v34 = vld [vmem:[%s3277_s6] sm:$0x3]  ;;  %v1267_v11 = vperm.slane %v1265_v33, 0  ;;  %v1268_v46 = vperm.slane %v1265_v33, 1 }
 0x160   : > { %v957_v41 = vrot.slane %v956_v36, 4  ;;  %v953_v55 = vadd.f32 %v952_v40, %v951_v23  ;;  %1455 = vmatpush.bf16.msrb.mxu1 %v2097_v43  ;;  %v1014_v35 = vperm.slane %v1012_v34, 0  ;;  %v1015_v39 = vperm.slane %v1012_v34, 1 }
 0x161   : > { %1481 = vmatpush.bf16.msrb.mxu3 %v2101_v50  ;;  %1469 = vmatpush.bf16.msrb.mxu2 %v2029_v60 }
 0x162   : > { %v958_v49 = vadd.f32 %v957_v41, %v956_v36  ;;  %v954_v7 = vrot.slane %v953_v55, 1 }
 0x164   : > { %v959_v56 = vrot.slane %v958_v49, 2  ;;  %1456 = vmatpush.bf16.msrb.mxu1 %v2089_v58  ;;  %v955_v16 = vadd.f32 %v954_v7, %v953_v55 }
 0x165   : > { %1482 = vmatpush.bf16.msrb.mxu3 %v2093_v2  ;;  %1470 = vmatpush.bf16.msrb.mxu2 %v2021_v0 }
 0x166   : > { %v960_v1 = vadd.f32 %v959_v56, %v958_v49 }
 0x168   : > { %v961_v8 = vrot.slane %v960_v1, 1  ;;  %1457 = vmatpush.bf16.msrb.mxu1 %v2081_v12 }
 0x169   : > { %1483 = vmatpush.bf16.msrb.mxu3 %v2085_v14 }
 0x16a   : > { %v962_v13 = vadd.f32 %v961_v8, %v960_v1 }
 0x16c   : > { %v967_v17 = vrot.slane %v962_v13, 4 }
 0x16e   : > { %v969_v18 = vsel %vm968_vm10, %v955_v16, %v967_v17 }
 0x16f   : > { %v971_v19 = vmul.f32 %v969_v18, %v964_v15 }
 0x171   : > { %973 = vst [vmem:[#allocation1] ss:$2 sm:$0xff] %v971_v19 }
 0x178   : > { %v974_v21 = vld.sshfl [vmem:[#allocation1] sm:$0xff pattern:$0x75316420]  ;;  %v975_v22 = vld.sshfl [vmem:[#allocation1 + $0x8] sm:$0xff pattern:$0x75316420] }
 0x179   : > { %v978_v23 = vpack.c.bf16 %v974_v21, %v974_v21  ;;  %v979_v24 = vpack.c.bf16 %v975_v22, %v975_v22  ;;  %1272 = vst [vmem:[#allocation1] ss:$4 sm:$0xff] %v1232_v20 }
 0x17b   : > { %1186 = vmatmul.bf16.vlgmr.msra.gmra.mxu0 %v978_v23  ;;  %1199 = vmatmul.bf16.vlgmr.msra.gmra.mxu1 %v979_v24 }
 0x17c   : > { %1212 = vmatmul.bf16.vlgmr.msra.gmra.mxu2 %v978_v23  ;;  %1225 = vmatmul.bf16.vlgmr.msra.gmra.mxu3 %v979_v24 }
 0x180   : > { %v1273_v25 = vld.sshfl [vmem:[#allocation1] sm:$0xff pattern:$0x73625140]  ;;  %v1274_v26 = vld.sshfl [vmem:[#allocation1 + $0x8] sm:$0xff pattern:$0x73625140] }
 0x18b   : > { %1445 = vmatmul.bf16.vlgmr.msrb.gmra.mxu0 %v1273_v25  ;;  %1458 = vmatmul.bf16.vlgmr.msrb.gmra.mxu1 %v1274_v26 }
 0x18c   : > { %1471 = vmatmul.bf16.vlgmr.msrb.gmra.mxu2 %v1273_v25  ;;  %1484 = vmatmul.bf16.vlgmr.msrb.gmra.mxu3 %v1274_v26 }
 0x1f8   : > { %v1187_v27 = vpop.f32.mrf.mxu0  ;;  %v1200_v28 = vpop.f32.mrf.mxu1 }
 0x1f9   : > { %v1188_v43 = vadd.f32 %v1187_v27, %v1014_v35 }
 0x1fb   : > { %v1201_v38 = vadd.f32 %v1200_v28, %v1188_v43 }
 0x1fd   : > { %v1230_v54 = vmax.f32 %v1201_v38, 0.0 }
 0x1ff   : > { %v1213_v29 = vpop.f32.mrf.mxu2  ;;  %v1226_v30 = vpop.f32.mrf.mxu3 }
 0x200   : > { %v1189_v31 = vpop.f32.mrf.mxu0  ;;  %v1202_v32 = vpop.f32.mrf.mxu1  ;;  %v1214_v44 = vadd.f32 %v1213_v29, %v1015_v39 }
 0x202   : > { %v1227_v49 = vadd.f32 %v1226_v30, %v1214_v44 }
 0x204   : > { %v1231_v56 = vmax.f32 %v1227_v49, 0.0 }
 0x207   : > { %v1215_v36 = vpop.f32.mrf.mxu2  ;;  %v1228_v37 = vpop.f32.mrf.mxu3 }
 0x208   : > { %v1446_v40 = vpop.f32.mrf.mxu0  ;;  %v1459_v41 = vpop.f32.mrf.mxu1 }
 0x209   : > { %v1447_v42 = vadd.f32 %v1446_v40, %v1267_v11 }
 0x20b   : > { %v1460_v45 = vadd.f32 %v1459_v41, %v1447_v42 }
 0x20d   : > { %v1489_v50 = vmax.f32 %v1460_v45, 0.0 }
 0x20f   : > { %v1472_v47 = vpop.f32.mrf.mxu2  ;;  %v1485_v48 = vpop.f32.mrf.mxu3  ;;  %v1491_v57 = vadd.f32 %v1489_v50, %v1230_v54 }
 0x210   : > { %v1473_v51 = vadd.f32 %v1472_v47, %v1268_v46  ;;  %v1448_v52 = vpop.f32.mrf.mxu0  ;;  %v1461_v53 = vpop.f32.mrf.mxu1 }
 0x211   : > { %v1493_v62 = vmax.f32 %v1491_v57, 0.0 }
 0x212   : > { %v1486_v55 = vadd.f32 %v1485_v48, %v1473_v51 }
 0x214   : > { %v1490_v58 = vmax.f32 %v1486_v55, 0.0 }
 0x216   : > { %v1492_v59 = vadd.f32 %v1490_v58, %v1231_v56 }
 0x217   : > { %v1474_v60 = vpop.f32.mrf.mxu2  ;;  %v1487_v61 = vpop.f32.mrf.mxu3 }
 0x218   : > { %v1494_v63 = vmax.f32 %v1492_v59, 0.0 }
 0x21a   : > { %v1495_v1 = vpack.c.bf16 %v1494_v63, %v1493_v62 }
 0x21c   : > { %v1497_v2 = vrot.slane %v1495_v1, 2 }
 0x21e   : > { %v1500_v3 = vsel %vm948_vm2, %v1495_v1, %v1497_v2 }
 0x21f   : > { %1502 = vst [vmem:[%s402_s13] sm:$0xf] %v1500_v3 }
 0x220 PF: > { %s19_s11 = sadd.s32 1, %s2330_s11   ;;  %s3289_s30 = smov %s2326_s10 }
 0x221   : > { %p16_p5 = scmp.ge.s32.totalorder %s19_s11, 4   ;;  %s3290_s10 = smov %s3292_s12 }
 0x223   :  { %18 = sbr.rel (!%p16_p5) target bundleno = 2 (0x2), region = 89 }

// kernel: _lambda_.142
= control target key start
LH: loop header
LB: loop body
LE: loop exit
PB: predicated region body
PF: predicated region fallthrough
CT: control target
= control target key end

     0   :  { %s1009_s1 = inlined_call_operand.vmem [shape: bf16[256,384], index: 1, kind: input, shape index: {}]   ;;  %s1010_s0 = inlined_call_operand.vmem [shape: bf16[8,256], index: 0, kind: input, shape index: {}]   ;;  %s1011_s2 = inlined_call_operand.vmem [shape: f32[1,384], index: 2, kind: input, shape index: {}]   ;;  %s1012_s3 = inlined_call_operand.vmem [shape: bf16[8,384], index: 3, kind: output, shape index: {}]  }
   0x1   :  { %v525_v0 = vld [vmem:[%s1009_s1 + $0xa8] sm:$0xf]  ;;  %v653_v1 = vld [vmem:[%s1009_s1 + $0xb0] sm:$0xf0]  ;;  %v513_v5 = vld [vmem:[%s1009_s1 + $0x90] sm:$0xf] }
   0x2   :  { %v621_v2 = vld [vmem:[%s1009_s1 + $0x168] sm:$0xf]  ;;  %v526_v3 = vor.u32 %v653_v1, %v525_v0  ;;  %v677_v4 = vld [vmem:[%s1009_s1 + $0x170] sm:$0xf0]  ;;  %v650_v6 = vld [vmem:[%s1009_s1 + $0x98] sm:$0xf0] }
   0x3   :  { %v622_v7 = vor.u32 %v677_v4, %v621_v2  ;;  %v609_v8 = vld [vmem:[%s1009_s1 + $0x150] sm:$0xf]  ;;  %v674_v9 = vld [vmem:[%s1009_s1 + $0x158] sm:$0xf0]  ;;  %v652_v10 = vld [vmem:[%s1009_s1 + $0xac] sm:$0xf]  ;;  %v514_v11 = vor.u32 %v650_v6, %v513_v5 }
   0x4   :  { %350 = vmatpush.bf16.msra.mxu0 %v526_v3  ;;  %v527_v12 = vld [vmem:[%s1009_s1 + $0xb4] sm:$0xf0]  ;;  %v647_v14 = vld [vmem:[%s1009_s1 + $0x80] sm:$0xf0]  ;;  %v610_v15 = vor.u32 %v674_v9, %v609_v8  ;;  %v676_v19 = vld [vmem:[%s1009_s1 + $0x16c] sm:$0xf] }
   0x5   :  { %v501_v13 = vld [vmem:[%s1009_s1 + $0x78] sm:$0xf]  ;;  %363 = vmatpush.bf16.msra.mxu1 %v622_v7  ;;  %v530_v16 = vor.u32 %v652_v10, %v527_v12  ;;  %v671_v18 = vld [vmem:[%s1009_s1 + $0x140] sm:$0xf0]  ;;  %v649_v21 = vld [vmem:[%s1009_s1 + $0x94] sm:$0xf] }
   0x6   :  { %v597_v17 = vld [vmem:[%s1009_s1 + $0x138] sm:$0xf]  ;;  %v515_v22 = vld [vmem:[%s1009_s1 + $0x9c] sm:$0xf0]  ;;  %v502_v25 = vor.u32 %v647_v14, %v501_v13  ;;  %v673_v27 = vld [vmem:[%s1009_s1 + $0x154] sm:$0xf] }
   0x7   :  { %v623_v20 = vld [vmem:[%s1009_s1 + $0x174] sm:$0xf0]  ;;  %376 = vmatpush.bf16.msra.mxu2 %v530_v16  ;;  %v518_v24 = vor.u32 %v649_v21, %v515_v22  ;;  %v489_v26 = vld [vmem:[%s1009_s1 + $0x60] sm:$0xf]  ;;  %v598_v29 = vor.u32 %v671_v18, %v597_v17  ;;  %v644_v30 = vld [vmem:[%s1009_s1 + $0x68] sm:$0xf0] }
   0x8   :  { %v626_v23 = vor.u32 %v676_v19, %v623_v20  ;;  %351 = vmatpush.bf16.msra.mxu0 %v514_v11  ;;  %v611_v28 = vld [vmem:[%s1009_s1 + $0x15c] sm:$0xf0]  ;;  %v646_v32 = vld [vmem:[%s1009_s1 + $0x7c] sm:$0xf]  ;;  %v503_v33 = vld [vmem:[%s1009_s1 + $0x84] sm:$0xf0]  ;;  %v490_v39 = vor.u32 %v644_v30, %v489_v26 }
   0x9   :  { %364 = vmatpush.bf16.msra.mxu1 %v610_v15  ;;  %v614_v31 = vor.u32 %v673_v27, %v611_v28  ;;  %v585_v34 = vld [vmem:[%s1009_s1 + $0x120] sm:$0xf]  ;;  %v668_v35 = vld [vmem:[%s1009_s1 + $0x128] sm:$0xf0]  ;;  %v506_v36 = vor.u32 %v646_v32, %v503_v33  ;;  %v670_v37 = vld [vmem:[%s1009_s1 + $0x13c] sm:$0xf] }
   0xa   :  { %389 = vmatpush.bf16.msra.mxu3 %v626_v23  ;;  %v599_v38 = vld [vmem:[%s1009_s1 + $0x144] sm:$0xf0]  ;;  %v643_v40 = vld [vmem:[%s1009_s1 + $0x64] sm:$0xf]  ;;  %v491_v41 = vld [vmem:[%s1009_s1 + $0x6c] sm:$0xf0]  ;;  %v586_v42 = vor.u32 %v668_v35, %v585_v34 }
   0xb   :  { %377 = vmatpush.bf16.msra.mxu2 %v518_v24  ;;  %v477_v43 = vld [vmem:[%s1009_s1 + $0x48] sm:$0xf]  ;;  %v641_v44 = vld [vmem:[%s1009_s1 + $0x50] sm:$0xf0]  ;;  %v602_v46 = vor.u32 %v670_v37, %v599_v38  ;;  %v667_v48 = vld [vmem:[%s1009_s1 + $0x124] sm:$0xf]  ;;  %v494_v50 = vor.u32 %v643_v40, %v491_v41 }
   0xc   :  { %352 = vmatpush.bf16.msra.mxu0 %v502_v25  ;;  %v573_v45 = vld [vmem:[%s1009_s1 + $0x108] sm:$0xf]  ;;  %v665_v47 = vld [vmem:[%s1009_s1 + $0x110] sm:$0xf0]  ;;  %v587_v49 = vld [vmem:[%s1009_s1 + $0x12c] sm:$0xf0]  ;;  %v478_v51 = vor.u32 %v641_v44, %v477_v43 }
   0xd   :  { %365 = vmatpush.bf16.msra.mxu1 %v598_v29  ;;  %v640_v52 = vld [vmem:[%s1009_s1 + $0x4c] sm:$0xf]  ;;  %v479_v53 = vld [vmem:[%s1009_s1 + $0x54] sm:$0xf0]  ;;  %v574_v54 = vor.u32 %v665_v47, %v573_v45  ;;  %v465_v55 = vld [vmem:[%s1009_s1 + $0x30] sm:$0xf]  ;;  %v590_v58 = vor.u32 %v667_v48, %v587_v49 }
   0xe   :  { %390 = vmatpush.bf16.msra.mxu3 %v614_v31  ;;  %v638_v56 = vld [vmem:[%s1009_s1 + $0x38] sm:$0xf0]  ;;  %v561_v57 = vld [vmem:[%s1009_s1 + $0xf0] sm:$0xf]  ;;  %v664_v60 = vld [vmem:[%s1009_s1 + $0x10c] sm:$0xf]  ;;  %v482_v62 = vor.u32 %v640_v52, %v479_v53 }
   0xf   :  { %378 = vmatpush.bf16.msra.mxu2 %v506_v36  ;;  %v662_v59 = vld [vmem:[%s1009_s1 + $0xf8] sm:$0xf0]  ;;  %v575_v61 = vld [vmem:[%s1009_s1 + $0x114] sm:$0xf0]  ;;  %v466_v63 = vor.u32 %v638_v56, %v465_v55  ;;  %v637_v0 = vld [vmem:[%s1009_s1 + $0x34] sm:$0xf] }
  0x10   :  { %353 = vmatpush.bf16.msra.mxu0 %v490_v39  ;;  %v467_v1 = vld [vmem:[%s1009_s1 + $0x3c] sm:$0xf0]  ;;  %v562_v2 = vor.u32 %v662_v59, %v561_v57  ;;  %v453_v3 = vld [vmem:[%s1009_s1 + $0x18] sm:$0xf]  ;;  %v635_v4 = vld [vmem:[%s1009_s1 + $0x20] sm:$0xf0]  ;;  %v578_v6 = vor.u32 %v664_v60, %v575_v61 }
  0x11   :  { %366 = vmatpush.bf16.msra.mxu1 %v586_v42  ;;  %v549_v5 = vld [vmem:[%s1009_s1 + $0xd8] sm:$0xf]  ;;  %v659_v7 = vld [vmem:[%s1009_s1 + $0xe0] sm:$0xf0]  ;;  %v661_v8 = vld [vmem:[%s1009_s1 + $0xf4] sm:$0xf]  ;;  %v470_v10 = vor.u32 %v637_v0, %v467_v1  ;;  %v454_v12 = vor.u32 %v635_v4, %v453_v3 }
  0x12   :  { %391 = vmatpush.bf16.msra.mxu3 %v602_v46  ;;  %v563_v9 = vld [vmem:[%s1009_s1 + $0xfc] sm:$0xf0]  ;;  %v634_v13 = vld [vmem:[%s1009_s1 + $0x1c] sm:$0xf]  ;;  %v455_v14 = vld [vmem:[%s1009_s1 + $0x24] sm:$0xf0]  ;;  %v550_v16 = vor.u32 %v659_v7, %v549_v5 }
  0x13   :  { %379 = vmatpush.bf16.msra.mxu2 %v494_v50  ;;  %v441_v11 = vld [vmem:[%s1009_s1] sm:$0xf]  ;;  %v632_v17 = vld [vmem:[%s1009_s1 + $0x8] sm:$0xf0]  ;;  %v566_v20 = vor.u32 %v661_v8, %v563_v9  ;;  %v533_v21 = vld [vmem:[%s1009_s1 + $0xb0] sm:$0xf]  ;;  %v458_v25 = vor.u32 %v634_v13, %v455_v14 }
  0x14   :  { %354 = vmatpush.bf16.msra.mxu0 %v478_v51  ;;  %v14_v15 = vld [vmem:[%s1010_s0] sm:$0xff]  ;;  %v656_v19 = vld [vmem:[%s1009_s1 + $0xc8] sm:$0xf0]  ;;  %v654_v22 = vld [vmem:[%s1009_s1 + $0xb8] sm:$0xf0]  ;;  %v442_v29 = vor.u32 %v632_v17, %v441_v11 }
  0x15   :  { %367 = vmatpush.bf16.msra.mxu1 %v574_v54  ;;  %v537_v18 = vld [vmem:[%s1009_s1 + $0xc0] sm:$0xf]  ;;  %v629_v23 = vld [vmem:[%s1009_s1 + $0x170] sm:$0xf]  ;;  %v678_v24 = vld [vmem:[%s1009_s1 + $0x178] sm:$0xf0]  ;;  %v88_v28 = vunpack.c.l.b16 %v14_v15  ;;  %v89_v32 = vunpack.c.h.b16 %v14_v15  ;;  %v534_v34 = vor.u32 %v654_v22, %v533_v21 }
  0x16   :  { %392 = vmatpush.bf16.msra.mxu3 %v590_v58  ;;  %v658_v26 = vld [vmem:[%s1009_s1 + $0xdc] sm:$0xf]  ;;  %v551_v27 = vld [vmem:[%s1009_s1 + $0xe4] sm:$0xf0]  ;;  %v631_v30 = vld [vmem:[%s1009_s1 + $0x4] sm:$0xf]  ;;  %v538_v33 = vor.u32 %v656_v19, %v537_v18  ;;  %v630_v35 = vor.u32 %v678_v24, %v629_v23 }
  0x17   :  { %380 = vmatpush.bf16.msra.mxu2 %v482_v62  ;;  %v443_v31 = vld [vmem:[%s1009_s1 + $0xc] sm:$0xf0]  ;;  %v554_v36 = vor.u32 %v658_v26, %v551_v27  ;;  %v521_v37 = vld [vmem:[%s1009_s1 + $0x98] sm:$0xf]  ;;  %v651_v38 = vld [vmem:[%s1009_s1 + $0xa0] sm:$0xf0]  ;;  %v912_v42 = vpack.c.b16 %v88_v28, %v88_v28  ;;  %v920_v45 = vpack.c.b16 %v89_v32, %v89_v32 }
  0x18   :  { %355 = vmatpush.bf16.msra.mxu0 %v466_v63  ;;  %v617_v39 = vld [vmem:[%s1009_s1 + $0x158] sm:$0xf]  ;;  %v675_v40 = vld [vmem:[%s1009_s1 + $0x160] sm:$0xf0]  ;;  %v446_v41 = vor.u32 %v631_v30, %v443_v31  ;;  %v539_v44 = vld [vmem:[%s1009_s1 + $0xcc] sm:$0xf0]  ;;  %v522_v46 = vor.u32 %v651_v38, %v521_v37 }
  0x19   :  { %368 = vmatpush.bf16.msra.mxu1 %v562_v2  ;;  %v655_v43 = vld [vmem:[%s1009_s1 + $0xc4] sm:$0xf]  ;;  %v618_v47 = vor.u32 %v675_v40, %v617_v39  ;;  %v509_v49 = vld [vmem:[%s1009_s1 + $0x80] sm:$0xf]  ;;  %v648_v50 = vld [vmem:[%s1009_s1 + $0x88] sm:$0xf0] }
  0x1a   :  { %393 = vmatpush.bf16.msra.mxu3 %v578_v6  ;;  %v542_v48 = vor.u32 %v655_v43, %v539_v44  ;;  %v605_v51 = vld [vmem:[%s1009_s1 + $0x140] sm:$0xf]  ;;  %v672_v52 = vld [vmem:[%s1009_s1 + $0x148] sm:$0xf0]  ;;  %v510_v53 = vor.u32 %v648_v50, %v509_v49  ;;  %v497_v55 = vld [vmem:[%s1009_s1 + $0x68] sm:$0xf] }
  0x1b   :  { %381 = vmatpush.bf16.msra.mxu2 %v470_v10  ;;  %v606_v54 = vor.u32 %v672_v52, %v605_v51  ;;  %v645_v56 = vld [vmem:[%s1009_s1 + $0x70] sm:$0xf0]  ;;  %v593_v57 = vld [vmem:[%s1009_s1 + $0x128] sm:$0xf]  ;;  %v485_v61 = vld [vmem:[%s1009_s1 + $0x50] sm:$0xf] }
  0x1c   :  { %356 = vmatpush.bf16.msra.mxu0 %v454_v12  ;;  %v669_v58 = vld [vmem:[%s1009_s1 + $0x130] sm:$0xf0]  ;;  %v498_v59 = vor.u32 %v645_v56, %v497_v55  ;;  %v642_v62 = vld [vmem:[%s1009_s1 + $0x58] sm:$0xf0]  ;;  %v581_v63 = vld [vmem:[%s1009_s1 + $0x110] sm:$0xf] }
  0x1d   :  { %369 = vmatpush.bf16.msra.mxu1 %v550_v16  ;;  %v594_v60 = vor.u32 %v669_v58, %v593_v57  ;;  %v666_v0 = vld [vmem:[%s1009_s1 + $0x118] sm:$0xf0]  ;;  %v486_v1 = vor.u32 %v642_v62, %v485_v61  ;;  %v473_v3 = vld [vmem:[%s1009_s1 + $0x38] sm:$0xf]  ;;  %v639_v4 = vld [vmem:[%s1009_s1 + $0x40] sm:$0xf0] }
  0x1e   :  { %394 = vmatpush.bf16.msra.mxu3 %v566_v20  ;;  %v582_v2 = vor.u32 %v666_v0, %v581_v63  ;;  %v569_v5 = vld [vmem:[%s1009_s1 + $0xf8] sm:$0xf]  ;;  %v663_v6 = vld [vmem:[%s1009_s1 + $0x100] sm:$0xf0]  ;;  %v474_v7 = vor.u32 %v639_v4, %v473_v3  ;;  %v461_v9 = vld [vmem:[%s1009_s1 + $0x20] sm:$0xf] }
  0x1f   :  { %382 = vmatpush.bf16.msra.mxu2 %v458_v25  ;;  %v570_v8 = vor.u32 %v663_v6, %v569_v5  ;;  %v636_v10 = vld [vmem:[%s1009_s1 + $0x28] sm:$0xf0]  ;;  %v557_v11 = vld [vmem:[%s1009_s1 + $0xe0] sm:$0xf]  ;;  %v449_v15 = vld [vmem:[%s1009_s1 + $0x8] sm:$0xf] }
  0x20   :  { %357 = vmatpush.bf16.msra.mxu0 %v442_v29  ;;  %v660_v12 = vld [vmem:[%s1009_s1 + $0xe8] sm:$0xf0]  ;;  %v462_v13 = vor.u32 %v636_v10, %v461_v9  ;;  %v633_v16 = vld [vmem:[%s1009_s1 + $0x10] sm:$0xf0]  ;;  %v545_v17 = vld [vmem:[%s1009_s1 + $0xc8] sm:$0xf] }
  0x21   :  { %370 = vmatpush.bf16.msra.mxu1 %v538_v33  ;;  %v558_v14 = vor.u32 %v660_v12, %v557_v11  ;;  %v657_v18 = vld [vmem:[%s1009_s1 + $0xd0] sm:$0xf0]  ;;  %v450_v19 = vor.u32 %v633_v16, %v449_v15  ;;  %v79_v21 = vld [vmem:[%s1011_s2] sm:$0x7] }
  0x22   :  { %395 = vmatpush.bf16.msra.mxu3 %v554_v36  ;;  %v546_v20 = vor.u32 %v657_v18, %v545_v17  ;;  %v81_v23 = vperm.slane %v79_v21, 0  ;;  %v82_v26 = vperm.slane %v79_v21, 1  ;;  %v83_v39 = vperm.slane %v79_v21, 2 }
  0x23   :  { %383 = vmatpush.bf16.msra.mxu2 %v446_v41  ;;  %358 = vmatmul.bf16.vlgmr.msra.gmra.mxu0 %v912_v42 }
  0x24   :  { %402 = vmatpush.bf16.msrb.mxu0 %v534_v34  ;;  %371 = vmatmul.bf16.vlgmr.msra.gmra.mxu1 %v920_v45 }
  0x25   :  { %415 = vmatpush.bf16.msrb.mxu1 %v630_v35 }
  0x26   :  { %396 = vmatpush.bf16.msra.mxu3 %v542_v48  ;;  %384 = vmatmul.bf16.vlgmr.msra.gmra.mxu2 %v912_v42 }
  0x28   :  { %403 = vmatpush.bf16.msrb.mxu0 %v522_v46 }
  0x29   :  { %416 = vmatpush.bf16.msrb.mxu1 %v618_v47  ;;  %397 = vmatmul.bf16.vlgmr.msra.gmra.mxu3 %v920_v45 }
  0x2c   :  { %404 = vmatpush.bf16.msrb.mxu0 %v510_v53 }
  0x2d   :  { %417 = vmatpush.bf16.msrb.mxu1 %v606_v54 }
  0x30   :  { %405 = vmatpush.bf16.msrb.mxu0 %v498_v59 }
  0x31   :  { %418 = vmatpush.bf16.msrb.mxu1 %v594_v60 }
  0x34   :  { %406 = vmatpush.bf16.msrb.mxu0 %v486_v1 }
  0x35   :  { %419 = vmatpush.bf16.msrb.mxu1 %v582_v2 }
  0x38   :  { %407 = vmatpush.bf16.msrb.mxu0 %v474_v7 }
  0x39   :  { %420 = vmatpush.bf16.msrb.mxu1 %v570_v8 }
  0x3c   :  { %408 = vmatpush.bf16.msrb.mxu0 %v462_v13 }
  0x3d   :  { %421 = vmatpush.bf16.msrb.mxu1 %v558_v14 }
  0x40   :  { %409 = vmatpush.bf16.msrb.mxu0 %v450_v19 }
  0x41   :  { %422 = vmatpush.bf16.msrb.mxu1 %v546_v20 }
  0x43   :  { %410 = vmatmul.bf16.vlgmr.msrb.gmra.mxu0 %v912_v42 }
  0x44   :  { %423 = vmatmul.bf16.vlgmr.msrb.gmra.mxu1 %v920_v45 }
  0xa0   :  { %v359_v22 = vpop.f32.mrf.mxu0 }
  0xa1   :  { %v372_v24 = vpop.f32.mrf.mxu1  ;;  %v360_v25 = vadd.f32 %v359_v22, %v81_v23 }
  0xa3   :  { %v373_v28 = vadd.f32 %v372_v24, %v360_v25 }
  0xa5   :  { %v428_v33 = vmax.f32 %v373_v28, 0.0 }
  0xa8   :  { %v361_v27 = vpop.f32.mrf.mxu0 }
  0xa9   :  { %v374_v29 = vpop.f32.mrf.mxu1  ;;  %v385_v30 = vpop.f32.mrf.mxu2 }
  0xaa   :  { %v386_v31 = vadd.f32 %v385_v30, %v82_v26 }
  0xac   :  { %v398_v32 = vpop.f32.mrf.mxu3 }
  0xad   :  { %v399_v34 = vadd.f32 %v398_v32, %v386_v31 }
  0xaf   :  { %v429_v35 = vmax.f32 %v399_v34, 0.0 }
  0xb1   :  { %v431_v36 = vpack.c.bf16 %v429_v35, %v428_v33  ;;  %v387_v37 = vpop.f32.mrf.mxu2 }
  0xb3   :  { %433 = vst [vmem:[%s1012_s3] sm:$0xff] %v431_v36 }
  0xb4   :  { %v400_v38 = vpop.f32.mrf.mxu3 }
  0xc0   :  { %v411_v40 = vpop.f32.mrf.mxu0 }
  0xc1   :  { %v412_v41 = vadd.f32 %v411_v40, %v83_v39  ;;  %v424_v42 = vpop.f32.mrf.mxu1 }
  0xc3   :  { %v425_v43 = vadd.f32 %v424_v42, %v412_v41 }
  0xc5   :  { %v430_v44 = vmax.f32 %v425_v43, 0.0 }
  0xc7   :  { %v432_v45 = vpack.c.bf16 %v430_v44, %v430_v44 }
  0xc8   :  { %v413_v46 = vpop.f32.mrf.mxu0 }
  0xc9   :  { %434 = vst [vmem:[%s1012_s3 + $0x8] sm:$0xf] %v432_v45  ;;  %v426_v47 = vpop.f32.mrf.mxu1 }

// kernel: _lambda_.143
= control target key start
LH: loop header
LB: loop body
LE: loop exit
PB: predicated region body
PF: predicated region fallthrough
CT: control target
= control target key end

     0   :  { %vm1148_vm0 = vcmask 261120   ;;  %vm1467_vm1 = vcmask 1043456   ;;  %vm1468_vm2 = vcmask 261124   ;;  %s3559_s1 = inlined_call_operand.vmem [shape: bf16[1440,160], index: 1, kind: input, shape index: {}]   ;;  %s3560_s0 = inlined_call_operand.vmem [shape: bf16[8,1440], index: 0, kind: input, shape index: {}]   ;;  %s3561_s2 = inlined_call_operand.vmem [shape: f32[1,160], index: 2, kind: input, shape index: {}]   ;;  %s3562_s3 = inlined_call_operand.vmem [shape: bf16[8,160], index: 3, kind: output, shape index: {}]  }
   0x1   :  { %v1533_v0 = vld [vmem:[%s3559_s1 + $0x70] sm:$0xf]  ;;  %v2212_v1 = vld [vmem:[%s3559_s1 + $0x74] sm:$0xf0]  ;;  %v1525_v11 = vld [vmem:[%s3559_s1 + $0x60] sm:$0xf] }
   0x2   :  { %v1597_v2 = vld [vmem:[%s3559_s1 + $0xf0] sm:$0xf]  ;;  %v1534_v3 = vor.u32 %v2212_v1, %v1533_v0  ;;  %v2228_v4 = vld [vmem:[%s3559_s1 + $0xf4] sm:$0xf0]  ;;  %v2210_v13 = vld [vmem:[%s3559_s1 + $0x64] sm:$0xf0] }
   0x3   :  { %v1661_v5 = vld [vmem:[%s3559_s1 + $0x170] sm:$0xf]  ;;  %v2244_v6 = vld [vmem:[%s3559_s1 + $0x174] sm:$0xf0]  ;;  %v1598_v7 = vor.u32 %v2228_v4, %v1597_v2  ;;  %v1589_v14 = vld [vmem:[%s3559_s1 + $0xe0] sm:$0xf]  ;;  %v1526_v16 = vor.u32 %v2210_v13, %v1525_v11 }
   0x4   :  { %v1662_v8 = vor.u32 %v2244_v6, %v1661_v5  ;;  %v1725_v9 = vld [vmem:[%s3559_s1 + $0x1f0] sm:$0xf]  ;;  %v2260_v10 = vld [vmem:[%s3559_s1 + $0x1f4] sm:$0xf0]  ;;  %1152 = vmatpush.bf16.msra.mxu0 %v1534_v3  ;;  %v2226_v15 = vld [vmem:[%s3559_s1 + $0xe4] sm:$0xf0] }
   0x5   :  { %v1726_v12 = vor.u32 %v2260_v10, %v1725_v9  ;;  %1165 = vmatpush.bf16.msra.mxu1 %v1598_v7  ;;  %v1590_v17 = vor.u32 %v2226_v15, %v1589_v14  ;;  %v1653_v18 = vld [vmem:[%s3559_s1 + $0x160] sm:$0xf]  ;;  %v2242_v19 = vld [vmem:[%s3559_s1 + $0x164] sm:$0xf0]  ;;  %v1517_v23 = vld [vmem:[%s3559_s1 + $0x50] sm:$0xf] }
   0x6   :  { %1178 = vmatpush.bf16.msra.mxu2 %v1662_v8  ;;  %v1717_v20 = vld [vmem:[%s3559_s1 + $0x1e0] sm:$0xf]  ;;  %v1654_v21 = vor.u32 %v2242_v19, %v1653_v18  ;;  %v2258_v22 = vld [vmem:[%s3559_s1 + $0x1e4] sm:$0xf0]  ;;  %v2208_v24 = vld [vmem:[%s3559_s1 + $0x54] sm:$0xf0] }
   0x7   :  { %1191 = vmatpush.bf16.msra.mxu3 %v1726_v12  ;;  %v1718_v25 = vor.u32 %v2258_v22, %v1717_v20  ;;  %v1581_v26 = vld [vmem:[%s3559_s1 + $0xd0] sm:$0xf]  ;;  %v2224_v27 = vld [vmem:[%s3559_s1 + $0xd4] sm:$0xf0]  ;;  %v1518_v29 = vor.u32 %v2208_v24, %v1517_v23  ;;  %v1509_v35 = vld [vmem:[%s3559_s1 + $0x40] sm:$0xf] }
   0x8   :  { %v1645_v28 = vld [vmem:[%s3559_s1 + $0x150] sm:$0xf]  ;;  %1153 = vmatpush.bf16.msra.mxu0 %v1526_v16  ;;  %v2240_v30 = vld [vmem:[%s3559_s1 + $0x154] sm:$0xf0]  ;;  %v1582_v33 = vor.u32 %v2224_v27, %v1581_v26  ;;  %v2206_v36 = vld [vmem:[%s3559_s1 + $0x44] sm:$0xf0] }
   0x9   :  { %v1709_v31 = vld [vmem:[%s3559_s1 + $0x1d0] sm:$0xf]  ;;  %v2256_v32 = vld [vmem:[%s3559_s1 + $0x1d4] sm:$0xf0]  ;;  %1166 = vmatpush.bf16.msra.mxu1 %v1590_v17  ;;  %v1646_v34 = vor.u32 %v2240_v30, %v1645_v28  ;;  %v1573_v37 = vld [vmem:[%s3559_s1 + $0xc0] sm:$0xf]  ;;  %v1510_v44 = vor.u32 %v2206_v36, %v1509_v35 }
   0xa   :  { %1179 = vmatpush.bf16.msra.mxu2 %v1654_v21  ;;  %v1710_v38 = vor.u32 %v2256_v32, %v1709_v31  ;;  %v2222_v39 = vld [vmem:[%s3559_s1 + $0xc4] sm:$0xf0]  ;;  %v1637_v40 = vld [vmem:[%s3559_s1 + $0x140] sm:$0xf]  ;;  %v1501_v47 = vld [vmem:[%s3559_s1 + $0x30] sm:$0xf] }
   0xb   :  { %1192 = vmatpush.bf16.msra.mxu3 %v1718_v25  ;;  %v2238_v41 = vld [vmem:[%s3559_s1 + $0x144] sm:$0xf0]  ;;  %v1701_v42 = vld [vmem:[%s3559_s1 + $0x1c0] sm:$0xf]  ;;  %v1574_v45 = vor.u32 %v2222_v39, %v1573_v37  ;;  %v2204_v48 = vld [vmem:[%s3559_s1 + $0x34] sm:$0xf0] }
   0xc   :  { %v2254_v43 = vld [vmem:[%s3559_s1 + $0x1c4] sm:$0xf0]  ;;  %1154 = vmatpush.bf16.msra.mxu0 %v1518_v29  ;;  %v1638_v46 = vor.u32 %v2238_v41, %v1637_v40  ;;  %v1565_v49 = vld [vmem:[%s3559_s1 + $0xb0] sm:$0xf]  ;;  %v2220_v51 = vld [vmem:[%s3559_s1 + $0xb4] sm:$0xf0]  ;;  %v1502_v56 = vor.u32 %v2204_v48, %v1501_v47 }
   0xd   :  { %1167 = vmatpush.bf16.msra.mxu1 %v1582_v33  ;;  %v1702_v50 = vor.u32 %v2254_v43, %v1701_v42  ;;  %v1629_v52 = vld [vmem:[%s3559_s1 + $0x130] sm:$0xf]  ;;  %v2236_v53 = vld [vmem:[%s3559_s1 + $0x134] sm:$0xf0]  ;;  %v1566_v57 = vor.u32 %v2220_v51, %v1565_v49  ;;  %v1493_v59 = vld [vmem:[%s3559_s1 + $0x20] sm:$0xf] }
   0xe   :  { %1180 = vmatpush.bf16.msra.mxu2 %v1646_v34  ;;  %v1693_v54 = vld [vmem:[%s3559_s1 + $0x1b0] sm:$0xf]  ;;  %v2252_v55 = vld [vmem:[%s3559_s1 + $0x1b4] sm:$0xf0]  ;;  %v1630_v58 = vor.u32 %v2236_v53, %v1629_v52  ;;  %v2202_v60 = vld [vmem:[%s3559_s1 + $0x24] sm:$0xf0] }
   0xf   :  { %1193 = vmatpush.bf16.msra.mxu3 %v1710_v38  ;;  %v1557_v61 = vld [vmem:[%s3559_s1 + $0xa0] sm:$0xf]  ;;  %v1694_v62 = vor.u32 %v2252_v55, %v1693_v54  ;;  %v2218_v63 = vld [vmem:[%s3559_s1 + $0xa4] sm:$0xf0]  ;;  %v1494_v4 = vor.u32 %v2202_v60, %v1493_v59  ;;  %v1485_v7 = vld [vmem:[%s3559_s1 + $0x10] sm:$0xf] }
  0x10   :  { %1155 = vmatpush.bf16.msra.mxu0 %v1510_v44  ;;  %v1621_v0 = vld [vmem:[%s3559_s1 + $0x120] sm:$0xf]  ;;  %v2234_v1 = vld [vmem:[%s3559_s1 + $0x124] sm:$0xf0]  ;;  %v1558_v5 = vor.u32 %v2218_v63, %v1557_v61  ;;  %v2200_v8 = vld [vmem:[%s3559_s1 + $0x14] sm:$0xf0] }
  0x11   :  { %1168 = vmatpush.bf16.msra.mxu1 %v1574_v45  ;;  %v1685_v2 = vld [vmem:[%s3559_s1 + $0x1a0] sm:$0xf]  ;;  %v2250_v3 = vld [vmem:[%s3559_s1 + $0x1a4] sm:$0xf0]  ;;  %v1622_v6 = vor.u32 %v2234_v1, %v1621_v0  ;;  %v1549_v9 = vld [vmem:[%s3559_s1 + $0x90] sm:$0xf]  ;;  %v1486_v16 = vor.u32 %v2200_v8, %v1485_v7 }
  0x12   :  { %1181 = vmatpush.bf16.msra.mxu2 %v1638_v46  ;;  %v1686_v10 = vor.u32 %v2250_v3, %v1685_v2  ;;  %v2216_v11 = vld [vmem:[%s3559_s1 + $0x94] sm:$0xf0]  ;;  %v1613_v12 = vld [vmem:[%s3559_s1 + $0x110] sm:$0xf]  ;;  %v1477_v17 = vld [vmem:[%s3559_s1] sm:$0xf] }
  0x13   :  { %1194 = vmatpush.bf16.msra.mxu3 %v1702_v50  ;;  %v2232_v13 = vld [vmem:[%s3559_s1 + $0x114] sm:$0xf0]  ;;  %v1677_v14 = vld [vmem:[%s3559_s1 + $0x190] sm:$0xf]  ;;  %v2198_v18 = vld [vmem:[%s3559_s1 + $0x4] sm:$0xf0]  ;;  %v1550_v19 = vor.u32 %v2216_v11, %v1549_v9 }
  0x14   :  { %1156 = vmatpush.bf16.msra.mxu0 %v1502_v56  ;;  %v2248_v15 = vld [vmem:[%s3559_s1 + $0x194] sm:$0xf0]  ;;  %v1614_v20 = vor.u32 %v2232_v13, %v1613_v12  ;;  %v1541_v21 = vld [vmem:[%s3559_s1 + $0x80] sm:$0xf]  ;;  %v2214_v22 = vld [vmem:[%s3559_s1 + $0x84] sm:$0xf0]  ;;  %v1478_v31 = vor.u32 %v2198_v18, %v1477_v17 }
  0x15   :  { %1169 = vmatpush.bf16.msra.mxu1 %v1566_v57  ;;  %v1605_v23 = vld [vmem:[%s3559_s1 + $0x100] sm:$0xf]  ;;  %v1678_v24 = vor.u32 %v2248_v15, %v1677_v14  ;;  %v2230_v25 = vld [vmem:[%s3559_s1 + $0x104] sm:$0xf0]  ;;  %v1789_v28 = vld [vmem:[%s3559_s1 + $0x270] sm:$0xf]  ;;  %v1542_v35 = vor.u32 %v2214_v22, %v1541_v21 }
  0x16   :  { %1182 = vmatpush.bf16.msra.mxu2 %v1630_v58  ;;  %v1669_v26 = vld [vmem:[%s3559_s1 + $0x180] sm:$0xf]  ;;  %v2246_v27 = vld [vmem:[%s3559_s1 + $0x184] sm:$0xf0]  ;;  %v2276_v29 = vld [vmem:[%s3559_s1 + $0x274] sm:$0xf0]  ;;  %v1606_v36 = vor.u32 %v2230_v25, %v1605_v23 }
  0x17   :  { %1195 = vmatpush.bf16.msra.mxu3 %v1694_v62  ;;  %v1853_v30 = vld [vmem:[%s3559_s1 + $0x2f0] sm:$0xf]  ;;  %v2292_v32 = vld [vmem:[%s3559_s1 + $0x2f4] sm:$0xf0]  ;;  %v1670_v39 = vor.u32 %v2246_v27, %v1669_v26  ;;  %v1790_v40 = vor.u32 %v2276_v29, %v1789_v28  ;;  %v1781_v43 = vld [vmem:[%s3559_s1 + $0x260] sm:$0xf] }
  0x18   :  { %1157 = vmatpush.bf16.msra.mxu0 %v1494_v4  ;;  %v1917_v33 = vld [vmem:[%s3559_s1 + $0x370] sm:$0xf]  ;;  %v2308_v34 = vld [vmem:[%s3559_s1 + $0x374] sm:$0xf0]  ;;  %v1854_v41 = vor.u32 %v2292_v32, %v1853_v30  ;;  %v2274_v44 = vld [vmem:[%s3559_s1 + $0x264] sm:$0xf0] }
  0x19   :  { %1170 = vmatpush.bf16.msra.mxu1 %v1558_v5  ;;  %v1981_v37 = vld [vmem:[%s3559_s1 + $0x3f0] sm:$0xf]  ;;  %v2324_v38 = vld [vmem:[%s3559_s1 + $0x3f4] sm:$0xf0]  ;;  %v1918_v42 = vor.u32 %v2308_v34, %v1917_v33  ;;  %v1845_v45 = vld [vmem:[%s3559_s1 + $0x2e0] sm:$0xf]  ;;  %v1782_v52 = vor.u32 %v2274_v44, %v1781_v43 }
  0x1a   :  { %1183 = vmatpush.bf16.msra.mxu2 %v1622_v6  ;;  %v1982_v46 = vor.u32 %v2324_v38, %v1981_v37  ;;  %v2290_v47 = vld [vmem:[%s3559_s1 + $0x2e4] sm:$0xf0]  ;;  %v1909_v48 = vld [vmem:[%s3559_s1 + $0x360] sm:$0xf]  ;;  %v1773_v53 = vld [vmem:[%s3559_s1 + $0x250] sm:$0xf] }
  0x1b   :  { %1196 = vmatpush.bf16.msra.mxu3 %v1686_v10  ;;  %v2306_v49 = vld [vmem:[%s3559_s1 + $0x364] sm:$0xf0]  ;;  %v1973_v50 = vld [vmem:[%s3559_s1 + $0x3e0] sm:$0xf]  ;;  %v1846_v54 = vor.u32 %v2290_v47, %v1845_v45  ;;  %v2272_v56 = vld [vmem:[%s3559_s1 + $0x254] sm:$0xf0] }
  0x1c   :  { %1158 = vmatpush.bf16.msra.mxu0 %v1486_v16  ;;  %v2322_v51 = vld [vmem:[%s3559_s1 + $0x3e4] sm:$0xf0]  ;;  %v1910_v55 = vor.u32 %v2306_v49, %v1909_v48  ;;  %v1837_v57 = vld [vmem:[%s3559_s1 + $0x2d0] sm:$0xf]  ;;  %v2288_v60 = vld [vmem:[%s3559_s1 + $0x2d4] sm:$0xf0]  ;;  %v1774_v3 = vor.u32 %v2272_v56, %v1773_v53 }
  0x1d   :  { %1171 = vmatpush.bf16.msra.mxu1 %v1550_v19  ;;  %v16_v58 = vld [vmem:[%s3560_s0 + $0x8] sm:$0xff]  ;;  %v1974_v59 = vor.u32 %v2322_v51, %v1973_v50  ;;  %v1901_v61 = vld [vmem:[%s3559_s1 + $0x350] sm:$0xf]  ;;  %v2304_v62 = vld [vmem:[%s3559_s1 + $0x354] sm:$0xf0]  ;;  %v1838_v7 = vor.u32 %v2288_v60, %v1837_v57 }
  0x1e   :  { %1184 = vmatpush.bf16.msra.mxu2 %v1614_v20  ;;  %v216_v63 = vunpack.c.h.b16 %v16_v58  ;;  %v215_v0 = vunpack.c.l.b16 %v16_v58  ;;  %v1965_v1 = vld [vmem:[%s3559_s1 + $0x3d0] sm:$0xf]  ;;  %v2320_v2 = vld [vmem:[%s3559_s1 + $0x3d4] sm:$0xf0]  ;;  %v15_v6 = vld [vmem:[%s3560_s0] sm:$0xff]  ;;  %v1902_v8 = vor.u32 %v2304_v62, %v1901_v61 }
  0x1f   :  { %1197 = vmatpush.bf16.msra.mxu3 %v1678_v24  ;;  %v1765_v9 = vld [vmem:[%s3559_s1 + $0x240] sm:$0xf]  ;;  %v2270_v10 = vld [vmem:[%s3559_s1 + $0x244] sm:$0xf0]  ;;  %v213_v12 = vunpack.c.l.b16 %v15_v6  ;;  %v214_v13 = vunpack.c.h.b16 %v15_v6  ;;  %v1966_v14 = vor.u32 %v2320_v2, %v1965_v1  ;;  %v1757_v25 = vld [vmem:[%s3559_s1 + $0x230] sm:$0xf] }
  0x20   :  { %1159 = vmatpush.bf16.msra.mxu0 %v1478_v31  ;;  %v2664_v4 = vpack.c.b16 %v216_v63, %v216_v63  ;;  %v2666_v5 = vpack.c.b16 %v215_v0, %v215_v0  ;;  %v1829_v11 = vld [vmem:[%s3559_s1 + $0x2c0] sm:$0xf]  ;;  %v2286_v15 = vld [vmem:[%s3559_s1 + $0x2c4] sm:$0xf0]  ;;  %v1766_v22 = vor.u32 %v2270_v10, %v1765_v9  ;;  %v2268_v26 = vld [vmem:[%s3559_s1 + $0x234] sm:$0xf0] }
  0x21   :  { %1172 = vmatpush.bf16.msra.mxu1 %v1542_v35  ;;  %v1893_v16 = vld [vmem:[%s3559_s1 + $0x340] sm:$0xf]  ;;  %v2302_v17 = vld [vmem:[%s3559_s1 + $0x344] sm:$0xf0]  ;;  %v2697_v20 = vpack.c.b16 %v213_v12, %v213_v12  ;;  %v2699_v21 = vpack.c.b16 %v214_v13, %v214_v13  ;;  %v1830_v23 = vor.u32 %v2286_v15, %v1829_v11  ;;  %v1821_v27 = vld [vmem:[%s3559_s1 + $0x2b0] sm:$0xf]  ;;  %v1758_v34 = vor.u32 %v2268_v26, %v1757_v25 }
  0x22   :  { %1185 = vmatpush.bf16.msra.mxu2 %v1606_v36  ;;  %v1957_v18 = vld [vmem:[%s3559_s1 + $0x3c0] sm:$0xf]  ;;  %v2318_v19 = vld [vmem:[%s3559_s1 + $0x3c4] sm:$0xf0]  ;;  %v1894_v24 = vor.u32 %v2302_v17, %v1893_v16  ;;  %v2284_v29 = vld [vmem:[%s3559_s1 + $0x2b4] sm:$0xf0] }
  0x23   :  { %1198 = vmatpush.bf16.msra.mxu3 %v1670_v39  ;;  %v1958_v28 = vor.u32 %v2318_v19, %v1957_v18  ;;  %v1885_v30 = vld [vmem:[%s3559_s1 + $0x330] sm:$0xf]  ;;  %v2300_v31 = vld [vmem:[%s3559_s1 + $0x334] sm:$0xf0]  ;;  %1160 = vmatmul.bf16.vlgmr.msra.gmra.mxu0 %v2697_v20  ;;  %v1822_v35 = vor.u32 %v2284_v29, %v1821_v27  ;;  %v1749_v37 = vld [vmem:[%s3559_s1 + $0x220] sm:$0xf] }
  0x24   :  { %1204 = vmatpush.bf16.msrb.mxu0 %v1790_v40  ;;  %v1949_v32 = vld [vmem:[%s3559_s1 + $0x3b0] sm:$0xf]  ;;  %v2316_v33 = vld [vmem:[%s3559_s1 + $0x3b4] sm:$0xf0]  ;;  %1173 = vmatmul.bf16.vlgmr.msra.gmra.mxu1 %v2699_v21  ;;  %v1886_v36 = vor.u32 %v2300_v31, %v1885_v30  ;;  %v2266_v38 = vld [vmem:[%s3559_s1 + $0x224] sm:$0xf0] }
  0x25   :  { %1217 = vmatpush.bf16.msrb.mxu1 %v1854_v41  ;;  %1186 = vmatmul.bf16.vlgmr.msra.gmra.mxu2 %v2666_v5  ;;  %v1813_v39 = vld [vmem:[%s3559_s1 + $0x2a0] sm:$0xf]  ;;  %v1950_v40 = vor.u32 %v2316_v33, %v1949_v32  ;;  %v2282_v41 = vld [vmem:[%s3559_s1 + $0x2a4] sm:$0xf0]  ;;  %v1741_v49 = vld [vmem:[%s3559_s1 + $0x210] sm:$0xf] }
  0x26   :  { %1230 = vmatpush.bf16.msrb.mxu2 %v1918_v42  ;;  %1199 = vmatmul.bf16.vlgmr.msra.gmra.mxu3 %v2664_v4  ;;  %v1877_v42 = vld [vmem:[%s3559_s1 + $0x320] sm:$0xf]  ;;  %v2298_v43 = vld [vmem:[%s3559_s1 + $0x324] sm:$0xf0]  ;;  %v1814_v47 = vor.u32 %v2282_v41, %v1813_v39  ;;  %v2264_v50 = vld [vmem:[%s3559_s1 + $0x214] sm:$0xf0] }
  0x27   :  { %1243 = vmatpush.bf16.msrb.mxu3 %v1982_v46  ;;  %v1941_v44 = vld [vmem:[%s3559_s1 + $0x3a0] sm:$0xf]  ;;  %v2314_v45 = vld [vmem:[%s3559_s1 + $0x3a4] sm:$0xf0]  ;;  %v1750_v46 = vor.u32 %v2266_v38, %v1749_v37  ;;  %v1878_v48 = vor.u32 %v2298_v43, %v1877_v42  ;;  %v1805_v51 = vld [vmem:[%s3559_s1 + $0x290] sm:$0xf] }
  0x28   :  { %1205 = vmatpush.bf16.msrb.mxu0 %v1782_v52  ;;  %v1942_v52 = vor.u32 %v2314_v45, %v1941_v44  ;;  %v2280_v53 = vld [vmem:[%s3559_s1 + $0x294] sm:$0xf0]  ;;  %v1933_v56 = vld [vmem:[%s3559_s1 + $0x390] sm:$0xf]  ;;  %v1733_v58 = vld [vmem:[%s3559_s1 + $0x200] sm:$0xf] }
  0x29   :  { %1218 = vmatpush.bf16.msrb.mxu1 %v1846_v54  ;;  %v1869_v54 = vld [vmem:[%s3559_s1 + $0x310] sm:$0xf]  ;;  %v2312_v57 = vld [vmem:[%s3559_s1 + $0x394] sm:$0xf0]  ;;  %v2262_v60 = vld [vmem:[%s3559_s1 + $0x204] sm:$0xf0]  ;;  %v1806_v63 = vor.u32 %v2280_v53, %v1805_v51 }
  0x2a   :  { %1231 = vmatpush.bf16.msrb.mxu2 %v1910_v55  ;;  %v2296_v55 = vld [vmem:[%s3559_s1 + $0x314] sm:$0xf0]  ;;  %v1797_v61 = vld [vmem:[%s3559_s1 + $0x280] sm:$0xf]  ;;  %v2278_v62 = vld [vmem:[%s3559_s1 + $0x284] sm:$0xf0]  ;;  %v1934_v6 = vor.u32 %v2312_v57, %v1933_v56  ;;  %v1734_v13 = vor.u32 %v2262_v60, %v1733_v58 }
  0x2b   :  { %1244 = vmatpush.bf16.msrb.mxu3 %v1974_v59  ;;  %v1742_v59 = vor.u32 %v2264_v50, %v1741_v49  ;;  %v1870_v0 = vor.u32 %v2296_v55, %v1869_v54  ;;  %v1861_v1 = vld [vmem:[%s3559_s1 + $0x300] sm:$0xf]  ;;  %v2294_v2 = vld [vmem:[%s3559_s1 + $0x304] sm:$0xf0]  ;;  %v17_v9 = vld [vmem:[%s3560_s0 + $0x10] sm:$0xff]  ;;  %v1798_v18 = vor.u32 %v2278_v62, %v1797_v61 }
  0x2c   :  { %1206 = vmatpush.bf16.msrb.mxu0 %v1774_v3  ;;  %v18_v3 = vld [vmem:[%s3560_s0 + $0x18] sm:$0xff]  ;;  %v2045_v10 = vld [vmem:[%s3559_s1 + $0x470] sm:$0xf]  ;;  %v1862_v19 = vor.u32 %v2294_v2, %v1861_v1  ;;  %v217_v25 = vunpack.c.l.b16 %v17_v9  ;;  %v2037_v31 = vld [vmem:[%s3559_s1 + $0x460] sm:$0xf] }
  0x2d   :  { %1219 = vmatpush.bf16.msrb.mxu1 %v1838_v7  ;;  %v1925_v7 = vld [vmem:[%s3559_s1 + $0x380] sm:$0xf]  ;;  %v2340_v11 = vld [vmem:[%s3559_s1 + $0x474] sm:$0xf0]  ;;  %v2109_v12 = vld [vmem:[%s3559_s1 + $0x4f0] sm:$0xf]  ;;  %v219_v17 = vunpack.c.l.b16 %v18_v3 }
  0x2e   :  { %1232 = vmatpush.bf16.msrb.mxu2 %v1902_v8  ;;  %v2310_v8 = vld [vmem:[%s3559_s1 + $0x384] sm:$0xf0]  ;;  %v2173_v15 = vld [vmem:[%s3559_s1 + $0x570] sm:$0xf]  ;;  %v2372_v16 = vld [vmem:[%s3559_s1 + $0x574] sm:$0xf0]  ;;  %v2046_v27 = vor.u32 %v2340_v11, %v2045_v10  ;;  %v2857_v42 = vpack.c.b16 %v217_v25, %v217_v25 }
  0x2f   :  { %1245 = vmatpush.bf16.msrb.mxu3 %v1966_v14  ;;  %v2356_v14 = vld [vmem:[%s3559_s1 + $0x4f4] sm:$0xf0]  ;;  %v1926_v26 = vor.u32 %v2310_v8, %v1925_v7  ;;  %v2174_v30 = vor.u32 %v2372_v16, %v2173_v15  ;;  %v2338_v32 = vld [vmem:[%s3559_s1 + $0x464] sm:$0xf0]  ;;  %v2101_v33 = vld [vmem:[%s3559_s1 + $0x4e0] sm:$0xf]  ;;  %v2847_v38 = vpack.c.b16 %v219_v17, %v219_v17 }
  0x30   :  { %1207 = vmatpush.bf16.msrb.mxu0 %v1766_v22  ;;  %v2189_v22 = vld [vmem:[%s3559_s1 + $0x590] sm:$0xf]  ;;  %v2110_v29 = vor.u32 %v2356_v14, %v2109_v12  ;;  %v2370_v37 = vld [vmem:[%s3559_s1 + $0x564] sm:$0xf0]  ;;  %v2181_v39 = vld [vmem:[%s3559_s1 + $0x580] sm:$0xf]  ;;  %v2038_v43 = vor.u32 %v2338_v32, %v2037_v31 }
  0x31   :  { %1220 = vmatpush.bf16.msrb.mxu1 %v1830_v23  ;;  %v2376_v23 = vld [vmem:[%s3559_s1 + $0x594] sm:$0xf0]  ;;  %v2211_v44 = vld [vmem:[%s3559_s1 + $0x74] sm:$0xf]  ;;  %v1535_v45 = vld [vmem:[%s3559_s1 + $0x78] sm:$0xf0] }
  0x32   :  { %1233 = vmatpush.bf16.msrb.mxu2 %v1894_v24  ;;  %v220_v24 = vunpack.c.h.b16 %v18_v3  ;;  %v2029_v49 = vld [vmem:[%s3559_s1 + $0x450] sm:$0xf]  ;;  %v2336_v50 = vld [vmem:[%s3559_s1 + $0x454] sm:$0xf0]  ;;  %v1538_v56 = vor.u32 %v2211_v44, %v1535_v45  ;;  %v2209_v58 = vld [vmem:[%s3559_s1 + $0x64] sm:$0xf] }
  0x33   :  { %1246 = vmatpush.bf16.msrb.mxu3 %v1958_v28  ;;  %v218_v28 = vunpack.c.h.b16 %v17_v9  ;;  %v2093_v51 = vld [vmem:[%s3559_s1 + $0x4d0] sm:$0xf]  ;;  %v2352_v53 = vld [vmem:[%s3559_s1 + $0x4d4] sm:$0xf0]  ;;  %v2030_v57 = vor.u32 %v2336_v50, %v2029_v49  ;;  %v2021_v62 = vld [vmem:[%s3559_s1 + $0x440] sm:$0xf] }
  0x34   :  { %1208 = vmatpush.bf16.msrb.mxu0 %v1758_v34  ;;  %v2190_v34 = vor.u32 %v2376_v23, %v2189_v22  ;;  %v2855_v41 = vpack.c.b16 %v220_v24, %v220_v24  ;;  %v2157_v54 = vld [vmem:[%s3559_s1 + $0x550] sm:$0xf]  ;;  %v2368_v55 = vld [vmem:[%s3559_s1 + $0x554] sm:$0xf0]  ;;  %v2094_v60 = vor.u32 %v2352_v53, %v2093_v51  ;;  %v2350_v1 = vld [vmem:[%s3559_s1 + $0x4c4] sm:$0xf0] }
  0x35   :  { %1221 = vmatpush.bf16.msrb.mxu1 %v1822_v35  ;;  %v2354_v35 = vld [vmem:[%s3559_s1 + $0x4e4] sm:$0xf0]  ;;  %v2158_v61 = vor.u32 %v2368_v55, %v2157_v54  ;;  %v2149_v2 = vld [vmem:[%s3559_s1 + $0x540] sm:$0xf]  ;;  %v2207_v8 = vld [vmem:[%s3559_s1 + $0x54] sm:$0xf] }
  0x36   :  { %1234 = vmatpush.bf16.msrb.mxu2 %v1886_v36  ;;  %v2165_v36 = vld [vmem:[%s3559_s1 + $0x560] sm:$0xf]  ;;  %v2366_v3 = vld [vmem:[%s3559_s1 + $0x544] sm:$0xf0]  ;;  %v1519_v9 = vld [vmem:[%s3559_s1 + $0x58] sm:$0xf0] }
  0x37   :  { %1247 = vmatpush.bf16.msrb.mxu3 %v1950_v40  ;;  %v2374_v40 = vld [vmem:[%s3559_s1 + $0x584] sm:$0xf0]  ;;  %v2150_v11 = vor.u32 %v2366_v3, %v2149_v2  ;;  %v2013_v12 = vld [vmem:[%s3559_s1 + $0x430] sm:$0xf]  ;;  %v2348_v15 = vld [vmem:[%s3559_s1 + $0x4b4] sm:$0xf0] }
  0x38   :  { %1209 = vmatpush.bf16.msrb.mxu0 %v1750_v46  ;;  %v2865_v46 = vpack.c.b16 %v218_v28, %v218_v28  ;;  %v2077_v14 = vld [vmem:[%s3559_s1 + $0x4b0] sm:$0xf]  ;;  %v2364_v17 = vld [vmem:[%s3559_s1 + $0x534] sm:$0xf0]  ;;  %v2205_v23 = vld [vmem:[%s3559_s1 + $0x44] sm:$0xf] }
  0x39   :  { %1222 = vmatpush.bf16.msrb.mxu1 %v1814_v47  ;;  %v2102_v47 = vor.u32 %v2354_v35, %v2101_v33  ;;  %v2141_v16 = vld [vmem:[%s3559_s1 + $0x530] sm:$0xf]  ;;  %v1511_v24 = vld [vmem:[%s3559_s1 + $0x48] sm:$0xf0]  ;;  %v2005_v28 = vld [vmem:[%s3559_s1 + $0x420] sm:$0xf] }
  0x3a   :  { %1235 = vmatpush.bf16.msrb.mxu2 %v1878_v48  ;;  %v2166_v48 = vor.u32 %v2370_v37, %v2165_v36  ;;  %v2346_v31 = vld [vmem:[%s3559_s1 + $0x4a4] sm:$0xf0]  ;;  %v2133_v32 = vld [vmem:[%s3559_s1 + $0x520] sm:$0xf]  ;;  %v2203_v36 = vld [vmem:[%s3559_s1 + $0x34] sm:$0xf] }
  0x3b   :  { %1248 = vmatpush.bf16.msrb.mxu3 %v1942_v52  ;;  %v2182_v52 = vor.u32 %v2374_v40, %v2181_v39  ;;  %v2362_v33 = vld [vmem:[%s3559_s1 + $0x524] sm:$0xf0]  ;;  %v1503_v37 = vld [vmem:[%s3559_s1 + $0x38] sm:$0xf0]  ;;  %v1997_v39 = vld [vmem:[%s3559_s1 + $0x410] sm:$0xf] }
  0x3c   :  { %1210 = vmatpush.bf16.msrb.mxu0 %v1742_v59  ;;  %v1527_v59 = vld [vmem:[%s3559_s1 + $0x68] sm:$0xf0]  ;;  %v2134_v44 = vor.u32 %v2362_v33, %v2133_v32  ;;  %v2328_v45 = vld [vmem:[%s3559_s1 + $0x414] sm:$0xf0]  ;;  %v2125_v49 = vld [vmem:[%s3559_s1 + $0x510] sm:$0xf]  ;;  %v1506_v51 = vor.u32 %v2203_v36, %v1503_v37 }
  0x3d   :  { %1223 = vmatpush.bf16.msrb.mxu1 %v1806_v63  ;;  %v2334_v63 = vld [vmem:[%s3559_s1 + $0x444] sm:$0xf0]  ;;  %v2360_v50 = vld [vmem:[%s3559_s1 + $0x514] sm:$0xf0]  ;;  %v1998_v53 = vor.u32 %v2328_v45, %v1997_v39  ;;  %v1495_v54 = vld [vmem:[%s3559_s1 + $0x28] sm:$0xf0] }
  0x3e   :  { %1236 = vmatpush.bf16.msrb.mxu2 %v1870_v0  ;;  %v2085_v0 = vld [vmem:[%s3559_s1 + $0x4c0] sm:$0xf]  ;;  %v2022_v7 = vor.u32 %v2334_v63, %v2021_v62  ;;  %v2358_v63 = vld [vmem:[%s3559_s1 + $0x504] sm:$0xf0]  ;;  %v1599_v2 = vld [vmem:[%s3559_s1 + $0xf8] sm:$0xf0] }
  0x3f   :  { %1249 = vmatpush.bf16.msrb.mxu3 %v1934_v6  ;;  %v1530_v6 = vor.u32 %v2209_v58, %v1527_v59  ;;  %v2086_v10 = vor.u32 %v2350_v1, %v2085_v0  ;;  %v1989_v55 = vld [vmem:[%s3559_s1 + $0x400] sm:$0xf]  ;;  %v2126_v58 = vor.u32 %v2360_v50, %v2125_v49  ;;  %v2326_v59 = vld [vmem:[%s3559_s1 + $0x404] sm:$0xf0]  ;;  %v2227_v0 = vld [vmem:[%s3559_s1 + $0xf4] sm:$0xf] }
  0x40   :  { %1211 = vmatpush.bf16.msrb.mxu0 %v1734_v13  ;;  %v2332_v13 = vld [vmem:[%s3559_s1 + $0x434] sm:$0xf0]  ;;  %v2117_v62 = vld [vmem:[%s3559_s1 + $0x500] sm:$0xf]  ;;  %v2243_v3 = vld [vmem:[%s3559_s1 + $0x174] sm:$0xf] }
  0x41   :  { %1224 = vmatpush.bf16.msrb.mxu1 %v1798_v18  ;;  %v1522_v18 = vor.u32 %v2207_v8, %v1519_v9  ;;  %v2014_v22 = vor.u32 %v2332_v13, %v2013_v12  ;;  %v1990_v8 = vor.u32 %v2326_v59, %v1989_v55  ;;  %v2199_v9 = vld [vmem:[%s3559_s1 + $0x14] sm:$0xf]  ;;  %v1791_v33 = vld [vmem:[%s3559_s1 + $0x278] sm:$0xf0]  ;;  %v2257_v36 = vld [vmem:[%s3559_s1 + $0x1e4] sm:$0xf] }
  0x42   :  { %1237 = vmatpush.bf16.msrb.mxu2 %v1862_v19  ;;  %v2940_v19 = vld [vmem:[%s3560_s0 + $0x28] sm:$0xff]  ;;  %v2275_v32 = vld [vmem:[%s3559_s1 + $0x274] sm:$0xf]  ;;  %v2273_v50 = vld [vmem:[%s3559_s1 + $0x264] sm:$0xf] }
  0x43   :  { %1250 = vmatpush.bf16.msrb.mxu3 %v1926_v26  ;;  %1212 = vmatmul.bf16.vlgmr.msrb.gmra.mxu0 %v2857_v42  ;;  %v224_v25 = vunpack.c.h.b16 %v2940_v19  ;;  %v2078_v26 = vor.u32 %v2348_v15, %v2077_v14  ;;  %v2118_v14 = vor.u32 %v2358_v63, %v2117_v62  ;;  %v1602_v15 = vor.u32 %v2227_v0, %v1599_v2  ;;  %v1719_v37 = vld [vmem:[%s3559_s1 + $0x1e8] sm:$0xf0]  ;;  %v2223_v39 = vld [vmem:[%s3559_s1 + $0xd4] sm:$0xf]  ;;  %v1711_v55 = vld [vmem:[%s3559_s1 + $0x1d8] sm:$0xf0] }
  0x44   :  { %1256 = vmatpush.bf16.msra.mxu0 %v2046_v27  ;;  %1225 = vmatmul.bf16.vlgmr.msrb.gmra.mxu1 %v2865_v46  ;;  %v2142_v27 = vor.u32 %v2364_v17, %v2141_v16  ;;  %v2259_v17 = vld [vmem:[%s3559_s1 + $0x1f4] sm:$0xf]  ;;  %v1722_v49 = vor.u32 %v2257_v36, %v1719_v37  ;;  %v1639_v59 = vld [vmem:[%s3559_s1 + $0x148] sm:$0xf0]  ;;  %v1775_v63 = vld [vmem:[%s3559_s1 + $0x258] sm:$0xf0] }
  0x45   :  { %1269 = vmatpush.bf16.msra.mxu1 %v2110_v29  ;;  %1238 = vmatmul.bf16.vlgmr.msrb.gmra.mxu2 %v2847_v38  ;;  %v2330_v29 = vld [vmem:[%s3559_s1 + $0x424] sm:$0xf0]  ;;  %v2976_v40 = vpack.c.b16 %v224_v25, %v224_v25  ;;  %v2241_v25 = vld [vmem:[%s3559_s1 + $0x164] sm:$0xf]  ;;  %v2239_v45 = vld [vmem:[%s3559_s1 + $0x154] sm:$0xf] }
  0x46   :  { %1282 = vmatpush.bf16.msra.mxu2 %v2174_v30  ;;  %1251 = vmatmul.bf16.vlgmr.msrb.gmra.mxu3 %v2855_v41  ;;  %v2069_v30 = vld [vmem:[%s3559_s1 + $0x4a0] sm:$0xf]  ;;  %v2006_v35 = vor.u32 %v2330_v29, %v2005_v28  ;;  %v2197_v29 = vld [vmem:[%s3559_s1 + $0x4] sm:$0xf]  ;;  %v2271_v62 = vld [vmem:[%s3559_s1 + $0x254] sm:$0xf] }
  0x47   :  { %1301 = vmatpush.bf16.msra.mxu3 %v2190_v34  ;;  %v1514_v34 = vor.u32 %v2205_v23, %v1511_v24  ;;  %v1591_v24 = vld [vmem:[%s3559_s1 + $0xe8] sm:$0xf0]  ;;  %v2253_v2 = vld [vmem:[%s3559_s1 + $0x1c4] sm:$0xf]  ;;  %v2231_v36 = vld [vmem:[%s3559_s1 + $0x114] sm:$0xf] }
  0x48   :  { %1257 = vmatpush.bf16.msra.mxu0 %v2038_v43  ;;  %v2070_v43 = vor.u32 %v2346_v31, %v2069_v30  ;;  %v1479_v30 = vld [vmem:[%s3559_s1 + $0x8] sm:$0xf0]  ;;  %v1615_v37 = vld [vmem:[%s3559_s1 + $0x118] sm:$0xf0]  ;;  %vm1469_vm3 = vmor %vm1468_vm2, %vm1467_vm1 }
  0x49   :  { %1270 = vmatpush.bf16.msra.mxu1 %v2102_v47  ;;  %v2061_v47 = vld [vmem:[%s3559_s1 + $0x490] sm:$0xf] }
  0x4a   :  { %1283 = vmatpush.bf16.msra.mxu2 %v2166_v48  ;;  %v2344_v48 = vld [vmem:[%s3559_s1 + $0x494] sm:$0xf0] }
  0x4b   :  { %1302 = vmatpush.bf16.msra.mxu3 %v2182_v52  ;;  %v2201_v52 = vld [vmem:[%s3559_s1 + $0x24] sm:$0xf] }
  0x4c   :  { %1258 = vmatpush.bf16.msra.mxu0 %v2030_v57  ;;  %v2062_v57 = vor.u32 %v2344_v48, %v2061_v47  ;;  %v1498_v1 = vor.u32 %v2201_v52, %v1495_v54  ;;  %v1647_v47 = vld [vmem:[%s3559_s1 + $0x158] sm:$0xf0]  ;;  %v1794_v48 = vor.u32 %v2275_v32, %v1791_v33  ;;  %v2255_v54 = vld [vmem:[%s3559_s1 + $0x1d4] sm:$0xf]  ;;  %v2249_v32 = vld [vmem:[%s3559_s1 + $0x1a4] sm:$0xf] }
  0x4d   :  { %1271 = vmatpush.bf16.msra.mxu1 %v2094_v60  ;;  %v2053_v60 = vld [vmem:[%s3559_s1 + $0x480] sm:$0xf]  ;;  %v1687_v33 = vld [vmem:[%s3559_s1 + $0x1a8] sm:$0xf0] }
  0x4e   :  { %1284 = vmatpush.bf16.msra.mxu2 %v2158_v61  ;;  %v2342_v61 = vld [vmem:[%s3559_s1 + $0x484] sm:$0xf0] }
  0x4f   :  { %1308 = vmatpush.bf16.msrb.mxu3 %v1538_v56  ;;  %v19_v56 = vld [vmem:[%s3560_s0 + $0x20] sm:$0xff]  ;;  %v2054_v13 = vor.u32 %v2342_v61, %v2053_v60  ;;  %v1714_v61 = vor.u32 %v2255_v54, %v1711_v55  ;;  %v1607_v54 = vld [vmem:[%s3559_s1 + $0x108] sm:$0xf0]  ;;  %v2291_v55 = vld [vmem:[%s3559_s1 + $0x2f4] sm:$0xf] }
  0x50   :  { %1259 = vmatpush.bf16.msra.mxu0 %v2022_v7  ;;  %v221_v7 = vunpack.c.l.b16 %v19_v56  ;;  %v222_v12 = vunpack.c.h.b16 %v19_v56  ;;  %v2221_v56 = vld [vmem:[%s3559_s1 + $0xc4] sm:$0xf] }
  0x51   :  { %1272 = vmatpush.bf16.msra.mxu1 %v2086_v10  ;;  %v1487_v10 = vld [vmem:[%s3559_s1 + $0x18] sm:$0xf0] }
  0x52   :  { %1285 = vmatpush.bf16.msra.mxu2 %v2150_v11  ;;  %v223_v11 = vunpack.c.l.b16 %v2940_v19  ;;  %v1490_v19 = vor.u32 %v2199_v9, %v1487_v10  ;;  %v3050_v23 = vpack.c.b16 %v221_v7, %v221_v7  ;;  %v3063_v28 = vpack.c.b16 %v222_v12, %v222_v12  ;;  %v1567_v7 = vld [vmem:[%s3559_s1 + $0xb8] sm:$0xf0]  ;;  %v2269_v12 = vld [vmem:[%s3559_s1 + $0x244] sm:$0xf] }
  0x53   :  { %1309 = vmatpush.bf16.msrb.mxu3 %v1530_v6  ;;  %v1663_v6 = vld [vmem:[%s3559_s1 + $0x178] sm:$0xf0]  ;;  %v1778_v10 = vor.u32 %v2271_v62, %v1775_v63 }
  0x54   :  { %1260 = vmatpush.bf16.msra.mxu0 %v2014_v22  ;;  %v1666_v16 = vor.u32 %v2243_v3, %v1663_v6  ;;  %v2225_v22 = vld [vmem:[%s3559_s1 + $0xe4] sm:$0xf]  ;;  %v1703_v3 = vld [vmem:[%s3559_s1 + $0x1c8] sm:$0xf0]  ;;  %v2219_v6 = vld [vmem:[%s3559_s1 + $0xb4] sm:$0xf] }
  0x55   :  { %1273 = vmatpush.bf16.msra.mxu1 %v2078_v26  ;;  %v1655_v26 = vld [vmem:[%s3559_s1 + $0x168] sm:$0xf0]  ;;  %v1631_v9 = vld [vmem:[%s3559_s1 + $0x138] sm:$0xf0] }
  0x56   :  { %1286 = vmatpush.bf16.msra.mxu2 %v2142_v27  ;;  %2195 = vmatmul.msk.bf16.vlgmr.msra.gmra.mxu3 %vm1148_vm0, %v2976_v40  ;;  %v3061_v27 = vpack.c.b16 %v223_v11, %v223_v11  ;;  %v1706_v11 = vor.u32 %v2253_v2, %v1703_v3  ;;  %v1743_v62 = vld [vmem:[%s3559_s1 + $0x218] sm:$0xf0]  ;;  %v1671_v2 = vld [vmem:[%s3559_s1 + $0x188] sm:$0xf0] }
  0x57   :  { %1310 = vmatpush.bf16.msrb.mxu3 %v1522_v18  ;;  %v1727_v18 = vld [vmem:[%s3559_s1 + $0x1f8] sm:$0xf0] }
  0x58   :  { %1261 = vmatpush.bf16.msra.mxu0 %v2006_v35  ;;  %v1730_v31 = vor.u32 %v2259_v17, %v1727_v18  ;;  %v1658_v35 = vor.u32 %v2241_v25, %v1655_v26  ;;  %v2217_v17 = vld [vmem:[%s3559_s1 + $0xa4] sm:$0xf]  ;;  %v1559_v18 = vld [vmem:[%s3559_s1 + $0xa8] sm:$0xf0]  ;;  %v2267_v26 = vld [vmem:[%s3559_s1 + $0x234] sm:$0xf] }
  0x59   :  { %1274 = vmatpush.bf16.msra.mxu1 %v2070_v43  ;;  %v1482_v43 = vor.u32 %v2197_v29, %v1479_v30  ;;  %v1759_v29 = vld [vmem:[%s3559_s1 + $0x238] sm:$0xf0]  ;;  %v1562_v30 = vor.u32 %v2217_v17, %v1559_v18  ;;  %v2339_v17 = vld [vmem:[%s3559_s1 + $0x474] sm:$0xf] }
  0x5a   :  { %1287 = vmatpush.bf16.msra.mxu2 %v2134_v44  ;;  %v1583_v44 = vld [vmem:[%s3559_s1 + $0xd8] sm:$0xf0] }
  0x5b   :  { %1311 = vmatpush.bf16.msrb.mxu3 %v1514_v34  ;;  %v1594_v34 = vor.u32 %v2225_v22, %v1591_v24  ;;  %v1586_v52 = vor.u32 %v2223_v39, %v1583_v44  ;;  %v2233_v22 = vld [vmem:[%s3559_s1 + $0x124] sm:$0xf]  ;;  %v1762_v39 = vor.u32 %v2267_v26, %v1759_v29  ;;  %v2047_v18 = vld [vmem:[%s3559_s1 + $0x478] sm:$0xf0]  ;;  %v2287_v26 = vld [vmem:[%s3559_s1 + $0x2d4] sm:$0xf] }
  0x5c   :  { %1262 = vmatpush.bf16.msra.mxu0 %v1998_v53  ;;  %v1650_v53 = vor.u32 %v2239_v45, %v1647_v47  ;;  %v2265_v44 = vld [vmem:[%s3559_s1 + $0x224] sm:$0xf]  ;;  %v1751_v45 = vld [vmem:[%s3559_s1 + $0x228] sm:$0xf0]  ;;  %v2247_v47 = vld [vmem:[%s3559_s1 + $0x194] sm:$0xf] }
  0x5d   :  { %1275 = vmatpush.bf16.msra.mxu1 %v2062_v57  ;;  %v1575_v57 = vld [vmem:[%s3559_s1 + $0xc8] sm:$0xf0] }
  0x5e   :  { %1288 = vmatpush.bf16.msra.mxu2 %v2126_v58  ;;  %v2237_v58 = vld [vmem:[%s3559_s1 + $0x144] sm:$0xf]  ;;  %v1578_v0 = vor.u32 %v2221_v56, %v1575_v57  ;;  %v1754_v56 = vor.u32 %v2265_v44, %v1751_v45  ;;  %v1855_v57 = vld [vmem:[%s3559_s1 + $0x2f8] sm:$0xf0] }
  0x5f   :  { %1312 = vmatpush.bf16.msrb.mxu3 %v1506_v51  ;;  %v1783_v51 = vld [vmem:[%s3559_s1 + $0x268] sm:$0xf0]  ;;  %v1858_v3 = vor.u32 %v2291_v55, %v1855_v57  ;;  %v2285_v44 = vld [vmem:[%s3559_s1 + $0x2c4] sm:$0xf]  ;;  %v2283_v55 = vld [vmem:[%s3559_s1 + $0x2b4] sm:$0xf] }
  0x60   :  { %1263 = vmatpush.bf16.msra.mxu0 %v1990_v8  ;;  %v1786_v60 = vor.u32 %v2273_v50, %v1783_v51  ;;  %v2235_v8 = vld [vmem:[%s3559_s1 + $0x134] sm:$0xf]  ;;  %v1679_v50 = vld [vmem:[%s3559_s1 + $0x198] sm:$0xf0]  ;;  %v2213_v51 = vld [vmem:[%s3559_s1 + $0x84] sm:$0xf] }
  0x61   :  { %1276 = vmatpush.bf16.msra.mxu1 %v2054_v13  ;;  %v1767_v13 = vld [vmem:[%s3559_s1 + $0x248] sm:$0xf0]  ;;  %v2301_v45 = vld [vmem:[%s3559_s1 + $0x344] sm:$0xf]  ;;  %v2299_v57 = vld [vmem:[%s3559_s1 + $0x334] sm:$0xf] }
  0x62   :  { %1289 = vmatpush.bf16.msra.mxu2 %v2118_v14  ;;  %v1570_v14 = vor.u32 %v2219_v6, %v1567_v7  ;;  %v1770_v24 = vor.u32 %v2269_v12, %v1767_v13  ;;  %v2323_v7 = vld [vmem:[%s3559_s1 + $0x3f4] sm:$0xf]  ;;  %v2305_v12 = vld [vmem:[%s3559_s1 + $0x364] sm:$0xf]  ;;  %v1911_v13 = vld [vmem:[%s3559_s1 + $0x368] sm:$0xf0] }
  0x63   :  { %1313 = vmatpush.bf16.msrb.mxu3 %v1498_v1  ;;  %1264 = vmatmul.bf16.vlgmr.msra.gmra.mxu0 %v3050_v23  ;;  %v1642_v1 = vor.u32 %v2237_v58, %v1639_v59  ;;  %v2307_v58 = vld [vmem:[%s3559_s1 + $0x374] sm:$0xf]  ;;  %v1919_v59 = vld [vmem:[%s3559_s1 + $0x378] sm:$0xf0] }
  0x64   :  { %1321 = vmatpush.bf16.msrb.mxu0 %v1602_v15  ;;  %1277 = vmatmul.bf16.vlgmr.msra.gmra.mxu1 %v3063_v28  ;;  %v1634_v15 = vor.u32 %v2235_v8, %v1631_v9  ;;  %v1922_v6 = vor.u32 %v2307_v58, %v1919_v59  ;;  %v1983_v8 = vld [vmem:[%s3559_s1 + $0x3f8] sm:$0xf0]  ;;  %v2289_v9 = vld [vmem:[%s3559_s1 + $0x2e4] sm:$0xf] }
  0x65   :  { %1334 = vmatpush.bf16.msrb.mxu1 %v1666_v16  ;;  %1290 = vmatmul.bf16.vlgmr.msra.gmra.mxu2 %v3061_v27  ;;  %v1695_v16 = vld [vmem:[%s3559_s1 + $0x1b8] sm:$0xf0] }
  0x66   :  { %1347 = vmatpush.bf16.msrb.mxu2 %v1730_v31  ;;  %v1887_v58 = vld [vmem:[%s3559_s1 + $0x338] sm:$0xf0] }
  0x67   :  { %1314 = vmatpush.bf16.msrb.mxu3 %v1490_v19  ;;  %v1623_v19 = vld [vmem:[%s3559_s1 + $0x128] sm:$0xf0] }
  0x68   :  { %1322 = vmatpush.bf16.msrb.mxu0 %v1594_v34  ;;  %v1626_v31 = vor.u32 %v2233_v22, %v1623_v19  ;;  %v2215_v34 = vld [vmem:[%s3559_s1 + $0x94] sm:$0xf]  ;;  %v1914_v19 = vor.u32 %v2305_v12, %v1911_v13 }
  0x69   :  { %1335 = vmatpush.bf16.msrb.mxu1 %v1658_v35  ;;  %v1551_v35 = vld [vmem:[%s3559_s1 + $0x98] sm:$0xf0] }
  0x6a   :  { %1348 = vmatpush.bf16.msrb.mxu2 %v1722_v49  ;;  %v1618_v49 = vor.u32 %v2231_v36, %v1615_v37  ;;  %v2039_v36 = vld [vmem:[%s3559_s1 + $0x468] sm:$0xf0] }
  0x6b   :  { %1315 = vmatpush.bf16.msrb.mxu3 %v1482_v43  ;;  %v1690_v43 = vor.u32 %v2249_v32, %v1687_v33  ;;  %v1903_v32 = vld [vmem:[%s3559_s1 + $0x358] sm:$0xf0]  ;;  %v2050_v33 = vor.u32 %v2339_v17, %v2047_v18  ;;  %v2295_v17 = vld [vmem:[%s3559_s1 + $0x314] sm:$0xf] }
  0x6c   :  { %1323 = vmatpush.bf16.msrb.mxu0 %v1586_v52  ;;  %v1543_v52 = vld [vmem:[%s3559_s1 + $0x88] sm:$0xf0]  ;;  %v1871_v18 = vld [vmem:[%s3559_s1 + $0x318] sm:$0xf0] }
  0x6d   :  { %1336 = vmatpush.bf16.msrb.mxu1 %v1650_v53  ;;  %v2229_v53 = vld [vmem:[%s3559_s1 + $0x104] sm:$0xf]  ;;  %v1546_v63 = vor.u32 %v2213_v51, %v1543_v52  ;;  %v2031_v51 = vld [vmem:[%s3559_s1 + $0x458] sm:$0xf0] }
  0x6e   :  { %1316 = vmatmul.bf16.vlgmr.msrb.gmra.mxu3 %v2697_v20  ;;  %1349 = vmatpush.bf16.msrb.mxu2 %v1714_v61  ;;  %v2251_v20 = vld [vmem:[%s3559_s1 + $0x1b4] sm:$0xf] }
  0x6f   :  { %1360 = vmatpush.bf16.msra.mxu3 %v1794_v48  ;;  %v1698_v25 = vor.u32 %v2251_v20, %v1695_v16  ;;  %v1554_v48 = vor.u32 %v2215_v34, %v1551_v35  ;;  %v2263_v61 = vld [vmem:[%s3559_s1 + $0x214] sm:$0xf]  ;;  %v1735_v20 = vld [vmem:[%s3559_s1 + $0x208] sm:$0xf0]  ;;  %v1986_v16 = vor.u32 %v2323_v7, %v1983_v8  ;;  %v2337_v35 = vld [vmem:[%s3559_s1 + $0x464] sm:$0xf] }
  0x70   :  { %1324 = vmatpush.bf16.msrb.mxu0 %v1578_v0  ;;  %v1610_v0 = vor.u32 %v2229_v53, %v1607_v54  ;;  %v1959_v54 = vld [vmem:[%s3559_s1 + $0x3c8] sm:$0xf0] }
  0x71   :  { %1337 = vmatpush.bf16.msrb.mxu1 %v1642_v1  ;;  %v2245_v1 = vld [vmem:[%s3559_s1 + $0x184] sm:$0xf]  ;;  %v1879_v7 = vld [vmem:[%s3559_s1 + $0x328] sm:$0xf0] }
  0x72   :  { %1350 = vmatpush.bf16.msrb.mxu2 %v1706_v11  ;;  %v1847_v11 = vld [vmem:[%s3559_s1 + $0x2e8] sm:$0xf0] }
  0x73   :  { %1361 = vmatpush.bf16.msra.mxu3 %v1786_v60  ;;  %v1682_v60 = vor.u32 %v2247_v47, %v1679_v50  ;;  %v1850_v22 = vor.u32 %v2289_v9, %v1847_v11  ;;  %v1895_v47 = vld [vmem:[%s3559_s1 + $0x348] sm:$0xf0]  ;;  %v2335_v50 = vld [vmem:[%s3559_s1 + $0x454] sm:$0xf]  ;;  %v2015_v11 = vld [vmem:[%s3559_s1 + $0x438] sm:$0xf0] }
  0x74   :  { %1325 = vmatpush.bf16.msrb.mxu0 %v1570_v14  ;;  %v1674_v14 = vor.u32 %v2245_v1, %v1671_v2  ;;  %v1898_v53 = vor.u32 %v2301_v45, %v1895_v47  ;;  %v2034_v59 = vor.u32 %v2335_v50, %v2031_v51  ;;  %v1951_v1 = vld [vmem:[%s3559_s1 + $0x3b8] sm:$0xf0]  ;;  %v2281_v2 = vld [vmem:[%s3559_s1 + $0x2a4] sm:$0xf]  ;;  %v1927_v50 = vld [vmem:[%s3559_s1 + $0x388] sm:$0xf0] }
  0x75   :  { %1338 = vmatpush.bf16.msrb.mxu1 %v1634_v15  ;;  %v2261_v15 = vld [vmem:[%s3559_s1 + $0x204] sm:$0xf]  ;;  %v1999_v45 = vld [vmem:[%s3559_s1 + $0x418] sm:$0xf0] }
  0x76   :  { %1351 = vmatpush.bf16.msrb.mxu2 %v1698_v25  ;;  %v1975_v25 = vld [vmem:[%s3559_s1 + $0x3e8] sm:$0xf0]  ;;  %v1738_v29 = vor.u32 %v2261_v15, %v1735_v20  ;;  %v2279_v20 = vld [vmem:[%s3559_s1 + $0x294] sm:$0xf] }
  0x77   :  { %1362 = vmatpush.bf16.msra.mxu3 %v1778_v10  ;;  %v1746_v10 = vor.u32 %v2263_v61, %v1743_v62  ;;  %v2333_v61 = vld [vmem:[%s3559_s1 + $0x444] sm:$0xf]  ;;  %v2023_v62 = vld [vmem:[%s3559_s1 + $0x448] sm:$0xf0] }
  0x78   :  { %1326 = vmatpush.bf16.msrb.mxu0 %v1562_v30  ;;  %v1839_v30 = vld [vmem:[%s3559_s1 + $0x2d8] sm:$0xf0]  ;;  %v2026_v8 = vor.u32 %v2333_v61, %v2023_v62  ;;  %v1943_v15 = vld [vmem:[%s3559_s1 + $0x3a8] sm:$0xf0] }
  0x79   :  { %1339 = vmatpush.bf16.msrb.mxu1 %v1626_v31  ;;  %v2303_v31 = vld [vmem:[%s3559_s1 + $0x354] sm:$0xf]  ;;  %v1842_v37 = vor.u32 %v2287_v26, %v1839_v30  ;;  %v1874_v30 = vor.u32 %v2295_v17, %v1871_v18  ;;  %v1991_v61 = vld [vmem:[%s3559_s1 + $0x408] sm:$0xf0]  ;;  %v3512_v17 = vld [vmem:[%s3561_s2] sm:$0x3] }
  0x7a   :  { %1352 = vmatpush.bf16.msrb.mxu2 %v1690_v43  ;;  %v1967_v43 = vld [vmem:[%s3559_s1 + $0x3d8] sm:$0xf0]  ;;  %v2311_v26 = vld [vmem:[%s3559_s1 + $0x394] sm:$0xf] }
  0x7b   :  { %1363 = vmatpush.bf16.msra.mxu3 %v1770_v24  ;;  %v2321_v24 = vld [vmem:[%s3559_s1 + $0x3e4] sm:$0xf] }
  0x7c   :  { %1327 = vmatpush.bf16.msrb.mxu0 %v1554_v48  ;;  %v1978_v34 = vor.u32 %v2321_v24, %v1975_v25  ;;  %v2042_v48 = vor.u32 %v2337_v35, %v2039_v36  ;;  %v2329_v24 = vld [vmem:[%s3559_s1 + $0x424] sm:$0xf]  ;;  %v2007_v25 = vld [vmem:[%s3559_s1 + $0x428] sm:$0xf0]  ;;  %v2355_v36 = vld [vmem:[%s3559_s1 + $0x4f4] sm:$0xf] }
  0x7d   :  { %1340 = vmatpush.bf16.msrb.mxu1 %v1618_v49  ;;  %v1863_v35 = vld [vmem:[%s3559_s1 + $0x308] sm:$0xf0] }
  0x7e   :  { %1353 = vmatpush.bf16.msrb.mxu2 %v1682_v60 }
  0x7f   :  { %1364 = vmatpush.bf16.msra.mxu3 %v1762_v39  ;;  %v1906_v39 = vor.u32 %v2303_v31, %v1903_v32  ;;  %v1935_v31 = vld [vmem:[%s3559_s1 + $0x398] sm:$0xf0]  ;;  %v2277_v32 = vld [vmem:[%s3559_s1 + $0x284] sm:$0xf] }
  0x80   :  { %1328 = vmatpush.bf16.msrb.mxu0 %v1546_v63 }
  0x81   :  { %1341 = vmatpush.bf16.msrb.mxu1 %v1610_v0  ;;  %v1890_v0 = vor.u32 %v2299_v57, %v1887_v58  ;;  %v2369_v57 = vld [vmem:[%s3559_s1 + $0x564] sm:$0xf]  ;;  %v2167_v58 = vld [vmem:[%s3559_s1 + $0x568] sm:$0xf0] }
  0x82   :  { %1354 = vmatpush.bf16.msrb.mxu2 %v1674_v14  ;;  %v2313_v14 = vld [vmem:[%s3559_s1 + $0x3a4] sm:$0xf] }
  0x83   :  { %1365 = vmatpush.bf16.msra.mxu3 %v1754_v56  ;;  %1329 = vmatmul.bf16.vlgmr.msrb.gmra.mxu0 %v2699_v21  ;;  %v2319_v21 = vld [vmem:[%s3559_s1 + $0x3d4] sm:$0xf]  ;;  %v1823_v56 = vld [vmem:[%s3559_s1 + $0x2b8] sm:$0xf0] }
  0x84   :  { %1373 = vmatpush.bf16.msra.mxu0 %v1858_v3  ;;  %1342 = vmatmul.bf16.vlgmr.msrb.gmra.mxu1 %v2666_v5  ;;  %v1831_v5 = vld [vmem:[%s3559_s1 + $0x2c8] sm:$0xf0]  ;;  %v1970_v49 = vor.u32 %v2319_v21, %v1967_v43  ;;  %v1826_v63 = vor.u32 %v2283_v55, %v1823_v56  ;;  %v2371_v21 = vld [vmem:[%s3559_s1 + $0x574] sm:$0xf]  ;;  %v2175_v43 = vld [vmem:[%s3559_s1 + $0x578] sm:$0xf0] }
  0x85   :  { %1386 = vmatpush.bf16.msra.mxu1 %v1922_v6  ;;  %1355 = vmatmul.bf16.vlgmr.msrb.gmra.mxu2 %v2664_v4  ;;  %v1834_v52 = vor.u32 %v2285_v44, %v1831_v5  ;;  %v2317_v4 = vld [vmem:[%s3559_s1 + $0x3c4] sm:$0xf]  ;;  %v1815_v3 = vld [vmem:[%s3559_s1 + $0x2a8] sm:$0xf0]  ;;  %v1938_v44 = vor.u32 %v2311_v26, %v1935_v31  ;;  %v2327_v5 = vld [vmem:[%s3559_s1 + $0x414] sm:$0xf] }
  0x86   :  { %1399 = vmatpush.bf16.msra.mxu2 %v1986_v16  ;;  %v1962_v60 = vor.u32 %v2317_v4, %v1959_v54  ;;  %v2297_v6 = vld [vmem:[%s3559_s1 + $0x324] sm:$0xf]  ;;  %v1818_v12 = vor.u32 %v2281_v2, %v1815_v3  ;;  %v1807_v16 = vld [vmem:[%s3559_s1 + $0x298] sm:$0xf0]  ;;  %v2375_v4 = vld [vmem:[%s3559_s1 + $0x594] sm:$0xf]  ;;  %v2002_v55 = vor.u32 %v2327_v5, %v1999_v45 }
  0x87   :  { %1366 = vmatpush.bf16.msra.mxu3 %v1746_v10  ;;  %v2331_v10 = vld [vmem:[%s3559_s1 + $0x434] sm:$0xf]  ;;  %v1882_v13 = vor.u32 %v2297_v6, %v1879_v7  ;;  %v2191_v54 = vld [vmem:[%s3559_s1 + $0x598] sm:$0xf0]  ;;  %v2103_v56 = vld [vmem:[%s3559_s1 + $0x4e8] sm:$0xf0] }
  0x88   :  { %1374 = vmatpush.bf16.msra.mxu0 %v1850_v22  ;;  %v2018_v22 = vor.u32 %v2331_v10, %v2015_v11  ;;  %v2194_v62 = vor.u32 %v2375_v4, %v2191_v54  ;;  %v2351_v3 = vld [vmem:[%s3559_s1 + $0x4d4] sm:$0xf]  ;;  %v2095_v6 = vld [vmem:[%s3559_s1 + $0x4d8] sm:$0xf0]  ;;  %v2135_v26 = vld [vmem:[%s3559_s1 + $0x528] sm:$0xf0] }
  0x89   :  { %1387 = vmatpush.bf16.msra.mxu1 %v1914_v19  ;;  %v1946_v19 = vor.u32 %v2313_v14, %v1943_v15  ;;  %v2367_v7 = vld [vmem:[%s3559_s1 + $0x554] sm:$0xf]  ;;  %v2098_v10 = vor.u32 %v2351_v3, %v2095_v6 }
  0x8a   :  { %1400 = vmatpush.bf16.msra.mxu2 %v1978_v34  ;;  %v2293_v34 = vld [vmem:[%s3559_s1 + $0x304] sm:$0xf]  ;;  %v2347_v15 = vld [vmem:[%s3559_s1 + $0x4b4] sm:$0xf] }
  0x8b   :  { %1367 = vmatpush.bf16.msra.mxu3 %v1738_v29  ;;  %v1810_v29 = vor.u32 %v2279_v20, %v1807_v16  ;;  %v2079_v20 = vld [vmem:[%s3559_s1 + $0x4b8] sm:$0xf0]  ;;  %v2363_v16 = vld [vmem:[%s3559_s1 + $0x534] sm:$0xf] }
  0x8c   :  { %1375 = vmatpush.bf16.msra.mxu0 %v1842_v37  ;;  %v2010_v37 = vor.u32 %v2329_v24, %v2007_v25  ;;  %v2082_v18 = vor.u32 %v2347_v15, %v2079_v20  ;;  %v2071_v24 = vld [vmem:[%s3559_s1 + $0x4a8] sm:$0xf0]  ;;  %v2361_v25 = vld [vmem:[%s3559_s1 + $0x524] sm:$0xf] }
  0x8d   :  { %1388 = vmatpush.bf16.msra.mxu1 %v1906_v39  ;;  %v2111_v39 = vld [vmem:[%s3559_s1 + $0x4f8] sm:$0xf0]  ;;  %v2138_v31 = vor.u32 %v2361_v25, %v2135_v26 }
  0x8e   :  { %1368 = vmatmul.bf16.vlgmr.msra.gmra.mxu3 %v2857_v42  ;;  %1401 = vmatpush.bf16.msra.mxu2 %v1970_v49  ;;  %v2315_v42 = vld [vmem:[%s3559_s1 + $0x3b4] sm:$0xf]  ;;  %v2309_v49 = vld [vmem:[%s3559_s1 + $0x384] sm:$0xf]  ;;  %v2114_v51 = vor.u32 %v2355_v36, %v2111_v39  ;;  %v2127_v36 = vld [vmem:[%s3559_s1 + $0x518] sm:$0xf0] }
  0x8f   :  { %1412 = vmatpush.bf16.msrb.mxu3 %v2050_v33  ;;  %v1954_v9 = vor.u32 %v2315_v42, %v1951_v1  ;;  %v1799_v33 = vld [vmem:[%s3559_s1 + $0x288] sm:$0xf0]  ;;  %v2373_v42 = vld [vmem:[%s3559_s1 + $0x584] sm:$0xf] }
  0x90   :  { %1376 = vmatpush.bf16.msra.mxu0 %v1834_v52  ;;  %v1802_v47 = vor.u32 %v2277_v32, %v1799_v33  ;;  %v2178_v52 = vor.u32 %v2371_v21, %v2175_v43  ;;  %v2183_v1 = vld [vmem:[%s3559_s1 + $0x588] sm:$0xf0]  ;;  %v2343_v32 = vld [vmem:[%s3559_s1 + $0x494] sm:$0xf]  ;;  %v2063_v33 = vld [vmem:[%s3559_s1 + $0x498] sm:$0xf0] }
  0x91   :  { %1389 = vmatpush.bf16.msra.mxu1 %v1898_v53  ;;  %v2353_v53 = vld [vmem:[%s3559_s1 + $0x4e4] sm:$0xf]  ;;  %v2066_v43 = vor.u32 %v2343_v32, %v2063_v33 }
  0x92   :  { %1402 = vmatpush.bf16.msra.mxu2 %v1962_v60  ;;  %v2325_v60 = vld [vmem:[%s3559_s1 + $0x404] sm:$0xf] }
  0x93   :  { %1413 = vmatpush.bf16.msrb.mxu3 %v2042_v48  ;;  %v1866_v48 = vor.u32 %v2293_v34, %v1863_v35  ;;  %v1994_v2 = vor.u32 %v2325_v60, %v1991_v61  ;;  %v2359_v35 = vld [vmem:[%s3559_s1 + $0x514] sm:$0xf] }
  0x94   :  { %1377 = vmatpush.bf16.msra.mxu0 %v1826_v63  ;;  %v2106_v63 = vor.u32 %v2353_v53, %v2103_v56  ;;  %v2130_v45 = vor.u32 %v2359_v35, %v2127_v36 }
  0x95   :  { %1390 = vmatpush.bf16.msra.mxu1 %v1890_v0  ;;  %v2170_v0 = vor.u32 %v2369_v57, %v2167_v58 }
  0x96   :  { %1403 = vmatpush.bf16.msra.mxu2 %v1954_v9  ;;  %v2186_v9 = vor.u32 %v2373_v42, %v2183_v1 }
  0x97   :  { %1414 = vmatpush.bf16.msrb.mxu3 %v2034_v59  ;;  %v1930_v59 = vor.u32 %v2309_v49, %v1927_v50  ;;  %v2357_v49 = vld [vmem:[%s3559_s1 + $0x504] sm:$0xf]  ;;  %v2119_v50 = vld [vmem:[%s3559_s1 + $0x508] sm:$0xf0] }
  0x98   :  { %1378 = vmatpush.bf16.msra.mxu0 %v1818_v12  ;;  %v2087_v12 = vld [vmem:[%s3559_s1 + $0x4c8] sm:$0xf0]  ;;  %v2122_v53 = vor.u32 %v2357_v49, %v2119_v50 }
  0x99   :  { %1391 = vmatpush.bf16.msra.mxu1 %v1882_v13  ;;  %v2151_v13 = vld [vmem:[%s3559_s1 + $0x548] sm:$0xf0] }
  0x9a   :  { %1404 = vmatpush.bf16.msra.mxu2 %v1946_v19  ;;  %v2345_v19 = vld [vmem:[%s3559_s1 + $0x4a4] sm:$0xf] }
  0x9b   :  { %1415 = vmatpush.bf16.msrb.mxu3 %v2026_v8  ;;  %v2159_v8 = vld [vmem:[%s3559_s1 + $0x558] sm:$0xf0] }
  0x9c   :  { %1379 = vmatpush.bf16.msra.mxu0 %v1810_v29  ;;  %v2162_v11 = vor.u32 %v2367_v7, %v2159_v8  ;;  %v203_v29 = vperm.slane %v3512_v17, 0 }
  0x9d   :  { %1392 = vmatpush.bf16.msra.mxu1 %v1874_v30  ;;  %v2074_v30 = vor.u32 %v2345_v19, %v2071_v24  ;;  %v204_v24 = vperm.slane %v3512_v17, 1 }
  0x9e   :  { %1405 = vmatpush.bf16.msra.mxu2 %v1938_v44 }
  0x9f   :  { %1416 = vmatpush.bf16.msrb.mxu3 %v2018_v22 }
  0xa0   :  { %1380 = vmatpush.bf16.msra.mxu0 %v1802_v47  ;;  %v1161_v34 = vpop.f32.mrf.mxu0  ;;  %v2341_v47 = vld [vmem:[%s3559_s1 + $0x484] sm:$0xf] }
  0xa1   :  { %1393 = vmatpush.bf16.msra.mxu1 %v1866_v48  ;;  %v1174_v39 = vpop.f32.mrf.mxu1  ;;  %v2055_v48 = vld [vmem:[%s3559_s1 + $0x488] sm:$0xf0] }
  0xa2   :  { %1406 = vmatpush.bf16.msra.mxu2 %v1930_v59 }
  0xa3   :  { %1417 = vmatpush.bf16.msrb.mxu3 %v2010_v37  ;;  %1381 = vmatmul.bf16.vlgmr.msra.gmra.mxu0 %v2865_v46  ;;  %v2349_v46 = vld [vmem:[%s3559_s1 + $0x4c4] sm:$0xf]  ;;  %v1162_v37 = vadd.f32 %v1161_v34, %v203_v29 }
  0xa4   :  { %1425 = vmatpush.bf16.msrb.mxu0 %v2114_v51  ;;  %1394 = vmatmul.bf16.vlgmr.msra.gmra.mxu1 %v2847_v38  ;;  %v2365_v38 = vld [vmem:[%s3559_s1 + $0x544] sm:$0xf] }
  0xa5   :  { %1438 = vmatpush.bf16.msrb.mxu1 %v2178_v52  ;;  %1407 = vmatmul.bf16.vlgmr.msra.gmra.mxu2 %v2855_v41  ;;  %v2090_v41 = vor.u32 %v2349_v46, %v2087_v12  ;;  %v2154_v14 = vor.u32 %v2365_v38, %v2151_v13  ;;  %v1175_v44 = vadd.f32 %v1174_v39, %v1162_v37 }
  0xa6   :  { %1457 = vmatpush.bf16.msrb.mxu2 %v2194_v62 }
  0xa7   :  { %1418 = vmatpush.bf16.msrb.mxu3 %v2002_v55 }
  0xa8   :  { %1426 = vmatpush.bf16.msrb.mxu0 %v2106_v63  ;;  %v1187_v21 = vpop.f32.mrf.mxu2  ;;  %v1163_v4 = vpop.f32.mrf.mxu0 }
  0xa9   :  { %1439 = vmatpush.bf16.msrb.mxu1 %v2170_v0  ;;  %v1200_v5 = vpop.f32.mrf.mxu3  ;;  %v1188_v51 = vadd.f32 %v1187_v21, %v1175_v44  ;;  %v1176_v54 = vpop.f32.mrf.mxu1 }
  0xaa   :  { %1458 = vmatpush.bf16.msrb.mxu2 %v2186_v9 }
  0xab   :  { %1419 = vmatpush.bf16.msrb.mxu3 %v1994_v2  ;;  %v1201_v52 = vadd.f32 %v1200_v5, %v1188_v51 }
  0xac   :  { %1427 = vmatpush.bf16.msrb.mxu0 %v2098_v10 }
  0xad   :  { %1440 = vmatpush.bf16.msrb.mxu1 %v2162_v11 }
  0xae   :  { %1420 = vmatmul.bf16.vlgmr.msrb.gmra.mxu3 %v3050_v23  ;;  %v2143_v23 = vld [vmem:[%s3559_s1 + $0x538] sm:$0xf0] }
  0xaf   :  { %v2146_v22 = vor.u32 %v2363_v16, %v2143_v23 }
  0xb0   :  { %1428 = vmatpush.bf16.msrb.mxu0 %v2090_v41  ;;  %v1189_v55 = vpop.f32.mrf.mxu2 }
  0xb1   :  { %1441 = vmatpush.bf16.msrb.mxu1 %v2154_v14  ;;  %v1202_v56 = vpop.f32.mrf.mxu3 }
  0xb4   :  { %1429 = vmatpush.bf16.msrb.mxu0 %v2082_v18 }
  0xb5   :  { %1442 = vmatpush.bf16.msrb.mxu1 %v2146_v22  ;;  %2196 = vmatmul.msk.bf16.vlgmr.msrb.gmra.mxu2 %vm1148_vm0, %v2976_v40  ;;  %v2058_v40 = vor.u32 %v2341_v47, %v2055_v48 }
  0xb8   :  { %1430 = vmatpush.bf16.msrb.mxu0 %v2074_v30 }
  0xb9   :  { %1443 = vmatpush.bf16.msrb.mxu1 %v2138_v31 }
  0xbc   :  { %1431 = vmatpush.bf16.msrb.mxu0 %v2066_v43 }
  0xbd   :  { %1444 = vmatpush.bf16.msrb.mxu1 %v2130_v45 }
  0xc0   :  { %1432 = vmatpush.bf16.msrb.mxu0 %v2058_v40  ;;  %v1213_v57 = vpop.f32.mrf.mxu0 }
  0xc1   :  { %1445 = vmatpush.bf16.msrb.mxu1 %v2122_v53  ;;  %v1214_v58 = vadd.f32 %v1213_v57, %v1201_v52  ;;  %v1226_v59 = vpop.f32.mrf.mxu1 }
  0xc3   :  { %1433 = vmatmul.bf16.vlgmr.msrb.gmra.mxu0 %v3063_v28  ;;  %v1227_v60 = vadd.f32 %v1226_v59, %v1214_v58 }
  0xc4   :  { %1446 = vmatmul.bf16.vlgmr.msrb.gmra.mxu1 %v3061_v27 }
  0xc8   :  { %v1239_v61 = vpop.f32.mrf.mxu2  ;;  %v1215_v42 = vpop.f32.mrf.mxu0 }
  0xc9   :  { %v1240_v62 = vadd.f32 %v1239_v61, %v1227_v60  ;;  %v1252_v63 = vpop.f32.mrf.mxu3  ;;  %v1228_v1 = vpop.f32.mrf.mxu1 }
  0xcb   :  { %v1253_v0 = vadd.f32 %v1252_v63, %v1240_v62 }
  0xd0   :  { %v1241_v2 = vpop.f32.mrf.mxu2 }
  0xd1   :  { %v1254_v3 = vpop.f32.mrf.mxu3 }
  0xd9   :  { %v1304_v6 = vpop.f32.mrf.mxu3 }
  0xe0   :  { %v1265_v7 = vpop.f32.mrf.mxu0 }
  0xe1   :  { %v1266_v8 = vadd.f32 %v1265_v7, %v1253_v0  ;;  %v1278_v9 = vpop.f32.mrf.mxu1  ;;  %v1306_v28 = vpop.f32.mrf.mxu3 }
  0xe3   :  { %v1279_v10 = vadd.f32 %v1278_v9, %v1266_v8 }
  0xe8   :  { %v1291_v11 = vpop.f32.mrf.mxu2  ;;  %v1267_v46 = vpop.f32.mrf.mxu0 }
  0xe9   :  { %v1292_v27 = vadd.f32 %v1291_v11, %v1279_v10  ;;  %v1280_v12 = vpop.f32.mrf.mxu1 }
  0xeb   :  { %v1305_v38 = vadd.f32 %v1304_v6, %v1292_v27 }
  0xed   :  { %v1464_v53 = vmax.f32 %v1305_v38, 0.0 }
  0xf0   :  { %v1293_v41 = vpop.f32.mrf.mxu2 }
  0xf1   :  { %v1317_v13 = vpop.f32.mrf.mxu3 }
  0xf2   :  { %v1318_v26 = vadd.f32 %v1317_v13, %v204_v24 }
  0xf9   :  { %v1319_v14 = vpop.f32.mrf.mxu3 }
 0x100   :  { %v1330_v15 = vpop.f32.mrf.mxu0 }
 0x101   :  { %v1343_v20 = vpop.f32.mrf.mxu1  ;;  %v1331_v29 = vadd.f32 %v1330_v15, %v1318_v26 }
 0x103   :  { %v1344_v32 = vadd.f32 %v1343_v20, %v1331_v29 }
 0x108   :  { %v1332_v16 = vpop.f32.mrf.mxu0  ;;  %v1356_v23 = vpop.f32.mrf.mxu2 }
 0x109   :  { %v1345_v18 = vpop.f32.mrf.mxu1  ;;  %v1357_v33 = vadd.f32 %v1356_v23, %v1344_v32 }
 0x110   :  { %v1358_v19 = vpop.f32.mrf.mxu2 }
 0x111   :  { %v1369_v22 = vpop.f32.mrf.mxu3 }
 0x112   :  { %v1370_v37 = vadd.f32 %v1369_v22, %v1357_v33 }
 0x119   :  { %v1371_v25 = vpop.f32.mrf.mxu3 }
 0x120   :  { %v1382_v30 = vpop.f32.mrf.mxu0 }
 0x121   :  { %v1395_v31 = vpop.f32.mrf.mxu1  ;;  %v1383_v21 = vadd.f32 %v1382_v30, %v1370_v37 }
 0x123   :  { %v1396_v44 = vadd.f32 %v1395_v31, %v1383_v21 }
 0x128   :  { %v1384_v34 = vpop.f32.mrf.mxu0  ;;  %v1408_v35 = vpop.f32.mrf.mxu2 }
 0x129   :  { %v1397_v36 = vpop.f32.mrf.mxu1  ;;  %v1409_v45 = vadd.f32 %v1408_v35, %v1396_v44 }
 0x130   :  { %v1410_v43 = vpop.f32.mrf.mxu2 }
 0x131   :  { %v1421_v39 = vpop.f32.mrf.mxu3 }
 0x132   :  { %v1422_v48 = vadd.f32 %v1421_v39, %v1409_v45 }
 0x138   :  { %v1460_v47 = vpop.f32.mrf.mxu2 }
 0x139   :  { %v1423_v5 = vpop.f32.mrf.mxu3 }
 0x140   :  { %v1434_v17 = vpop.f32.mrf.mxu0  ;;  %v1462_v40 = vpop.f32.mrf.mxu2 }
 0x141   :  { %v1435_v49 = vadd.f32 %v1434_v17, %v1422_v48  ;;  %v1447_v50 = vpop.f32.mrf.mxu1 }
 0x143   :  { %v1448_v51 = vadd.f32 %v1447_v50, %v1435_v49 }
 0x145   :  { %v1461_v52 = vadd.f32 %v1460_v47, %v1448_v51 }
 0x147   :  { %v1465_v4 = vmax.f32 %v1461_v52, 0.0 }
 0x148   :  { %v1436_v54 = vpop.f32.mrf.mxu0 }
 0x149   :  { %v1466_v55 = vpack.c.bf16 %v1465_v4, %v1464_v53  ;;  %v1449_v56 = vpop.f32.mrf.mxu1 }
 0x14b   :  { %1470 = vst.msk [vmem:[%s3562_s3] sm:$0xff] %vm1469_vm3, %v1466_v55 }

// kernel: _lambda_.145
= control target key start
LH: loop header
LB: loop body
LE: loop exit
PB: predicated region body
PF: predicated region fallthrough
CT: control target
= control target key end

     0   :  { %s3933_s30 = smov 0   ;;  %s3935_s10 = smov 0   ;;  %s5500_s0 = inlined_call_operand.vmem [shape: bf16[2,4,320], index: 0, kind: input, shape index: {}]   ;;  %s5501_s1 = inlined_call_operand.vmem [shape: bf16[2,4,256], index: 1, kind: input, shape index: {}]   ;;  %s5502_s2 = inlined_call_operand.vmem [shape: bf16[2,320], index: 2, kind: input, shape index: {}]   ;;  %s5503_s3 = inlined_call_operand.vmem [shape: bf16[320,320], index: 3, kind: input, shape index: {}]   ;;  %s5504_s4 = inlined_call_operand.vmem [shape: bf16[320,320], index: 4, kind: input, shape index: {}]   ;;  %s5505_s5 = inlined_call_operand.vmem [shape: bf16[320,384], index: 5, kind: input, shape index: {}]   ;;  %s5506_s6 = inlined_call_operand.vmem [shape: f32[1,384], index: 6, kind: input, shape index: {}, may-alias: {6,8}]   ;;  %s5507_s7 = inlined_call_operand.vmem [shape: bf16[256,384], index: 7, kind: input, shape index: {}]   ;;  %s5508_s8 = inlined_call_operand.vmem [shape: f32[1,384], index: 8, kind: input, shape index: {}, may-alias: {6,8}]   ;;  %s5509_s9 = inlined_call_operand.vmem [shape: bf16[2,4,384], index: 9, kind: output, shape index: {}]  }
   0x1   :  { %s3937_s11 = smov 0  }
   0x2 LB: > { %s31_s12 = sadd.s32 1, %s3876_s10  ;;  %p2659_p0 = scmp.ge.s32.totalorder %s3880_s11, 1  ;;  %s3880_s11 = sphi %s3937_s11, %s19_s11   ;;  %s3876_s10 = sphi %s3935_s10, %s5519_s10   ;;  %s3872_s30 = sphi %s3933_s30, %s5518_s30  }
   0x3   : > { %p33_p1 = scmp.ge.s32.totalorder %s31_s12, 2  ;;  %p323_p2 = scmp.lt.s32.totalorder %s3880_s11, 3 }
   0x5   : > { %s5521_s12 = smov (%p33_p1, %s31_s12), 0  ;;  %p324_p3 = pnand %p2659_p0, %p323_p2 }
   0x6   : > { %p376_p4 = scmp.lt.s32.totalorder (!%p324_p3), %s3872_s30, 1 }
   0x7   : > { %327 = sbr.rel (%p324_p3) target bundleno = 652 (0x28c), region = 56 }
   0xc   : > { %v2894_v0 = vld [vmem:[%s5503_s3 + $0x1c8] sm:$0xf]  ;;  %v3650_v1 = vld [vmem:[%s5503_s3 + $0x1d0] sm:$0xf0]  ;;  %v3613_v2 = vld [vmem:[%s5503_s3 + $0xac] sm:$0xf] }
   0xd   : > { %v2895_v3 = vor.u32 %v3650_v1, %v2894_v0  ;;  %v2752_v4 = vld [vmem:[%s5503_s3 + $0xb4] sm:$0xf0]  ;;  %v2882_v5 = vld [vmem:[%s5503_s3 + $0x1b0] sm:$0xf]  ;;  %v3647_v6 = vld [vmem:[%s5503_s3 + $0x1b8] sm:$0xf0] }
   0xe   : > { %v2755_v7 = vor.u32 %v3613_v2, %v2752_v4  ;;  %v3610_v8 = vld [vmem:[%s5503_s3 + $0x94] sm:$0xf]  ;;  %v2740_v9 = vld [vmem:[%s5503_s3 + $0x9c] sm:$0xf0]  ;;  %v2883_v10 = vor.u32 %v3647_v6, %v2882_v5  ;;  %v2870_v11 = vld [vmem:[%s5503_s3 + $0x198] sm:$0xf] }
   0xf   : > { %845 = vmatpush.bf16.msra.mxu2 %v2895_v3  ;;  %v2743_v12 = vor.u32 %v3610_v8, %v2740_v9  ;;  %v3644_v13 = vld [vmem:[%s5503_s3 + $0x1a0] sm:$0xf0]  ;;  %v2846_v14 = vld [vmem:[%s5503_s3 + $0x168] sm:$0xf]  ;;  %v3638_v15 = vld [vmem:[%s5503_s3 + $0x170] sm:$0xf0] }
  0x10   : > { %854 = vmatpush.bf16.msra.mxu3 %v2755_v7  ;;  %v3607_v16 = vld [vmem:[%s5503_s3 + $0x7c] sm:$0xf]  ;;  %v2728_v17 = vld [vmem:[%s5503_s3 + $0x84] sm:$0xf0]  ;;  %v2847_v18 = vor.u32 %v3638_v15, %v2846_v14  ;;  %v2858_v19 = vld [vmem:[%s5503_s3 + $0x180] sm:$0xf]  ;;  %v2871_v22 = vor.u32 %v3644_v13, %v2870_v11 }
  0x11   : > { %v3641_v20 = vld [vmem:[%s5503_s3 + $0x188] sm:$0xf0]  ;;  %v2750_v21 = vld [vmem:[%s5503_s3 + $0xa8] sm:$0xf]  ;;  %v3614_v23 = vld [vmem:[%s5503_s3 + $0xb0] sm:$0xf0]  ;;  %v2731_v26 = vor.u32 %v3607_v16, %v2728_v17 }
  0x12   : > { %828 = vmatpush.bf16.msra.mxu1 %v2847_v18  ;;  %v2834_v24 = vld [vmem:[%s5503_s3 + $0x150] sm:$0xf]  ;;  %v3635_v25 = vld [vmem:[%s5503_s3 + $0x158] sm:$0xf0]  ;;  %v3604_v27 = vld [vmem:[%s5503_s3 + $0x64] sm:$0xf]  ;;  %v2751_v30 = vor.u32 %v3614_v23, %v2750_v21  ;;  %v2859_v38 = vor.u32 %v3641_v20, %v2858_v19 }
  0x13   : > { %846 = vmatpush.bf16.msra.mxu2 %v2883_v10  ;;  %v2716_v28 = vld [vmem:[%s5503_s3 + $0x6c] sm:$0xf0]  ;;  %v3637_v29 = vld [vmem:[%s5503_s3 + $0x16c] sm:$0xf]  ;;  %v2835_v31 = vor.u32 %v3635_v25, %v2834_v24  ;;  %v2848_v32 = vld [vmem:[%s5503_s3 + $0x174] sm:$0xf0] }
  0x14   : > { %855 = vmatpush.bf16.msra.mxu3 %v2743_v12  ;;  %v2738_v33 = vld [vmem:[%s5503_s3 + $0x90] sm:$0xf]  ;;  %v3611_v34 = vld [vmem:[%s5503_s3 + $0x98] sm:$0xf0]  ;;  %815 = vmatpush.bf16.msra.mxu0 %v2751_v30  ;;  %v2822_v36 = vld [vmem:[%s5503_s3 + $0x138] sm:$0xf]  ;;  %v2719_v42 = vor.u32 %v3604_v27, %v2716_v28  ;;  %v2851_v43 = vor.u32 %v3637_v29, %v2848_v32 }
  0x15   : > { %v2739_v35 = vor.u32 %v3611_v34, %v2738_v33  ;;  %v3632_v37 = vld [vmem:[%s5503_s3 + $0x140] sm:$0xf0]  ;;  %v3601_v39 = vld [vmem:[%s5503_s3 + $0x4c] sm:$0xf]  ;;  %v2704_v40 = vld [vmem:[%s5503_s3 + $0x54] sm:$0xf0] }
  0x16   : > { %829 = vmatpush.bf16.msra.mxu1 %v2835_v31  ;;  %v2823_v41 = vor.u32 %v3632_v37, %v2822_v36  ;;  %v2726_v44 = vld [vmem:[%s5503_s3 + $0x78] sm:$0xf]  ;;  %v3608_v45 = vld [vmem:[%s5503_s3 + $0x80] sm:$0xf0]  ;;  %v2810_v46 = vld [vmem:[%s5503_s3 + $0x120] sm:$0xf]  ;;  %v2707_v56 = vor.u32 %v3601_v39, %v2704_v40 }
  0x17   : > { %847 = vmatpush.bf16.msra.mxu2 %v2871_v22  ;;  %v3634_v47 = vld [vmem:[%s5503_s3 + $0x154] sm:$0xf]  ;;  %v2836_v48 = vld [vmem:[%s5503_s3 + $0x15c] sm:$0xf0]  ;;  %v3629_v49 = vld [vmem:[%s5503_s3 + $0x128] sm:$0xf0]  ;;  %v2727_v50 = vor.u32 %v3608_v45, %v2726_v44 }
  0x18   : > { %856 = vmatpush.bf16.msra.mxu3 %v2731_v26  ;;  %816 = vmatpush.bf16.msra.mxu0 %v2739_v35  ;;  %v3598_v51 = vld [vmem:[%s5503_s3 + $0x34] sm:$0xf]  ;;  %v2692_v52 = vld [vmem:[%s5503_s3 + $0x3c] sm:$0xf0]  ;;  %v2811_v53 = vor.u32 %v3629_v49, %v2810_v46  ;;  %v3605_v55 = vld [vmem:[%s5503_s3 + $0x68] sm:$0xf0]  ;;  %v2839_v57 = vor.u32 %v3634_v47, %v2836_v48 }
  0x19   : > { %v2714_v54 = vld [vmem:[%s5503_s3 + $0x60] sm:$0xf]  ;;  %v2798_v58 = vld [vmem:[%s5503_s3 + $0x108] sm:$0xf]  ;;  %v3626_v59 = vld [vmem:[%s5503_s3 + $0x110] sm:$0xf0]  ;;  %v2695_v3 = vor.u32 %v3598_v51, %v2692_v52 }
  0x1a   : > { %830 = vmatpush.bf16.msra.mxu1 %v2823_v41  ;;  %v404_v60 = vld [vmem:[%s5502_s2] sm:$0x7]  ;;  %v3631_v61 = vld [vmem:[%s5503_s3 + $0x13c] sm:$0xf]  ;;  %v2824_v62 = vld [vmem:[%s5503_s3 + $0x144] sm:$0xf0]  ;;  %v2715_v63 = vor.u32 %v3605_v55, %v2714_v54  ;;  %v2799_v0 = vor.u32 %v3626_v59, %v2798_v58 }
  0x1b   : > { %848 = vmatpush.bf16.msra.mxu2 %v2859_v38  ;;  %486 = vst [vmem:[#allocation1] ss:$9 sm:$0xff] %v404_v60  ;;  %v2702_v1 = vld [vmem:[%s5503_s3 + $0x48] sm:$0xf]  ;;  %v3602_v2 = vld [vmem:[%s5503_s3 + $0x50] sm:$0xf0]  ;;  %v2827_v4 = vor.u32 %v3631_v61, %v2824_v62 }
  0x1c   : > { %857 = vmatpush.bf16.msra.mxu3 %v2719_v42  ;;  %817 = vmatpush.bf16.msra.mxu0 %v2727_v50  ;;  %v3595_v5 = vld [vmem:[%s5503_s3 + $0x1c] sm:$0xf]  ;;  %v2786_v6 = vld [vmem:[%s5503_s3 + $0xf0] sm:$0xf]  ;;  %v2680_v8 = vld [vmem:[%s5503_s3 + $0x24] sm:$0xf0]  ;;  %v2703_v11 = vor.u32 %v3602_v2, %v2702_v1 }
  0x1d   : > { %v3623_v7 = vld [vmem:[%s5503_s3 + $0xf8] sm:$0xf0]  ;;  %v3628_v9 = vld [vmem:[%s5503_s3 + $0x124] sm:$0xf]  ;;  %v2812_v10 = vld [vmem:[%s5503_s3 + $0x12c] sm:$0xf0]  ;;  %v2683_v16 = vor.u32 %v3595_v5, %v2680_v8 }
  0x1e   : > { %831 = vmatpush.bf16.msra.mxu1 %v2811_v53  ;;  %vm812_vm0 = vcmask 523264   ;;  %v3592_v12 = vld [vmem:[%s5503_s3 + $0x4] sm:$0xf]  ;;  %v2787_v13 = vor.u32 %v3623_v7, %v2786_v6  ;;  %v2690_v14 = vld [vmem:[%s5503_s3 + $0x30] sm:$0xf]  ;;  %v2815_v17 = vor.u32 %v3628_v9, %v2812_v10  ;;  %vm1524_vm6 = vcmask 1041408  }
  0x1f   : > { %867 = vmatpush.bf16.msrb.mxu2 %v2851_v43  ;;  %v3599_v15 = vld [vmem:[%s5503_s3 + $0x38] sm:$0xf0]  ;;  %v2774_v19 = vld [vmem:[%s5503_s3 + $0xd8] sm:$0xf]  ;;  %v3620_v20 = vld [vmem:[%s5503_s3 + $0xe0] sm:$0xf0] }
  0x20   : > { %858 = vmatpush.bf16.msra.mxu3 %v2707_v56  ;;  %818 = vmatpush.bf16.msra.mxu0 %v2715_v63  ;;  %v2668_v21 = vld [vmem:[%s5503_s3 + $0xc] sm:$0xf0]  ;;  %v3625_v22 = vld [vmem:[%s5503_s3 + $0x10c] sm:$0xf]  ;;  %v2800_v23 = vld [vmem:[%s5503_s3 + $0x114] sm:$0xf0]  ;;  %v2691_v26 = vor.u32 %v3599_v15, %v2690_v14  ;;  %v2775_v27 = vor.u32 %v3620_v20, %v2774_v19 }
  0x21   : > { %v3649_v24 = vld [vmem:[%s5503_s3 + $0x1cc] sm:$0xf]  ;;  %v2896_v25 = vld [vmem:[%s5503_s3 + $0x1d4] sm:$0xf0]  ;;  %v3596_v29 = vld [vmem:[%s5503_s3 + $0x20] sm:$0xf0]  ;;  %v2671_v30 = vor.u32 %v3592_v12, %v2668_v21  ;;  %v2803_v31 = vor.u32 %v3625_v22, %v2800_v23 }
  0x22   : > { %832 = vmatpush.bf16.msra.mxu1 %v2799_v0  ;;  %v4121_v18 = vld [vmem:[#allocation1 + $0x12] sm:$0xff]  ;;  %v2678_v28 = vld [vmem:[%s5503_s3 + $0x18] sm:$0xf]  ;;  %v3622_v32 = vld [vmem:[%s5503_s3 + $0xf4] sm:$0xf]  ;;  %v2899_v35 = vor.u32 %v3649_v24, %v2896_v25  ;;  %vm1539_vm15 = vcmask 517120  }
  0x23   : > { %868 = vmatpush.bf16.msrb.mxu2 %v2839_v57  ;;  %v2762_v33 = vld [vmem:[%s5503_s3 + $0xc0] sm:$0xf]  ;;  %v3617_v34 = vld [vmem:[%s5503_s3 + $0xc8] sm:$0xf0]  ;;  %v2758_v37 = vld [vmem:[%s5503_s3 + $0xb0] sm:$0xf]  ;;  %v2679_v41 = vor.u32 %v3596_v29, %v2678_v28 }
  0x24   : > { %859 = vmatpush.bf16.msra.mxu3 %v2695_v3  ;;  %2904 = vmatmul.msk.bf16.vlgmr.msra.gmra.mxu2 %vm812_vm0, %v4121_v18  ;;  %v2788_v36 = vld [vmem:[%s5503_s3 + $0xfc] sm:$0xf0]  ;;  %v3615_v38 = vld [vmem:[%s5503_s3 + $0xb8] sm:$0xf0]  ;;  %v3646_v39 = vld [vmem:[%s5503_s3 + $0x1b4] sm:$0xf]  ;;  %v2763_v42 = vor.u32 %v3617_v34, %v2762_v33 }
  0x25   : > { %819 = vmatpush.bf16.msra.mxu0 %v2703_v11  ;;  %v2884_v40 = vld [vmem:[%s5503_s3 + $0x1bc] sm:$0xf0]  ;;  %v3593_v44 = vld [vmem:[%s5503_s3 + $0x8] sm:$0xf0]  ;;  %v4182_v45 = vld [vmem:[#allocation1] sm:$0xff]  ;;  %v2791_v46 = vor.u32 %v3622_v32, %v2788_v36  ;;  %v2759_v48 = vor.u32 %v3615_v38, %v2758_v37 }
  0x26   : > { %833 = vmatpush.bf16.msra.mxu1 %v2787_v13  ;;  %v2666_v43 = vld [vmem:[%s5503_s3] sm:$0xf]  ;;  %v3619_v47 = vld [vmem:[%s5503_s3 + $0xdc] sm:$0xf]  ;;  %v2887_v49 = vor.u32 %v3646_v39, %v2884_v40  ;;  %v2776_v50 = vld [vmem:[%s5503_s3 + $0xe4] sm:$0xf0] }
  0x27   : > { %869 = vmatpush.bf16.msrb.mxu2 %v2827_v4  ;;  %v2746_v51 = vld [vmem:[%s5503_s3 + $0x98] sm:$0xf]  ;;  %v3612_v52 = vld [vmem:[%s5503_s3 + $0xa0] sm:$0xf0]  ;;  %v3643_v53 = vld [vmem:[%s5503_s3 + $0x19c] sm:$0xf]  ;;  %v2667_v55 = vor.u32 %v3593_v44, %v2666_v43  ;;  %v2779_v59 = vor.u32 %v3619_v47, %v2776_v50 }
  0x28   : > { %860 = vmatpush.bf16.msra.mxu3 %v2683_v16  ;;  %v2872_v54 = vld [vmem:[%s5503_s3 + $0x1a4] sm:$0xf0]  ;;  %v4203_v56 = vld [vmem:[#allocation1 + $0x9] sm:$0xff]  ;;  %v2902_v57 = vld [vmem:[%s5503_s3 + $0x1d0] sm:$0xf]  ;;  %v2747_v62 = vor.u32 %v3612_v52, %v2746_v51 }
  0x29   : > { %820 = vmatpush.bf16.msra.mxu0 %v2691_v26  ;;  %v3651_v58 = vld [vmem:[%s5503_s3 + $0x1d8] sm:$0xf0]  ;;  %v3616_v60 = vld [vmem:[%s5503_s3 + $0xc4] sm:$0xf]  ;;  %v2764_v61 = vld [vmem:[%s5503_s3 + $0xcc] sm:$0xf0]  ;;  %v2875_v1 = vor.u32 %v3643_v53, %v2872_v54 }
  0x2a   : > { %834 = vmatpush.bf16.msra.mxu1 %v2775_v27  ;;  %v2734_v63 = vld [vmem:[%s5503_s3 + $0x80] sm:$0xf]  ;;  %v2903_v0 = vor.u32 %v3651_v58, %v2902_v57  ;;  %v3609_v2 = vld [vmem:[%s5503_s3 + $0x88] sm:$0xf0]  ;;  %v2890_v3 = vld [vmem:[%s5503_s3 + $0x1b8] sm:$0xf]  ;;  %v2767_v10 = vor.u32 %v3616_v60, %v2764_v61 }
  0x2b   : > { %870 = vmatpush.bf16.msrb.mxu2 %v2815_v17  ;;  %v3648_v4 = vld [vmem:[%s5503_s3 + $0x1c0] sm:$0xf0]  ;;  %v2860_v6 = vld [vmem:[%s5503_s3 + $0x18c] sm:$0xf0]  ;;  %v3639_v8 = vld [vmem:[%s5503_s3 + $0x178] sm:$0xf0]  ;;  %v2735_v11 = vor.u32 %v3609_v2, %v2734_v63 }
  0x2c   : > { %861 = vmatpush.bf16.msra.mxu3 %v2671_v30  ;;  %v3640_v5 = vld [vmem:[%s5503_s3 + $0x184] sm:$0xf]  ;;  %v2854_v7 = vld [vmem:[%s5503_s3 + $0x170] sm:$0xf]  ;;  %v2891_v9 = vor.u32 %v3648_v4, %v2890_v3  ;;  %v2878_v12 = vld [vmem:[%s5503_s3 + $0x1a0] sm:$0xf] }
  0x2d   : > { %821 = vmatpush.bf16.msra.mxu0 %v2679_v41  ;;  %v3645_v13 = vld [vmem:[%s5503_s3 + $0x1a8] sm:$0xf0]  ;;  %v2863_v14 = vor.u32 %v3640_v5, %v2860_v6  ;;  %v2722_v15 = vld [vmem:[%s5503_s3 + $0x68] sm:$0xf]  ;;  %v3606_v16 = vld [vmem:[%s5503_s3 + $0x70] sm:$0xf0]  ;;  %v2855_v17 = vor.u32 %v3639_v8, %v2854_v7 }
  0x2e   : > { %835 = vmatpush.bf16.msra.mxu1 %v2763_v42  ;;  %v2842_v19 = vld [vmem:[%s5503_s3 + $0x158] sm:$0xf]  ;;  %v3636_v20 = vld [vmem:[%s5503_s3 + $0x160] sm:$0xf0]  ;;  %v2879_v21 = vor.u32 %v3645_v13, %v2878_v12  ;;  %v2723_v22 = vor.u32 %v3606_v16, %v2722_v15  ;;  %v2710_v23 = vld [vmem:[%s5503_s3 + $0x50] sm:$0xf] }
  0x2f   : > { %871 = vmatpush.bf16.msrb.mxu2 %v2803_v31  ;;  %862 = vmatmul.bf16.vlgmr.msra.gmra.mxu3 %v4182_v45  ;;  %v2866_v24 = vld [vmem:[%s5503_s3 + $0x188] sm:$0xf]  ;;  %v3642_v25 = vld [vmem:[%s5503_s3 + $0x190] sm:$0xf0]  ;;  %v3603_v26 = vld [vmem:[%s5503_s3 + $0x58] sm:$0xf0]  ;;  %v2843_v29 = vor.u32 %v3636_v20, %v2842_v19 }
  0x30   : > { %884 = vmatpush.bf16.msrb.mxu3 %v2899_v35  ;;  %v3089_v27 = vld [vmem:[%s5504_s4 + $0x168] sm:$0xf]  ;;  %v3698_v28 = vld [vmem:[%s5504_s4 + $0x170] sm:$0xf0]  ;;  %v2830_v32 = vld [vmem:[%s5503_s3 + $0x140] sm:$0xf]  ;;  %v2867_v34 = vor.u32 %v3642_v25, %v2866_v24  ;;  %v2711_v37 = vor.u32 %v3603_v26, %v2710_v23 }
  0x31   : > { %822 = vmatpush.bf16.msra.mxu0 %v2667_v55  ;;  %836 = vmatmul.bf16.vlgmr.msra.gmra.mxu1 %v4203_v56  ;;  %v2993_v30 = vld [vmem:[%s5504_s4 + $0xa8] sm:$0xf]  ;;  %v3674_v31 = vld [vmem:[%s5504_s4 + $0xb0] sm:$0xf0]  ;;  %v3633_v33 = vld [vmem:[%s5503_s3 + $0x148] sm:$0xf0]  ;;  %v3090_v39 = vor.u32 %v3698_v28, %v3089_v27 }
  0x32   : > { %893 = vmatpush.bf16.msrb.mxu1 %v2759_v48  ;;  %v2994_v35 = vor.u32 %v3674_v31, %v2993_v30  ;;  %v2981_v36 = vld [vmem:[%s5504_s4 + $0x90] sm:$0xf]  ;;  %v2698_v38 = vld [vmem:[%s5503_s3 + $0x38] sm:$0xf]  ;;  %v3671_v40 = vld [vmem:[%s5504_s4 + $0x98] sm:$0xf0] }
  0x33   : > { %872 = vmatpush.bf16.msrb.mxu2 %v2791_v46  ;;  %v3600_v41 = vld [vmem:[%s5503_s3 + $0x40] sm:$0xf0]  ;;  %v3077_v42 = vld [vmem:[%s5504_s4 + $0x150] sm:$0xf]  ;;  %v3695_v43 = vld [vmem:[%s5504_s4 + $0x158] sm:$0xf0]  ;;  %v2982_v44 = vor.u32 %v3671_v40, %v2981_v36  ;;  %v2831_v46 = vor.u32 %v3633_v33, %v2830_v32 }
  0x34   : > { %885 = vmatpush.bf16.msrb.mxu3 %v2887_v49  ;;  %823 = vmatmul.bf16.vlgmr.msra.gmra.mxu0 %v4182_v45  ;;  %v2969_v47 = vld [vmem:[%s5504_s4 + $0x78] sm:$0xf]  ;;  %v3668_v48 = vld [vmem:[%s5504_s4 + $0x80] sm:$0xf0]  ;;  %v2818_v49 = vld [vmem:[%s5503_s3 + $0x128] sm:$0xf]  ;;  %v2699_v51 = vor.u32 %v3600_v41, %v2698_v38  ;;  %v3078_v53 = vor.u32 %v3695_v43, %v3077_v42 }
  0x35   : > { %923 = vmatpush.bf16.msrb.mxu0 %v2903_v0  ;;  %v3630_v50 = vld [vmem:[%s5503_s3 + $0x130] sm:$0xf0]  ;;  %v2686_v52 = vld [vmem:[%s5503_s3 + $0x20] sm:$0xf]  ;;  %v3597_v54 = vld [vmem:[%s5503_s3 + $0x28] sm:$0xf0]  ;;  %v2970_v58 = vor.u32 %v3668_v48, %v2969_v47 }
  0x36   : > { %894 = vmatpush.bf16.msrb.mxu1 %v2747_v62  ;;  %v3065_v55 = vld [vmem:[%s5504_s4 + $0x138] sm:$0xf]  ;;  %v3692_v57 = vld [vmem:[%s5504_s4 + $0x140] sm:$0xf0]  ;;  %v2806_v60 = vld [vmem:[%s5503_s3 + $0x110] sm:$0xf]  ;;  %v2687_v62 = vor.u32 %v3597_v54, %v2686_v52 }
  0x37   : > { %873 = vmatpush.bf16.msrb.mxu2 %v2779_v59  ;;  %v2819_v59 = vor.u32 %v3630_v50, %v2818_v49  ;;  %v3627_v61 = vld [vmem:[%s5503_s3 + $0x118] sm:$0xf0]  ;;  %v2674_v63 = vld [vmem:[%s5503_s3 + $0x8] sm:$0xf]  ;;  %v3066_v0 = vor.u32 %v3692_v57, %v3065_v55  ;;  %v3053_v2 = vld [vmem:[%s5504_s4 + $0x120] sm:$0xf] }
  0x38   : > { %886 = vmatpush.bf16.msrb.mxu3 %v2875_v1  ;;  %v3594_v1 = vld [vmem:[%s5503_s3 + $0x10] sm:$0xf0]  ;;  %v3689_v3 = vld [vmem:[%s5504_s4 + $0x128] sm:$0xf0]  ;;  %v2807_v4 = vor.u32 %v3627_v61, %v2806_v60  ;;  %v2794_v5 = vld [vmem:[%s5503_s3 + $0xf8] sm:$0xf] }
  0x39   : > { %924 = vmatpush.bf16.msrb.mxu0 %v2891_v9  ;;  %v3624_v6 = vld [vmem:[%s5503_s3 + $0x100] sm:$0xf0]  ;;  %v3054_v7 = vor.u32 %v3689_v3, %v3053_v2  ;;  %v3041_v8 = vld [vmem:[%s5504_s4 + $0x108] sm:$0xf]  ;;  %v3686_v9 = vld [vmem:[%s5504_s4 + $0x110] sm:$0xf0] }
  0x3a   : > { %895 = vmatpush.bf16.msrb.mxu1 %v2735_v11  ;;  %v2782_v11 = vld [vmem:[%s5503_s3 + $0xe0] sm:$0xf]  ;;  %v3621_v12 = vld [vmem:[%s5503_s3 + $0xe8] sm:$0xf0]  ;;  %v3042_v13 = vor.u32 %v3686_v9, %v3041_v8  ;;  %v2770_v15 = vld [vmem:[%s5503_s3 + $0xc8] sm:$0xf] }
  0x3b   : > { %874 = vmatpush.bf16.msrb.mxu2 %v2767_v10  ;;  %v2795_v10 = vor.u32 %v3624_v6, %v2794_v5  ;;  %v3618_v16 = vld [vmem:[%s5503_s3 + $0xd0] sm:$0xf0]  ;;  %v2995_v19 = vld [vmem:[%s5504_s4 + $0xb4] sm:$0xf0]  ;;  %v3029_v23 = vld [vmem:[%s5504_s4 + $0xf0] sm:$0xf] }
  0x3c   : > { %887 = vmatpush.bf16.msrb.mxu3 %v2863_v14  ;;  %v2783_v14 = vor.u32 %v3621_v12, %v2782_v11  ;;  %v2771_v20 = vor.u32 %v3618_v16, %v2770_v15  ;;  %v3683_v25 = vld [vmem:[%s5504_s4 + $0xf8] sm:$0xf0]  ;;  %v2983_v27 = vld [vmem:[%s5504_s4 + $0x9c] sm:$0xf0]  ;;  %v3662_v30 = vld [vmem:[%s5504_s4 + $0x50] sm:$0xf0] }
  0x3d   : > { %925 = vmatpush.bf16.msrb.mxu0 %v2879_v21  ;;  %v3030_v26 = vor.u32 %v3683_v25, %v3029_v23  ;;  %v3017_v32 = vld [vmem:[%s5504_s4 + $0xd8] sm:$0xf]  ;;  %v3680_v33 = vld [vmem:[%s5504_s4 + $0xe0] sm:$0xf0]  ;;  %v2971_v36 = vld [vmem:[%s5504_s4 + $0x84] sm:$0xf0] }
  0x3e   : > { %875 = vmatmul.bf16.vlgmr.msrb.gmra.mxu2 %v4203_v56  ;;  %896 = vmatpush.bf16.msrb.mxu1 %v2723_v22  ;;  %v3665_v22 = vld [vmem:[%s5504_s4 + $0x68] sm:$0xf0]  ;;  %v3659_v38 = vld [vmem:[%s5504_s4 + $0x38] sm:$0xf0]  ;;  %v3005_v41 = vld [vmem:[%s5504_s4 + $0xc0] sm:$0xf] }
  0x3f   : > { %1341 = vmatpush.bf16.msra.mxu2 %v2994_v35  ;;  %2905 = vmatmul.msk.bf16.vlgmr.msrb.gmra.mxu3 %vm812_vm0, %v4121_v18  ;;  %v3018_v35 = vor.u32 %v3680_v33, %v3017_v32  ;;  %v3677_v42 = vld [vmem:[%s5504_s4 + $0xc8] sm:$0xf0]  ;;  %v3001_v47 = vld [vmem:[%s5504_s4 + $0xb0] sm:$0xf]  ;;  %v3675_v49 = vld [vmem:[%s5504_s4 + $0xb8] sm:$0xf0] }
  0x40   : > { %906 = vmatpush.bf16.msra.mxu3 %v2855_v17  ;;  %v3673_v17 = vld [vmem:[%s5504_s4 + $0xac] sm:$0xf]  ;;  %v3006_v43 = vor.u32 %v3677_v42, %v3005_v41  ;;  %v3002_v50 = vor.u32 %v3675_v49, %v3001_v47  ;;  %v3656_v52 = vld [vmem:[%s5504_s4 + $0x20] sm:$0xf0]  ;;  %v2947_v55 = vld [vmem:[%s5504_s4 + $0x54] sm:$0xf0] }
  0x41   : > { %926 = vmatpush.bf16.msrb.mxu0 %v2867_v34  ;;  %v2998_v21 = vor.u32 %v3673_v17, %v2995_v19  ;;  %v3667_v34 = vld [vmem:[%s5504_s4 + $0x7c] sm:$0xf]  ;;  %v3661_v54 = vld [vmem:[%s5504_s4 + $0x4c] sm:$0xf]  ;;  %v2989_v57 = vld [vmem:[%s5504_s4 + $0x98] sm:$0xf] }
  0x42   : > { %897 = vmatpush.bf16.msrb.mxu1 %v2711_v37  ;;  %v2933_v37 = vld [vmem:[%s5504_s4 + $0x30] sm:$0xf]  ;;  %v2909_v61 = vld [vmem:[%s5504_s4] sm:$0xf]  ;;  %v3655_v6 = vld [vmem:[%s5504_s4 + $0x1c] sm:$0xf] }
  0x43   : > { %1342 = vmatpush.bf16.msra.mxu2 %v2982_v44  ;;  %v2934_v40 = vor.u32 %v3659_v38, %v2933_v37  ;;  %v3664_v44 = vld [vmem:[%s5504_s4 + $0x64] sm:$0xf]  ;;  %v2977_v2 = vld [vmem:[%s5504_s4 + $0x80] sm:$0xf]  ;;  %v3666_v9 = vld [vmem:[%s5504_s4 + $0x70] sm:$0xf0] }
  0x44   : > { %907 = vmatpush.bf16.msra.mxu3 %v2843_v29  ;;  %2906 = vmatmul.msk.bf16.vlgmr.msrb.gmra.mxu0 %vm812_vm0, %v4121_v18  ;;  %v2675_v18 = vor.u32 %v3594_v1, %v2674_v63  ;;  %v2945_v29 = vld [vmem:[%s5504_s4 + $0x48] sm:$0xf]  ;;  %v2935_v1 = vld [vmem:[%s5504_s4 + $0x3c] sm:$0xf0]  ;;  %v3710_v12 = vld [vmem:[%s5504_s4 + $0x1d0] sm:$0xf0] }
  0x45   : > { %1354 = vmatpush.bf16.msra.mxu0 %v3090_v39  ;;  %v2946_v31 = vor.u32 %v3662_v30, %v2945_v29  ;;  %v2974_v39 = vor.u32 %v3667_v34, %v2971_v36  ;;  %v3137_v11 = vld [vmem:[%s5504_s4 + $0x1c8] sm:$0xf]  ;;  %v3139_v15 = vld [vmem:[%s5504_s4 + $0x1d4] sm:$0xf0]  ;;  %v3652_v16 = vld [vmem:[%s5504_s4 + $0x4] sm:$0xf] }
  0x46   : > { %898 = vmatpush.bf16.msrb.mxu1 %v2699_v51  ;;  %v2921_v51 = vld [vmem:[%s5504_s4 + $0x18] sm:$0xf]  ;;  %v2911_v17 = vld [vmem:[%s5504_s4 + $0xc] sm:$0xf0]  ;;  %v3707_v25 = vld [vmem:[%s5504_s4 + $0x1b8] sm:$0xf0] }
  0x47   : > { %1343 = vmatpush.bf16.msra.mxu2 %v2970_v58  ;;  %v2950_v58 = vor.u32 %v3661_v54, %v2947_v55  ;;  %v3660_v29 = vld [vmem:[%s5504_s4 + $0x40] sm:$0xf0]  ;;  %v3113_v32 = vld [vmem:[%s5504_s4 + $0x198] sm:$0xf]  ;;  %v3703_v34 = vld [vmem:[%s5504_s4 + $0x19c] sm:$0xf] }
  0x48   : > { %908 = vmatpush.bf16.msra.mxu3 %v2831_v46  ;;  %v2959_v46 = vld [vmem:[%s5504_s4 + $0x6c] sm:$0xf0]  ;;  %v3704_v33 = vld [vmem:[%s5504_s4 + $0x1a0] sm:$0xf0]  ;;  %v3115_v36 = vld [vmem:[%s5504_s4 + $0x1a4] sm:$0xf0] }
  0x49   : > { %1355 = vmatpush.bf16.msra.mxu0 %v3078_v53  ;;  %v2962_v48 = vor.u32 %v3664_v44, %v2959_v46  ;;  %v2922_v53 = vor.u32 %v3656_v52, %v2921_v51  ;;  %v2929_v37 = vld [vmem:[%s5504_s4 + $0x20] sm:$0xf]  ;;  %v3657_v38 = vld [vmem:[%s5504_s4 + $0x28] sm:$0xf0]  ;;  %v3700_v42 = vld [vmem:[%s5504_s4 + $0x184] sm:$0xf] }
  0x4a   : > { %899 = vmatpush.bf16.msrb.mxu1 %v2687_v62  ;;  %v3653_v62 = vld [vmem:[%s5504_s4 + $0x8] sm:$0xf0]  ;;  %v2930_v44 = vor.u32 %v3657_v38, %v2929_v37  ;;  %v3103_v46 = vld [vmem:[%s5504_s4 + $0x18c] sm:$0xf0]  ;;  %v3654_v51 = vld [vmem:[%s5504_s4 + $0x10] sm:$0xf0] }
  0x4b   : > { %v2910_v63 = vor.u32 %v3653_v62, %v2909_v61  ;;  %v3701_v41 = vld [vmem:[%s5504_s4 + $0x188] sm:$0xf0]  ;;  %v3711_v54 = vld [vmem:[%s5504_s4 + $0x1d8] sm:$0xf0] }
  0x4c   : > { %909 = vmatpush.bf16.msra.mxu3 %v2819_v59  ;;  %v3672_v59 = vld [vmem:[%s5504_s4 + $0xa0] sm:$0xf0]  ;;  %v3697_v47 = vld [vmem:[%s5504_s4 + $0x16c] sm:$0xf] }
  0x4d   : > { %1356 = vmatpush.bf16.msra.mxu0 %v3066_v0  ;;  %v2990_v60 = vor.u32 %v3672_v59, %v2989_v57  ;;  %v3658_v0 = vld [vmem:[%s5504_s4 + $0x34] sm:$0xf]  ;;  %v3685_v38 = vld [vmem:[%s5504_s4 + $0x10c] sm:$0xf] }
  0x4e   : > { %900 = vmatpush.bf16.msrb.mxu1 %v2675_v18  ;;  %v2938_v3 = vor.u32 %v3658_v0, %v2935_v1  ;;  %v2923_v18 = vld [vmem:[%s5504_s4 + $0x24] sm:$0xf0]  ;;  %v3097_v0 = vld [vmem:[%s5504_s4 + $0x170] sm:$0xf]  ;;  %v3699_v1 = vld [vmem:[%s5504_s4 + $0x178] sm:$0xf0] }
  0x4f   : > { %v2926_v8 = vor.u32 %v3655_v6, %v2923_v18  ;;  %v3098_v6 = vor.u32 %v3699_v1, %v3097_v0  ;;  %v3681_v0 = vld [vmem:[%s5504_s4 + $0xe8] sm:$0xf0] }
  0x50   : > { %910 = vmatpush.bf16.msra.mxu3 %v2807_v4  ;;  %v3669_v4 = vld [vmem:[%s5504_s4 + $0x88] sm:$0xf0] }
  0x51   : > { %1357 = vmatpush.bf16.msra.mxu0 %v3054_v7  ;;  %901 = vmatmul.bf16.vlgmr.msrb.gmra.mxu1 %v4182_v45  ;;  %v2957_v45 = vld [vmem:[%s5504_s4 + $0x60] sm:$0xf]  ;;  %v2978_v5 = vor.u32 %v3669_v4, %v2977_v2  ;;  %v2965_v7 = vld [vmem:[%s5504_s4 + $0x68] sm:$0xf]  ;;  %v3694_v4 = vld [vmem:[%s5504_s4 + $0x154] sm:$0xf] }
  0x52   : > { %v2958_v24 = vor.u32 %v3665_v22, %v2957_v45  ;;  %v2953_v45 = vld [vmem:[%s5504_s4 + $0x50] sm:$0xf]  ;;  %v3663_v22 = vld [vmem:[%s5504_s4 + $0x58] sm:$0xf0] }
  0x53   : > { %v2954_v23 = vor.u32 %v3663_v22, %v2953_v45  ;;  %v3073_v45 = vld [vmem:[%s5504_s4 + $0x140] sm:$0xf]  ;;  %v3693_v22 = vld [vmem:[%s5504_s4 + $0x148] sm:$0xf0] }
  0x54   : > { %911 = vmatpush.bf16.msra.mxu3 %v2795_v10  ;;  %1344 = vmatpush.bf16.msra.mxu2 %v2958_v24  ;;  %v2966_v10 = vor.u32 %v3666_v9, %v2965_v7  ;;  %v3125_v24 = vld [vmem:[%s5504_s4 + $0x1b0] sm:$0xf]  ;;  %v3133_v7 = vld [vmem:[%s5504_s4 + $0x1b8] sm:$0xf] }
  0x55   : > { %1358 = vmatpush.bf16.msra.mxu0 %v3042_v13  ;;  %v3709_v13 = vld [vmem:[%s5504_s4 + $0x1cc] sm:$0xf]  ;;  %v3085_v9 = vld [vmem:[%s5504_s4 + $0x158] sm:$0xf] }
  0x58   : > { %912 = vmatpush.bf16.msra.mxu3 %v2783_v14  ;;  %1345 = vmatpush.bf16.msra.mxu2 %v2946_v31  ;;  %v3138_v14 = vor.u32 %v3710_v12, %v3137_v11  ;;  %v3708_v11 = vld [vmem:[%s5504_s4 + $0x1c0] sm:$0xf0] }
  0x59   : > { %1359 = vmatpush.bf16.msra.mxu0 %v3030_v26  ;;  %v3706_v26 = vld [vmem:[%s5504_s4 + $0x1b4] sm:$0xf] }
  0x5a   : > { %1371 = vmatpush.bf16.msra.mxu1 %v3138_v14  ;;  %v3134_v14 = vor.u32 %v3708_v11, %v3133_v7 }
  0x5c   : > { %913 = vmatpush.bf16.msra.mxu3 %v2771_v20  ;;  %1346 = vmatpush.bf16.msra.mxu2 %v2934_v40  ;;  %v3142_v20 = vor.u32 %v3709_v13, %v3139_v15  ;;  %v3101_v40 = vld [vmem:[%s5504_s4 + $0x180] sm:$0xf]  ;;  %v3691_v15 = vld [vmem:[%s5504_s4 + $0x13c] sm:$0xf] }
  0x5d   : > { %1360 = vmatpush.bf16.msra.mxu0 %v3018_v35  ;;  %v3114_v35 = vor.u32 %v3704_v33, %v3113_v32  ;;  %v3102_v52 = vor.u32 %v3701_v41, %v3101_v40  ;;  %v3690_v32 = vld [vmem:[%s5504_s4 + $0x130] sm:$0xf0] }
  0x5f   : > { %914 = vmatmul.bf16.vlgmr.msra.gmra.mxu3 %v4203_v56  ;;  %v3670_v56 = vld [vmem:[%s5504_s4 + $0x94] sm:$0xf] }
  0x60   : > { %1380 = vmatpush.bf16.msrb.mxu3 %v2998_v21  ;;  %v2986_v28 = vor.u32 %v3670_v56, %v2983_v27  ;;  %1347 = vmatpush.bf16.msra.mxu2 %v2922_v53  ;;  %v2914_v21 = vor.u32 %v3652_v16, %v2911_v17  ;;  %v3126_v56 = vor.u32 %v3707_v25, %v3125_v24  ;;  %v3127_v27 = vld [vmem:[%s5504_s4 + $0x1bc] sm:$0xf0]  ;;  %v3145_v53 = vld [vmem:[%s5504_s4 + $0x1d0] sm:$0xf]  ;;  %v3067_v16 = vld [vmem:[%s5504_s4 + $0x144] sm:$0xf0] }
  0x61   : > { %1361 = vmatpush.bf16.msra.mxu0 %v3006_v43  ;;  %v3130_v30 = vor.u32 %v3706_v26, %v3127_v27  ;;  %v3688_v26 = vld [vmem:[%s5504_s4 + $0x124] sm:$0xf]  ;;  %v3074_v27 = vor.u32 %v3693_v22, %v3073_v45  ;;  %v3324_v22 = vld [vmem:[%s5505_s5 + $0x150] sm:$0xf] }
  0x62   : > { %1372 = vmatpush.bf16.msra.mxu1 %v3126_v56  ;;  %v3055_v56 = vld [vmem:[%s5504_s4 + $0x12c] sm:$0xf0] }
  0x64   : > { %1381 = vmatpush.bf16.msrb.mxu3 %v2986_v28  ;;  %1348 = vmatpush.bf16.msra.mxu2 %v2910_v63  ;;  %v2941_v28 = vld [vmem:[%s5504_s4 + $0x38] sm:$0xf] }
  0x65   : > { %1419 = vmatpush.bf16.msrb.mxu0 %v3002_v50  ;;  %v2942_v31 = vor.u32 %v3660_v29, %v2941_v28  ;;  %v2917_v50 = vld [vmem:[%s5504_s4 + $0x8] sm:$0xf]  ;;  %v3058_v28 = vor.u32 %v3688_v26, %v3055_v56  ;;  %v3312_v26 = vld [vmem:[%s5505_s5 + $0x138] sm:$0xf]  ;;  %v3752_v56 = vld [vmem:[%s5505_s5 + $0x140] sm:$0xf0] }
  0x66   : > { %1373 = vmatpush.bf16.msra.mxu1 %v3114_v35  ;;  %v2918_v62 = vor.u32 %v3654_v51, %v2917_v50  ;;  %v3109_v29 = vld [vmem:[%s5504_s4 + $0x188] sm:$0xf]  ;;  %v3679_v51 = vld [vmem:[%s5504_s4 + $0xdc] sm:$0xf] }
  0x68   : > { %1382 = vmatpush.bf16.msrb.mxu3 %v2974_v39  ;;  %1410 = vmatpush.bf16.msrb.mxu2 %v3142_v20  ;;  %v3118_v39 = vor.u32 %v3703_v34, %v3115_v36  ;;  %v3121_v20 = vld [vmem:[%s5504_s4 + $0x1a0] sm:$0xf] }
  0x69   : > { %1420 = vmatpush.bf16.msrb.mxu0 %v2990_v60  ;;  %v3146_v60 = vor.u32 %v3711_v54, %v3145_v53  ;;  %v3037_v53 = vld [vmem:[%s5504_s4 + $0xf8] sm:$0xf]  ;;  %v3684_v54 = vld [vmem:[%s5504_s4 + $0x100] sm:$0xf0] }
  0x6a   : > { %1374 = vmatpush.bf16.msra.mxu1 %v3102_v52  ;;  %v3019_v52 = vld [vmem:[%s5504_s4 + $0xe4] sm:$0xf0] }
  0x6c   : > { %1383 = vmatpush.bf16.msrb.mxu3 %v2962_v48  ;;  %1411 = vmatpush.bf16.msrb.mxu2 %v3130_v30  ;;  %v3091_v48 = vld [vmem:[%s5504_s4 + $0x174] sm:$0xf0]  ;;  %v3702_v30 = vld [vmem:[%s5504_s4 + $0x190] sm:$0xf0] }
  0x6d   : > { %1421 = vmatpush.bf16.msrb.mxu0 %v2978_v5  ;;  %v3094_v59 = vor.u32 %v3697_v47, %v3091_v48  ;;  %v3079_v5 = vld [vmem:[%s5504_s4 + $0x15c] sm:$0xf0]  ;;  %v3110_v33 = vor.u32 %v3702_v30, %v3109_v29 }
  0x6e   : > { %v3082_v18 = vor.u32 %v3694_v4, %v3079_v5  ;;  %v3031_v47 = vld [vmem:[%s5504_s4 + $0xfc] sm:$0xf0]  ;;  %v3678_v4 = vld [vmem:[%s5504_s4 + $0xd0] sm:$0xf0] }
  0x6f   : > { %1393 = vmatpush.bf16.msrb.mxu1 %v3094_v59  ;;  %v3300_v30 = vld [vmem:[%s5505_s5 + $0x120] sm:$0xf] }
  0x70   : > { %1384 = vmatpush.bf16.msrb.mxu3 %v2950_v58  ;;  %1412 = vmatpush.bf16.msrb.mxu2 %v3118_v39  ;;  %v3106_v58 = vor.u32 %v3700_v42, %v3103_v46  ;;  %v3043_v39 = vld [vmem:[%s5504_s4 + $0x114] sm:$0xf0]  ;;  %v3049_v42 = vld [vmem:[%s5504_s4 + $0x110] sm:$0xf]  ;;  %v3682_v46 = vld [vmem:[%s5504_s4 + $0xf4] sm:$0xf] }
  0x71   : > { %1422 = vmatpush.bf16.msrb.mxu0 %v2966_v10  ;;  %v3696_v10 = vld [vmem:[%s5504_s4 + $0x160] sm:$0xf0]  ;;  %v3046_v41 = vor.u32 %v3685_v38, %v3043_v39  ;;  %v3733_v38 = vld [vmem:[%s5505_s5 + $0xac] sm:$0xf]  ;;  %v3242_v39 = vld [vmem:[%s5505_s5 + $0xb4] sm:$0xf0] }
  0x72   : > { %v3086_v17 = vor.u32 %v3696_v10, %v3085_v9 }
  0x73   : > { %1394 = vmatpush.bf16.msrb.mxu1 %v3082_v18 }
  0x74   : > { %1385 = vmatpush.bf16.msrb.mxu3 %v2938_v3  ;;  %1413 = vmatpush.bf16.msrb.mxu2 %v3106_v58  ;;  %v3022_v58 = vor.u32 %v3679_v51, %v3019_v52  ;;  %v3731_v51 = vld [vmem:[%s5505_s5 + $0x98] sm:$0xf0]  ;;  %v3730_v52 = vld [vmem:[%s5505_s5 + $0x94] sm:$0xf] }
  0x75   : > { %1423 = vmatpush.bf16.msrb.mxu0 %v2954_v23 }
  0x78   : > { %1386 = vmatpush.bf16.msrb.mxu3 %v2926_v8 }
  0x79   : > { %1424 = vmatpush.bf16.msrb.mxu0 %v2942_v31  ;;  %v3061_v31 = vld [vmem:[%s5504_s4 + $0x128] sm:$0xf] }
  0x7a   : > { %v3062_v37 = vor.u32 %v3690_v32, %v3061_v31  ;;  %v3749_v31 = vld [vmem:[%s5505_s5 + $0x128] sm:$0xf0] }
  0x7c   : > { %1387 = vmatpush.bf16.msrb.mxu3 %v2914_v21  ;;  %v3705_v21 = vld [vmem:[%s5504_s4 + $0x1a8] sm:$0xf0] }
  0x7d   : > { %1425 = vmatpush.bf16.msrb.mxu0 %v2930_v44  ;;  %v3122_v23 = vor.u32 %v3705_v21, %v3121_v20  ;;  %v3336_v20 = vld [vmem:[%s5505_s5 + $0x168] sm:$0xf]  ;;  %v3758_v21 = vld [vmem:[%s5505_s5 + $0x170] sm:$0xf0] }
  0x7e   : > { %v3337_v45 = vor.u32 %v3758_v21, %v3336_v20 }
  0x80   : > { %1449 = vmatpush.bf16.msra.mxu3 %v3146_v60  ;;  %v3038_v60 = vor.u32 %v3684_v54, %v3037_v53 }
  0x81   : > { %1426 = vmatpush.bf16.msrb.mxu0 %v2918_v62  ;;  %v3007_v62 = vld [vmem:[%s5504_s4 + $0xcc] sm:$0xf0] }
  0x84   : > { %1450 = vmatpush.bf16.msra.mxu3 %v3134_v14 }
  0x88   : > { %1451 = vmatpush.bf16.msra.mxu3 %v3122_v23  ;;  %v3755_v23 = vld [vmem:[%s5505_s5 + $0x158] sm:$0xf0] }
  0x8c   : > { %1452 = vmatpush.bf16.msra.mxu3 %v3110_v33  ;;  %v3301_v33 = vor.u32 %v3749_v31, %v3300_v30  ;;  %v1515_v30 = vlaneseq }
  0xa7   : > { %v850_v19 = vpop.f32.mrf.mxu2 }
  0xae   : > { %v837_v43 = vpop.f32.mrf.mxu1 }
  0xaf   : > { %v852_v49 = vpop.f32.mrf.mxu2 }
  0xb0   : > { %v3034_v49 = vor.u32 %v3682_v46, %v3031_v47  ;;  %v3384_v46 = vld [vmem:[%s5505_s5 + $0x1c8] sm:$0xf]  ;;  %v3770_v47 = vld [vmem:[%s5505_s5 + $0x1d0] sm:$0xf0] }
  0xb1   : > { %v824_v57 = vpop.f32.mrf.mxu0 }
  0xb2   : > { %v863_v55 = vpop.f32.mrf.mxu3  ;;  %v838_v61 = vadd.f32 %v837_v43, %v824_v57  ;;  %v3687_v43 = vld [vmem:[%s5504_s4 + $0x118] sm:$0xf0] }
  0xb3   : > { %v3050_v50 = vor.u32 %v3687_v43, %v3049_v42  ;;  %v3746_v42 = vld [vmem:[%s5505_s5 + $0x110] sm:$0xf0] }
  0xb4   : > { %v851_v63 = vadd.f32 %v850_v19, %v838_v61  ;;  %v3070_v19 = vor.u32 %v3691_v15, %v3067_v16  ;;  %v3676_v61 = vld [vmem:[%s5504_s4 + $0xc4] sm:$0xf] }
  0xb5   : > { %v3010_v1 = vor.u32 %v3676_v61, %v3007_v62  ;;  %v3372_v61 = vld [vmem:[%s5505_s5 + $0x1b0] sm:$0xf]  ;;  %v3767_v62 = vld [vmem:[%s5505_s5 + $0x1b8] sm:$0xf0] }
  0xb6   : > { %v932_v2 = vmax.f32 %v851_v63, 0.0  ;;  %v839_v3 = vpop.f32.mrf.mxu1  ;;  %1395 = vmatpush.bf16.msrb.mxu1 %v3070_v19  ;;  %v3025_v63 = vld [vmem:[%s5504_s4 + $0xe0] sm:$0xf] }
  0xb7   : > { %v3013_v3 = vld [vmem:[%s5504_s4 + $0xc8] sm:$0xf] }
  0xb8   : > { %v4601_v8 = vpack.c.bf16 %v932_v2, %v932_v2  ;;  %v3026_v2 = vor.u32 %v3681_v0, %v3025_v63  ;;  %v3373_v0 = vor.u32 %v3767_v62, %v3372_v61  ;;  %v3182_v62 = vld [vmem:[%s5505_s5 + $0x3c] sm:$0xf0] }
  0xb9   : > { %v826_v13 = vpop.f32.mrf.mxu0 }
  0xba   : > { %v865_v12 = vpop.f32.mrf.mxu3  ;;  %1349 = vmatmul.bf16.vlgmr.msra.gmra.mxu2 %v4601_v8  ;;  %1388 = vmatmul.bf16.vlgmr.msrb.gmra.mxu3 %v4601_v8 }
  0xbb   : > { %1432 = vmatpush.bf16.msra.mxu2 %v3098_v6  ;;  %1396 = vmatpush.bf16.msrb.mxu1 %v3058_v28  ;;  %v3014_v6 = vor.u32 %v3678_v4, %v3013_v3  ;;  %v3727_v3 = vld [vmem:[%s5505_s5 + $0x7c] sm:$0xf] }
  0xbc   : > { %1996 = vmatpush.bf16.msrb.mxu3 %v3337_v45  ;;  %v3724_v45 = vld [vmem:[%s5505_s5 + $0x64] sm:$0xf] }
  0xbf   : > { %1433 = vmatpush.bf16.msra.mxu2 %v3086_v17  ;;  %1397 = vmatpush.bf16.msrb.mxu1 %v3046_v41  ;;  %v3245_v41 = vor.u32 %v3733_v38, %v3242_v39  ;;  %v3194_v39 = vld [vmem:[%s5505_s5 + $0x54] sm:$0xf0] }
  0xc1   : > { %v876_v24 = vpop.f32.mrf.mxu2  ;;  %v928_v35 = vpop.f32.mrf.mxu0 }
  0xc2   : > { %v877_v25 = vadd.f32 %v876_v24, %v863_v55  ;;  %v889_v34 = vpop.f32.mrf.mxu3  ;;  %v3325_v24 = vor.u32 %v3755_v23, %v3324_v22  ;;  %v3206_v22 = vld [vmem:[%s5505_s5 + $0x6c] sm:$0xf0] }
  0xc3   : > { %1434 = vmatpush.bf16.msra.mxu2 %v3074_v27  ;;  %1398 = vmatpush.bf16.msrb.mxu1 %v3034_v49  ;;  %v3313_v27 = vor.u32 %v3752_v56, %v3312_v26  ;;  %v3385_v49 = vor.u32 %v3770_v47, %v3384_v46  ;;  %v3737_v26 = vld [vmem:[%s5505_s5 + $0xc8] sm:$0xf0]  ;;  %v3248_v56 = vld [vmem:[%s5505_s5 + $0xb0] sm:$0xf]  ;;  %v3236_v46 = vld [vmem:[%s5505_s5 + $0x98] sm:$0xf] }
  0xc4   : > { %v890_v36 = vadd.f32 %v889_v34, %v877_v25  ;;  %1997 = vmatpush.bf16.msrb.mxu3 %v3325_v24  ;;  %v3209_v24 = vor.u32 %v3724_v45, %v3206_v22  ;;  %v3732_v47 = vld [vmem:[%s5505_s5 + $0xa0] sm:$0xf0]  ;;  %v3717_v45 = vld [vmem:[%s5505_s5 + $0x28] sm:$0xf0] }
  0xc6   : > { %v933_v40 = vmax.f32 %v890_v36, 0.0  ;;  %v3734_v36 = vld [vmem:[%s5505_s5 + $0xb0] sm:$0xf0] }
  0xc7   : > { %1435 = vmatpush.bf16.msra.mxu2 %v3062_v37  ;;  %1399 = vmatpush.bf16.msrb.mxu1 %v3022_v58  ;;  %v3743_v58 = vld [vmem:[%s5505_s5 + $0xf8] sm:$0xf0] }
  0xc8   : > { %v936_v48 = vpack.c.bf16 %v933_v40, %v933_v40  ;;  %1998 = vmatpush.bf16.msrb.mxu3 %v3313_v27  ;;  %v3288_v40 = vld [vmem:[%s5505_s5 + $0x108] sm:$0xf] }
  0xc9   : > { %v878_v44 = vpop.f32.mrf.mxu2  ;;  %v930_v57 = vpop.f32.mrf.mxu0 }
  0xca   : > { %1362 = vmatmul.bf16.vlgmr.msra.gmra.mxu0 %v936_v48  ;;  %v891_v55 = vpop.f32.mrf.mxu3  ;;  %v3289_v44 = vor.u32 %v3746_v42, %v3288_v40  ;;  %v3276_v57 = vld [vmem:[%s5505_s5 + $0xf0] sm:$0xf]  ;;  %v3757_v40 = vld [vmem:[%s5505_s5 + $0x16c] sm:$0xf] }
  0xcb   : > { %1436 = vmatpush.bf16.msra.mxu2 %v3050_v50  ;;  %1400 = vmatpush.bf16.msrb.mxu1 %v3010_v1  ;;  %v3228_v50 = vld [vmem:[%s5505_s5 + $0x90] sm:$0xf]  ;;  %v3230_v55 = vld [vmem:[%s5505_s5 + $0x9c] sm:$0xf0]  ;;  %v3216_v1 = vld [vmem:[%s5505_s5 + $0x78] sm:$0xf] }
  0xcc   : > { %1999 = vmatpush.bf16.msrb.mxu3 %v3301_v33  ;;  %v3229_v54 = vor.u32 %v3731_v51, %v3228_v50  ;;  %2013 = vmatpush.bf16.msra.mxu0 %v3385_v49 }
  0xce   : > { %v902_v59 = vpop.f32.mrf.mxu1 }
  0xcf   : > { %1437 = vmatpush.bf16.msra.mxu2 %v3038_v60  ;;  %v3277_v60 = vor.u32 %v3743_v58, %v3276_v57  ;;  %v3180_v57 = vld [vmem:[%s5505_s5 + $0x30] sm:$0xf]  ;;  %v3719_v58 = vld [vmem:[%s5505_s5 + $0x38] sm:$0xf0] }
  0xd0   : > { %2000 = vmatpush.bf16.msrb.mxu3 %v3289_v44  ;;  %2014 = vmatpush.bf16.msra.mxu0 %v3373_v0  ;;  %v3181_v61 = vor.u32 %v3719_v58, %v3180_v57  ;;  %v3766_v58 = vld [vmem:[%s5505_s5 + $0x1b4] sm:$0xf] }
  0xd3   : > { %1438 = vmatpush.bf16.msra.mxu2 %v3026_v2  ;;  %v3728_v2 = vld [vmem:[%s5505_s5 + $0x80] sm:$0xf0] }
  0xd4   : > { %2001 = vmatpush.bf16.msrb.mxu3 %v3277_v60 }
  0xd6   : > { %v904_v5 = vpop.f32.mrf.mxu1 }
  0xd7   : > { %1439 = vmatpush.bf16.msra.mxu2 %v3014_v6  ;;  %v3217_v5 = vor.u32 %v3728_v2, %v3216_v1  ;;  %v3218_v6 = vld [vmem:[%s5505_s5 + $0x84] sm:$0xf0] }
  0xda   : > { %1427 = vmatmul.bf16.vlgmr.msrb.gmra.mxu0 %v4601_v8 }
  0xe2   : > { %v915_v18 = vpop.f32.mrf.mxu3 }
  0xe3   : > { %v916_v7 = vadd.f32 %v915_v18, %v902_v59  ;;  %v3233_v59 = vor.u32 %v3730_v52, %v3230_v55  ;;  %v3264_v18 = vld [vmem:[%s5505_s5 + $0xd8] sm:$0xf]  ;;  %v3237_v52 = vor.u32 %v3732_v47, %v3236_v46  ;;  %v3392_v46 = vld [vmem:[%s5505_s5 + $0x1d0] sm:$0xf] }
  0xe5   : > { %v929_v9 = vadd.f32 %v928_v35, %v916_v7  ;;  %v3240_v35 = vld [vmem:[%s5505_s5 + $0xa8] sm:$0xf]  ;;  %v3221_v7 = vor.u32 %v3727_v3, %v3218_v6  ;;  %v3326_v3 = vld [vmem:[%s5505_s5 + $0x15c] sm:$0xf0]  ;;  %v3188_v6 = vld [vmem:[%s5505_s5 + $0x38] sm:$0xf] }
  0xe6   : > { %v3241_v37 = vor.u32 %v3734_v36, %v3240_v35  ;;  %v3722_v35 = vld [vmem:[%s5505_s5 + $0x50] sm:$0xf0]  ;;  %v3721_v36 = vld [vmem:[%s5505_s5 + $0x4c] sm:$0xf] }
  0xe7   : > { %v934_v10 = vmax.f32 %v929_v9, 0.0  ;;  %v3740_v9 = vld [vmem:[%s5505_s5 + $0xe0] sm:$0xf0]  ;;  %v3197_v44 = vor.u32 %v3721_v36, %v3194_v39  ;;  %v3302_v39 = vld [vmem:[%s5505_s5 + $0x12c] sm:$0xf0] }
  0xe9   : > { %v937_v11 = vpack.c.bf16 %v934_v10, %v934_v10 }
  0xea   : > { %v917_v12 = vpop.f32.mrf.mxu3 }
  0xeb   : > { %3147 = vmatmul.msk.bf16.vlgmr.msra.gmra.mxu1 %vm812_vm0, %v937_v11  ;;  %3148 = vmatmul.msk.bf16.vlgmr.msrb.gmra.mxu2 %vm812_vm0, %v937_v11 }
  0xec   : > { %3149 = vmatmul.msk.bf16.vlgmr.msra.gmra.mxu3 %vm812_vm0, %v937_v11  ;;  %1983 = vmatpush.bf16.msra.mxu1 %v3241_v37  ;;  %v3360_v11 = vld [vmem:[%s5505_s5 + $0x198] sm:$0xf] }
  0xed   : > { %2022 = vmatpush.bf16.msrb.mxu2 %v3245_v41  ;;  %v3338_v41 = vld [vmem:[%s5505_s5 + $0x174] sm:$0xf0] }
  0xee   : > { %v3341_v51 = vor.u32 %v3757_v40, %v3338_v41 }
  0xf0   : > { %1984 = vmatpush.bf16.msra.mxu1 %v3229_v54  ;;  %v1516_v54 = vshrl.u32 %v1515_v30, 7  ;;  %v3713_v30 = vld [vmem:[%s5505_s5 + $0x8] sm:$0xf0] }
  0xf1   : > { %2023 = vmatpush.bf16.msrb.mxu2 %v3233_v59  ;;  %v1517_v59 = vstv %s3872_s30  ;;  %s5523_s30 = smov (!%p376_p4, %s3872_s30), 1 }
  0xf2   : > { %vm4930_vm5 = vcmp.eq.s32.totalorder %v1516_v54, %v1517_v59  ;;  %v3745_v54 = vld [vmem:[%s5505_s5 + $0x10c] sm:$0xf]  ;;  %s3820_s23 = smul.u32 6, %s5523_s30  ;;  %s3591_s27 = sshll.u32 %s5523_s30, 2 }
  0xf3   : > { %s393_s13 = scalar_lea.vmem %s5501_s1, %s3591_s27 }
  0xf4   : > { %1985 = vmatpush.bf16.msra.mxu1 %v3217_v5  ;;  %v3224_v5 = vld [vmem:[%s5505_s5 + $0x80] sm:$0xf]  ;;  %s384_s26 = scalar_lea.vmem %s5500_s0, %s3820_s23  ;;  %s402_s20 = scalar_lea.vmem %s5509_s9, %s3820_s23 }
  0xf5   : > { %2024 = vmatpush.bf16.msrb.mxu2 %v3221_v7 }
  0xf9   : > { %2025 = vmatpush.bf16.msrb.mxu2 %v3209_v24  ;;  %v3212_v24 = vld [vmem:[%s5505_s5 + $0x68] sm:$0xf] }
  0xfb   : > { %1401 = vmatmul.bf16.vlgmr.msrb.gmra.mxu1 %v936_v48  ;;  %1440 = vmatmul.bf16.vlgmr.msra.gmra.mxu2 %v936_v48 }
  0xfd   : > { %2026 = vmatpush.bf16.msrb.mxu2 %v3197_v44  ;;  %v3386_v44 = vld [vmem:[%s5505_s5 + $0x1d4] sm:$0xf0] }
 0x13d   : > { %v1350_v13 = vpop.f32.mrf.mxu2  ;;  %v4702_v14 = vpop.f32.mrf.mxu3 }
 0x145   : > { %v1352_v16 = vpop.f32.mrf.mxu2  ;;  %v1391_v8 = vpop.f32.mrf.mxu3 }
 0x146   : > { %v3204_v16 = vld [vmem:[%s5505_s5 + $0x60] sm:$0xf]  ;;  %v3725_v8 = vld [vmem:[%s5505_s5 + $0x68] sm:$0xf0] }
 0x147   : > { %v1363_v15 = vpop.f32.mrf.mxu0  ;;  %v3205_v21 = vor.u32 %v3725_v8, %v3204_v16  ;;  %v3715_v16 = vld [vmem:[%s5505_s5 + $0x1c] sm:$0xf]  ;;  %v3170_v8 = vld [vmem:[%s5505_s5 + $0x24] sm:$0xf0] }
 0x148   : > { %v1364_v28 = vadd.f32 %v1363_v15, %v1350_v13  ;;  %v3265_v13 = vor.u32 %v3740_v9, %v3264_v18  ;;  %v3764_v15 = vld [vmem:[%s5505_s5 + $0x1a0] sm:$0xf0]  ;;  %v3173_v22 = vor.u32 %v3715_v16, %v3170_v8  ;;  %v3368_v16 = vld [vmem:[%s5505_s5 + $0x1a0] sm:$0xf] }
 0x149   : > { %v3361_v20 = vor.u32 %v3764_v15, %v3360_v11  ;;  %1986 = vmatpush.bf16.msra.mxu1 %v3205_v21 }
 0x14a   : > { %2002 = vmatpush.bf16.msrb.mxu3 %v3265_v13  ;;  %v3716_v13 = vld [vmem:[%s5505_s5 + $0x20] sm:$0xf0] }
 0x14b   : > { %2015 = vmatpush.bf16.msra.mxu0 %v3361_v20 }
 0x14f   : > { %v1365_v17 = vpop.f32.mrf.mxu0 }
 0x157   : > { %v4704_v19 = vpop.f32.mrf.mxu0 }
 0x15f   : > { %v1430_v25 = vpop.f32.mrf.mxu0 }
 0x160   : > { %v3252_v25 = vld [vmem:[%s5505_s5 + $0xc0] sm:$0xf] }
 0x161   : > { %v3253_v27 = vor.u32 %v3737_v26, %v3252_v25  ;;  %v3726_v25 = vld [vmem:[%s5505_s5 + $0x70] sm:$0xf0] }
 0x163   : > { %2003 = vmatpush.bf16.msrb.mxu3 %v3253_v27 }
 0x168   : > { %v1376_v29 = vpop.f32.mrf.mxu1 }
 0x169   : > { %v1377_v32 = vadd.f32 %v1376_v29, %v1364_v28  ;;  %v3348_v28 = vld [vmem:[%s5505_s5 + $0x180] sm:$0xf]  ;;  %v3761_v29 = vld [vmem:[%s5505_s5 + $0x188] sm:$0xf0] }
 0x16a   : > { %v3349_v33 = vor.u32 %v3761_v29, %v3348_v28  ;;  %v3213_v28 = vor.u32 %v3726_v25, %v3212_v24  ;;  %v3156_v29 = vld [vmem:[%s5505_s5] sm:$0xf]  ;;  %v3739_v25 = vld [vmem:[%s5505_s5 + $0xdc] sm:$0xf] }
 0x16b   : > { %v3150_v34 = vmul.f32 -1.442695, %v1377_v32  ;;  %v3157_v36 = vor.u32 %v3713_v30, %v3156_v29  ;;  %v3350_v30 = vld [vmem:[%s5505_s5 + $0x18c] sm:$0xf0] }
 0x16c   : > { %2016 = vmatpush.bf16.msra.mxu0 %v3349_v33  ;;  %v3882_v33 = vmov 0.0  }
 0x16d   : > { %3846 = vpow2.f32 %v3150_v34  ;;  %v3192_v34 = vld [vmem:[%s5505_s5 + $0x48] sm:$0xf] }
 0x16e   : > { %v4748_v43 = vpop.f32.mrf.mxu2  ;;  %v3193_v38 = vor.u32 %v3722_v35, %v3192_v34  ;;  %v4958_v34 = vsel %vm4930_vm5, 1.0, %v3882_v33  ;;  %v3158_v35 = vld [vmem:[%s5505_s5 + $0xc] sm:$0xf0] }
 0x16f   : > { %v4756_v48 = vpop.f32.mrf.mxu3 }
 0x170   : > { %v1378_v53 = vpop.f32.mrf.mxu1  ;;  %1987 = vmatpush.bf16.msra.mxu1 %v3193_v38  ;;  %2035 = vmatpush.bf16.msrb.mxu0 %v3341_v51  ;;  %v3748_v38 = vld [vmem:[%s5505_s5 + $0x124] sm:$0xf]  ;;  %v3200_v51 = vld [vmem:[%s5505_s5 + $0x50] sm:$0xf] }
 0x173   : > { %v3847_v63 = vpop.eup %3846 }
 0x174   : > { %v4791_v4 = vadd.f32 1.0, %v3847_v63  ;;  %v3754_v63 = vld [vmem:[%s5505_s5 + $0x154] sm:$0xf]  ;;  %1988 = vmatpush.bf16.msra.mxu1 %v3181_v61 }
 0x175   : > { %v3329_v7 = vor.u32 %v3754_v63, %v3326_v3 }
 0x176   : > { %3848 = vrcp.f32 %v4791_v4  ;;  %v1417_v10 = vpop.f32.mrf.mxu2  ;;  %v1479_v49 = vand.u32 2147483647, %v4791_v4  ;;  %vm1475_vm2 = vweird.f32 %v4791_v4  ;;  %v1481_v18 = vand.u32 2147483648, %v4791_v4 }
 0x177   : > { %v1456_v12 = vpop.f32.mrf.mxu3  ;;  %2036 = vmatpush.bf16.msrb.mxu0 %v3329_v7  ;;  %v3742_v10 = vld [vmem:[%s5505_s5 + $0xf4] sm:$0xf] }
 0x178   : > { %v1402_v17 = vpop.f32.mrf.mxu1  ;;  %vm4897_vm3 = vcmp.eq.f32.partialorder %v1479_v49, 8.507059e+37  ;;  %v1482_v26 = vor.u32 1.1754944e-38, %v1481_v18  ;;  %v3720_v18 = vld [vmem:[%s5505_s5 + $0x40] sm:$0xf0] }
 0x179   : > { %v1403_v23 = vadd.f32 %v1402_v17, %v4702_v14  ;;  %v3735_v14 = vld [vmem:[%s5505_s5 + $0xb8] sm:$0xf0] }
 0x17a   : > { %v3249_v32 = vor.u32 %v3735_v14, %v3248_v56  ;;  %v3751_v17 = vld [vmem:[%s5505_s5 + $0x13c] sm:$0xf] }
 0x17b   : > { %v1416_v31 = vadd.f32 %v4748_v43, %v1403_v23  ;;  %v3314_v23 = vld [vmem:[%s5505_s5 + $0x144] sm:$0xf0] }
 0x17c   : > { %v4850_v37 = vpop.eup %3848  ;;  %2061 = vmatpush.bf16.msra.mxu3 %v3249_v32  ;;  %v3317_v14 = vor.u32 %v3751_v17, %v3314_v23 }
 0x17d   : > { %v1471_v42 = vmul.f32 %v4850_v37, %v4791_v4  ;;  %v3151_v43 = vmul.f32 -1.442695, %v1416_v31  ;;  %vm1476_vm1 = vweird.f32 %v4850_v37  ;;  %v3168_v4 = vld [vmem:[%s5505_s5 + $0x18] sm:$0xf]  ;;  %v3712_v31 = vld [vmem:[%s5505_s5 + $0x4] sm:$0xf] }
 0x17e   : > { %v1441_v50 = vpop.f32.mrf.mxu2  ;;  %vm4908_vm4 = vmor %vm1475_vm2, %vm1476_vm1  ;;  %v3169_v15 = vor.u32 %v3716_v13, %v3168_v4  ;;  %2037 = vmatpush.bf16.msrb.mxu0 %v3317_v14  ;;  %v3763_v13 = vld [vmem:[%s5505_s5 + $0x19c] sm:$0xf]  ;;  %vm1553_vm1 = vcmask 1043456  }
 0x17f   : > { %v1472_v53 = vsub.f32 1.0, %v1471_v42  ;;  %3850 = vpow2.f32 %v3151_v43  ;;  %v1442_v55 = vadd.f32 %v1441_v50, %v4704_v19  ;;  %v3718_v19 = vld [vmem:[%s5505_s5 + $0x34] sm:$0xf]  ;;  %v3305_v42 = vor.u32 %v3748_v38, %v3302_v39  ;;  %v3769_v43 = vld [vmem:[%s5505_s5 + $0x1cc] sm:$0xf] }
 0x180   : > { %v1404_v60 = vpop.f32.mrf.mxu1  ;;  %v3185_v2 = vor.u32 %v3718_v19, %v3182_v62  ;;  %2062 = vmatpush.bf16.msra.mxu3 %v3237_v52  ;;  %1989 = vmatpush.bf16.msra.mxu1 %v3169_v15  ;;  %v3389_v49 = vor.u32 %v3769_v43, %v3386_v44  ;;  %v3771_v50 = vld [vmem:[%s5505_s5 + $0x1d8] sm:$0xf0]  ;;  %v3374_v19 = vld [vmem:[%s5505_s5 + $0x1bc] sm:$0xf0]  ;;  %v3380_v62 = vld [vmem:[%s5505_s5 + $0x1b8] sm:$0xf] }
 0x181   : > { %v1473_v0 = vmul.f32 %v4850_v37, %v1472_v53  ;;  %v1455_v1 = vadd.f32 %v4756_v48, %v1442_v55  ;;  %v3729_v48 = vld [vmem:[%s5505_s5 + $0x88] sm:$0xf0]  ;;  %v3393_v52 = vor.u32 %v3771_v50, %v3392_v46  ;;  %v3723_v53 = vld [vmem:[%s5505_s5 + $0x58] sm:$0xf0]  ;;  %v3290_v55 = vld [vmem:[%s5505_s5 + $0x114] sm:$0xf0] }
 0x182   : > { %2027 = vmatpush.bf16.msrb.mxu2 %v3185_v2  ;;  %v3225_v12 = vor.u32 %v3729_v48, %v3224_v5  ;;  %2038 = vmatpush.bf16.msrb.mxu0 %v3305_v42  ;;  %v3201_v61 = vor.u32 %v3723_v53, %v3200_v51  ;;  %v3768_v2 = vld [vmem:[%s5505_s5 + $0x1c0] sm:$0xf0]  ;;  %v3362_v15 = vld [vmem:[%s5505_s5 + $0x1a4] sm:$0xf0]  ;;  %v3714_v43 = vld [vmem:[%s5505_s5 + $0x10] sm:$0xf0] }
 0x183   : > { %v1474_v9 = vadd.f32 %v4850_v37, %v1473_v0  ;;  %v3152_v11 = vmul.f32 -1.442695, %v1455_v1  ;;  %v3293_v0 = vor.u32 %v3745_v54, %v3290_v55  ;;  %v3377_v1 = vor.u32 %v3766_v58, %v3374_v19  ;;  %v3164_v38 = vld [vmem:[%s5505_s5 + $0x8] sm:$0xf]  ;;  %v3736_v50 = vld [vmem:[%s5505_s5 + $0xc4] sm:$0xf] }
 0x184   : > { %2063 = vmatpush.bf16.msra.mxu3 %v3225_v12  ;;  %1990 = vmatpush.bf16.msra.mxu1 %v3157_v36  ;;  %v3381_v5 = vor.u32 %v3768_v2, %v3380_v62  ;;  %v3365_v17 = vor.u32 %v3763_v13, %v3362_v15  ;;  %v3254_v51 = vld [vmem:[%s5505_s5 + $0xcc] sm:$0xf0] }
 0x185   : > { %v3851_v20 = vpop.eup %3850  ;;  %v1478_v21 = vsel %vm4908_vm4, %v4850_v37, %v1474_v9  ;;  %3852 = vpow2.f32 %v3152_v11  ;;  %v3161_v37 = vor.u32 %v3712_v31, %v3158_v35  ;;  %v3189_v9 = vor.u32 %v3720_v18, %v3188_v6  ;;  %v3278_v11 = vld [vmem:[%s5505_s5 + $0xfc] sm:$0xf0]  ;;  %v3356_v31 = vld [vmem:[%s5505_s5 + $0x188] sm:$0xf] }
 0x186   : > { %v4943_v56 = vadd.f32 1.0, %v3851_v20  ;;  %v1443_v27 = vpop.f32.mrf.mxu2  ;;  %2028 = vmatpush.bf16.msrb.mxu2 %v3173_v22  ;;  %v1483_v32 = vsel %vm4897_vm3, %v1482_v26, %v1478_v21  ;;  %2039 = vmatpush.bf16.msrb.mxu0 %v3293_v0  ;;  %v3281_v4 = vor.u32 %v3742_v10, %v3278_v11  ;;  %v3765_v20 = vld [vmem:[%s5505_s5 + $0x1a8] sm:$0xf0]  ;;  %v3176_v21 = vld [vmem:[%s5505_s5 + $0x20] sm:$0xf]  ;;  %v3257_v54 = vor.u32 %v3736_v50, %v3254_v51 }
 0x187   : > { %v1521_v41 = vmul.f32 %v4958_v34, %v1483_v32  ;;  %v3369_v24 = vor.u32 %v3765_v20, %v3368_v16  ;;  %v3266_v26 = vld [vmem:[%s5505_s5 + $0xe4] sm:$0xf0]  ;;  %v3760_v27 = vld [vmem:[%s5505_s5 + $0x184] sm:$0xf]  ;;  %v3753_v50 = vld [vmem:[%s5505_s5 + $0x148] sm:$0xf0] }
 0x188   : > { %3854 = vrcp.f32 %v4943_v56  ;;  %2064 = vmatpush.bf16.msra.mxu3 %v3213_v28  ;;  %2052 = vmatpush.bf16.msrb.mxu1 %v3389_v49  ;;  %v1494_v63 = vand.u32 2147483647, %v4943_v56  ;;  %v1496_v48 = vand.u32 2147483648, %v4943_v56  ;;  %vm1490_vm8 = vweird.f32 %v4943_v56  ;;  %v1547_v6 = vld [vmem:[%s384_s26] sm:$0x3f] }
 0x189   : > { %v1525_v59 = vsel %vm1524_vm6, %v1521_v41, 0.0  ;;  %v3177_v28 = vor.u32 %v3717_v45, %v3176_v21  ;;  %v3269_v29 = vor.u32 %v3739_v25, %v3266_v26  ;;  %v3353_v36 = vor.u32 %v3760_v27, %v3350_v30  ;;  %v3579_v20 = vld [vmem:[%s5507_s7 + $0x168] sm:$0xf]  ;;  %v3818_v21 = vld [vmem:[%s5507_s7 + $0x170] sm:$0xf0] }
 0x18a   : > { %2029 = vmatpush.bf16.msrb.mxu2 %v3161_v37  ;;  %v1526_v7 = vrot.slane %v1525_v59, 4  ;;  %vm1495_vm10 = vcmp.eq.f32.partialorder %v1494_v63, 8.507059e+37  ;;  %v1497_v14 = vor.u32 1.1754944e-38, %v1496_v48  ;;  %2040 = vmatpush.bf16.msrb.mxu0 %v3281_v4  ;;  %v3762_v37 = vld [vmem:[%s5505_s5 + $0x190] sm:$0xf0]  ;;  %v3165_v49 = vor.u32 %v3714_v43, %v3164_v38 }
 0x18b   : > { %v3853_v40 = vpop.eup %3852  ;;  %v3357_v42 = vor.u32 %v3762_v37, %v3356_v31  ;;  %v1548_v48 = vunpack.c.l.bf16 %v1547_v6  ;;  %v1549_v4 = vunpack.c.h.bf16 %v1547_v6  ;;  %v3793_v45 = vld [vmem:[%s5507_s7 + $0xac] sm:$0xf]  ;;  %v3794_v25 = vld [vmem:[%s5507_s7 + $0xb0] sm:$0xf0]  ;;  %v3332_v31 = vld [vmem:[%s5505_s5 + $0x158] sm:$0xf] }
 0x18c   : > { %v4980_v47 = vadd.f32 1.0, %v3853_v40  ;;  %2065 = vmatpush.bf16.msra.mxu3 %v3201_v61  ;;  %2053 = vmatpush.bf16.msrb.mxu1 %v3377_v1  ;;  %v1527_v32 = vadd.f32 %v1526_v7, %v1525_v59  ;;  %v3473_v37 = vld [vmem:[%s5507_s7 + $0x9c] sm:$0xf0]  ;;  %v3791_v43 = vld [vmem:[%s5507_s7 + $0x98] sm:$0xf0] }
 0x18d   : > { %v3555_v51 = vld [vmem:[%s5507_s7 + $0x138] sm:$0xf]  ;;  %v3785_v6 = vld [vmem:[%s5507_s7 + $0x68] sm:$0xf0] }
 0x18e   : > { %v4997_v57 = vpop.eup %3854  ;;  %3856 = vrcp.f32 %v4980_v47  ;;  %2091 = vmatpush.bf16.msra.mxu2 %v3393_v52  ;;  %v1509_v40 = vand.u32 2147483647, %v4980_v47  ;;  %v1511_v41 = vand.u32 2147483648, %v4980_v47  ;;  %2041 = vmatpush.bf16.msrb.mxu0 %v3269_v29  ;;  %vm1505_vm12 = vweird.f32 %v4980_v47 }
 0x18f   : > { %v1486_v60 = vmul.f32 %v4997_v57, %v4943_v56  ;;  %vm1491_vm7 = vweird.f32 %v4997_v57  ;;  %v1528_v55 = vrot.slane %v1527_v32, 2  ;;  %v3580_v29 = vor.u32 %v3818_v21, %v3579_v20  ;;  %v3744_v20 = vld [vmem:[%s5505_s5 + $0x100] sm:$0xf0] }
 0x190   : > { %2066 = vmatpush.bf16.msra.mxu3 %v3189_v9  ;;  %vm5064_vm9 = vmor %vm1490_vm8, %vm1491_vm7  ;;  %2054 = vmatpush.bf16.msrb.mxu1 %v3365_v17  ;;  %v1512_v58 = vor.u32 1.1754944e-38, %v1511_v41  ;;  %vm1510_vm14 = vcmp.eq.f32.partialorder %v1509_v40, 8.507059e+37  ;;  %v3759_v17 = vld [vmem:[%s5505_s5 + $0x178] sm:$0xf0] }
 0x191   : > { %v1487_v3 = vsub.f32 1.0, %v1486_v60  ;;  %v1529_v62 = vadd.f32 %v1528_v55, %v1527_v32  ;;  %v3756_v32 = vld [vmem:[%s5505_s5 + $0x160] sm:$0xf0] }
 0x192   : > { %2092 = vmatpush.bf16.msra.mxu2 %v3381_v5  ;;  %2042 = vmatpush.bf16.msrb.mxu0 %v3257_v54  ;;  %v3333_v41 = vor.u32 %v3756_v32, %v3332_v31  ;;  %v3461_v54 = vld [vmem:[%s5507_s7 + $0x84] sm:$0xf0]  ;;  %v3775_v32 = vld [vmem:[%s5507_s7 + $0x1c] sm:$0xf] }
 0x193   : > { %v1488_v12 = vmul.f32 %v4997_v57, %v1487_v3  ;;  %v1530_v2 = vrot.slane %v1529_v62, 1 }
 0x194   : > { %v3857_v8 = vpop.eup %3856  ;;  %2067 = vmatpush.bf16.msra.mxu3 %v3177_v28  ;;  %2055 = vmatpush.bf16.msrb.mxu1 %v3353_v36  ;;  %v3790_v36 = vld [vmem:[%s5507_s7 + $0x94] sm:$0xf] }
 0x195   : > { %v1489_v22 = vadd.f32 %v4997_v57, %v1488_v12  ;;  %v1501_v23 = vmul.f32 %v3857_v8, %v4980_v47  ;;  %vm1506_vm11 = vweird.f32 %v3857_v8 }
 0x196   : > { %2093 = vmatpush.bf16.msra.mxu2 %v3369_v24  ;;  %vm1507_vm13 = vmor %vm1505_vm12, %vm1506_vm11  ;;  %v3483_v24 = vld [vmem:[%s5507_s7 + $0xa8] sm:$0xf] }
 0x197   : > { %v1493_v33 = vsel %vm5064_vm9, %v4997_v57, %v1489_v22  ;;  %v1502_v35 = vsub.f32 1.0, %v1501_v23  ;;  %v3485_v22 = vld [vmem:[%s5507_s7 + $0xb4] sm:$0xf0]  ;;  %v2103_v23 = vld [vmem:[%s393_s13] sm:$0xf] }
 0x198   : > { %v1498_v39 = vsel %vm1495_vm10, %v1497_v14, %v1493_v33  ;;  %2068 = vmatpush.bf16.msra.mxu3 %v3165_v49  ;;  %v3488_v30 = vor.u32 %v3793_v45, %v3485_v22  ;;  %v3567_v33 = vld [vmem:[%s5507_s7 + $0x150] sm:$0xf]  ;;  %v3320_v49 = vld [vmem:[%s5505_s5 + $0x140] sm:$0xf]  ;;  %v3778_v45 = vld [vmem:[%s5507_s7 + $0x34] sm:$0xf] }
 0x199   : > { %v1522_v44 = vmul.f32 %v4958_v34, %v1498_v39  ;;  %v1503_v46 = vmul.f32 %v3857_v8, %v1502_v35  ;;  %v3815_v35 = vld [vmem:[%s5507_s7 + $0x158] sm:$0xf0]  ;;  %v3484_v39 = vor.u32 %v3794_v25, %v3483_v24  ;;  %v3425_v22 = vld [vmem:[%s5507_s7 + $0x3c] sm:$0xf0]  ;;  %v3519_v24 = vld [vmem:[%s5507_s7 + $0xf0] sm:$0xf] }
 0x19a   : > { %2094 = vmatpush.bf16.msra.mxu2 %v3357_v42  ;;  %v3471_v42 = vld [vmem:[%s5507_s7 + $0x90] sm:$0xf]  ;;  %v3803_v25 = vld [vmem:[%s5507_s7 + $0xf8] sm:$0xf0] }
 0x19b   : > { %v1532_v52 = vsel %vm1524_vm6, %v1522_v44, 0.0  ;;  %v1504_v53 = vadd.f32 %v3857_v8, %v1503_v46  ;;  %v3568_v44 = vor.u32 %v3815_v35, %v3567_v33  ;;  %v3476_v46 = vor.u32 %v3790_v36, %v3473_v37  ;;  %v3413_v33 = vld [vmem:[%s5507_s7 + $0x24] sm:$0xf0]  ;;  %v3507_v36 = vld [vmem:[%s5507_s7 + $0xd8] sm:$0xf] }
 0x19c   : > { %v1533_v57 = vrot.slane %v1532_v52, 4  ;;  %v3472_v55 = vor.u32 %v3791_v43, %v3471_v42  ;;  %v3520_v31 = vor.u32 %v3803_v25, %v3519_v24  ;;  %v3800_v37 = vld [vmem:[%s5507_s7 + $0xe0] sm:$0xf0]  ;;  %v3260_v42 = vld [vmem:[%s5505_s5 + $0xc8] sm:$0xf] }
 0x19d   : > { %v1508_v59 = vsel %vm1507_vm13, %v3857_v8, %v1504_v53  ;;  %v3344_v8 = vld [vmem:[%s5505_s5 + $0x170] sm:$0xf]  ;;  %v3787_v53 = vld [vmem:[%s5507_s7 + $0x7c] sm:$0xf]  ;;  %v3738_v43 = vld [vmem:[%s5505_s5 + $0xd0] sm:$0xf0] }
 0x19e   : > { %v1534_v60 = vadd.f32 %v1533_v57, %v1532_v52  ;;  %v1513_v61 = vsel %vm1510_vm14, %v1512_v58, %v1508_v59  ;;  %v3345_v56 = vor.u32 %v3759_v17, %v3344_v8  ;;  %v3812_v52 = vld [vmem:[%s5507_s7 + $0x140] sm:$0xf0]  ;;  %v3321_v57 = vor.u32 %v3753_v50, %v3320_v49  ;;  %v3459_v58 = vld [vmem:[%s5507_s7 + $0x78] sm:$0xf]  ;;  %v3401_v49 = vld [vmem:[%s5507_s7 + $0xc] sm:$0xf0] }
 0x19f   : > { %v1523_v19 = vmul.f32 %v4958_v34, %v1513_v61  ;;  %v1531_v34 = vadd.f32 %v1530_v2, %v1529_v62  ;;  %v3788_v59 = vld [vmem:[%s5507_s7 + $0x80] sm:$0xf0]  ;;  %v3464_v61 = vor.u32 %v3787_v53, %v3461_v54  ;;  %v3750_v62 = vld [vmem:[%s5505_s5 + $0x130] sm:$0xf0]  ;;  %v3284_v17 = vld [vmem:[%s5505_s5 + $0xf8] sm:$0xf] }
 0x1a0   : > { %v1535_v63 = vrot.slane %v1534_v60, 2  ;;  %v3460_v2 = vor.u32 %v3788_v59, %v3459_v58  ;;  %v3817_v50 = vld [vmem:[%s5507_s7 + $0x16c] sm:$0xf]  ;;  %v3495_v53 = vld [vmem:[%s5507_s7 + $0xc0] sm:$0xf] }
 0x1a1   : > { %v1540_v47 = vsel %vm1539_vm15, %v1523_v19, 0.0  ;;  %v3308_v19 = vld [vmem:[%s5505_s5 + $0x128] sm:$0xf]  ;;  %v3797_v54 = vld [vmem:[%s5507_s7 + $0xc8] sm:$0xf0] }
 0x1a2   : > { %v1536_v0 = vadd.f32 %v1535_v63, %v1534_v60  ;;  %v1541_v1 = vrot.slane %v1540_v47, 4  ;;  %v3556_v60 = vor.u32 %v3812_v52, %v3555_v51  ;;  %v3543_v63 = vld [vmem:[%s5507_s7 + $0x120] sm:$0xf]  ;;  %v3581_v51 = vld [vmem:[%s5507_s7 + $0x174] sm:$0xf0] }
 0x1a3   : > { %v3819_v58 = vld [vmem:[%s5507_s7 + $0x178] sm:$0xf0]  ;;  %v3399_v59 = vld [vmem:[%s5507_s7] sm:$0xf] }
 0x1a4   : > { %v1537_v3 = vrot.slane %v1536_v0, 1  ;;  %v1542_v5 = vadd.f32 %v1541_v1, %v1540_v47  ;;  %v3809_v47 = vld [vmem:[%s5507_s7 + $0x128] sm:$0xf0]  ;;  %v3449_v1 = vld [vmem:[%s5507_s7 + $0x6c] sm:$0xf0] }
 0x1a6   : > { %v1538_v18 = vadd.f32 %v1537_v3, %v1536_v0  ;;  %v1543_v7 = vrot.slane %v1542_v5, 2  ;;  %v3784_v0 = vld [vmem:[%s5507_s7 + $0x64] sm:$0xf]  ;;  %v3309_v3 = vor.u32 %v3750_v62, %v3308_v19  ;;  %v3584_v19 = vor.u32 %v3817_v50, %v3581_v51  ;;  %v3799_v50 = vld [vmem:[%s5507_s7 + $0xdc] sm:$0xf] }
 0x1a7   : > { %v3496_v62 = vor.u32 %v3797_v54, %v3495_v53  ;;  %v3509_v51 = vld [vmem:[%s5507_s7 + $0xe4] sm:$0xf0]  ;;  %v3801_v53 = vld [vmem:[%s5507_s7 + $0xe8] sm:$0xf0] }
 0x1a8   : > { %v1552_v9 = vrot.slane %v1538_v18, 4  ;;  %v1544_v10 = vadd.f32 %v1543_v7, %v1542_v5  ;;  %v3447_v5 = vld [vmem:[%s5507_s7 + $0x60] sm:$0xf]  ;;  %v3544_v18 = vor.u32 %v3809_v47, %v3543_v63  ;;  %v3452_v7 = vor.u32 %v3784_v0, %v3449_v1  ;;  %v3491_v63 = vld [vmem:[%s5507_s7 + $0xb0] sm:$0xf] }
 0x1a9   : > { %v3795_v47 = vld [vmem:[%s5507_s7 + $0xb8] sm:$0xf0] }
 0x1aa   : > { %v1554_v11 = vsel %vm1553_vm1, %v1531_v34, %v1552_v9  ;;  %v1545_v12 = vrot.slane %v1544_v10, 1  ;;  %v3747_v34 = vld [vmem:[%s5505_s5 + $0x118] sm:$0xf0]  ;;  %v3781_v9 = vld [vmem:[%s5507_s7 + $0x4c] sm:$0xf] }
 0x1ab   : > { %v1556_v13 = vmul.f32 %v1554_v11, %v1548_v48  ;;  %v3296_v48 = vld [vmem:[%s5505_s5 + $0x110] sm:$0xf]  ;;  %v3448_v11 = vor.u32 %v3785_v6, %v3447_v5  ;;  %v3575_v5 = vld [vmem:[%s5507_s7 + $0x158] sm:$0xf]  ;;  %v3816_v6 = vld [vmem:[%s5507_s7 + $0x160] sm:$0xf0] }
 0x1ac   : > { %v1546_v15 = vadd.f32 %v1545_v12, %v1544_v10  ;;  %v3437_v10 = vld [vmem:[%s5507_s7 + $0x54] sm:$0xf0]  ;;  %v3531_v12 = vld [vmem:[%s5507_s7 + $0x108] sm:$0xf] }
 0x1ad   : > { %1560 = vst [vmem:[#allocation1] ss:$2 sm:$0xff] %v1556_v13  ;;  %v3297_v13 = vor.u32 %v3747_v34, %v3296_v48  ;;  %v3440_v8 = vor.u32 %v3781_v9, %v3437_v10  ;;  %v3792_v34 = vld [vmem:[%s5507_s7 + $0xa0] sm:$0xf0]  ;;  %v3811_v9 = vld [vmem:[%s5507_s7 + $0x13c] sm:$0xf] }
 0x1ae   : > { %v1557_v16 = vmul.f32 %v1549_v4, %v1546_v15  ;;  %v3806_v4 = vld [vmem:[%s5507_s7 + $0x110] sm:$0xf0]  ;;  %v3435_v15 = vld [vmem:[%s5507_s7 + $0x48] sm:$0xf] }
 0x1af   : > { %v3532_v21 = vor.u32 %v3806_v4, %v3531_v12  ;;  %v3557_v10 = vld [vmem:[%s5507_s7 + $0x144] sm:$0xf0]  ;;  %v3576_v12 = vor.u32 %v3816_v6, %v3575_v5  ;;  %v3563_v4 = vld [vmem:[%s5507_s7 + $0x140] sm:$0xf] }
 0x1b0   : > { %1562 = vst [vmem:[#allocation1 + $0x10] ss:$2 sm:$0xff] %v1557_v16  ;;  %v3782_v16 = vld [vmem:[%s5507_s7 + $0x50] sm:$0xf0]  ;;  %v1652_v5 = vld [vmem:[%s5506_s6] sm:$0x7] }
 0x1b4   : > { %v1563_v26 = vld.sshfl [vmem:[#allocation1] sm:$0xff pattern:$0x75316420]  ;;  %v1564_v27 = vld.sshfl [vmem:[#allocation1 + $0x8] sm:$0xff pattern:$0x75316420] }
 0x1b5   : > { %v5138_v14 = vpack.c.bf16 %v1563_v26, %v1563_v26  ;;  %v5140_v28 = vpack.c.bf16 %v1564_v27, %v1564_v27  ;;  %v3285_v26 = vor.u32 %v3744_v20, %v3284_v17  ;;  %v3423_v27 = vld [vmem:[%s5507_s7 + $0x30] sm:$0xf]  ;;  %v3789_v17 = vld [vmem:[%s5507_s7 + $0x88] sm:$0xf0] }
 0x1b7   : > { %1991 = vmatmul.bf16.vlgmr.msra.gmra.mxu1 %v5138_v14  ;;  %2004 = vmatmul.bf16.vlgmr.msrb.gmra.mxu3 %v5140_v28  ;;  %v1565_v38 = vld.sshfl [vmem:[#allocation1 + $0x10] sm:$0xff pattern:$0x75316420] }
 0x1b8   : > { %2030 = vmatmul.bf16.vlgmr.msrb.gmra.mxu2 %v5138_v14  ;;  %2074 = vmatpush.bf16.msra.mxu1 %v3345_v56  ;;  %v5163_v40 = vpack.c.bf16 %v1565_v38, %v1565_v38  ;;  %2177 = vst [vmem:[#allocation1] ss:$4 sm:$0xff] %v2103_v23  ;;  %v3436_v23 = vor.u32 %v3782_v16, %v3435_v15  ;;  %v3779_v56 = vld [vmem:[%s5507_s7 + $0x38] sm:$0xf0]  ;;  %v3813_v15 = vld [vmem:[%s5507_s7 + $0x148] sm:$0xf0] }
 0x1b9   : > { %2451 = vmatpush.bf16.msrb.mxu2 %v3580_v29  ;;  %2464 = vmatpush.bf16.msrb.mxu3 %v3488_v30  ;;  %v3428_v29 = vor.u32 %v3778_v45, %v3425_v22  ;;  %v3272_v30 = vld [vmem:[%s5505_s5 + $0xe0] sm:$0xf]  ;;  %v3424_v35 = vor.u32 %v3779_v56, %v3423_v27  ;;  %v3564_v20 = vor.u32 %v3813_v15, %v3563_v4  ;;  %v3545_v45 = vld [vmem:[%s5507_s7 + $0x12c] sm:$0xf0]  ;;  %v3551_v22 = vld [vmem:[%s5507_s7 + $0x128] sm:$0xf] }
 0x1ba   : > { %3394 = vmatmul.msk.bf16.vlgmr.msra.gmra.mxu0 %vm812_vm0, %v5163_v40  ;;  %v3786_v27 = vld [vmem:[%s5507_s7 + $0x70] sm:$0xf0] }
 0x1bb   : > { %2438 = vmatpush.bf16.msra.mxu0 %v3484_v39  ;;  %v3411_v39 = vld [vmem:[%s5507_s7 + $0x18] sm:$0xf] }
 0x1bc   : > { %2075 = vmatpush.bf16.msra.mxu1 %v3333_v41  ;;  %v3416_v41 = vor.u32 %v3775_v32, %v3413_v33 }
 0x1bd   : > { %2452 = vmatpush.bf16.msrb.mxu2 %v3568_v44  ;;  %2465 = vmatpush.bf16.msrb.mxu3 %v3476_v46  ;;  %v3772_v44 = vld [vmem:[%s5507_s7 + $0x4] sm:$0xf]  ;;  %v3508_v46 = vor.u32 %v3800_v37, %v3507_v36  ;;  %v3783_v36 = vld [vmem:[%s5507_s7 + $0x58] sm:$0xf0] }
 0x1bf   : > { %2439 = vmatpush.bf16.msra.mxu0 %v3472_v55  ;;  %v3587_v55 = vld [vmem:[%s5507_s7 + $0x170] sm:$0xf] }
 0x1c0   : > { %2076 = vmatpush.bf16.msra.mxu1 %v3321_v57  ;;  %v3261_v57 = vor.u32 %v3738_v43, %v3260_v42  ;;  %v3588_v0 = vor.u32 %v3819_v58, %v3587_v55  ;;  %v3512_v55 = vor.u32 %v3799_v50, %v3509_v51  ;;  %v3777_v58 = vld [vmem:[%s5507_s7 + $0x28] sm:$0xf0] }
 0x1c1   : > { %2453 = vmatpush.bf16.msrb.mxu2 %v3556_v60  ;;  %2466 = vmatpush.bf16.msrb.mxu3 %v3464_v61  ;;  %v3773_v60 = vld [vmem:[%s5507_s7 + $0x8] sm:$0xf0]  ;;  %v3404_v61 = vor.u32 %v3772_v44, %v3401_v49  ;;  %v3431_v44 = vld [vmem:[%s5507_s7 + $0x38] sm:$0xf] }
 0x1c2   : > { %v3400_v1 = vor.u32 %v3773_v60, %v3399_v59  ;;  %v3796_v60 = vld [vmem:[%s5507_s7 + $0xc4] sm:$0xf] }
 0x1c3   : > { %2440 = vmatpush.bf16.msra.mxu0 %v3460_v2  ;;  %v3814_v2 = vld [vmem:[%s5507_s7 + $0x154] sm:$0xf] }
 0x1c4   : > { %2077 = vmatpush.bf16.msra.mxu1 %v3309_v3  ;;  %v3569_v3 = vld [vmem:[%s5507_s7 + $0x15c] sm:$0xf0] }
 0x1c5   : > { %2454 = vmatpush.bf16.msrb.mxu2 %v3544_v18  ;;  %2467 = vmatpush.bf16.msrb.mxu3 %v3452_v7  ;;  %v3492_v18 = vor.u32 %v3795_v47, %v3491_v63  ;;  %v3479_v7 = vld [vmem:[%s5507_s7 + $0x98] sm:$0xf]  ;;  %v3572_v48 = vor.u32 %v3814_v2, %v3569_v3 }
 0x1c6   : > { %v3480_v16 = vor.u32 %v3792_v34, %v3479_v7 }
 0x1c7   : > { %2441 = vmatpush.bf16.msra.mxu0 %v3448_v11  ;;  %3395 = vmatmul.msk.bf16.vlgmr.msrb.gmra.mxu1 %vm812_vm0, %v5163_v40  ;;  %v5365_v11 = vld.sshfl [vmem:[#allocation1] sm:$0xff pattern:$0x73625140] }
 0x1c8   : > { %2069 = vmatmul.bf16.vlgmr.msra.gmra.mxu3 %v5138_v14  ;;  %2078 = vmatpush.bf16.msra.mxu1 %v3297_v13  ;;  %v3741_v14 = vld [vmem:[%s5505_s5 + $0xe8] sm:$0xf0]  ;;  %v5371_v13 = vld.sshfl [vmem:[#allocation1 + $0x8] sm:$0xff pattern:$0x73625140] }
 0x1c9   : > { %3396 = vmatmul.msk.bf16.vlgmr.msra.gmra.mxu2 %vm812_vm0, %v5163_v40  ;;  %2468 = vmatpush.bf16.msrb.mxu3 %v3440_v8  ;;  %v3273_v38 = vor.u32 %v3741_v14, %v3272_v30  ;;  %v3776_v40 = vld [vmem:[%s5507_s7 + $0x20] sm:$0xf0]  ;;  %v3560_v8 = vor.u32 %v3811_v9, %v3557_v10  ;;  %v3533_v30 = vld [vmem:[%s5507_s7 + $0x114] sm:$0xf0]  ;;  %v3539_v14 = vld [vmem:[%s5507_s7 + $0x110] sm:$0xf] }
 0x1ca   : > { %2455 = vmatpush.bf16.msrb.mxu2 %v3532_v21  ;;  %2043 = vmatmul.bf16.vlgmr.msrb.gmra.mxu0 %v5140_v28  ;;  %v3412_v52 = vor.u32 %v3776_v40, %v3411_v39  ;;  %v3808_v21 = vld [vmem:[%s5507_s7 + $0x124] sm:$0xf]  ;;  %v3521_v39 = vld [vmem:[%s5507_s7 + $0xfc] sm:$0xf0]  ;;  %v3527_v40 = vld [vmem:[%s5507_s7 + $0xf8] sm:$0xf] }
 0x1cb   : > { %2442 = vmatpush.bf16.msra.mxu0 %v3436_v23  ;;  %v3810_v23 = vld [vmem:[%s5507_s7 + $0x130] sm:$0xf0]  ;;  %v3548_v25 = vor.u32 %v3808_v21, %v3545_v45  ;;  %vm2535_vm0 = vcmask 1045508  }
 0x1cc   : > { %2079 = vmatpush.bf16.msra.mxu1 %v3285_v26  ;;  %v3455_v26 = vld [vmem:[%s5507_s7 + $0x68] sm:$0xf]  ;;  %v3552_v56 = vor.u32 %v3810_v23, %v3551_v22 }
 0x1cd   : > { %2469 = vmatpush.bf16.msrb.mxu3 %v3428_v29  ;;  %v3805_v29 = vld [vmem:[%s5507_s7 + $0x10c] sm:$0xf]  ;;  %v3456_v32 = vor.u32 %v3786_v27, %v3455_v26 }
 0x1ce   : > { %2456 = vmatpush.bf16.msrb.mxu2 %v3520_v31  ;;  %v3807_v31 = vld [vmem:[%s5507_s7 + $0x118] sm:$0xf0]  ;;  %v3536_v33 = vor.u32 %v3805_v29, %v3533_v30 }
 0x1cf   : > { %2443 = vmatpush.bf16.msra.mxu0 %v3424_v35  ;;  %v3443_v35 = vld [vmem:[%s5507_s7 + $0x50] sm:$0xf]  ;;  %v3540_v37 = vor.u32 %v3807_v31, %v3539_v14  ;;  %v2168_v14 = vld [vmem:[%s5508_s8] sm:$0x7]  ;;  %v1655_v31 = vperm.slane %v1652_v5, 1 }
 0x1d0   : > { %2080 = vmatpush.bf16.msra.mxu1 %v3273_v38  ;;  %v3802_v38 = vld [vmem:[%s5507_s7 + $0xf4] sm:$0xf]  ;;  %v3444_v42 = vor.u32 %v3783_v36, %v3443_v35 }
 0x1d1   : > { %2470 = vmatpush.bf16.msrb.mxu3 %v3416_v41  ;;  %v3804_v41 = vld [vmem:[%s5507_s7 + $0x100] sm:$0xf0]  ;;  %v3524_v43 = vor.u32 %v3802_v38, %v3521_v39  ;;  %v1656_v38 = vperm.slane %v1652_v5, 2 }
 0x1d2   : > { %2457 = vmatpush.bf16.msrb.mxu2 %v3508_v46  ;;  %v3780_v46 = vld [vmem:[%s5507_s7 + $0x40] sm:$0xf0]  ;;  %v3528_v49 = vor.u32 %v3804_v41, %v3527_v40 }
 0x1d3   : > { %2444 = vmatpush.bf16.msra.mxu0 %v3412_v52  ;;  %v3515_v52 = vld [vmem:[%s5507_s7 + $0xe0] sm:$0xf]  ;;  %v3432_v54 = vor.u32 %v3780_v46, %v3431_v44  ;;  %v2172_v44 = vperm.slane %v2168_v14, 2 }
 0x1d4   : > { %2081 = vmatpush.bf16.msra.mxu1 %v3261_v57  ;;  %v3419_v57 = vld [vmem:[%s5507_s7 + $0x20] sm:$0xf]  ;;  %v3516_v59 = vor.u32 %v3801_v53, %v3515_v52 }
 0x1d5   : > { %2471 = vmatpush.bf16.msrb.mxu3 %v3404_v61  ;;  %v3497_v61 = vld [vmem:[%s5507_s7 + $0xcc] sm:$0xf0]  ;;  %v3420_v63 = vor.u32 %v3777_v58, %v3419_v57 }
 0x1d6   : > { %2458 = vmatpush.bf16.msrb.mxu2 %v3496_v62  ;;  %v3798_v62 = vld [vmem:[%s5507_s7 + $0xd0] sm:$0xf0]  ;;  %v3500_v47 = vor.u32 %v3796_v60, %v3497_v61 }
 0x1d7   : > { %2445 = vmatpush.bf16.msra.mxu0 %v3400_v1  ;;  %2082 = vmatmul.bf16.vlgmr.msra.gmra.mxu1 %v5140_v28  ;;  %v3467_v28 = vld [vmem:[%s5507_s7 + $0x80] sm:$0xf]  ;;  %v3774_v1 = vld [vmem:[%s5507_s7 + $0x10] sm:$0xf0] }
 0x1d8   : > { %2477 = vmatpush.bf16.msrb.mxu1 %v3584_v19  ;;  %2472 = vmatmul.bf16.vlgmr.msrb.gmra.mxu3 %v5365_v11  ;;  %v3468_v24 = vor.u32 %v3789_v17, %v3467_v28  ;;  %v3503_v19 = vld [vmem:[%s5507_s7 + $0xc8] sm:$0xf] }
 0x1d9   : > { %2459 = vmatmul.bf16.vlgmr.msrb.gmra.mxu2 %v5371_v13  ;;  %v3504_v2 = vor.u32 %v3798_v62, %v3503_v19 }
 0x1da   : > { %2503 = vmatpush.bf16.msra.mxu2 %v3588_v0  ;;  %2446 = vmatmul.bf16.vlgmr.msra.gmra.mxu0 %v5365_v11  ;;  %v3407_v0 = vld [vmem:[%s5507_s7 + $0x8] sm:$0xf] }
 0x1db   : > { %2490 = vmatpush.bf16.msrb.mxu0 %v3492_v18  ;;  %v3408_v3 = vor.u32 %v3774_v1, %v3407_v0  ;;  %v1654_v18 = vperm.slane %v1652_v5, 0 }
 0x1dc   : > { %2478 = vmatpush.bf16.msrb.mxu1 %v3572_v48 }
 0x1de   : > { %2504 = vmatpush.bf16.msra.mxu2 %v3576_v12 }
 0x1df   : > { %2491 = vmatpush.bf16.msrb.mxu0 %v3480_v16 }
 0x1e0   : > { %2479 = vmatpush.bf16.msrb.mxu1 %v3560_v8 }
 0x1e2   : > { %2505 = vmatpush.bf16.msra.mxu2 %v3564_v20 }
 0x1e3   : > { %2492 = vmatpush.bf16.msrb.mxu0 %v3468_v24 }
 0x1e4   : > { %2480 = vmatpush.bf16.msrb.mxu1 %v3548_v25 }
 0x1e6   : > { %2506 = vmatpush.bf16.msra.mxu2 %v3552_v56 }
 0x1e7   : > { %2493 = vmatpush.bf16.msrb.mxu0 %v3456_v32  ;;  %v2170_v32 = vperm.slane %v2168_v14, 0 }
 0x1e8   : > { %2481 = vmatpush.bf16.msrb.mxu1 %v3536_v33 }
 0x1ea   : > { %2507 = vmatpush.bf16.msra.mxu2 %v3540_v37  ;;  %v2171_v37 = vperm.slane %v2168_v14, 1 }
 0x1eb   : > { %2494 = vmatpush.bf16.msrb.mxu0 %v3444_v42 }
 0x1ec   : > { %2482 = vmatpush.bf16.msrb.mxu1 %v3524_v43 }
 0x1ee   : > { %2508 = vmatpush.bf16.msra.mxu2 %v3528_v49 }
 0x1ef   : > { %2495 = vmatpush.bf16.msrb.mxu0 %v3432_v54 }
 0x1f0   : > { %2483 = vmatpush.bf16.msrb.mxu1 %v3512_v55 }
 0x1f2   : > { %2509 = vmatpush.bf16.msra.mxu2 %v3516_v59 }
 0x1f3   : > { %2496 = vmatpush.bf16.msrb.mxu0 %v3420_v63 }
 0x1f4   : > { %2484 = vmatpush.bf16.msrb.mxu1 %v3500_v47 }
 0x1f6   : > { %2510 = vmatpush.bf16.msra.mxu2 %v3504_v2 }
 0x1f7   : > { %2485 = vmatmul.bf16.vlgmr.msrb.gmra.mxu1 %v5371_v13  ;;  %2497 = vmatpush.bf16.msrb.mxu0 %v3408_v3 }
 0x1f9   : > { %2511 = vmatmul.bf16.vlgmr.msra.gmra.mxu2 %v5371_v13 }
 0x1fa   : > { %2498 = vmatmul.bf16.vlgmr.msrb.gmra.mxu0 %v5365_v11 }
 0x234   : > { %v1992_v6 = vpop.f32.mrf.mxu1 }
 0x235   : > { %v1993_v48 = vadd.f32 %v1992_v6, %v1654_v18 }
 0x237   : > { %v2018_v7 = vpop.f32.mrf.mxu0 }
 0x23a   : > { %v2005_v34 = vpop.f32.mrf.mxu3 }
 0x23b   : > { %v2006_v9 = vadd.f32 %v2005_v34, %v1993_v48  ;;  %v2031_v10 = vpop.f32.mrf.mxu2 }
 0x23c   : > { %v1994_v12 = vpop.f32.mrf.mxu1  ;;  %v2032_v33 = vadd.f32 %v2031_v10, %v1655_v31 }
 0x23d   : > { %v2019_v4 = vadd.f32 %v2018_v7, %v2006_v9 }
 0x23f   : > { %v2020_v15 = vpop.f32.mrf.mxu0  ;;  %v2100_v54 = vmax.f32 %v2019_v4, 0.0 }
 0x242   : > { %v2007_v16 = vpop.f32.mrf.mxu3 }
 0x243   : > { %v2033_v8 = vpop.f32.mrf.mxu2 }
 0x244   : > { %v2057_v28 = vpop.f32.mrf.mxu1 }
 0x247   : > { %v2044_v13 = vpop.f32.mrf.mxu0 }
 0x248   : > { %v2045_v36 = vadd.f32 %v2044_v13, %v2032_v33 }
 0x24a   : > { %v2058_v40 = vadd.f32 %v2057_v28, %v2045_v36 }
 0x24b   : > { %v2070_v17 = vpop.f32.mrf.mxu3 }
 0x24c   : > { %v2096_v11 = vpop.f32.mrf.mxu2  ;;  %v2059_v20 = vpop.f32.mrf.mxu1  ;;  %v2071_v42 = vadd.f32 %v2070_v17, %v1656_v38  ;;  %v2101_v51 = vmax.f32 %v2058_v40, 0.0 }
 0x24f   : > { %v2046_v21 = vpop.f32.mrf.mxu0 }
 0x253   : > { %v2072_v45 = vpop.f32.mrf.mxu3 }
 0x254   : > { %v2098_v22 = vpop.f32.mrf.mxu2  ;;  %v2083_v23 = vpop.f32.mrf.mxu1 }
 0x255   : > { %v2084_v49 = vadd.f32 %v2083_v23, %v2071_v42 }
 0x257   : > { %v2447_v24 = vpop.f32.mrf.mxu0  ;;  %v2097_v58 = vadd.f32 %v2096_v11, %v2084_v49 }
 0x258   : > { %v2448_v35 = vadd.f32 %v2447_v24, %v2170_v32 }
 0x259   : > { %v2102_v63 = vmax.f32 %v2097_v58, 0.0 }
 0x25b   : > { %v2473_v25 = vpop.f32.mrf.mxu3 }
 0x25c   : > { %v2460_v26 = vpop.f32.mrf.mxu2  ;;  %v2085_v27 = vpop.f32.mrf.mxu1  ;;  %v2474_v41 = vadd.f32 %v2473_v25, %v2171_v37 }
 0x25d   : > { %v2461_v39 = vadd.f32 %v2460_v26, %v2448_v35 }
 0x25f   : > { %v2449_v56 = vpop.f32.mrf.mxu0  ;;  %v2516_v50 = vmax.f32 %v2461_v39, 0.0 }
 0x261   : > { %v2519_v59 = vadd.f32 %v2516_v50, %v2100_v54 }
 0x263   : > { %v2475_v29 = vpop.f32.mrf.mxu3  ;;  %v2522_v47 = vmax.f32 %v2519_v59, 0.0 }
 0x264   : > { %v2462_v30 = vpop.f32.mrf.mxu2 }
 0x274   : > { %v2486_v43 = vpop.f32.mrf.mxu1 }
 0x275   : > { %v2487_v46 = vadd.f32 %v2486_v43, %v2474_v41 }
 0x277   : > { %v2517_v52 = vmax.f32 %v2487_v46, 0.0  ;;  %v2499_v53 = vpop.f32.mrf.mxu0 }
 0x278   : > { %v2500_v55 = vadd.f32 %v2499_v53, %v2172_v44 }
 0x279   : > { %v2520_v57 = vadd.f32 %v2517_v52, %v2101_v51 }
 0x27b   : > { %v2523_v61 = vmax.f32 %v2520_v57, 0.0 }
 0x27c   : > { %v2512_v60 = vpop.f32.mrf.mxu2  ;;  %v2488_v62 = vpop.f32.mrf.mxu1 }
 0x27d   : > { %v2513_v19 = vadd.f32 %v2512_v60, %v2500_v55  ;;  %v2525_v2 = vpack.c.bf16 %v2523_v61, %v2522_v47 }
 0x27f   : > { %v2518_v0 = vmax.f32 %v2513_v19, 0.0  ;;  %v2501_v1 = vpop.f32.mrf.mxu0  ;;  %v2529_v18 = vrot.slane %v2525_v2, 2 }
 0x281   : > { %v2521_v3 = vadd.f32 %v2518_v0, %v2102_v63  ;;  %v2534_v9 = vsel %vm1524_vm6, %v2525_v2, %v2529_v18 }
 0x283   : > { %v2524_v5 = vmax.f32 %v2521_v3, 0.0 }
 0x284   : > { %v2514_v6 = vpop.f32.mrf.mxu2 }
 0x285   : > { %v2526_v7 = vpack.c.bf16 %v2524_v5, %v2524_v5 }
 0x287   : > { %v2530_v48 = vrot.slane %v2526_v7, 4  ;;  %v2531_v34 = vrot.slane %v2526_v7, 6 }
 0x289   : > { %v2538_v10 = vsel %vm2535_vm0, %v2530_v48, %v2531_v34 }
 0x28a   : > { %v2539_v12 = vsel %vm1553_vm1, %v2534_v9, %v2538_v10 }
 0x28b   : > { %2541 = vst [vmem:[%s402_s20] sm:$0x3f] %v2539_v12 }
 0x28c PF: > { %s19_s11 = sadd.s32 1, %s3880_s11   ;;  %s5518_s30 = smov %s3876_s10 }
 0x28d   : > { %p16_p5 = scmp.ge.s32.totalorder %s19_s11, 4   ;;  %s5519_s10 = smov %s5521_s12 }
 0x28f   :  { %18 = sbr.rel (!%p16_p5) target bundleno = 2 (0x2), region = 90 }

</bundles_post_ra>
